<compile_context>
chip_gen: v6e
topology: v6e:2x2x1
jax: 0.10.0
libtpu: 0.0.40
codegen_flags: <defaults>
</compile_context>

<pallas_src>
import math

import jax
import jax.numpy as jnp
from jax.experimental import pallas as pl
from jax.experimental.pallas import tpu as pltpu


_VMEM_LIMIT = 32 * 1024 * 1024
B_BLK = 8  # images per conv grid step (multiple of 8 keeps blocks sublane-aligned)


def _round_up(a, b):
    return ((a + b - 1) // b) * b


# ----------------------------------------------------------------------------
# Fused conv3x3(pad=1) + bias + ReLU + maxpool(2,2) kernel (B_BLK images/step)
# ----------------------------------------------------------------------------
def _conv_qmax_kernel(x_ref, w_ref, b_ref, o_ref):
    """x_ref : (4, B_BLK*Ho*Wo, 9*Cin) bf16 -- im2col patches, one dense slab per
               2x2 pooling-window quadrant (quadrant-major).
       w_ref : (9*Cin, Cout) bf16 packed conv weights.
       b_ref : (1, Cout) f32 bias.
       o_ref : (B_BLK*Ho*Wo, Cout) bf16 pooled output (dense store)."""
    w = w_ref[...]
    acc = jnp.dot(x_ref[0], w, preferred_element_type=jnp.float32)
    for q in range(1, 4):                       # max over the 2x2 pool window
        acc = jnp.maximum(acc, jnp.dot(x_ref[q], w,
                                       preferred_element_type=jnp.float32))
    o_ref[...] = jnp.maximum(acc + b_ref[...], 0.0).astype(o_ref.dtype)


def _conv_relu_pool(x_nhwc, w_packed, b_row):
    """(N, H, W, Cin) bf16 -> pooled conv output (N, H//2, W//2, Cout) bf16.
    N must be a multiple of B_BLK (forward pads the batch once)."""
    N, H, W, Cin = x_nhwc.shape
    K, Cout = w_packed.shape                    # K = 9 * Cin
    Ho, Wo = H // 2, W // 2
    M_img = Ho * Wo

    # Wrapper-side im2col restricted to the positions floor-pooling reads,
    # grouped quadrant-major so the kernel's pool-max is over 4 dense slabs.
    xp = jnp.pad(x_nhwc, ((0, 0), (1, 1), (1, 1), (0, 0)))
    taps = [xp[:, kh:kh + H, kw:kw + W, :] for kh in range(3) for kw in range(3)]
    pat = jnp.concatenate(taps, axis=-1)                    # (N, H, W, 9*Cin)
    pat = pat[:, :2 * Ho, :2 * Wo, :]                       # drop unread border (odd H/W)
    pat = pat.reshape(N, Ho, 2, Wo, 2, K)
    pat = jnp.transpose(pat, (2, 4, 0, 1, 3, 5))            # (dh, dw, N, Ho, Wo, K)
    pat = pat.reshape(4, N * M_img, K)

    out = pl.pallas_call(
        _conv_qmax_kernel,
        out_shape=jax.ShapeDtypeStruct((N * M_img, Cout), jnp.bfloat16),
        grid=(N // B_BLK,),
        in_specs=[
            pl.BlockSpec((4, B_BLK * M_img, K), lambda n: (0, n, 0)),
            pl.BlockSpec((K, Cout), lambda n: (0, 0)),       # weights stay resident
            pl.BlockSpec((1, Cout), lambda n: (0, 0)),
        ],
        out_specs=pl.BlockSpec((B_BLK * M_img, Cout), lambda n: (n, 0)),
        compiler_params=pltpu.CompilerParams(
            dimension_semantics=("parallel",),
            vmem_limit_bytes=_VMEM_LIMIT),
    )(pat, w_packed, b_row)
    return out.reshape(N, Ho, Wo, Cout)


# ----------------------------------------------------------------------------
# Fused fc1 (+ReLU) + fc2 kernel, tiled over batch rows
# ----------------------------------------------------------------------------
def _fc_fused_kernel(x_ref, w1_ref, b1_ref, w2_ref, b2_ref, o_ref):
    h = jnp.dot(x_ref[...], w1_ref[...], preferred_element_type=jnp.float32)
    h = jnp.maximum(h + b1_ref[...], 0.0).astype(jnp.bfloat16)
    y = jnp.dot(h, w2_ref[...], preferred_element_type=jnp.float32)
    o_ref[...] = (y + b2_ref[...]).astype(o_ref.dtype)


def _fc_fused(x2d, w1, b1, w2, b2):
    N, K = x2d.shape
    H1 = w1.shape[1]
    C = w2.shape[1]
    bn = math.gcd(N, 128)                       # N is a multiple of 8 -> bn in [8,128]
    return pl.pallas_call(
        _fc_fused_kernel,
        out_shape=jax.ShapeDtypeStruct((N, C), jnp.float32),
        grid=(N // bn,),
        in_specs=[
            pl.BlockSpec((bn, K), lambda i: (i, 0)),
            pl.BlockSpec((K, H1), lambda i: (0, 0)),
            pl.BlockSpec((1, H1), lambda i: (0, 0)),
            pl.BlockSpec((H1, C), lambda i: (0, 0)),
            pl.BlockSpec((1, C), lambda i: (0, 0)),
        ],
        out_specs=pl.BlockSpec((bn, C), lambda i: (i, 0)),
        compiler_params=pltpu.CompilerParams(
            dimension_semantics=("parallel",),
            vmem_limit_bytes=_VMEM_LIMIT),
    )(x2d, w1, b1, w2, b2)


# ----------------------------------------------------------------------------
# Parameters
# ----------------------------------------------------------------------------
def init_params(key, num_classes):
    """Deterministic parameter init matching the PyTorch module's shapes."""
    ks = jax.random.split(key, 10)

    def conv_w(k, cout, cin):
        fan_in = cin * 9
        return jax.random.uniform(k, (cout, cin, 3, 3), jnp.float32, -1.0, 1.0) / jnp.sqrt(fan_in)

    def lin_w(k, cout, cin):
        return jax.random.uniform(k, (cout, cin), jnp.float32, -1.0, 1.0) / jnp.sqrt(cin)

    return {
        "conv1_w": conv_w(ks[0], 32, 1),
        "conv1_b": jax.random.uniform(ks[1], (32,), jnp.float32, -0.1, 0.1),
        "conv2_w": conv_w(ks[2], 64, 32),
        "conv2_b": jax.random.uniform(ks[3], (64,), jnp.float32, -0.1, 0.1),
        "conv3_w": conv_w(ks[4], 128, 64),
        "conv3_b": jax.random.uniform(ks[5], (128,), jnp.float32, -0.1, 0.1),
        "fc1_w": lin_w(ks[6], 128, 128 * 3 * 3),      # (out, in) like nn.Linear
        "fc1_b": jax.random.uniform(ks[7], (128,), jnp.float32, -0.1, 0.1),
        "fc2_w": lin_w(ks[8], num_classes, 128),
        "fc2_b": jax.random.uniform(ks[9], (num_classes,), jnp.float32, -0.1, 0.1),
    }


def prepare_params(params):
    """One-time repack into kernel-friendly layouts (hoisted out of forward)."""
    def pack_conv(w):                       # (Cout,Cin,3,3) -> (9*Cin, Cout), tap-major
        cout, cin = w.shape[0], w.shape[1]
        return jnp.transpose(w, (2, 3, 1, 0)).reshape(9 * cin, cout).astype(jnp.bfloat16)

    def pack_fc1(w):                        # rows permuted from NCHW to NHWC flatten order
        out_f, in_f = w.shape               # (128, 1152), in-index = c*9 + h*3 + w
        w = w.reshape(out_f, 128, 3, 3)     # (out, c, h, w)
        w = jnp.transpose(w, (2, 3, 1, 0))  # (h, w, c, out)
        return w.reshape(in_f, out_f).astype(jnp.bfloat16)   # row = (h*3+w)*128 + c

    return {
        "conv1_w": pack_conv(params["conv1_w"]),
        "conv1_b": params["conv1_b"].reshape(1, -1).astype(jnp.float32),
        "conv2_w": pack_conv(params["conv2_w"]),
        "conv2_b": params["conv2_b"].reshape(1, -1).astype(jnp.float32),
        "conv3_w": pack_conv(params["conv3_w"]),
        "conv3_b": params["conv3_b"].reshape(1, -1).astype(jnp.float32),
        "fc1_w": pack_fc1(params["fc1_w"]),                                 # (1152, 128)
        "fc1_b": params["fc1_b"].reshape(1, -1).astype(jnp.float32),
        "fc2_w": jnp.transpose(params["fc2_w"]).astype(jnp.bfloat16),       # (128, classes)
        "fc2_b": params["fc2_b"].reshape(1, -1).astype(jnp.float32),
    }


# ----------------------------------------------------------------------------
# Forward
# ----------------------------------------------------------------------------
def cnn_forward(prepared, x_nchw):
    """x: (N, 1, 28, 28) NCHW -> logits (N, num_classes)."""
    N = x_nchw.shape[0]
    x = jnp.transpose(x_nchw, (0, 2, 3, 1)).astype(jnp.bfloat16)          # NHWC bf16
    Np = _round_up(max(N, B_BLK), B_BLK)                                  # pad batch once
    if Np != N:
        x = jnp.pad(x, ((0, Np - N), (0, 0), (0, 0), (0, 0)))
    x = _conv_relu_pool(x, prepared["conv1_w"], prepared["conv1_b"])      # (Np,14,14, 32)
    x = _conv_relu_pool(x, prepared["conv2_w"], prepared["conv2_b"])      # (Np, 7, 7, 64)
    x = _conv_relu_pool(x, prepared["conv3_w"], prepared["conv3_b"])      # (Np, 3, 3,128)
    x2d = x.reshape(Np, 3 * 3 * 128)           # NHWC flatten; fc1_w rows already permuted
    logits = _fc_fused(x2d, prepared["fc1_w"], prepared["fc1_b"],
                       prepared["fc2_w"], prepared["fc2_b"])
    return logits[:N]


# ----------------------------------------------------------------------------
# Pure-JAX float32 reference (sanity check of the bf16 Pallas path)
# ----------------------------------------------------------------------------
def _reference_forward(params, x_nchw):
    def im2col(x):
        N, H, W, C = x.shape
        xp = jnp.pad(x, ((0, 0), (1, 1), (1, 1), (0, 0)))
        cols = [xp[:, kh:kh + H, kw:kw + W, :] for kh in range(3) for kw in range(3)]
        return jnp.stack(cols, axis=3).reshape(N * H * W, 9 * C)

    def conv_relu(x, w_oihw, b):
        N, H, W, Cin = x.shape
        Cout = w_oihw.shape[0]
        w_mat = jnp.transpose(w_oihw, (2, 3, 1, 0)).reshape(9 * Cin, Cout)
        y = jnp.maximum(im2col(x) @ w_mat + b, 0.0)
        return y.reshape(N, H, W, Cout)

    def pool(x):
        N, H, W, C = x.shape
        Ho, Wo = H // 2, W // 2
        return x[:, :2 * Ho, :2 * Wo, :].reshape(N, Ho, 2, Wo, 2, C).max(axis=(2, 4))

    x = jnp.transpose(x_nchw, (0, 2, 3, 1)).astype(jnp.float32)
    x = pool(conv_relu(x, params["conv1_w"], params["conv1_b"]))
    x = pool(conv_relu(x, params["conv2_w"], params["conv2_b"]))
    x = pool(conv_relu(x, params["conv3_w"], params["conv3_b"]))
    N = x.shape[0]
    x = jnp.transpose(x, (0, 3, 1, 2)).reshape(N, 128 * 3 * 3)            # NCHW flatten
    x = jnp.maximum(x @ params["fc1_w"].T + params["fc1_b"], 0.0)
    return x @ params["fc2_w"].T + params["fc2_b"]


# ----------------------------------------------------------------------------
if __name__ == "__main__":
    num_classes = 10
    batch = 2

    key = jax.random.PRNGKey(0)
    k_params, k_x = jax.random.split(key)

    params = init_params(k_params, num_classes)
    prepared = prepare_params(params)
    # Spatial size 28x28 is implied by fc1 = Linear(128*3*3, 128): 28 -> 14 -> 7 -> 3.
    x = jax.random.normal(k_x, (batch, 1, 28, 28), jnp.float32)

    logits = jax.jit(cnn_forward)(prepared, x)
    logits = jax.block_until_ready(logits)
    assert logits.shape == (batch, num_classes), logits.shape

    # Loose tolerance: the Pallas path uses bf16 activations/weights on the MXU.
    ref = _reference_forward(params, x)
    err = float(jnp.max(jnp.abs(logits - ref)))
    scale = float(jnp.max(jnp.abs(ref)))
    assert err <= 0.06 * scale + 3e-2, (err, scale)

    print("KERNEL_OK")
</pallas_src>

<mosaic_0001>
module attributes {stable_mosaic.version = 11 : i64} {
  func.func @_conv_qmax_kernel(%arg0: i32, %arg1: memref<4x1568x9xbf16, #tpu.memory_space<vmem>>, %arg2: memref<9x32xbf16, #tpu.memory_space<vmem>>, %arg3: memref<1x32xf32, #tpu.memory_space<vmem>>, %arg4: memref<1568x32xbf16, #tpu.memory_space<vmem>>) attributes {dimension_semantics = [#tpu.dimension_semantics<parallel>], iteration_bounds = array<i64: 1>, scalar_prefetch = 0 : i64, scratch_operands = 0 : i64, tpu.core_type = #tpu.core_type<tc>, window_params = [{transform_indices = @transform_0, window_bounds = array<i64: 4, 1568, 9>}, {pipeline_mode = #tpu.pipeline_mode<synchronous>, transform_indices = @transform_1, window_bounds = array<i64: 9, 32>}, {pipeline_mode = #tpu.pipeline_mode<synchronous>, transform_indices = @transform_2, window_bounds = array<i64: 1, 32>}, {transform_indices = @transform_3, window_bounds = array<i64: 1568, 32>}]} {
    %c0 = arith.constant 0 : index
    %c0_0 = arith.constant 0 : index
    %0 = vector.load %arg2[%c0, %c0_0] : memref<9x32xbf16, #tpu.memory_space<vmem>>, vector<9x32xbf16>
    %c0_1 = arith.constant 0 : index
    %c0_2 = arith.constant 0 : index
    %c0_3 = arith.constant 0 : index
    %1 = vector.load %arg1[%c0_1, %c0_2, %c0_3] : memref<4x1568x9xbf16, #tpu.memory_space<vmem>>, vector<1x1568x9xbf16>
    %2 = vector.shape_cast %1 : vector<1x1568x9xbf16> to vector<1568x9xbf16>
    %cst = arith.constant dense<0.000000e+00> : vector<1568x32xf32>
    %3 = tpu.matmul %2, %0, %cst {dimension_numbers = #tpu.dot_dimension_numbers<[1], [0], [0], [1], [0, 0, 1, 1], [], []>} : vector<1568x9xbf16>, vector<9x32xbf16>, vector<1568x32xf32> -> vector<1568x32xf32>
    %c1 = arith.constant 1 : index
    %c0_4 = arith.constant 0 : index
    %c0_5 = arith.constant 0 : index
    %4 = vector.load %arg1[%c1, %c0_4, %c0_5] : memref<4x1568x9xbf16, #tpu.memory_space<vmem>>, vector<1x1568x9xbf16>
    %5 = vector.shape_cast %4 : vector<1x1568x9xbf16> to vector<1568x9xbf16>
    %cst_6 = arith.constant dense<0.000000e+00> : vector<1568x32xf32>
    %6 = tpu.matmul %5, %0, %cst_6 {dimension_numbers = #tpu.dot_dimension_numbers<[1], [0], [0], [1], [0, 0, 1, 1], [], []>} : vector<1568x9xbf16>, vector<9x32xbf16>, vector<1568x32xf32> -> vector<1568x32xf32>
    %7 = arith.maximumf %3, %6 : vector<1568x32xf32>
    %c2 = arith.constant 2 : index
    %c0_7 = arith.constant 0 : index
    %c0_8 = arith.constant 0 : index
    %8 = vector.load %arg1[%c2, %c0_7, %c0_8] : memref<4x1568x9xbf16, #tpu.memory_space<vmem>>, vector<1x1568x9xbf16>
    %9 = vector.shape_cast %8 : vector<1x1568x9xbf16> to vector<1568x9xbf16>
    %cst_9 = arith.constant dense<0.000000e+00> : vector<1568x32xf32>
    %10 = tpu.matmul %9, %0, %cst_9 {dimension_numbers = #tpu.dot_dimension_numbers<[1], [0], [0], [1], [0, 0, 1, 1], [], []>} : vector<1568x9xbf16>, vector<9x32xbf16>, vector<1568x32xf32> -> vector<1568x32xf32>
    %11 = arith.maximumf %7, %10 : vector<1568x32xf32>
    %c3 = arith.constant 3 : index
    %c0_10 = arith.constant 0 : index
    %c0_11 = arith.constant 0 : index
    %12 = vector.load %arg1[%c3, %c0_10, %c0_11] : memref<4x1568x9xbf16, #tpu.memory_space<vmem>>, vector<1x1568x9xbf16>
    %13 = vector.shape_cast %12 : vector<1x1568x9xbf16> to vector<1568x9xbf16>
    %cst_12 = arith.constant dense<0.000000e+00> : vector<1568x32xf32>
    %14 = tpu.matmul %13, %0, %cst_12 {dimension_numbers = #tpu.dot_dimension_numbers<[1], [0], [0], [1], [0, 0, 1, 1], [], []>} : vector<1568x9xbf16>, vector<9x32xbf16>, vector<1568x32xf32> -> vector<1568x32xf32>
    %15 = arith.maximumf %11, %14 : vector<1568x32xf32>
    %c0_13 = arith.constant 0 : index
    %c0_14 = arith.constant 0 : index
    %16 = vector.load %arg3[%c0_13, %c0_14] : memref<1x32xf32, #tpu.memory_space<vmem>>, vector<1x32xf32>
    %17 = vector.broadcast %16 : vector<1x32xf32> to vector<1568x32xf32>
    %18 = arith.addf %15, %17 : vector<1568x32xf32>
    %cst_15 = arith.constant 0.000000e+00 : f32
    %19 = vector.broadcast %cst_15 : f32 to vector<1568x32xf32>
    %20 = arith.maximumf %18, %19 : vector<1568x32xf32>
    %21 = arith.truncf %20 : vector<1568x32xf32> to vector<1568x32xbf16>
    %c0_16 = arith.constant 0 : index
    %c0_17 = arith.constant 0 : index
    %22 = vector.load %arg4[%c0_16, %c0_17] : memref<1568x32xbf16, #tpu.memory_space<vmem>>, vector<1568x32xbf16>
    tpu.vector_store %arg4[%c0_16, %c0_17], %21 {strides = array<i32>} : memref<1568x32xbf16, #tpu.memory_space<vmem>>, vector<1568x32xbf16>,
    return
  }
  func.func @transform_0(%arg0: i32) -> (i32, i32, i32) {
    %c0_i32 = arith.constant 0 : i32
    %c0_i32_0 = arith.constant 0 : i32
    %c0_i32_1 = arith.constant 0 : i32
    return %c0_i32, %arg0, %c0_i32_0 : i32, i32, i32
  }
  func.func @transform_1(%arg0: i32) -> (i32, i32) {
    %c0_i32 = arith.constant 0 : i32
    %c0_i32_0 = arith.constant 0 : i32
    %c0_i32_1 = arith.constant 0 : i32
    return %c0_i32, %c0_i32_0 : i32, i32
  }
  func.func @transform_2(%arg0: i32) -> (i32, i32) {
    %c0_i32 = arith.constant 0 : i32
    %c0_i32_0 = arith.constant 0 : i32
    %c0_i32_1 = arith.constant 0 : i32
    return %c0_i32, %c0_i32_0 : i32, i32
  }
  func.func @transform_3(%arg0: i32) -> (i32, i32) {
    %c0_i32 = arith.constant 0 : i32
    %c0_i32_0 = arith.constant 0 : i32
    return %arg0, %c0_i32 : i32, i32
  }
}

module attributes {stable_mosaic.version = 11 : i64} {
  func.func @_conv_qmax_kernel(%arg0: i32, %arg1: memref<4x392x288xbf16, #tpu.memory_space<vmem>>, %arg2: memref<288x64xbf16, #tpu.memory_space<vmem>>, %arg3: memref<1x64xf32, #tpu.memory_space<vmem>>, %arg4: memref<392x64xbf16, #tpu.memory_space<vmem>>) attributes {dimension_semantics = [#tpu.dimension_semantics<parallel>], iteration_bounds = array<i64: 1>, scalar_prefetch = 0 : i64, scratch_operands = 0 : i64, tpu.core_type = #tpu.core_type<tc>, window_params = [{transform_indices = @transform_0, window_bounds = array<i64: 4, 392, 288>}, {pipeline_mode = #tpu.pipeline_mode<synchronous>, transform_indices = @transform_1, window_bounds = array<i64: 288, 64>}, {pipeline_mode = #tpu.pipeline_mode<synchronous>, transform_indices = @transform_2, window_bounds = array<i64: 1, 64>}, {transform_indices = @transform_3, window_bounds = array<i64: 392, 64>}]} {
    %c0 = arith.constant 0 : index
    %c0_0 = arith.constant 0 : index
    %0 = vector.load %arg2[%c0, %c0_0] : memref<288x64xbf16, #tpu.memory_space<vmem>>, vector<288x64xbf16>
    %c0_1 = arith.constant 0 : index
    %c0_2 = arith.constant 0 : index
    %c0_3 = arith.constant 0 : index
    %1 = vector.load %arg1[%c0_1, %c0_2, %c0_3] : memref<4x392x288xbf16, #tpu.memory_space<vmem>>, vector<1x392x288xbf16>
    %2 = vector.shape_cast %1 : vector<1x392x288xbf16> to vector<392x288xbf16>
    %cst = arith.constant dense<0.000000e+00> : vector<392x64xf32>
    %3 = tpu.matmul %2, %0, %cst {dimension_numbers = #tpu.dot_dimension_numbers<[1], [0], [0], [1], [0, 0, 1, 1], [], []>} : vector<392x288xbf16>, vector<288x64xbf16>, vector<392x64xf32> -> vector<392x64xf32>
    %c1 = arith.constant 1 : index
    %c0_4 = arith.constant 0 : index
    %c0_5 = arith.constant 0 : index
    %4 = vector.load %arg1[%c1, %c0_4, %c0_5] : memref<4x392x288xbf16, #tpu.memory_space<vmem>>, vector<1x392x288xbf16>
    %5 = vector.shape_cast %4 : vector<1x392x288xbf16> to vector<392x288xbf16>
    %cst_6 = arith.constant dense<0.000000e+00> : vector<392x64xf32>
    %6 = tpu.matmul %5, %0, %cst_6 {dimension_numbers = #tpu.dot_dimension_numbers<[1], [0], [0], [1], [0, 0, 1, 1], [], []>} : vector<392x288xbf16>, vector<288x64xbf16>, vector<392x64xf32> -> vector<392x64xf32>
    %7 = arith.maximumf %3, %6 : vector<392x64xf32>
    %c2 = arith.constant 2 : index
    %c0_7 = arith.constant 0 : index
    %c0_8 = arith.constant 0 : index
    %8 = vector.load %arg1[%c2, %c0_7, %c0_8] : memref<4x392x288xbf16, #tpu.memory_space<vmem>>, vector<1x392x288xbf16>
    %9 = vector.shape_cast %8 : vector<1x392x288xbf16> to vector<392x288xbf16>
    %cst_9 = arith.constant dense<0.000000e+00> : vector<392x64xf32>
    %10 = tpu.matmul %9, %0, %cst_9 {dimension_numbers = #tpu.dot_dimension_numbers<[1], [0], [0], [1], [0, 0, 1, 1], [], []>} : vector<392x288xbf16>, vector<288x64xbf16>, vector<392x64xf32> -> vector<392x64xf32>
    %11 = arith.maximumf %7, %10 : vector<392x64xf32>
    %c3 = arith.constant 3 : index
    %c0_10 = arith.constant 0 : index
    %c0_11 = arith.constant 0 : index
    %12 = vector.load %arg1[%c3, %c0_10, %c0_11] : memref<4x392x288xbf16, #tpu.memory_space<vmem>>, vector<1x392x288xbf16>
    %13 = vector.shape_cast %12 : vector<1x392x288xbf16> to vector<392x288xbf16>
    %cst_12 = arith.constant dense<0.000000e+00> : vector<392x64xf32>
    %14 = tpu.matmul %13, %0, %cst_12 {dimension_numbers = #tpu.dot_dimension_numbers<[1], [0], [0], [1], [0, 0, 1, 1], [], []>} : vector<392x288xbf16>, vector<288x64xbf16>, vector<392x64xf32> -> vector<392x64xf32>
    %15 = arith.maximumf %11, %14 : vector<392x64xf32>
    %c0_13 = arith.constant 0 : index
    %c0_14 = arith.constant 0 : index
    %16 = vector.load %arg3[%c0_13, %c0_14] : memref<1x64xf32, #tpu.memory_space<vmem>>, vector<1x64xf32>
    %17 = vector.broadcast %16 : vector<1x64xf32> to vector<392x64xf32>
    %18 = arith.addf %15, %17 : vector<392x64xf32>
    %cst_15 = arith.constant 0.000000e+00 : f32
    %19 = vector.broadcast %cst_15 : f32 to vector<392x64xf32>
    %20 = arith.maximumf %18, %19 : vector<392x64xf32>
    %21 = arith.truncf %20 : vector<392x64xf32> to vector<392x64xbf16>
    %c0_16 = arith.constant 0 : index
    %c0_17 = arith.constant 0 : index
    %22 = vector.load %arg4[%c0_16, %c0_17] : memref<392x64xbf16, #tpu.memory_space<vmem>>, vector<392x64xbf16>
    tpu.vector_store %arg4[%c0_16, %c0_17], %21 {strides = array<i32>} : memref<392x64xbf16, #tpu.memory_space<vmem>>, vector<392x64xbf16>,
    return
  }
  func.func @transform_0(%arg0: i32) -> (i32, i32, i32) {
    %c0_i32 = arith.constant 0 : i32
    %c0_i32_0 = arith.constant 0 : i32
    %c0_i32_1 = arith.constant 0 : i32
    return %c0_i32, %arg0, %c0_i32_0 : i32, i32, i32
  }
  func.func @transform_1(%arg0: i32) -> (i32, i32) {
    %c0_i32 = arith.constant 0 : i32
    %c0_i32_0 = arith.constant 0 : i32
    %c0_i32_1 = arith.constant 0 : i32
    return %c0_i32, %c0_i32_0 : i32, i32
  }
  func.func @transform_2(%arg0: i32) -> (i32, i32) {
    %c0_i32 = arith.constant 0 : i32
    %c0_i32_0 = arith.constant 0 : i32
    %c0_i32_1 = arith.constant 0 : i32
    return %c0_i32, %c0_i32_0 : i32, i32
  }
  func.func @transform_3(%arg0: i32) -> (i32, i32) {
    %c0_i32 = arith.constant 0 : i32
    %c0_i32_0 = arith.constant 0 : i32
    return %arg0, %c0_i32 : i32, i32
  }
}

module attributes {stable_mosaic.version = 11 : i64} {
  func.func @_conv_qmax_kernel(%arg0: i32, %arg1: memref<4x72x576xbf16, #tpu.memory_space<vmem>>, %arg2: memref<576x128xbf16, #tpu.memory_space<vmem>>, %arg3: memref<1x128xf32, #tpu.memory_space<vmem>>, %arg4: memref<72x128xbf16, #tpu.memory_space<vmem>>) attributes {dimension_semantics = [#tpu.dimension_semantics<parallel>], iteration_bounds = array<i64: 1>, scalar_prefetch = 0 : i64, scratch_operands = 0 : i64, tpu.core_type = #tpu.core_type<tc>, window_params = [{transform_indices = @transform_0, window_bounds = array<i64: 4, 72, 576>}, {pipeline_mode = #tpu.pipeline_mode<synchronous>, transform_indices = @transform_1, window_bounds = array<i64: 576, 128>}, {pipeline_mode = #tpu.pipeline_mode<synchronous>, transform_indices = @transform_2, window_bounds = array<i64: 1, 128>}, {transform_indices = @transform_3, window_bounds = array<i64: 72, 128>}]} {
    %c0 = arith.constant 0 : index
    %c0_0 = arith.constant 0 : index
    %0 = vector.load %arg2[%c0, %c0_0] : memref<576x128xbf16, #tpu.memory_space<vmem>>, vector<576x128xbf16>
    %c0_1 = arith.constant 0 : index
    %c0_2 = arith.constant 0 : index
    %c0_3 = arith.constant 0 : index
    %1 = vector.load %arg1[%c0_1, %c0_2, %c0_3] : memref<4x72x576xbf16, #tpu.memory_space<vmem>>, vector<1x72x576xbf16>
    %2 = vector.shape_cast %1 : vector<1x72x576xbf16> to vector<72x576xbf16>
    %cst = arith.constant dense<0.000000e+00> : vector<72x128xf32>
    %3 = tpu.matmul %2, %0, %cst {dimension_numbers = #tpu.dot_dimension_numbers<[1], [0], [0], [1], [0, 0, 1, 1], [], []>} : vector<72x576xbf16>, vector<576x128xbf16>, vector<72x128xf32> -> vector<72x128xf32>
    %c1 = arith.constant 1 : index
    %c0_4 = arith.constant 0 : index
    %c0_5 = arith.constant 0 : index
    %4 = vector.load %arg1[%c1, %c0_4, %c0_5] : memref<4x72x576xbf16, #tpu.memory_space<vmem>>, vector<1x72x576xbf16>
    %5 = vector.shape_cast %4 : vector<1x72x576xbf16> to vector<72x576xbf16>
    %cst_6 = arith.constant dense<0.000000e+00> : vector<72x128xf32>
    %6 = tpu.matmul %5, %0, %cst_6 {dimension_numbers = #tpu.dot_dimension_numbers<[1], [0], [0], [1], [0, 0, 1, 1], [], []>} : vector<72x576xbf16>, vector<576x128xbf16>, vector<72x128xf32> -> vector<72x128xf32>
    %7 = arith.maximumf %3, %6 : vector<72x128xf32>
    %c2 = arith.constant 2 : index
    %c0_7 = arith.constant 0 : index
    %c0_8 = arith.constant 0 : index
    %8 = vector.load %arg1[%c2, %c0_7, %c0_8] : memref<4x72x576xbf16, #tpu.memory_space<vmem>>, vector<1x72x576xbf16>
    %9 = vector.shape_cast %8 : vector<1x72x576xbf16> to vector<72x576xbf16>
    %cst_9 = arith.constant dense<0.000000e+00> : vector<72x128xf32>
    %10 = tpu.matmul %9, %0, %cst_9 {dimension_numbers = #tpu.dot_dimension_numbers<[1], [0], [0], [1], [0, 0, 1, 1], [], []>} : vector<72x576xbf16>, vector<576x128xbf16>, vector<72x128xf32> -> vector<72x128xf32>
    %11 = arith.maximumf %7, %10 : vector<72x128xf32>
    %c3 = arith.constant 3 : index
    %c0_10 = arith.constant 0 : index
    %c0_11 = arith.constant 0 : index
    %12 = vector.load %arg1[%c3, %c0_10, %c0_11] : memref<4x72x576xbf16, #tpu.memory_space<vmem>>, vector<1x72x576xbf16>
    %13 = vector.shape_cast %12 : vector<1x72x576xbf16> to vector<72x576xbf16>
    %cst_12 = arith.constant dense<0.000000e+00> : vector<72x128xf32>
    %14 = tpu.matmul %13, %0, %cst_12 {dimension_numbers = #tpu.dot_dimension_numbers<[1], [0], [0], [1], [0, 0, 1, 1], [], []>} : vector<72x576xbf16>, vector<576x128xbf16>, vector<72x128xf32> -> vector<72x128xf32>
    %15 = arith.maximumf %11, %14 : vector<72x128xf32>
    %c0_13 = arith.constant 0 : index
    %c0_14 = arith.constant 0 : index
    %16 = vector.load %arg3[%c0_13, %c0_14] : memref<1x128xf32, #tpu.memory_space<vmem>>, vector<1x128xf32>
    %17 = vector.broadcast %16 : vector<1x128xf32> to vector<72x128xf32>
    %18 = arith.addf %15, %17 : vector<72x128xf32>
    %cst_15 = arith.constant 0.000000e+00 : f32
    %19 = vector.broadcast %cst_15 : f32 to vector<72x128xf32>
    %20 = arith.maximumf %18, %19 : vector<72x128xf32>
    %21 = arith.truncf %20 : vector<72x128xf32> to vector<72x128xbf16>
    %c0_16 = arith.constant 0 : index
    %c0_17 = arith.constant 0 : index
    %22 = vector.load %arg4[%c0_16, %c0_17] : memref<72x128xbf16, #tpu.memory_space<vmem>>, vector<72x128xbf16>
    tpu.vector_store %arg4[%c0_16, %c0_17], %21 {strides = array<i32>} : memref<72x128xbf16, #tpu.memory_space<vmem>>, vector<72x128xbf16>,
    return
  }
  func.func @transform_0(%arg0: i32) -> (i32, i32, i32) {
    %c0_i32 = arith.constant 0 : i32
    %c0_i32_0 = arith.constant 0 : i32
    %c0_i32_1 = arith.constant 0 : i32
    return %c0_i32, %arg0, %c0_i32_0 : i32, i32, i32
  }
  func.func @transform_1(%arg0: i32) -> (i32, i32) {
    %c0_i32 = arith.constant 0 : i32
    %c0_i32_0 = arith.constant 0 : i32
    %c0_i32_1 = arith.constant 0 : i32
    return %c0_i32, %c0_i32_0 : i32, i32
  }
  func.func @transform_2(%arg0: i32) -> (i32, i32) {
    %c0_i32 = arith.constant 0 : i32
    %c0_i32_0 = arith.constant 0 : i32
    %c0_i32_1 = arith.constant 0 : i32
    return %c0_i32, %c0_i32_0 : i32, i32
  }
  func.func @transform_3(%arg0: i32) -> (i32, i32) {
    %c0_i32 = arith.constant 0 : i32
    %c0_i32_0 = arith.constant 0 : i32
    return %arg0, %c0_i32 : i32, i32
  }
}

module attributes {stable_mosaic.version = 11 : i64} {
  func.func @_fc_fused_kernel(%arg0: i32, %arg1: memref<8x1152xbf16, #tpu.memory_space<vmem>>, %arg2: memref<1152x128xbf16, #tpu.memory_space<vmem>>, %arg3: memref<1x128xf32, #tpu.memory_space<vmem>>, %arg4: memref<128x10xbf16, #tpu.memory_space<vmem>>, %arg5: memref<1x10xf32, #tpu.memory_space<vmem>>, %arg6: memref<8x10xf32, #tpu.memory_space<vmem>>) attributes {dimension_semantics = [#tpu.dimension_semantics<parallel>], iteration_bounds = array<i64: 1>, scalar_prefetch = 0 : i64, scratch_operands = 0 : i64, tpu.core_type = #tpu.core_type<tc>, window_params = [{transform_indices = @transform_0, window_bounds = array<i64: 8, 1152>}, {pipeline_mode = #tpu.pipeline_mode<synchronous>, transform_indices = @transform_1, window_bounds = array<i64: 1152, 128>}, {pipeline_mode = #tpu.pipeline_mode<synchronous>, transform_indices = @transform_2, window_bounds = array<i64: 1, 128>}, {pipeline_mode = #tpu.pipeline_mode<synchronous>, transform_indices = @transform_3, window_bounds = array<i64: 128, 10>}, {pipeline_mode = #tpu.pipeline_mode<synchronous>, transform_indices = @transform_4, window_bounds = array<i64: 1, 10>}, {transform_indices = @transform_5, window_bounds = array<i64: 8, 10>}]} {
    %c0 = arith.constant 0 : index
    %c0_0 = arith.constant 0 : index
    %0 = vector.load %arg1[%c0, %c0_0] : memref<8x1152xbf16, #tpu.memory_space<vmem>>, vector<8x1152xbf16>
    %c0_1 = arith.constant 0 : index
    %c0_2 = arith.constant 0 : index
    %1 = vector.load %arg2[%c0_1, %c0_2] : memref<1152x128xbf16, #tpu.memory_space<vmem>>, vector<1152x128xbf16>
    %cst = arith.constant dense<0.000000e+00> : vector<8x128xf32>
    %2 = tpu.matmul %0, %1, %cst {dimension_numbers = #tpu.dot_dimension_numbers<[1], [0], [0], [1], [0, 0, 1, 1], [], []>} : vector<8x1152xbf16>, vector<1152x128xbf16>, vector<8x128xf32> -> vector<8x128xf32>
    %c0_3 = arith.constant 0 : index
    %c0_4 = arith.constant 0 : index
    %3 = vector.load %arg3[%c0_3, %c0_4] : memref<1x128xf32, #tpu.memory_space<vmem>>, vector<1x128xf32>
    %4 = vector.broadcast %3 : vector<1x128xf32> to vector<8x128xf32>
    %5 = arith.addf %2, %4 : vector<8x128xf32>
    %cst_5 = arith.constant 0.000000e+00 : f32
    %6 = vector.broadcast %cst_5 : f32 to vector<8x128xf32>
    %7 = arith.maximumf %5, %6 : vector<8x128xf32>
    %8 = arith.truncf %7 : vector<8x128xf32> to vector<8x128xbf16>
    %c0_6 = arith.constant 0 : index
    %c0_7 = arith.constant 0 : index
    %9 = vector.load %arg4[%c0_6, %c0_7] : memref<128x10xbf16, #tpu.memory_space<vmem>>, vector<128x10xbf16>
    %cst_8 = arith.constant dense<0.000000e+00> : vector<8x10xf32>
    %10 = tpu.matmul %8, %9, %cst_8 {dimension_numbers = #tpu.dot_dimension_numbers<[1], [0], [0], [1], [0, 0, 1, 1], [], []>} : vector<8x128xbf16>, vector<128x10xbf16>, vector<8x10xf32> -> vector<8x10xf32>
    %c0_9 = arith.constant 0 : index
    %c0_10 = arith.constant 0 : index
    %11 = vector.load %arg5[%c0_9, %c0_10] : memref<1x10xf32, #tpu.memory_space<vmem>>, vector<1x10xf32>
    %12 = vector.broadcast %11 : vector<1x10xf32> to vector<8x10xf32>
    %13 = arith.addf %10, %12 : vector<8x10xf32>
    %c0_11 = arith.constant 0 : index
    %c0_12 = arith.constant 0 : index
    %14 = vector.load %arg6[%c0_11, %c0_12] : memref<8x10xf32, #tpu.memory_space<vmem>>, vector<8x10xf32>
    tpu.vector_store %arg6[%c0_11, %c0_12], %13 {strides = array<i32>} : memref<8x10xf32, #tpu.memory_space<vmem>>, vector<8x10xf32>,
    return
  }
  func.func @transform_0(%arg0: i32) -> (i32, i32) {
    %c0_i32 = arith.constant 0 : i32
    %c0_i32_0 = arith.constant 0 : i32
    return %arg0, %c0_i32 : i32, i32
  }
  func.func @transform_1(%arg0: i32) -> (i32, i32) {
    %c0_i32 = arith.constant 0 : i32
    %c0_i32_0 = arith.constant 0 : i32
    %c0_i32_1 = arith.constant 0 : i32
    return %c0_i32, %c0_i32_0 : i32, i32
  }
  func.func @transform_2(%arg0: i32) -> (i32, i32) {
    %c0_i32 = arith.constant 0 : i32
    %c0_i32_0 = arith.constant 0 : i32
    %c0_i32_1 = arith.constant 0 : i32
    return %c0_i32, %c0_i32_0 : i32, i32
  }
  func.func @transform_3(%arg0: i32) -> (i32, i32) {
    %c0_i32 = arith.constant 0 : i32
    %c0_i32_0 = arith.constant 0 : i32
    %c0_i32_1 = arith.constant 0 : i32
    return %c0_i32, %c0_i32_0 : i32, i32
  }
  func.func @transform_4(%arg0: i32) -> (i32, i32) {
    %c0_i32 = arith.constant 0 : i32
    %c0_i32_0 = arith.constant 0 : i32
    %c0_i32_1 = arith.constant 0 : i32
    return %c0_i32, %c0_i32_0 : i32, i32
  }
  func.func @transform_5(%arg0: i32) -> (i32, i32) {
    %c0_i32 = arith.constant 0 : i32
    %c0_i32_0 = arith.constant 0 : i32
    return %arg0, %c0_i32 : i32, i32
  }
}

</mosaic_0001>

<bundles_post_ra>
// kernel: cnn_forward.4
= control target key start
LH: loop header
LB: loop body
LE: loop exit
PB: predicated region body
PF: predicated region fallthrough
CT: control target
= control target key end

     0   :  { %vm1003_vm0 = vcmask 1043456   ;;  %vm1004_vm1 = vcmask 1044480   ;;  %vm708_vm2 = vcmask 72704   ;;  %v12544_v1 = vmov 65535   ;;  %s16900_s1 = inlined_call_operand.vmem [shape: bf16[9,32], index: 1, kind: input, shape index: {}]   ;;  %s16901_s0 = inlined_call_operand.vmem [shape: bf16[4,1568,9], index: 0, kind: input, shape index: {}]   ;;  %s16902_s2 = inlined_call_operand.vmem [shape: f32[1,32], index: 2, kind: input, shape index: {}]   ;;  %s16903_s3 = inlined_call_operand.vmem [shape: bf16[1568,32], index: 3, kind: output, shape index: {}]  }
   0x1   :  { %v12148_v0 = vld [vmem:[%s16900_s1] sm:$0x1f]   ;;  %v1005_v2 = vsel %vm1003_vm0, 4294967295, %v12544_v1  ;;  %v12150_v5 = vld [vmem:[%s16901_s0 + $0x310] sm:$0xff]   ;;  %v12151_v7 = vld [vmem:[%s16901_s0 + $0x8] sm:$0xff]   ;;  %vm8992_vm3 = vcmask 257024  }
   0x2   :  { %v12149_v3 = vld [vmem:[%s16901_s0] sm:$0xff]   ;;  %v1006_v4 = vsel %vm1004_vm1, %v1005_v2, 0  ;;  %11555 = vmatprep.mubr.msk.bf16.mxu1 %vm708_vm2, %v12150_v5  ;;  %v12152_v8 = vld [vmem:[%s16901_s0 + $0x318] sm:$0xff]   ;;  %v12153_v9 = vld [vmem:[%s16901_s0 + $0x10] sm:$0xff]  }
   0x3   :  { %v1008_v6 = vand.u32 %v12148_v0, %v1006_v4  ;;  %11357 = vmatprep.mubr.msk.bf16.mxu0 %vm708_vm2, %v12149_v3  ;;  %v12154_v10 = vld [vmem:[%s16901_s0 + $0x320] sm:$0xff]   ;;  %v12155_v11 = vld [vmem:[%s16901_s0 + $0x18] sm:$0xff]   ;;  %v12156_v12 = vld [vmem:[%s16901_s0 + $0x328] sm:$0xff]  }
   0x4   :  { %v12157_v13 = vld [vmem:[%s16901_s0 + $0x20] sm:$0xff]   ;;  %v12158_v14 = vld [vmem:[%s16901_s0 + $0x330] sm:$0xff]   ;;  %v12159_v15 = vld [vmem:[%s16901_s0 + $0x28] sm:$0xff]  }
   0x5   :  { %11355 = vmatprep.subr.bf16.mxu0 %v1008_v6  ;;  %11553 = vmatprep.subr.bf16.mxu1 %v1008_v6  ;;  %v12160_v16 = vld [vmem:[%s16901_s0 + $0x338] sm:$0xff]   ;;  %v12161_v17 = vld [vmem:[%s16901_s0 + $0x30] sm:$0xff]   ;;  %v12162_v18 = vld [vmem:[%s16901_s0 + $0x340] sm:$0xff]  }
   0x6   :  { %11356 = vmatpush3.bf16.msra.mxu0 %v1008_v6  ;;  %11554 = vmatpush3.bf16.msra.mxu1 %v1008_v6  ;;  %v12163_v19 = vld [vmem:[%s16901_s0 + $0x38] sm:$0xff]   ;;  %v12164_v20 = vld [vmem:[%s16901_s0 + $0x348] sm:$0xff]   ;;  %v12165_v21 = vld [vmem:[%s16901_s0 + $0x40] sm:$0xff]  }
   0x7   :  { %11751 = vmatprep.subr.bf16.mxu0 %v1008_v6  ;;  %11949 = vmatprep.subr.bf16.mxu1 %v1008_v6  ;;  %v12166_v22 = vld [vmem:[%s16901_s0 + $0x350] sm:$0xff]   ;;  %v12167_v23 = vld [vmem:[%s16901_s0 + $0x48] sm:$0xff]   ;;  %v12168_v24 = vld [vmem:[%s16901_s0 + $0x358] sm:$0xff]  }
   0x8   :  { %v12169_v25 = vld [vmem:[%s16901_s0 + $0x50] sm:$0xff]   ;;  %v12170_v26 = vld [vmem:[%s16901_s0 + $0x360] sm:$0xff]   ;;  %v12171_v27 = vld [vmem:[%s16901_s0 + $0x58] sm:$0xff]  }
   0x9   :  { %11358 = vmatmul.mubr.msk.bf16.vlgmr.msra.gmra.mxu0 %vm708_vm2, %v12151_v7  ;;  %11556 = vmatmul.mubr.msk.bf16.vlgmr.msra.gmra.mxu1 %vm708_vm2, %v12152_v8  ;;  %v12172_v28 = vld [vmem:[%s16901_s0 + $0x368] sm:$0xff]   ;;  %v12173_v29 = vld [vmem:[%s16901_s0 + $0x60] sm:$0xff]   ;;  %v12174_v30 = vld [vmem:[%s16901_s0 + $0x370] sm:$0xff]  }
   0xa   :  { %11752 = vmatpush3.bf16.msra.mxu0 %v1008_v6  ;;  %11950 = vmatpush3.bf16.msra.mxu1 %v1008_v6  ;;  %v12175_v31 = vld [vmem:[%s16901_s0 + $0x68] sm:$0xff]   ;;  %v12176_v32 = vld [vmem:[%s16901_s0 + $0x378] sm:$0xff]   ;;  %v12177_v33 = vld [vmem:[%s16901_s0 + $0x70] sm:$0xff]  }
   0xb   :  { %11361 = vmatprep.mubr.msk.bf16.mxu0 %vm708_vm2, %v12153_v9  ;;  %11559 = vmatprep.mubr.msk.bf16.mxu1 %vm708_vm2, %v12154_v10  ;;  %v12178_v34 = vld [vmem:[%s16901_s0 + $0x380] sm:$0xff]   ;;  %v12179_v35 = vld [vmem:[%s16901_s0 + $0x78] sm:$0xff]   ;;  %v12180_v36 = vld [vmem:[%s16901_s0 + $0x388] sm:$0xff]  }
   0xc   :  { %v12181_v37 = vld [vmem:[%s16901_s0 + $0x80] sm:$0xff]   ;;  %v12182_v38 = vld [vmem:[%s16901_s0 + $0x390] sm:$0xff]   ;;  %v12183_v39 = vld [vmem:[%s16901_s0 + $0x88] sm:$0xff]  }
   0xd   :  { %v12184_v40 = vld [vmem:[%s16901_s0 + $0x398] sm:$0xff]   ;;  %v12185_v41 = vld [vmem:[%s16901_s0 + $0x90] sm:$0xff]   ;;  %v12186_v42 = vld [vmem:[%s16901_s0 + $0x3a0] sm:$0xff]  }
   0xe   :  { %v12187_v43 = vld [vmem:[%s16901_s0 + $0x98] sm:$0xff]   ;;  %v12188_v44 = vld [vmem:[%s16901_s0 + $0x3a8] sm:$0xff]   ;;  %v12189_v45 = vld [vmem:[%s16901_s0 + $0xa0] sm:$0xff]  }
   0xf   :  { %v12190_v46 = vld [vmem:[%s16901_s0 + $0x3b0] sm:$0xff]   ;;  %v12191_v47 = vld [vmem:[%s16901_s0 + $0xa8] sm:$0xff]   ;;  %v12192_v48 = vld [vmem:[%s16901_s0 + $0x3b8] sm:$0xff]  }
  0x10   :  { %v12193_v49 = vld [vmem:[%s16901_s0 + $0xb0] sm:$0xff]   ;;  %v12194_v50 = vld [vmem:[%s16901_s0 + $0x3c0] sm:$0xff]   ;;  %v12195_v51 = vld [vmem:[%s16901_s0 + $0xb8] sm:$0xff]  }
  0x11   :  { %11362 = vmatmul.mubr.msk.bf16.gmra.mxu0 %vm708_vm2, %v12155_v11  ;;  %11560 = vmatmul.mubr.msk.bf16.gmra.mxu1 %vm708_vm2, %v12156_v12  ;;  %v12196_v52 = vld [vmem:[%s16901_s0 + $0x3c8] sm:$0xff]   ;;  %v12197_v53 = vld [vmem:[%s16901_s0 + $0xc0] sm:$0xff]   ;;  %v12198_v54 = vld [vmem:[%s16901_s0 + $0x3d0] sm:$0xff]  }
  0x12   :  { %11365 = vmatprep.mubr.msk.bf16.mxu0 %vm708_vm2, %v12157_v13  ;;  %11563 = vmatprep.mubr.msk.bf16.mxu1 %vm708_vm2, %v12158_v14  ;;  %v12199_v55 = vld [vmem:[%s16901_s0 + $0xc8] sm:$0xff]   ;;  %v12200_v56 = vld [vmem:[%s16901_s0 + $0x3d8] sm:$0xff]   ;;  %v12201_v57 = vld [vmem:[%s16901_s0 + $0xd0] sm:$0xff]  }
  0x13   :  { %v12202_v58 = vld [vmem:[%s16901_s0 + $0x3e0] sm:$0xff]   ;;  %v12203_v59 = vld [vmem:[%s16901_s0 + $0xd8] sm:$0xff]   ;;  %v12204_v60 = vld [vmem:[%s16901_s0 + $0x3e8] sm:$0xff]  }
  0x14   :  { %v12205_v61 = vld [vmem:[%s16901_s0 + $0xe0] sm:$0xff]   ;;  %v12206_v62 = vld [vmem:[%s16901_s0 + $0x3f0] sm:$0xff]   ;;  %v12207_v63 = vld [vmem:[%s16901_s0 + $0xe8] sm:$0xff]  }
  0x15   :  { %v12208_v0 = vld [vmem:[%s16901_s0 + $0x3f8] sm:$0xff]   ;;  %v12209_v1 = vld [vmem:[%s16901_s0 + $0xf0] sm:$0xff]   ;;  %v12210_v2 = vld [vmem:[%s16901_s0 + $0x400] sm:$0xff]  }
  0x16   :  { %v12211_v3 = vld [vmem:[%s16901_s0 + $0xf8] sm:$0xff]   ;;  %v12212_v4 = vld [vmem:[%s16901_s0 + $0x408] sm:$0xff]   ;;  %v12213_v5 = vld [vmem:[%s16901_s0 + $0x100] sm:$0xff]  }
  0x17   :  { %v12214_v6 = vld [vmem:[%s16901_s0 + $0x410] sm:$0xff]   ;;  %v12215_v7 = vld [vmem:[%s16901_s0 + $0x108] sm:$0xff]   ;;  %v12216_v8 = vld [vmem:[%s16901_s0 + $0x418] sm:$0xff]  }
  0x18   :  { %v12217_v9 = vld [vmem:[%s16901_s0 + $0x110] sm:$0xff]   ;;  %v12218_v10 = vld [vmem:[%s16901_s0 + $0x420] sm:$0xff]   ;;  %v12219_v11 = vld [vmem:[%s16901_s0 + $0x118] sm:$0xff]  }
  0x19   :  { %11366 = vmatmul.mubr.msk.bf16.gmra.mxu0 %vm708_vm2, %v12159_v15  ;;  %11564 = vmatmul.mubr.msk.bf16.gmra.mxu1 %vm708_vm2, %v12160_v16  ;;  %v12220_v12 = vld [vmem:[%s16901_s0 + $0x428] sm:$0xff]   ;;  %v12221_v13 = vld [vmem:[%s16901_s0 + $0x120] sm:$0xff]   ;;  %v12222_v14 = vld [vmem:[%s16901_s0 + $0x430] sm:$0xff]  }
  0x1a   :  { %11369 = vmatprep.mubr.msk.bf16.mxu0 %vm708_vm2, %v12161_v17  ;;  %11567 = vmatprep.mubr.msk.bf16.mxu1 %vm708_vm2, %v12162_v18  ;;  %v12223_v15 = vld [vmem:[%s16901_s0 + $0x128] sm:$0xff]   ;;  %v12224_v16 = vld [vmem:[%s16901_s0 + $0x438] sm:$0xff]   ;;  %v12225_v17 = vld [vmem:[%s16901_s0 + $0x130] sm:$0xff]  }
  0x1b   :  { %v12226_v18 = vld [vmem:[%s16901_s0 + $0x440] sm:$0xff]  }
  0x21   :  { %11370 = vmatmul.mubr.msk.bf16.gmra.mxu0 %vm708_vm2, %v12163_v19  ;;  %11568 = vmatmul.mubr.msk.bf16.gmra.mxu1 %vm708_vm2, %v12164_v20  ;;  %v12227_v19 = vld [vmem:[%s16901_s0 + $0x138] sm:$0xff]   ;;  %v12228_v20 = vld [vmem:[%s16901_s0 + $0x448] sm:$0xff]  }
  0x22   :  { %11373 = vmatprep.mubr.msk.bf16.mxu0 %vm708_vm2, %v12165_v21  ;;  %11571 = vmatprep.mubr.msk.bf16.mxu1 %vm708_vm2, %v12166_v22  ;;  %v12229_v21 = vld [vmem:[%s16901_s0 + $0x140] sm:$0xff]   ;;  %v12230_v22 = vld [vmem:[%s16901_s0 + $0x450] sm:$0xff]  }
  0x29   :  { %11374 = vmatmul.mubr.msk.bf16.gmra.mxu0 %vm708_vm2, %v12167_v23  ;;  %11572 = vmatmul.mubr.msk.bf16.gmra.mxu1 %vm708_vm2, %v12168_v24  ;;  %v12231_v23 = vld [vmem:[%s16901_s0 + $0x148] sm:$0xff]   ;;  %v12232_v24 = vld [vmem:[%s16901_s0 + $0x458] sm:$0xff]  }
  0x2a   :  { %11377 = vmatprep.mubr.msk.bf16.mxu0 %vm708_vm2, %v12169_v25  ;;  %11575 = vmatprep.mubr.msk.bf16.mxu1 %vm708_vm2, %v12170_v26  ;;  %v12233_v25 = vld [vmem:[%s16901_s0 + $0x150] sm:$0xff]   ;;  %v12234_v26 = vld [vmem:[%s16901_s0 + $0x460] sm:$0xff]  }
  0x31   :  { %11378 = vmatmul.mubr.msk.bf16.gmra.mxu0 %vm708_vm2, %v12171_v27  ;;  %11576 = vmatmul.mubr.msk.bf16.gmra.mxu1 %vm708_vm2, %v12172_v28  ;;  %v12235_v27 = vld [vmem:[%s16901_s0 + $0x158] sm:$0xff]   ;;  %v12236_v28 = vld [vmem:[%s16901_s0 + $0x468] sm:$0xff]  }
  0x32   :  { %11381 = vmatprep.mubr.msk.bf16.mxu0 %vm708_vm2, %v12173_v29  ;;  %11579 = vmatprep.mubr.msk.bf16.mxu1 %vm708_vm2, %v12174_v30  ;;  %v12237_v29 = vld [vmem:[%s16901_s0 + $0x160] sm:$0xff]   ;;  %v12238_v30 = vld [vmem:[%s16901_s0 + $0x470] sm:$0xff]  }
  0x39   :  { %11382 = vmatmul.mubr.msk.bf16.gmra.mxu0 %vm708_vm2, %v12175_v31  ;;  %11580 = vmatmul.mubr.msk.bf16.gmra.mxu1 %vm708_vm2, %v12176_v32  ;;  %v12239_v31 = vld [vmem:[%s16901_s0 + $0x168] sm:$0xff]   ;;  %v12240_v32 = vld [vmem:[%s16901_s0 + $0x478] sm:$0xff]  }
  0x3a   :  { %11385 = vmatprep.mubr.msk.bf16.mxu0 %vm708_vm2, %v12177_v33  ;;  %11583 = vmatprep.mubr.msk.bf16.mxu1 %vm708_vm2, %v12178_v34  ;;  %v12241_v33 = vld [vmem:[%s16901_s0 + $0x170] sm:$0xff]   ;;  %v12242_v34 = vld [vmem:[%s16901_s0 + $0x480] sm:$0xff]  }
  0x41   :  { %11386 = vmatmul.mubr.msk.bf16.gmra.mxu0 %vm708_vm2, %v12179_v35  ;;  %11584 = vmatmul.mubr.msk.bf16.gmra.mxu1 %vm708_vm2, %v12180_v36  ;;  %v12243_v35 = vld [vmem:[%s16901_s0 + $0x178] sm:$0xff]   ;;  %v12244_v36 = vld [vmem:[%s16901_s0 + $0x488] sm:$0xff]  }
  0x42   :  { %11389 = vmatprep.mubr.msk.bf16.mxu0 %vm708_vm2, %v12181_v37  ;;  %11587 = vmatprep.mubr.msk.bf16.mxu1 %vm708_vm2, %v12182_v38  ;;  %v12245_v37 = vld [vmem:[%s16901_s0 + $0x180] sm:$0xff]   ;;  %v12246_v38 = vld [vmem:[%s16901_s0 + $0x490] sm:$0xff]  }
  0x49   :  { %11390 = vmatmul.mubr.msk.bf16.gmra.mxu0 %vm708_vm2, %v12183_v39  ;;  %11588 = vmatmul.mubr.msk.bf16.gmra.mxu1 %vm708_vm2, %v12184_v40  ;;  %v12247_v39 = vld [vmem:[%s16901_s0 + $0x188] sm:$0xff]   ;;  %v12248_v40 = vld [vmem:[%s16901_s0 + $0x498] sm:$0xff]  }
  0x4a   :  { %11393 = vmatprep.mubr.msk.bf16.mxu0 %vm708_vm2, %v12185_v41  ;;  %11591 = vmatprep.mubr.msk.bf16.mxu1 %vm708_vm2, %v12186_v42  ;;  %v12249_v41 = vld [vmem:[%s16901_s0 + $0x190] sm:$0xff]   ;;  %v12250_v42 = vld [vmem:[%s16901_s0 + $0x4a0] sm:$0xff]  }
  0x51   :  { %11394 = vmatmul.mubr.msk.bf16.gmra.mxu0 %vm708_vm2, %v12187_v43  ;;  %11592 = vmatmul.mubr.msk.bf16.gmra.mxu1 %vm708_vm2, %v12188_v44 }
  0x52   :  { %11397 = vmatprep.mubr.msk.bf16.mxu0 %vm708_vm2, %v12189_v45  ;;  %11595 = vmatprep.mubr.msk.bf16.mxu1 %vm708_vm2, %v12190_v46 }
  0x59   :  { %11398 = vmatmul.mubr.msk.bf16.gmra.mxu0 %vm708_vm2, %v12191_v47  ;;  %11596 = vmatmul.mubr.msk.bf16.gmra.mxu1 %vm708_vm2, %v12192_v48  ;;  %v12251_v48 = vld [vmem:[%s16901_s0 + $0x198] sm:$0xff]  }
  0x5a   :  { %11401 = vmatprep.mubr.msk.bf16.mxu0 %vm708_vm2, %v12193_v49  ;;  %11599 = vmatprep.mubr.msk.bf16.mxu1 %vm708_vm2, %v12194_v50  ;;  %v12252_v49 = vld [vmem:[%s16901_s0 + $0x4a8] sm:$0xff]  }
  0x61   :  { %11402 = vmatmul.mubr.msk.bf16.gmra.mxu0 %vm708_vm2, %v12195_v51  ;;  %11600 = vmatmul.mubr.msk.bf16.gmra.mxu1 %vm708_vm2, %v12196_v52 }
  0x62   :  { %11405 = vmatprep.mubr.msk.bf16.mxu0 %vm708_vm2, %v12197_v53  ;;  %11603 = vmatprep.mubr.msk.bf16.mxu1 %vm708_vm2, %v12198_v54  ;;  %v12253_v54 = vld [vmem:[%s16901_s0 + $0x1a0] sm:$0xff]  }
  0x69   :  { %11406 = vmatmul.mubr.msk.bf16.gmra.mxu0 %vm708_vm2, %v12199_v55  ;;  %11604 = vmatmul.mubr.msk.bf16.gmra.mxu1 %vm708_vm2, %v12200_v56  ;;  %v12254_v55 = vld [vmem:[%s16901_s0 + $0x4b0] sm:$0xff]  }
  0x6a   :  { %11409 = vmatprep.mubr.msk.bf16.mxu0 %vm708_vm2, %v12201_v57  ;;  %11607 = vmatprep.mubr.msk.bf16.mxu1 %vm708_vm2, %v12202_v58 }
  0x71   :  { %11410 = vmatmul.mubr.msk.bf16.gmra.mxu0 %vm708_vm2, %v12203_v59  ;;  %11608 = vmatmul.mubr.msk.bf16.gmra.mxu1 %vm708_vm2, %v12204_v60 }
  0x72   :  { %11413 = vmatprep.mubr.msk.bf16.mxu0 %vm708_vm2, %v12205_v61  ;;  %11611 = vmatprep.mubr.msk.bf16.mxu1 %vm708_vm2, %v12206_v62  ;;  %v12278_v61 = vld [vmem:[%s16901_s0 + $0x510] sm:$0xff]  }
  0x79   :  { %11414 = vmatmul.mubr.msk.bf16.gmra.mxu0 %vm708_vm2, %v12207_v63  ;;  %11612 = vmatmul.mubr.msk.bf16.gmra.mxu1 %vm708_vm2, %v12208_v0  ;;  %v12255_v0 = vld [vmem:[%s16901_s0 + $0x1a8] sm:$0xff]  }
  0x7a   :  { %11417 = vmatprep.mubr.msk.bf16.mxu0 %vm708_vm2, %v12209_v1  ;;  %11615 = vmatprep.mubr.msk.bf16.mxu1 %vm708_vm2, %v12210_v2  ;;  %v12256_v1 = vld [vmem:[%s16901_s0 + $0x4b8] sm:$0xff]   ;;  %v12277_v2 = vld [vmem:[%s16901_s0 + $0x200] sm:$0xff]  }
  0x81   :  { %11418 = vmatmul.mubr.msk.bf16.gmra.mxu0 %vm708_vm2, %v12211_v3  ;;  %11616 = vmatmul.mubr.msk.bf16.gmra.mxu1 %vm708_vm2, %v12212_v4 }
  0x82   :  { %11421 = vmatprep.mubr.msk.bf16.mxu0 %vm708_vm2, %v12213_v5  ;;  %11619 = vmatprep.mubr.msk.bf16.mxu1 %vm708_vm2, %v12214_v6  ;;  %v12257_v6 = vld [vmem:[%s16901_s0 + $0x1b0] sm:$0xff]  }
  0x89   :  { %11422 = vmatmul.mubr.msk.bf16.gmra.mxu0 %vm708_vm2, %v12215_v7  ;;  %11620 = vmatmul.mubr.msk.bf16.gmra.mxu1 %vm708_vm2, %v12216_v8  ;;  %v12258_v7 = vld [vmem:[%s16901_s0 + $0x4c0] sm:$0xff]  }
  0x8a   :  { %11425 = vmatprep.mubr.msk.bf16.mxu0 %vm708_vm2, %v12217_v9  ;;  %11623 = vmatprep.mubr.msk.bf16.mxu1 %vm708_vm2, %v12218_v10 }
  0x91   :  { %11426 = vmatmul.mubr.msk.bf16.gmra.mxu0 %vm708_vm2, %v12219_v11  ;;  %11624 = vmatmul.mubr.msk.bf16.gmra.mxu1 %vm708_vm2, %v12220_v12 }
  0x92   :  { %11429 = vmatprep.mubr.msk.bf16.mxu0 %vm708_vm2, %v12221_v13  ;;  %11627 = vmatprep.mubr.msk.bf16.mxu1 %vm708_vm2, %v12222_v14 }
  0x99   :  { %11430 = vmatmul.mubr.msk.bf16.gmra.mxu0 %vm708_vm2, %v12223_v15  ;;  %11628 = vmatmul.mubr.msk.bf16.gmra.mxu1 %vm708_vm2, %v12224_v16  ;;  %v12259_v16 = vld [vmem:[%s16901_s0 + $0x1b8] sm:$0xff]  }
  0x9a   :  { %11433 = vmatprep.mubr.msk.bf16.mxu0 %vm708_vm2, %v12225_v17  ;;  %11631 = vmatprep.mubr.msk.bf16.mxu1 %vm708_vm2, %v12226_v18  ;;  %v12260_v17 = vld [vmem:[%s16901_s0 + $0x4c8] sm:$0xff]  }
  0xa1   :  { %11434 = vmatmul.mubr.msk.bf16.gmra.mxu0 %vm708_vm2, %v12227_v19  ;;  %11632 = vmatmul.mubr.msk.bf16.gmra.mxu1 %vm708_vm2, %v12228_v20 }
  0xa2   :  { %11437 = vmatprep.mubr.msk.bf16.mxu0 %vm708_vm2, %v12229_v21  ;;  %11635 = vmatprep.mubr.msk.bf16.mxu1 %vm708_vm2, %v12230_v22  ;;  %v12261_v22 = vld [vmem:[%s16901_s0 + $0x1c0] sm:$0xff]  }
  0xa9   :  { %11438 = vmatmul.mubr.msk.bf16.gmra.mxu0 %vm708_vm2, %v12231_v23  ;;  %11636 = vmatmul.mubr.msk.bf16.gmra.mxu1 %vm708_vm2, %v12232_v24  ;;  %v12262_v23 = vld [vmem:[%s16901_s0 + $0x4d0] sm:$0xff]  }
  0xaa   :  { %11441 = vmatprep.mubr.msk.bf16.mxu0 %vm708_vm2, %v12233_v25  ;;  %11639 = vmatprep.mubr.msk.bf16.mxu1 %vm708_vm2, %v12234_v26 }
  0xb1   :  { %11442 = vmatmul.mubr.msk.bf16.gmra.mxu0 %vm708_vm2, %v12235_v27  ;;  %11640 = vmatmul.mubr.msk.bf16.gmra.mxu1 %vm708_vm2, %v12236_v28 }
  0xb2   :  { %11445 = vmatprep.mubr.msk.bf16.mxu0 %vm708_vm2, %v12237_v29  ;;  %11643 = vmatprep.mubr.msk.bf16.mxu1 %vm708_vm2, %v12238_v30  ;;  %v12274_v29 = vld [vmem:[%s16901_s0 + $0x500] sm:$0xff]  }
  0xb9   :  { %11446 = vmatmul.mubr.msk.bf16.gmra.mxu0 %vm708_vm2, %v12239_v31  ;;  %11644 = vmatmul.mubr.msk.bf16.gmra.mxu1 %vm708_vm2, %v12240_v32  ;;  %v12263_v32 = vld [vmem:[%s16901_s0 + $0x1c8] sm:$0xff]  }
  0xba   :  { %11449 = vmatprep.mubr.msk.bf16.mxu0 %vm708_vm2, %v12241_v33  ;;  %11647 = vmatprep.mubr.msk.bf16.mxu1 %vm708_vm2, %v12242_v34  ;;  %v12264_v33 = vld [vmem:[%s16901_s0 + $0x4d8] sm:$0xff]   ;;  %v12273_v34 = vld [vmem:[%s16901_s0 + $0x1f0] sm:$0xff]  }
  0xc1   :  { %11450 = vmatmul.mubr.msk.bf16.gmra.mxu0 %vm708_vm2, %v12243_v35  ;;  %11648 = vmatmul.mubr.msk.bf16.gmra.mxu1 %vm708_vm2, %v12244_v36 }
  0xc2   :  { %11453 = vmatprep.mubr.msk.bf16.mxu0 %vm708_vm2, %v12245_v37  ;;  %11651 = vmatprep.mubr.msk.bf16.mxu1 %vm708_vm2, %v12246_v38  ;;  %v12265_v38 = vld [vmem:[%s16901_s0 + $0x1d0] sm:$0xff]  }
  0xc9   :  { %v12972_v43 = vpop.f32.mrf.mxu0  ;;  %11454 = vmatmul.mubr.msk.bf16.gmra.mxu0 %vm708_vm2, %v12247_v39  ;;  %v12975_v44 = vpop.f32.mrf.mxu1  ;;  %11652 = vmatmul.mubr.msk.bf16.gmra.mxu1 %vm708_vm2, %v12248_v40  ;;  %v12266_v39 = vld [vmem:[%s16901_s0 + $0x4e0] sm:$0xff]  }
  0xca   :  { %11457 = vmatprep.mubr.msk.bf16.mxu0 %vm708_vm2, %v12249_v41  ;;  %11655 = vmatprep.mubr.msk.bf16.mxu1 %vm708_vm2, %v12250_v42 }
  0xcb   :  { %v12982_v46 = vpop.f32.mrf.mxu0  ;;  %v12984_v47 = vpop.f32.mrf.mxu1 }
  0xcd   :  { %v12994_v51 = vpop.f32.mrf.mxu0  ;;  %v12996_v52 = vpop.f32.mrf.mxu1 }
  0xcf   :  { %v13006_v56 = vpop.f32.mrf.mxu0  ;;  %v13008_v57 = vpop.f32.mrf.mxu1 }
  0xd1   :  { %v13012_v59 = vpop.f32.mrf.mxu0  ;;  %11458 = vmatmul.mubr.msk.bf16.gmra.mxu0 %vm708_vm2, %v12251_v48  ;;  %v13015_v60 = vpop.f32.mrf.mxu1  ;;  %11656 = vmatmul.mubr.msk.bf16.gmra.mxu1 %vm708_vm2, %v12252_v49 }
  0xd2   :  { %11461 = vmatprep.mubr.msk.bf16.mxu0 %vm708_vm2, %v12253_v54  ;;  %11659 = vmatprep.mubr.msk.bf16.mxu1 %vm708_vm2, %v12254_v55 }
  0xd3   :  { %v13022_v62 = vpop.f32.mrf.mxu0  ;;  %v13024_v63 = vpop.f32.mrf.mxu1 }
  0xd5   :  { %v13034_v3 = vpop.f32.mrf.mxu0  ;;  %v13036_v4 = vpop.f32.mrf.mxu1 }
  0xd7   :  { %v13046_v8 = vpop.f32.mrf.mxu0  ;;  %v13048_v9 = vpop.f32.mrf.mxu1 }
  0xd9   :  { %v13052_v11 = vpop.f32.mrf.mxu0  ;;  %11462 = vmatmul.mubr.msk.bf16.gmra.mxu0 %vm708_vm2, %v12255_v0  ;;  %v13055_v12 = vpop.f32.mrf.mxu1  ;;  %11660 = vmatmul.mubr.msk.bf16.gmra.mxu1 %vm708_vm2, %v12256_v1  ;;  %v12267_v1 = vld [vmem:[%s16901_s0 + $0x1d8] sm:$0xff]  }
  0xda   :  { %11465 = vmatprep.mubr.msk.bf16.mxu0 %vm708_vm2, %v12257_v6  ;;  %11663 = vmatprep.mubr.msk.bf16.mxu1 %vm708_vm2, %v12258_v7  ;;  %v12268_v6 = vld [vmem:[%s16901_s0 + $0x4e8] sm:$0xff]  }
  0xdb   :  { %v13062_v14 = vpop.f32.mrf.mxu0  ;;  %v13064_v15 = vpop.f32.mrf.mxu1 }
  0xdd   :  { %v13074_v19 = vpop.f32.mrf.mxu0  ;;  %v13076_v20 = vpop.f32.mrf.mxu1 }
  0xdf   :  { %v13086_v24 = vpop.f32.mrf.mxu0  ;;  %v13088_v25 = vpop.f32.mrf.mxu1 }
  0xe1   :  { %v13092_v27 = vpop.f32.mrf.mxu0  ;;  %11466 = vmatmul.mubr.msk.bf16.gmra.mxu0 %vm708_vm2, %v12259_v16  ;;  %v13095_v28 = vpop.f32.mrf.mxu1  ;;  %11664 = vmatmul.mubr.msk.bf16.gmra.mxu1 %vm708_vm2, %v12260_v17 }
  0xe2   :  { %11469 = vmatprep.mubr.msk.bf16.mxu0 %vm708_vm2, %v12261_v22  ;;  %11667 = vmatprep.mubr.msk.bf16.mxu1 %vm708_vm2, %v12262_v23  ;;  %v12269_v23 = vld [vmem:[%s16901_s0 + $0x1e0] sm:$0xff]  }
  0xe3   :  { %v13102_v30 = vpop.f32.mrf.mxu0  ;;  %v13104_v31 = vpop.f32.mrf.mxu1 }
  0xe5   :  { %v13114_v35 = vpop.f32.mrf.mxu0  ;;  %v13116_v36 = vpop.f32.mrf.mxu1 }
  0xe7   :  { %v13126_v40 = vpop.f32.mrf.mxu0  ;;  %v13128_v41 = vpop.f32.mrf.mxu1 }
  0xe9   :  { %v13132_v48 = vpop.f32.mrf.mxu0  ;;  %11470 = vmatmul.mubr.msk.bf16.gmra.mxu0 %vm708_vm2, %v12263_v32  ;;  %v13135_v49 = vpop.f32.mrf.mxu1  ;;  %11668 = vmatmul.mubr.msk.bf16.gmra.mxu1 %vm708_vm2, %v12264_v33  ;;  %v12270_v32 = vld [vmem:[%s16901_s0 + $0x4f0] sm:$0xff]  }
  0xea   :  { %11473 = vmatprep.mubr.msk.bf16.mxu0 %vm708_vm2, %v12265_v38  ;;  %11671 = vmatprep.mubr.msk.bf16.mxu1 %vm708_vm2, %v12266_v39  ;;  %v12271_v39 = vld [vmem:[%s16901_s0 + $0x1e8] sm:$0xff]  }
  0xeb   :  { %v13142_v55 = vpop.f32.mrf.mxu0  ;;  %v13144_v0 = vpop.f32.mrf.mxu1 }
  0xed   :  { %v13154_v16 = vpop.f32.mrf.mxu0  ;;  %v13156_v17 = vpop.f32.mrf.mxu1 }
  0xef   :  { %v13166_v33 = vpop.f32.mrf.mxu0  ;;  %v13168_v38 = vpop.f32.mrf.mxu1 }
  0xf1   :  { %v13172_v7 = vpop.f32.mrf.mxu0  ;;  %11474 = vmatmul.mubr.msk.bf16.gmra.mxu0 %vm708_vm2, %v12267_v1  ;;  %v13175_v22 = vpop.f32.mrf.mxu1  ;;  %11672 = vmatmul.mubr.msk.bf16.gmra.mxu1 %vm708_vm2, %v12268_v6  ;;  %v12272_v1 = vld [vmem:[%s16901_s0 + $0x4f8] sm:$0xff]  }
  0xf2   :  { %11477 = vmatprep.mubr.msk.bf16.mxu0 %vm708_vm2, %v12269_v23  ;;  %11675 = vmatprep.mubr.msk.bf16.mxu1 %vm708_vm2, %v12270_v32  ;;  %v12275_v6 = vld [vmem:[%s16901_s0 + $0x1f8] sm:$0xff]  }
  0xf3   :  { %v13182_v42 = vpop.f32.mrf.mxu0  ;;  %v13184_v37 = vpop.f32.mrf.mxu1 }
  0xf5   :  { %v13194_v54 = vpop.f32.mrf.mxu0  ;;  %v13196_v23 = vpop.f32.mrf.mxu1 }
  0xf7   :  { %v13206_v26 = vpop.f32.mrf.mxu0  ;;  %v13208_v21 = vpop.f32.mrf.mxu1 }
  0xf9   :  { %v13212_v18 = vpop.f32.mrf.mxu0  ;;  %11478 = vmatmul.mubr.msk.bf16.gmra.mxu0 %vm708_vm2, %v12271_v39  ;;  %v13215_v32 = vpop.f32.mrf.mxu1  ;;  %11676 = vmatmul.mubr.msk.bf16.gmra.mxu1 %vm708_vm2, %v12272_v1  ;;  %v12276_v39 = vld [vmem:[%s16901_s0 + $0x508] sm:$0xff]  }
  0xfa   :  { %17248 = vst [vmem:[#allocation2_spill] sm:$0xff] %v13212_v18  ;;  %17249 = vst [vmem:[#allocation3_spill] sm:$0xff] %v13215_v32  ;;  %11481 = vmatprep.mubr.msk.bf16.mxu0 %vm708_vm2, %v12273_v34  ;;  %11679 = vmatprep.mubr.msk.bf16.mxu1 %vm708_vm2, %v12274_v29  ;;  %v12279_v1 = vld [vmem:[%s16901_s0 + $0x208] sm:$0xff]  }
  0xfb   :  { %v13222_v10 = vpop.f32.mrf.mxu0  ;;  %v13224_v5 = vpop.f32.mrf.mxu1 }
  0xfc   :  { %17250 = vst [vmem:[#allocation4_spill] sm:$0xff] %v13222_v10  ;;  %17251 = vst [vmem:[#allocation5_spill] sm:$0xff] %v13224_v5 }
  0xfd   :  { %v13234_v13 = vpop.f32.mrf.mxu0  ;;  %v13236_v34 = vpop.f32.mrf.mxu1 }
  0xfe   :  { %17252 = vst [vmem:[#allocation6_spill] sm:$0xff] %v13234_v13  ;;  %17253 = vst [vmem:[#allocation7_spill] sm:$0xff] %v13236_v34 }
  0xff   :  { %v13246_v58 = vpop.f32.mrf.mxu0  ;;  %v13248_v53 = vpop.f32.mrf.mxu1 }
 0x100   :  { %17254 = vst [vmem:[#allocation8_spill] sm:$0xff] %v13246_v58  ;;  %17255 = vst [vmem:[#allocation9_spill] sm:$0xff] %v13248_v53 }
 0x101   :  { %v13252_v50 = vpop.f32.mrf.mxu0  ;;  %11482 = vmatmul.mubr.msk.bf16.gmra.mxu0 %vm708_vm2, %v12275_v6  ;;  %v13255_v29 = vpop.f32.mrf.mxu1  ;;  %11680 = vmatmul.mubr.msk.bf16.gmra.mxu1 %vm708_vm2, %v12276_v39  ;;  %v12280_v6 = vld [vmem:[%s16901_s0 + $0x518] sm:$0xff]  }
 0x102   :  { %17256 = vst [vmem:[#allocation10_spill] sm:$0xff] %v13252_v50  ;;  %17257 = vst [vmem:[#allocation11_spill] sm:$0xff] %v13255_v29  ;;  %11485 = vmatprep.mubr.msk.bf16.mxu0 %vm708_vm2, %v12277_v2  ;;  %11683 = vmatprep.mubr.msk.bf16.mxu1 %vm708_vm2, %v12278_v61  ;;  %v12281_v29 = vld [vmem:[%s16901_s0 + $0x210] sm:$0xff]   ;;  %v12282_v50 = vld [vmem:[%s16901_s0 + $0x520] sm:$0xff]  }
 0x103   :  { %v13262_v34 = vpop.f32.mrf.mxu0  ;;  %v13264_v13 = vpop.f32.mrf.mxu1  ;;  %v12283_v39 = vld [vmem:[%s16901_s0 + $0x218] sm:$0xff]  }
 0x104   :  { %17258 = vst [vmem:[#allocation12_spill] sm:$0xff] %v13262_v34  ;;  %17259 = vst [vmem:[#allocation13_spill] sm:$0xff] %v13264_v13 }
 0x105   :  { %v13274_v45 = vpop.f32.mrf.mxu0  ;;  %v13276_v2 = vpop.f32.mrf.mxu1 }
 0x106   :  { %17260 = vst [vmem:[#allocation14_spill] sm:$0xff] %v13274_v45  ;;  %17261 = vst [vmem:[#allocation15_spill] sm:$0xff] %v13276_v2 }
 0x107   :  { %v13286_v53 = vpop.f32.mrf.mxu0  ;;  %v13288_v58 = vpop.f32.mrf.mxu1 }
 0x108   :  { %17262 = vst [vmem:[#allocation16_spill] sm:$0xff] %v13286_v53  ;;  %17263 = vst [vmem:[#allocation17_spill] sm:$0xff] %v13288_v58 }
 0x109   :  { %v13292_v13 = vpop.f32.mrf.mxu0  ;;  %11486 = vmatmul.mubr.msk.bf16.gmra.mxu0 %vm708_vm2, %v12279_v1  ;;  %v13295_v61 = vpop.f32.mrf.mxu1  ;;  %11684 = vmatmul.mubr.msk.bf16.gmra.mxu1 %vm708_vm2, %v12280_v6  ;;  %v12284_v1 = vld [vmem:[%s16901_s0 + $0x528] sm:$0xff]  }
 0x10a   :  { %17264 = vst [vmem:[#allocation18_spill] sm:$0xff] %v13292_v13  ;;  %17265 = vst [vmem:[#allocation19_spill] sm:$0xff] %v13295_v61  ;;  %11489 = vmatprep.mubr.msk.bf16.mxu0 %vm708_vm2, %v12281_v29  ;;  %11687 = vmatprep.mubr.msk.bf16.mxu1 %vm708_vm2, %v12282_v50  ;;  %v12285_v61 = vld [vmem:[%s16901_s0 + $0x220] sm:$0xff]   ;;  %v12286_v13 = vld [vmem:[%s16901_s0 + $0x530] sm:$0xff]  }
 0x10b   :  { %v13302_v45 = vpop.f32.mrf.mxu0  ;;  %v13304_v34 = vpop.f32.mrf.mxu1  ;;  %v12287_v6 = vld [vmem:[%s16901_s0 + $0x228] sm:$0xff]  }
 0x10c   :  { %17266 = vst [vmem:[#allocation20_spill] sm:$0xff] %v13302_v45  ;;  %17267 = vst [vmem:[#allocation21_spill] sm:$0xff] %v13304_v34 }
 0x10d   :  { %v13314_v2 = vpop.f32.mrf.mxu0  ;;  %v13316_v29 = vpop.f32.mrf.mxu1 }
 0x10e   :  { %17268 = vst [vmem:[#allocation22_spill] sm:$0xff] %v13314_v2  ;;  %17269 = vst [vmem:[#allocation23_spill] sm:$0xff] %v13316_v29 }
 0x10f   :  { %v13326_v58 = vpop.f32.mrf.mxu0  ;;  %v13328_v53 = vpop.f32.mrf.mxu1 }
 0x110   :  { %17270 = vst [vmem:[#allocation24_spill] sm:$0xff] %v13326_v58  ;;  %17271 = vst [vmem:[#allocation25_spill] sm:$0xff] %v13328_v53 }
 0x111   :  { %v13332_v34 = vpop.f32.mrf.mxu0  ;;  %11490 = vmatmul.mubr.msk.bf16.gmra.mxu0 %vm708_vm2, %v12283_v39  ;;  %v13335_v50 = vpop.f32.mrf.mxu1  ;;  %11688 = vmatmul.mubr.msk.bf16.gmra.mxu1 %vm708_vm2, %v12284_v1  ;;  %v12288_v39 = vld [vmem:[%s16901_s0 + $0x538] sm:$0xff]  }
 0x112   :  { %17272 = vst [vmem:[#allocation26_spill] sm:$0xff] %v13332_v34  ;;  %17273 = vst [vmem:[#allocation27_spill] sm:$0xff] %v13335_v50  ;;  %11493 = vmatprep.mubr.msk.bf16.mxu0 %vm708_vm2, %v12285_v61  ;;  %11691 = vmatprep.mubr.msk.bf16.mxu1 %vm708_vm2, %v12286_v13  ;;  %v12289_v50 = vld [vmem:[%s16901_s0 + $0x230] sm:$0xff]   ;;  %v12290_v34 = vld [vmem:[%s16901_s0 + $0x540] sm:$0xff]  }
 0x113   :  { %v13342_v2 = vpop.f32.mrf.mxu0  ;;  %v13344_v45 = vpop.f32.mrf.mxu1  ;;  %v12291_v1 = vld [vmem:[%s16901_s0 + $0x238] sm:$0xff]  }
 0x114   :  { %17274 = vst [vmem:[#allocation28_spill] sm:$0xff] %v13342_v2  ;;  %17275 = vst [vmem:[#allocation29_spill] sm:$0xff] %v13344_v45 }
 0x115   :  { %v13354_v29 = vpop.f32.mrf.mxu0  ;;  %v13356_v61 = vpop.f32.mrf.mxu1 }
 0x116   :  { %17276 = vst [vmem:[#allocation30_spill] sm:$0xff] %v13354_v29  ;;  %17277 = vst [vmem:[#allocation31_spill] sm:$0xff] %v13356_v61 }
 0x117   :  { %v13366_v53 = vpop.f32.mrf.mxu0  ;;  %v13368_v58 = vpop.f32.mrf.mxu1 }
 0x118   :  { %17278 = vst [vmem:[#allocation32_spill] sm:$0xff] %v13366_v53  ;;  %17279 = vst [vmem:[#allocation33_spill] sm:$0xff] %v13368_v58 }
 0x119   :  { %v13372_v45 = vpop.f32.mrf.mxu0  ;;  %11494 = vmatmul.mubr.msk.bf16.gmra.mxu0 %vm708_vm2, %v12287_v6  ;;  %v13375_v13 = vpop.f32.mrf.mxu1  ;;  %11692 = vmatmul.mubr.msk.bf16.gmra.mxu1 %vm708_vm2, %v12288_v39  ;;  %v12292_v6 = vld [vmem:[%s16901_s0 + $0x548] sm:$0xff]  }
 0x11a   :  { %17280 = vst [vmem:[#allocation34_spill] sm:$0xff] %v13372_v45  ;;  %17281 = vst [vmem:[#allocation35_spill] sm:$0xff] %v13375_v13  ;;  %11497 = vmatprep.mubr.msk.bf16.mxu0 %vm708_vm2, %v12289_v50  ;;  %11695 = vmatprep.mubr.msk.bf16.mxu1 %vm708_vm2, %v12290_v34  ;;  %v12293_v13 = vld [vmem:[%s16901_s0 + $0x240] sm:$0xff]   ;;  %v12294_v45 = vld [vmem:[%s16901_s0 + $0x550] sm:$0xff]  }
 0x11b   :  { %v13382_v29 = vpop.f32.mrf.mxu0  ;;  %v13384_v2 = vpop.f32.mrf.mxu1  ;;  %v12295_v39 = vld [vmem:[%s16901_s0 + $0x248] sm:$0xff]  }
 0x11c   :  { %17282 = vst [vmem:[#allocation36_spill] sm:$0xff] %v13382_v29  ;;  %17283 = vst [vmem:[#allocation37_spill] sm:$0xff] %v13384_v2 }
 0x11d   :  { %v13394_v61 = vpop.f32.mrf.mxu0  ;;  %v13396_v50 = vpop.f32.mrf.mxu1 }
 0x11e   :  { %17284 = vst [vmem:[#allocation38_spill] sm:$0xff] %v13394_v61  ;;  %17285 = vst [vmem:[#allocation39_spill] sm:$0xff] %v13396_v50 }
 0x11f   :  { %v13406_v58 = vpop.f32.mrf.mxu0  ;;  %v13408_v53 = vpop.f32.mrf.mxu1 }
 0x120   :  { %17286 = vst [vmem:[#allocation40_spill] sm:$0xff] %v13406_v58  ;;  %17287 = vst [vmem:[#allocation41_spill] sm:$0xff] %v13408_v53 }
 0x121   :  { %v13412_v2 = vpop.f32.mrf.mxu0  ;;  %11498 = vmatmul.mubr.msk.bf16.gmra.mxu0 %vm708_vm2, %v12291_v1  ;;  %v13415_v34 = vpop.f32.mrf.mxu1  ;;  %11696 = vmatmul.mubr.msk.bf16.gmra.mxu1 %vm708_vm2, %v12292_v6  ;;  %v12296_v1 = vld [vmem:[%s16901_s0 + $0x558] sm:$0xff]  }
 0x122   :  { %17288 = vst [vmem:[#allocation42_spill] sm:$0xff] %v13412_v2  ;;  %17289 = vst [vmem:[#allocation43_spill] sm:$0xff] %v13415_v34  ;;  %11501 = vmatprep.mubr.msk.bf16.mxu0 %vm708_vm2, %v12293_v13  ;;  %11699 = vmatprep.mubr.msk.bf16.mxu1 %vm708_vm2, %v12294_v45  ;;  %v12297_v34 = vld [vmem:[%s16901_s0 + $0x250] sm:$0xff]   ;;  %v12298_v2 = vld [vmem:[%s16901_s0 + $0x560] sm:$0xff]  }
 0x123   :  { %v13422_v61 = vpop.f32.mrf.mxu0  ;;  %v13424_v29 = vpop.f32.mrf.mxu1  ;;  %v12299_v6 = vld [vmem:[%s16901_s0 + $0x258] sm:$0xff]  }
 0x124   :  { %17290 = vst [vmem:[#allocation44_spill] sm:$0xff] %v13422_v61  ;;  %17291 = vst [vmem:[#allocation45_spill] sm:$0xff] %v13424_v29 }
 0x125   :  { %v13434_v50 = vpop.f32.mrf.mxu0  ;;  %v13436_v13 = vpop.f32.mrf.mxu1 }
 0x126   :  { %17292 = vst [vmem:[#allocation46_spill] sm:$0xff] %v13434_v50  ;;  %17293 = vst [vmem:[#allocation47_spill] sm:$0xff] %v13436_v13 }
 0x127   :  { %v13446_v53 = vpop.f32.mrf.mxu0  ;;  %v13448_v58 = vpop.f32.mrf.mxu1 }
 0x128   :  { %17294 = vst [vmem:[#allocation48_spill] sm:$0xff] %v13446_v53  ;;  %17295 = vst [vmem:[#allocation49_spill] sm:$0xff] %v13448_v58 }
 0x129   :  { %v13452_v29 = vpop.f32.mrf.mxu0  ;;  %11502 = vmatmul.mubr.msk.bf16.gmra.mxu0 %vm708_vm2, %v12295_v39  ;;  %v13455_v45 = vpop.f32.mrf.mxu1  ;;  %11700 = vmatmul.mubr.msk.bf16.gmra.mxu1 %vm708_vm2, %v12296_v1  ;;  %v12300_v39 = vld [vmem:[%s16901_s0 + $0x568] sm:$0xff]  }
 0x12a   :  { %17296 = vst [vmem:[#allocation50_spill] sm:$0xff] %v13452_v29  ;;  %17297 = vst [vmem:[#allocation51_spill] sm:$0xff] %v13455_v45  ;;  %11505 = vmatprep.mubr.msk.bf16.mxu0 %vm708_vm2, %v12297_v34  ;;  %11703 = vmatprep.mubr.msk.bf16.mxu1 %vm708_vm2, %v12298_v2  ;;  %v12301_v45 = vld [vmem:[%s16901_s0 + $0x260] sm:$0xff]   ;;  %v12302_v29 = vld [vmem:[%s16901_s0 + $0x570] sm:$0xff]  }
 0x12b   :  { %v13462_v50 = vpop.f32.mrf.mxu0  ;;  %v13464_v61 = vpop.f32.mrf.mxu1  ;;  %v12303_v1 = vld [vmem:[%s16901_s0 + $0x268] sm:$0xff]  }
 0x12c   :  { %17298 = vst [vmem:[#allocation52_spill] sm:$0xff] %v13462_v50  ;;  %17299 = vst [vmem:[#allocation53_spill] sm:$0xff] %v13464_v61 }
 0x12d   :  { %v13474_v13 = vpop.f32.mrf.mxu0  ;;  %v13476_v34 = vpop.f32.mrf.mxu1 }
 0x12e   :  { %17300 = vst [vmem:[#allocation54_spill] sm:$0xff] %v13474_v13  ;;  %17301 = vst [vmem:[#allocation55_spill] sm:$0xff] %v13476_v34 }
 0x12f   :  { %v13486_v58 = vpop.f32.mrf.mxu0  ;;  %v13488_v53 = vpop.f32.mrf.mxu1 }
 0x130   :  { %17302 = vst [vmem:[#allocation56_spill] sm:$0xff] %v13486_v58  ;;  %17303 = vst [vmem:[#allocation57_spill] sm:$0xff] %v13488_v53 }
 0x131   :  { %v13492_v61 = vpop.f32.mrf.mxu0  ;;  %11506 = vmatmul.mubr.msk.bf16.gmra.mxu0 %vm708_vm2, %v12299_v6  ;;  %v13495_v2 = vpop.f32.mrf.mxu1  ;;  %11704 = vmatmul.mubr.msk.bf16.gmra.mxu1 %vm708_vm2, %v12300_v39  ;;  %v12304_v6 = vld [vmem:[%s16901_s0 + $0x578] sm:$0xff]  }
 0x132   :  { %17304 = vst [vmem:[#allocation58_spill] sm:$0xff] %v13492_v61  ;;  %17305 = vst [vmem:[#allocation59_spill] sm:$0xff] %v13495_v2  ;;  %11509 = vmatprep.mubr.msk.bf16.mxu0 %vm708_vm2, %v12301_v45  ;;  %11707 = vmatprep.mubr.msk.bf16.mxu1 %vm708_vm2, %v12302_v29  ;;  %v12305_v2 = vld [vmem:[%s16901_s0 + $0x270] sm:$0xff]   ;;  %v12306_v61 = vld [vmem:[%s16901_s0 + $0x580] sm:$0xff]  }
 0x133   :  { %v13502_v13 = vpop.f32.mrf.mxu0  ;;  %v13504_v50 = vpop.f32.mrf.mxu1  ;;  %v12307_v39 = vld [vmem:[%s16901_s0 + $0x278] sm:$0xff]  }
 0x134   :  { %17306 = vst [vmem:[#allocation60_spill] sm:$0xff] %v13502_v13  ;;  %17307 = vst [vmem:[#allocation61_spill] sm:$0xff] %v13504_v50 }
 0x135   :  { %v13514_v34 = vpop.f32.mrf.mxu0  ;;  %v13516_v45 = vpop.f32.mrf.mxu1 }
 0x136   :  { %17308 = vst [vmem:[#allocation62_spill] sm:$0xff] %v13514_v34  ;;  %17309 = vst [vmem:[#allocation63_spill] sm:$0xff] %v13516_v45 }
 0x137   :  { %v13526_v53 = vpop.f32.mrf.mxu0  ;;  %v13528_v58 = vpop.f32.mrf.mxu1 }
 0x138   :  { %17310 = vst [vmem:[#allocation64_spill] sm:$0xff] %v13526_v53  ;;  %17311 = vst [vmem:[#allocation65_spill] sm:$0xff] %v13528_v58 }
 0x139   :  { %v13532_v50 = vpop.f32.mrf.mxu0  ;;  %11510 = vmatmul.mubr.msk.bf16.gmra.mxu0 %vm708_vm2, %v12303_v1  ;;  %v13535_v29 = vpop.f32.mrf.mxu1  ;;  %11708 = vmatmul.mubr.msk.bf16.gmra.mxu1 %vm708_vm2, %v12304_v6  ;;  %v12308_v1 = vld [vmem:[%s16901_s0 + $0x588] sm:$0xff]  }
 0x13a   :  { %17312 = vst [vmem:[#allocation66_spill] sm:$0xff] %v13532_v50  ;;  %17313 = vst [vmem:[#allocation67_spill] sm:$0xff] %v13535_v29  ;;  %11513 = vmatprep.mubr.msk.bf16.mxu0 %vm708_vm2, %v12305_v2  ;;  %11711 = vmatprep.mubr.msk.bf16.mxu1 %vm708_vm2, %v12306_v61  ;;  %v12309_v29 = vld [vmem:[%s16901_s0 + $0x280] sm:$0xff]   ;;  %v12310_v50 = vld [vmem:[%s16901_s0 + $0x590] sm:$0xff]  }
 0x13b   :  { %v13542_v34 = vpop.f32.mrf.mxu0  ;;  %v13544_v13 = vpop.f32.mrf.mxu1  ;;  %v12311_v6 = vld [vmem:[%s16901_s0 + $0x288] sm:$0xff]  }
 0x13c   :  { %17314 = vst [vmem:[#allocation68_spill] sm:$0xff] %v13542_v34  ;;  %17315 = vst [vmem:[#allocation69_spill] sm:$0xff] %v13544_v13 }
 0x13d   :  { %v13554_v45 = vpop.f32.mrf.mxu0  ;;  %v13556_v2 = vpop.f32.mrf.mxu1 }
 0x13e   :  { %17316 = vst [vmem:[#allocation70_spill] sm:$0xff] %v13554_v45  ;;  %17317 = vst [vmem:[#allocation71_spill] sm:$0xff] %v13556_v2 }
 0x13f   :  { %v13566_v58 = vpop.f32.mrf.mxu0  ;;  %v13568_v53 = vpop.f32.mrf.mxu1 }
 0x140   :  { %17318 = vst [vmem:[#allocation72_spill] sm:$0xff] %v13566_v58  ;;  %17319 = vst [vmem:[#allocation73_spill] sm:$0xff] %v13568_v53 }
 0x141   :  { %v13572_v13 = vpop.f32.mrf.mxu0  ;;  %11514 = vmatmul.mubr.msk.bf16.gmra.mxu0 %vm708_vm2, %v12307_v39  ;;  %v13575_v61 = vpop.f32.mrf.mxu1  ;;  %11712 = vmatmul.mubr.msk.bf16.gmra.mxu1 %vm708_vm2, %v12308_v1  ;;  %v12312_v39 = vld [vmem:[%s16901_s0 + $0x598] sm:$0xff]  }
 0x142   :  { %17320 = vst [vmem:[#allocation74_spill] sm:$0xff] %v13572_v13  ;;  %17321 = vst [vmem:[#allocation75_spill] sm:$0xff] %v13575_v61  ;;  %11517 = vmatprep.mubr.msk.bf16.mxu0 %vm708_vm2, %v12309_v29  ;;  %11715 = vmatprep.mubr.msk.bf16.mxu1 %vm708_vm2, %v12310_v50  ;;  %v12313_v61 = vld [vmem:[%s16901_s0 + $0x290] sm:$0xff]   ;;  %v12314_v13 = vld [vmem:[%s16901_s0 + $0x5a0] sm:$0xff]  }
 0x143   :  { %v13582_v45 = vpop.f32.mrf.mxu0  ;;  %v13584_v34 = vpop.f32.mrf.mxu1  ;;  %v12315_v1 = vld [vmem:[%s16901_s0 + $0x298] sm:$0xff]  }
 0x144   :  { %17322 = vst [vmem:[#allocation76_spill] sm:$0xff] %v13582_v45  ;;  %17323 = vst [vmem:[#allocation77_spill] sm:$0xff] %v13584_v34 }
 0x145   :  { %v13594_v2 = vpop.f32.mrf.mxu0  ;;  %v13596_v29 = vpop.f32.mrf.mxu1 }
 0x146   :  { %17324 = vst [vmem:[#allocation78_spill] sm:$0xff] %v13594_v2  ;;  %17325 = vst [vmem:[#allocation79_spill] sm:$0xff] %v13596_v29 }
 0x147   :  { %v13606_v53 = vpop.f32.mrf.mxu0  ;;  %v13608_v58 = vpop.f32.mrf.mxu1 }
 0x148   :  { %17326 = vst [vmem:[#allocation80_spill] sm:$0xff] %v13606_v53  ;;  %17327 = vst [vmem:[#allocation81_spill] sm:$0xff] %v13608_v58 }
 0x149   :  { %v13612_v34 = vpop.f32.mrf.mxu0  ;;  %11518 = vmatmul.mubr.msk.bf16.gmra.mxu0 %vm708_vm2, %v12311_v6  ;;  %v13615_v50 = vpop.f32.mrf.mxu1  ;;  %11716 = vmatmul.mubr.msk.bf16.gmra.mxu1 %vm708_vm2, %v12312_v39  ;;  %v12316_v6 = vld [vmem:[%s16901_s0 + $0x5a8] sm:$0xff]   ;;  %v12322_v39 = vld [vmem:[%s16901_s0 + $0x5c0] sm:$0xff]  }
 0x14a   :  { %17328 = vst [vmem:[#allocation82_spill] sm:$0xff] %v13612_v34  ;;  %17329 = vst [vmem:[#allocation83_spill] sm:$0xff] %v13615_v50  ;;  %11521 = vmatprep.mubr.msk.bf16.mxu0 %vm708_vm2, %v12313_v61  ;;  %11719 = vmatprep.mubr.msk.bf16.mxu1 %vm708_vm2, %v12314_v13  ;;  %v12317_v50 = vld [vmem:[%s16901_s0 + $0x2a0] sm:$0xff]   ;;  %v12318_v34 = vld [vmem:[%s16901_s0 + $0x5b0] sm:$0xff]  }
 0x14b   :  { %v13622_v2 = vpop.f32.mrf.mxu0  ;;  %v13624_v45 = vpop.f32.mrf.mxu1 }
 0x14c   :  { %17330 = vst [vmem:[#allocation84_spill] sm:$0xff] %v13622_v2  ;;  %17331 = vst [vmem:[#allocation85_spill] sm:$0xff] %v13624_v45 }
 0x14d   :  { %v13634_v29 = vpop.f32.mrf.mxu0  ;;  %v13636_v61 = vpop.f32.mrf.mxu1 }
 0x14e   :  { %17332 = vst [vmem:[#allocation86_spill] sm:$0xff] %v13634_v29  ;;  %17333 = vst [vmem:[#allocation87_spill] sm:$0xff] %v13636_v61  ;;  %v12321_v61 = vld [vmem:[%s16901_s0 + $0x2b0] sm:$0xff]  }
 0x14f   :  { %v13646_v58 = vpop.f32.mrf.mxu0  ;;  %v13648_v53 = vpop.f32.mrf.mxu1 }
 0x150   :  { %17334 = vst [vmem:[#allocation88_spill] sm:$0xff] %v13646_v58  ;;  %17335 = vst [vmem:[#allocation89_spill] sm:$0xff] %v13648_v53 }
 0x151   :  { %v13652_v45 = vpop.f32.mrf.mxu0  ;;  %11522 = vmatmul.mubr.msk.bf16.gmra.mxu0 %vm708_vm2, %v12315_v1  ;;  %v13655_v13 = vpop.f32.mrf.mxu1  ;;  %11720 = vmatmul.mubr.msk.bf16.gmra.mxu1 %vm708_vm2, %v12316_v6  ;;  %v12319_v6 = vld [vmem:[%s16901_s0 + $0x2a8] sm:$0xff]  }
 0x152   :  { %17336 = vst [vmem:[#allocation90_spill] sm:$0xff] %v13652_v45  ;;  %17337 = vst [vmem:[#allocation91_spill] sm:$0xff] %v13655_v13  ;;  %11525 = vmatprep.mubr.msk.bf16.mxu0 %vm708_vm2, %v12317_v50  ;;  %11723 = vmatprep.mubr.msk.bf16.mxu1 %vm708_vm2, %v12318_v34  ;;  %v12320_v50 = vld [vmem:[%s16901_s0 + $0x5b8] sm:$0xff]   ;;  %v12326_v13 = vld [vmem:[%s16901_s0 + $0x5d0] sm:$0xff]  }
 0x153   :  { %v13662_v29 = vpop.f32.mrf.mxu0  ;;  %v13664_v2 = vpop.f32.mrf.mxu1 }
 0x154   :  { %17338 = vst [vmem:[#allocation92_spill] sm:$0xff] %v13662_v29  ;;  %17339 = vst [vmem:[#allocation93_spill] sm:$0xff] %v13664_v2 }
 0x155   :  { %v13668_v53 = vpop.f32.mrf.mxu0  ;;  %v13670_v1 = vpop.f32.mrf.mxu1 }
 0x156   :  { %17340 = vst [vmem:[#allocation94_spill] sm:$0xff] %v13668_v53  ;;  %17341 = vst [vmem:[#allocation95_spill] sm:$0xff] %v13670_v1  ;;  %v12325_v1 = vld [vmem:[%s16901_s0 + $0x2c0] sm:$0xff]  }
 0x157   :  { %v13686_v2 = vpop.f32.mrf.mxu0  ;;  %v13688_v29 = vpop.f32.mrf.mxu1 }
 0x158   :  { %17342 = vst [vmem:[#allocation96_spill] sm:$0xff] %v13686_v2  ;;  %17343 = vst [vmem:[#allocation97_spill] sm:$0xff] %v13688_v29 }
 0x159   :  { %v13692_v45 = vpop.f32.mrf.mxu0  ;;  %11526 = vmatmul.mubr.msk.bf16.gmra.mxu0 %vm708_vm2, %v12319_v6  ;;  %v13695_v34 = vpop.f32.mrf.mxu1  ;;  %11724 = vmatmul.mubr.msk.bf16.gmra.mxu1 %vm708_vm2, %v12320_v50  ;;  %v12323_v50 = vld [vmem:[%s16901_s0 + $0x2b8] sm:$0xff]  }
 0x15a   :  { %17344 = vst [vmem:[#allocation98_spill] sm:$0xff] %v13692_v45  ;;  %17345 = vst [vmem:[#allocation99_spill] sm:$0xff] %v13695_v34  ;;  %11529 = vmatprep.mubr.msk.bf16.mxu0 %vm708_vm2, %v12321_v61  ;;  %11727 = vmatprep.mubr.msk.bf16.mxu1 %vm708_vm2, %v12322_v39  ;;  %v12324_v61 = vld [vmem:[%s16901_s0 + $0x5c8] sm:$0xff]   ;;  %v12330_v34 = vld [vmem:[%s16901_s0 + $0x5e0] sm:$0xff]  }
 0x15b   :  { %v13702_v53 = vpop.f32.mrf.mxu0  ;;  %v13704_v58 = vpop.f32.mrf.mxu1 }
 0x15c   :  { %17346 = vst [vmem:[#allocation100_spill] sm:$0xff] %v13702_v53  ;;  %17347 = vst [vmem:[#allocation101_spill] sm:$0xff] %v13704_v58 }
 0x15d   :  { %v13708_v29 = vpop.f32.mrf.mxu0  ;;  %v13710_v6 = vpop.f32.mrf.mxu1 }
 0x15e   :  { %17348 = vst [vmem:[#allocation102_spill] sm:$0xff] %v13708_v29  ;;  %17349 = vst [vmem:[#allocation103_spill] sm:$0xff] %v13710_v6  ;;  %v12329_v6 = vld [vmem:[%s16901_s0 + $0x2d0] sm:$0xff]  }
 0x15f   :  { %v13726_v58 = vpop.f32.mrf.mxu0  ;;  %v13728_v53 = vpop.f32.mrf.mxu1 }
 0x160   :  { %17350 = vst [vmem:[#allocation104_spill] sm:$0xff] %v13726_v58  ;;  %17351 = vst [vmem:[#allocation105_spill] sm:$0xff] %v13728_v53 }
 0x161   :  { %v13732_v45 = vpop.f32.mrf.mxu0  ;;  %11530 = vmatmul.mubr.msk.bf16.gmra.mxu0 %vm708_vm2, %v12323_v50  ;;  %v13735_v39 = vpop.f32.mrf.mxu1  ;;  %11728 = vmatmul.mubr.msk.bf16.gmra.mxu1 %vm708_vm2, %v12324_v61  ;;  %v12327_v61 = vld [vmem:[%s16901_s0 + $0x2c8] sm:$0xff]  }
 0x162   :  { %17352 = vst [vmem:[#allocation106_spill] sm:$0xff] %v13732_v45  ;;  %17353 = vst [vmem:[#allocation107_spill] sm:$0xff] %v13735_v39  ;;  %11533 = vmatprep.mubr.msk.bf16.mxu0 %vm708_vm2, %v12325_v1  ;;  %11731 = vmatprep.mubr.msk.bf16.mxu1 %vm708_vm2, %v12326_v13  ;;  %v12328_v1 = vld [vmem:[%s16901_s0 + $0x5d8] sm:$0xff]   ;;  %v12334_v39 = vld [vmem:[%s16901_s0 + $0x5f0] sm:$0xff]  }
 0x163   :  { %v13742_v29 = vpop.f32.mrf.mxu0  ;;  %v13744_v2 = vpop.f32.mrf.mxu1 }
 0x164   :  { %17354 = vst [vmem:[#allocation108_spill] sm:$0xff] %v13742_v29  ;;  %17355 = vst [vmem:[#allocation109_spill] sm:$0xff] %v13744_v2 }
 0x165   :  { %v13748_v53 = vpop.f32.mrf.mxu0  ;;  %v13750_v50 = vpop.f32.mrf.mxu1 }
 0x166   :  { %17356 = vst [vmem:[#allocation110_spill] sm:$0xff] %v13748_v53  ;;  %17357 = vst [vmem:[#allocation111_spill] sm:$0xff] %v13750_v50  ;;  %v12333_v50 = vld [vmem:[%s16901_s0 + $0x2e0] sm:$0xff]  }
 0x167   :  { %v13766_v2 = vpop.f32.mrf.mxu0  ;;  %v13768_v29 = vpop.f32.mrf.mxu1 }
 0x168   :  { %17358 = vst [vmem:[#allocation112_spill] sm:$0xff] %v13766_v2  ;;  %17359 = vst [vmem:[#allocation113_spill] sm:$0xff] %v13768_v29 }
 0x169   :  { %v13772_v45 = vpop.f32.mrf.mxu0  ;;  %11534 = vmatmul.mubr.msk.bf16.gmra.mxu0 %vm708_vm2, %v12327_v61  ;;  %v13775_v13 = vpop.f32.mrf.mxu1  ;;  %11732 = vmatmul.mubr.msk.bf16.gmra.mxu1 %vm708_vm2, %v12328_v1  ;;  %v12331_v1 = vld [vmem:[%s16901_s0 + $0x2d8] sm:$0xff]  }
 0x16a   :  { %17360 = vst [vmem:[#allocation114_spill] sm:$0xff] %v13772_v45  ;;  %17361 = vst [vmem:[#allocation115_spill] sm:$0xff] %v13775_v13  ;;  %11537 = vmatprep.mubr.msk.bf16.mxu0 %vm708_vm2, %v12329_v6  ;;  %11735 = vmatprep.mubr.msk.bf16.mxu1 %vm708_vm2, %v12330_v34  ;;  %v12332_v6 = vld [vmem:[%s16901_s0 + $0x5e8] sm:$0xff]   ;;  %v12338_v13 = vld [vmem:[%s16901_s0 + $0x600] sm:$0xff]  }
 0x16b   :  { %v13782_v53 = vpop.f32.mrf.mxu0  ;;  %v13784_v58 = vpop.f32.mrf.mxu1 }
 0x16c   :  { %17362 = vst [vmem:[#allocation116_spill] sm:$0xff] %v13782_v53  ;;  %17363 = vst [vmem:[#allocation117_spill] sm:$0xff] %v13784_v58 }
 0x16d   :  { %v13788_v29 = vpop.f32.mrf.mxu0  ;;  %v13790_v61 = vpop.f32.mrf.mxu1 }
 0x16e   :  { %17364 = vst [vmem:[#allocation118_spill] sm:$0xff] %v13788_v29  ;;  %17365 = vst [vmem:[#allocation119_spill] sm:$0xff] %v13790_v61  ;;  %v12337_v61 = vld [vmem:[%s16901_s0 + $0x2f0] sm:$0xff]  }
 0x16f   :  { %v13806_v58 = vpop.f32.mrf.mxu0  ;;  %v13808_v53 = vpop.f32.mrf.mxu1 }
 0x170   :  { %17366 = vst [vmem:[#allocation120_spill] sm:$0xff] %v13806_v58  ;;  %17367 = vst [vmem:[#allocation121_spill] sm:$0xff] %v13808_v53 }
 0x171   :  { %v13812_v45 = vpop.f32.mrf.mxu0  ;;  %11538 = vmatmul.mubr.msk.bf16.gmra.mxu0 %vm708_vm2, %v12331_v1  ;;  %v13815_v34 = vpop.f32.mrf.mxu1  ;;  %11736 = vmatmul.mubr.msk.bf16.gmra.mxu1 %vm708_vm2, %v12332_v6  ;;  %v12335_v6 = vld [vmem:[%s16901_s0 + $0x2e8] sm:$0xff]  }
 0x172   :  { %17368 = vst [vmem:[#allocation122_spill] sm:$0xff] %v13812_v45  ;;  %17369 = vst [vmem:[#allocation123_spill] sm:$0xff] %v13815_v34  ;;  %11541 = vmatprep.mubr.msk.bf16.mxu0 %vm708_vm2, %v12333_v50  ;;  %11739 = vmatprep.mubr.msk.bf16.mxu1 %vm708_vm2, %v12334_v39  ;;  %v12336_v50 = vld [vmem:[%s16901_s0 + $0x5f8] sm:$0xff]   ;;  %v12342_v34 = vld [vmem:[%s16901_s0 + $0x610] sm:$0xff]  }
 0x173   :  { %v13822_v29 = vpop.f32.mrf.mxu0  ;;  %v13824_v2 = vpop.f32.mrf.mxu1 }
 0x174   :  { %17370 = vst [vmem:[#allocation124_spill] sm:$0xff] %v13822_v29  ;;  %17371 = vst [vmem:[#allocation125_spill] sm:$0xff] %v13824_v2 }
 0x175   :  { %v13828_v53 = vpop.f32.mrf.mxu0  ;;  %v13830_v1 = vpop.f32.mrf.mxu1 }
 0x176   :  { %17372 = vst [vmem:[#allocation126_spill] sm:$0xff] %v13828_v53  ;;  %17373 = vst [vmem:[#allocation127_spill] sm:$0xff] %v13830_v1  ;;  %v12341_v1 = vld [vmem:[%s16901_s0 + $0x300] sm:$0xff]  }
 0x177   :  { %v13846_v2 = vpop.f32.mrf.mxu0  ;;  %v13848_v29 = vpop.f32.mrf.mxu1 }
 0x178   :  { %17374 = vst [vmem:[#allocation128_spill] sm:$0xff] %v13846_v2  ;;  %17375 = vst [vmem:[#allocation129_spill] sm:$0xff] %v13848_v29 }
 0x179   :  { %v13852_v45 = vpop.f32.mrf.mxu0  ;;  %11542 = vmatmul.mubr.msk.bf16.gmra.mxu0 %vm708_vm2, %v12335_v6  ;;  %v13855_v39 = vpop.f32.mrf.mxu1  ;;  %11740 = vmatmul.mubr.msk.bf16.gmra.mxu1 %vm708_vm2, %v12336_v50  ;;  %v12339_v50 = vld [vmem:[%s16901_s0 + $0x2f8] sm:$0xff]  }
 0x17a   :  { %17376 = vst [vmem:[#allocation130_spill] sm:$0xff] %v13852_v45  ;;  %17377 = vst [vmem:[#allocation131_spill] sm:$0xff] %v13855_v39  ;;  %11545 = vmatprep.mubr.msk.bf16.mxu0 %vm708_vm2, %v12337_v61  ;;  %11743 = vmatprep.mubr.msk.bf16.mxu1 %vm708_vm2, %v12338_v13  ;;  %v12340_v61 = vld [vmem:[%s16901_s0 + $0x608] sm:$0xff]   ;;  %v12346_v39 = vld [vmem:[%s16901_s0 + $0x930] sm:$0xff]  }
 0x17b   :  { %v13862_v53 = vpop.f32.mrf.mxu0  ;;  %v13864_v58 = vpop.f32.mrf.mxu1 }
 0x17c   :  { %17378 = vst [vmem:[#allocation132_spill] sm:$0xff] %v13862_v53  ;;  %17379 = vst [vmem:[#allocation133_spill] sm:$0xff] %v13864_v58 }
 0x17d   :  { %v13868_v29 = vpop.f32.mrf.mxu0  ;;  %v13870_v6 = vpop.f32.mrf.mxu1 }
 0x17e   :  { %17380 = vst [vmem:[#allocation134_spill] sm:$0xff] %v13868_v29  ;;  %17381 = vst [vmem:[#allocation135_spill] sm:$0xff] %v13870_v6  ;;  %v12345_v6 = vld [vmem:[%s16901_s0 + $0x620] sm:$0xff]  }
 0x17f   :  { %v13886_v58 = vpop.f32.mrf.mxu0  ;;  %v13888_v53 = vpop.f32.mrf.mxu1 }
 0x180   :  { %17382 = vst [vmem:[#allocation136_spill] sm:$0xff] %v13886_v58  ;;  %17383 = vst [vmem:[#allocation137_spill] sm:$0xff] %v13888_v53 }
 0x181   :  { %v13892_v45 = vpop.f32.mrf.mxu0  ;;  %11546 = vmatmul.mubr.msk.bf16.gmra.mxu0 %vm708_vm2, %v12339_v50  ;;  %v13895_v13 = vpop.f32.mrf.mxu1  ;;  %11744 = vmatmul.mubr.msk.bf16.gmra.mxu1 %vm708_vm2, %v12340_v61  ;;  %v12343_v61 = vld [vmem:[%s16901_s0 + $0x308] sm:$0xff]  }
 0x182   :  { %17384 = vst [vmem:[#allocation138_spill] sm:$0xff] %v13892_v45  ;;  %17385 = vst [vmem:[#allocation139_spill] sm:$0xff] %v13895_v13  ;;  %11549 = vmatprep.mubr.msk.bf16.mxu0 %vm708_vm2, %v12341_v1  ;;  %11747 = vmatprep.mubr.msk.bf16.mxu1 %vm708_vm2, %v12342_v34  ;;  %v12344_v1 = vld [vmem:[%s16901_s0 + $0x618] sm:$0xff]   ;;  %v12350_v13 = vld [vmem:[%s16901_s0 + $0x940] sm:$0xff]  }
 0x183   :  { %v13902_v29 = vpop.f32.mrf.mxu0  ;;  %v13904_v2 = vpop.f32.mrf.mxu1 }
 0x184   :  { %17386 = vst [vmem:[#allocation140_spill] sm:$0xff] %v13902_v29  ;;  %17387 = vst [vmem:[#allocation141_spill] sm:$0xff] %v13904_v2 }
 0x185   :  { %v13908_v53 = vpop.f32.mrf.mxu0  ;;  %v13910_v50 = vpop.f32.mrf.mxu1 }
 0x186   :  { %17388 = vst [vmem:[#allocation142_spill] sm:$0xff] %v13908_v53  ;;  %17389 = vst [vmem:[#allocation143_spill] sm:$0xff] %v13910_v50  ;;  %v12349_v50 = vld [vmem:[%s16901_s0 + $0x630] sm:$0xff]  }
 0x187   :  { %v13926_v2 = vpop.f32.mrf.mxu0  ;;  %v13928_v29 = vpop.f32.mrf.mxu1 }
 0x188   :  { %17390 = vst [vmem:[#allocation144_spill] sm:$0xff] %v13926_v2  ;;  %17391 = vst [vmem:[#allocation145_spill] sm:$0xff] %v13928_v29 }
 0x189   :  { %v13932_v45 = vpop.f32.mrf.mxu0  ;;  %11550 = vmatmul.mubr.msk.bf16.gmra.mxu0 %vm708_vm2, %v12343_v61  ;;  %v13935_v34 = vpop.f32.mrf.mxu1  ;;  %11748 = vmatmul.mubr.msk.bf16.gmra.mxu1 %vm708_vm2, %v12344_v1  ;;  %v12347_v1 = vld [vmem:[%s16901_s0 + $0x628] sm:$0xff]  }
 0x18a   :  { %17392 = vst [vmem:[#allocation146_spill] sm:$0xff] %v13932_v45  ;;  %17393 = vst [vmem:[#allocation147_spill] sm:$0xff] %v13935_v34  ;;  %11753 = vmatprep.mubr.msk.bf16.mxu0 %vm708_vm2, %v12345_v6  ;;  %11951 = vmatprep.mubr.msk.bf16.mxu1 %vm708_vm2, %v12346_v39  ;;  %v12348_v6 = vld [vmem:[%s16901_s0 + $0x938] sm:$0xff]   ;;  %v12354_v34 = vld [vmem:[%s16901_s0 + $0x950] sm:$0xff]  }
 0x18b   :  { %v13942_v53 = vpop.f32.mrf.mxu0  ;;  %v13944_v58 = vpop.f32.mrf.mxu1 }
 0x18c   :  { %17394 = vst [vmem:[#allocation148_spill] sm:$0xff] %v13942_v53  ;;  %17395 = vst [vmem:[#allocation149_spill] sm:$0xff] %v13944_v58 }
 0x18d   :  { %v13948_v29 = vpop.f32.mrf.mxu0  ;;  %v13950_v61 = vpop.f32.mrf.mxu1 }
 0x18e   :  { %17396 = vst [vmem:[#allocation150_spill] sm:$0xff] %v13948_v29  ;;  %17397 = vst [vmem:[#allocation151_spill] sm:$0xff] %v13950_v61 }
 0x18f   :  { %v13966_v58 = vpop.f32.mrf.mxu0  ;;  %v13968_v53 = vpop.f32.mrf.mxu1 }
 0x190   :  { %17398 = vst [vmem:[#allocation152_spill] sm:$0xff] %v13966_v58  ;;  %17399 = vst [vmem:[#allocation153_spill] sm:$0xff] %v13968_v53 }
 0x191   :  { %v13972_v45 = vpop.f32.mrf.mxu0  ;;  %v13974_v2 = vpop.f32.mrf.mxu1  ;;  %11754 = vmatmul.mubr.msk.bf16.vlgmr.msra.gmra.mxu0 %vm708_vm2, %v12347_v1  ;;  %11952 = vmatmul.mubr.msk.bf16.vlgmr.msra.gmra.mxu1 %vm708_vm2, %v12348_v6  ;;  %v12351_v1 = vld [vmem:[%s16901_s0 + $0x638] sm:$0xff]   ;;  %v12353_v6 = vld [vmem:[%s16901_s0 + $0x640] sm:$0xff]  }
 0x192   :  { %17400 = vst [vmem:[#allocation154_spill] sm:$0xff] %v13972_v45  ;;  %17401 = vst [vmem:[#allocation155_spill] sm:$0xff] %v13974_v2  ;;  %11757 = vmatprep.mubr.msk.bf16.mxu0 %vm708_vm2, %v12349_v50  ;;  %11955 = vmatprep.mubr.msk.bf16.mxu1 %vm708_vm2, %v12350_v13  ;;  %v12352_v50 = vld [vmem:[%s16901_s0 + $0x948] sm:$0xff]  }
 0x193   :  { %v13982_v61 = vpop.f32.mrf.mxu0  ;;  %v13984_v29 = vpop.f32.mrf.mxu1 }
 0x194   :  { %17402 = vst [vmem:[#allocation156_spill] sm:$0xff] %v13982_v61  ;;  %17403 = vst [vmem:[#allocation157_spill] sm:$0xff] %v13984_v29  ;;  %v12358_v61 = vld [vmem:[%s16901_s0 + $0x960] sm:$0xff]  }
 0x195   :  { %v13988_v53 = vpop.f32.mrf.mxu0  ;;  %v13990_v58 = vpop.f32.mrf.mxu1 }
 0x196   :  { %17404 = vst [vmem:[#allocation158_spill] sm:$0xff] %v13988_v53  ;;  %17405 = vst [vmem:[#allocation159_spill] sm:$0xff] %v13990_v58 }
 0x197   :  { %v14006_v39 = vpop.f32.mrf.mxu0  ;;  %v14008_v29 = vpop.f32.mrf.mxu1 }
 0x198   :  { %17406 = vst [vmem:[#allocation160_spill] sm:$0xff] %v14006_v39  ;;  %17407 = vst [vmem:[#allocation161_spill] sm:$0xff] %v14008_v29 }
 0x199   :  { %v14012_v2 = vpop.f32.mrf.mxu0  ;;  %v14014_v45 = vpop.f32.mrf.mxu1  ;;  %11758 = vmatmul.mubr.msk.bf16.gmra.mxu0 %vm708_vm2, %v12351_v1  ;;  %11956 = vmatmul.mubr.msk.bf16.gmra.mxu1 %vm708_vm2, %v12352_v50  ;;  %v12355_v1 = vld [vmem:[%s16901_s0 + $0x648] sm:$0xff]   ;;  %v12356_v50 = vld [vmem:[%s16901_s0 + $0x958] sm:$0xff]  }
 0x19a   :  { %17408 = vst [vmem:[#allocation162_spill] sm:$0xff] %v14012_v2  ;;  %17409 = vst [vmem:[#allocation163_spill] sm:$0xff] %v14014_v45  ;;  %11761 = vmatprep.mubr.msk.bf16.mxu0 %vm708_vm2, %v12353_v6  ;;  %11959 = vmatprep.mubr.msk.bf16.mxu1 %vm708_vm2, %v12354_v34  ;;  %v12357_v6 = vld [vmem:[%s16901_s0 + $0x650] sm:$0xff]  }
 0x19b   :  { %v14022_v58 = vpop.f32.mrf.mxu0  ;;  %v14024_v53 = vpop.f32.mrf.mxu1 }
 0x19c   :  { %17410 = vst [vmem:[#allocation164_spill] sm:$0xff] %v14022_v58  ;;  %17411 = vst [vmem:[#allocation165_spill] sm:$0xff] %v14024_v53  ;;  %v12362_v58 = vld [vmem:[%s16901_s0 + $0x970] sm:$0xff]  }
 0x19d   :  { %v14028_v29 = vpop.f32.mrf.mxu0  ;;  %v14030_v39 = vpop.f32.mrf.mxu1 }
 0x19e   :  { %17412 = vst [vmem:[#allocation166_spill] sm:$0xff] %v14028_v29  ;;  %17413 = vst [vmem:[#allocation167_spill] sm:$0xff] %v14030_v39 }
 0x19f   :  { %v14046_v13 = vpop.f32.mrf.mxu0  ;;  %v14048_v53 = vpop.f32.mrf.mxu1 }
 0x1a0   :  { %17414 = vst [vmem:[#allocation168_spill] sm:$0xff] %v14046_v13  ;;  %17415 = vst [vmem:[#allocation169_spill] sm:$0xff] %v14048_v53 }
 0x1a1   :  { %v14052_v45 = vpop.f32.mrf.mxu0  ;;  %v14054_v2 = vpop.f32.mrf.mxu1  ;;  %11762 = vmatmul.mubr.msk.bf16.gmra.mxu0 %vm708_vm2, %v12355_v1  ;;  %11960 = vmatmul.mubr.msk.bf16.gmra.mxu1 %vm708_vm2, %v12356_v50  ;;  %v12359_v1 = vld [vmem:[%s16901_s0 + $0x658] sm:$0xff]   ;;  %v12360_v50 = vld [vmem:[%s16901_s0 + $0x968] sm:$0xff]  }
 0x1a2   :  { %17416 = vst [vmem:[#allocation170_spill] sm:$0xff] %v14052_v45  ;;  %17417 = vst [vmem:[#allocation171_spill] sm:$0xff] %v14054_v2  ;;  %11765 = vmatprep.mubr.msk.bf16.mxu0 %vm708_vm2, %v12357_v6  ;;  %11963 = vmatprep.mubr.msk.bf16.mxu1 %vm708_vm2, %v12358_v61  ;;  %v12361_v6 = vld [vmem:[%s16901_s0 + $0x660] sm:$0xff]  }
 0x1a3   :  { %v14062_v39 = vpop.f32.mrf.mxu0  ;;  %v14064_v29 = vpop.f32.mrf.mxu1 }
 0x1a4   :  { %17418 = vst [vmem:[#allocation172_spill] sm:$0xff] %v14062_v39  ;;  %17419 = vst [vmem:[#allocation173_spill] sm:$0xff] %v14064_v29  ;;  %v12366_v39 = vld [vmem:[%s16901_s0 + $0x980] sm:$0xff]  }
 0x1a5   :  { %v14068_v53 = vpop.f32.mrf.mxu0  ;;  %v14070_v13 = vpop.f32.mrf.mxu1 }
 0x1a6   :  { %17420 = vst [vmem:[#allocation174_spill] sm:$0xff] %v14068_v53  ;;  %17421 = vst [vmem:[#allocation175_spill] sm:$0xff] %v14070_v13 }
 0x1a7   :  { %v14086_v34 = vpop.f32.mrf.mxu0  ;;  %v14088_v29 = vpop.f32.mrf.mxu1 }
 0x1a8   :  { %17422 = vst [vmem:[#allocation176_spill] sm:$0xff] %v14086_v34  ;;  %17423 = vst [vmem:[#allocation177_spill] sm:$0xff] %v14088_v29 }
 0x1a9   :  { %v14092_v2 = vpop.f32.mrf.mxu0  ;;  %v14094_v45 = vpop.f32.mrf.mxu1  ;;  %11766 = vmatmul.mubr.msk.bf16.gmra.mxu0 %vm708_vm2, %v12359_v1  ;;  %11964 = vmatmul.mubr.msk.bf16.gmra.mxu1 %vm708_vm2, %v12360_v50  ;;  %v12363_v1 = vld [vmem:[%s16901_s0 + $0x668] sm:$0xff]   ;;  %v12364_v50 = vld [vmem:[%s16901_s0 + $0x978] sm:$0xff]  }
 0x1aa   :  { %17424 = vst [vmem:[#allocation178_spill] sm:$0xff] %v14092_v2  ;;  %17425 = vst [vmem:[#allocation179_spill] sm:$0xff] %v14094_v45  ;;  %11769 = vmatprep.mubr.msk.bf16.mxu0 %vm708_vm2, %v12361_v6  ;;  %11967 = vmatprep.mubr.msk.bf16.mxu1 %vm708_vm2, %v12362_v58  ;;  %v12365_v6 = vld [vmem:[%s16901_s0 + $0x670] sm:$0xff]  }
 0x1ab   :  { %v14102_v13 = vpop.f32.mrf.mxu0  ;;  %v14104_v53 = vpop.f32.mrf.mxu1 }
 0x1ac   :  { %17426 = vst [vmem:[#allocation180_spill] sm:$0xff] %v14102_v13  ;;  %17427 = vst [vmem:[#allocation181_spill] sm:$0xff] %v14104_v53  ;;  %v12370_v13 = vld [vmem:[%s16901_s0 + $0x990] sm:$0xff]  }
 0x1ad   :  { %v14108_v29 = vpop.f32.mrf.mxu0  ;;  %v14110_v34 = vpop.f32.mrf.mxu1 }
 0x1ae   :  { %17428 = vst [vmem:[#allocation182_spill] sm:$0xff] %v14108_v29  ;;  %17429 = vst [vmem:[#allocation183_spill] sm:$0xff] %v14110_v34 }
 0x1af   :  { %v14126_v61 = vpop.f32.mrf.mxu0  ;;  %v14128_v53 = vpop.f32.mrf.mxu1 }
 0x1b0   :  { %17430 = vst [vmem:[#allocation184_spill] sm:$0xff] %v14126_v61  ;;  %17431 = vst [vmem:[#allocation185_spill] sm:$0xff] %v14128_v53 }
 0x1b1   :  { %v14132_v45 = vpop.f32.mrf.mxu0  ;;  %v14134_v2 = vpop.f32.mrf.mxu1  ;;  %11770 = vmatmul.mubr.msk.bf16.gmra.mxu0 %vm708_vm2, %v12363_v1  ;;  %11968 = vmatmul.mubr.msk.bf16.gmra.mxu1 %vm708_vm2, %v12364_v50  ;;  %v12367_v1 = vld [vmem:[%s16901_s0 + $0x678] sm:$0xff]   ;;  %v12368_v50 = vld [vmem:[%s16901_s0 + $0x988] sm:$0xff]  }
 0x1b2   :  { %17432 = vst [vmem:[#allocation186_spill] sm:$0xff] %v14132_v45  ;;  %17433 = vst [vmem:[#allocation187_spill] sm:$0xff] %v14134_v2  ;;  %11773 = vmatprep.mubr.msk.bf16.mxu0 %vm708_vm2, %v12365_v6  ;;  %11971 = vmatprep.mubr.msk.bf16.mxu1 %vm708_vm2, %v12366_v39  ;;  %v12369_v6 = vld [vmem:[%s16901_s0 + $0x680] sm:$0xff]  }
 0x1b3   :  { %v14142_v34 = vpop.f32.mrf.mxu0  ;;  %v14144_v29 = vpop.f32.mrf.mxu1 }
 0x1b4   :  { %17434 = vst [vmem:[#allocation188_spill] sm:$0xff] %v14142_v34  ;;  %17435 = vst [vmem:[#allocation189_spill] sm:$0xff] %v14144_v29  ;;  %v12374_v34 = vld [vmem:[%s16901_s0 + $0x9a0] sm:$0xff]  }
 0x1b5   :  { %v14148_v53 = vpop.f32.mrf.mxu0  ;;  %v14150_v61 = vpop.f32.mrf.mxu1 }
 0x1b6   :  { %17436 = vst [vmem:[#allocation190_spill] sm:$0xff] %v14148_v53  ;;  %17437 = vst [vmem:[#allocation191_spill] sm:$0xff] %v14150_v61 }
 0x1b7   :  { %v14166_v58 = vpop.f32.mrf.mxu0  ;;  %v14168_v29 = vpop.f32.mrf.mxu1 }
 0x1b8   :  { %17438 = vst [vmem:[#allocation192_spill] sm:$0xff] %v14166_v58  ;;  %17439 = vst [vmem:[#allocation193_spill] sm:$0xff] %v14168_v29 }
 0x1b9   :  { %v14172_v2 = vpop.f32.mrf.mxu0  ;;  %v14174_v45 = vpop.f32.mrf.mxu1  ;;  %11774 = vmatmul.mubr.msk.bf16.gmra.mxu0 %vm708_vm2, %v12367_v1  ;;  %11972 = vmatmul.mubr.msk.bf16.gmra.mxu1 %vm708_vm2, %v12368_v50  ;;  %v12371_v1 = vld [vmem:[%s16901_s0 + $0x688] sm:$0xff]   ;;  %v12372_v50 = vld [vmem:[%s16901_s0 + $0x998] sm:$0xff]  }
 0x1ba   :  { %17440 = vst [vmem:[#allocation194_spill] sm:$0xff] %v14172_v2  ;;  %17441 = vst [vmem:[#allocation195_spill] sm:$0xff] %v14174_v45  ;;  %11777 = vmatprep.mubr.msk.bf16.mxu0 %vm708_vm2, %v12369_v6  ;;  %11975 = vmatprep.mubr.msk.bf16.mxu1 %vm708_vm2, %v12370_v13  ;;  %v12373_v6 = vld [vmem:[%s16901_s0 + $0x690] sm:$0xff]  }
 0x1bb   :  { %v14182_v61 = vpop.f32.mrf.mxu0  ;;  %v14184_v53 = vpop.f32.mrf.mxu1 }
 0x1bc   :  { %17442 = vst [vmem:[#allocation196_spill] sm:$0xff] %v14182_v61  ;;  %17443 = vst [vmem:[#allocation197_spill] sm:$0xff] %v14184_v53  ;;  %v12378_v61 = vld [vmem:[%s16901_s0 + $0x9b0] sm:$0xff]  }
 0x1bd   :  { %v14188_v29 = vpop.f32.mrf.mxu0  ;;  %v14190_v58 = vpop.f32.mrf.mxu1 }
 0x1be   :  { %17444 = vst [vmem:[#allocation198_spill] sm:$0xff] %v14188_v29  ;;  %17445 = vst [vmem:[#allocation199_spill] sm:$0xff] %v14190_v58 }
 0x1bf   :  { %v14206_v39 = vpop.f32.mrf.mxu0  ;;  %v14208_v53 = vpop.f32.mrf.mxu1 }
 0x1c0   :  { %17446 = vst [vmem:[#allocation200_spill] sm:$0xff] %v14206_v39  ;;  %17447 = vst [vmem:[#allocation201_spill] sm:$0xff] %v14208_v53 }
 0x1c1   :  { %v14212_v45 = vpop.f32.mrf.mxu0  ;;  %v14214_v2 = vpop.f32.mrf.mxu1  ;;  %11778 = vmatmul.mubr.msk.bf16.gmra.mxu0 %vm708_vm2, %v12371_v1  ;;  %11976 = vmatmul.mubr.msk.bf16.gmra.mxu1 %vm708_vm2, %v12372_v50  ;;  %v12375_v1 = vld [vmem:[%s16901_s0 + $0x698] sm:$0xff]   ;;  %v12376_v50 = vld [vmem:[%s16901_s0 + $0x9a8] sm:$0xff]  }
 0x1c2   :  { %17448 = vst [vmem:[#allocation202_spill] sm:$0xff] %v14212_v45  ;;  %17449 = vst [vmem:[#allocation203_spill] sm:$0xff] %v14214_v2  ;;  %11781 = vmatprep.mubr.msk.bf16.mxu0 %vm708_vm2, %v12373_v6  ;;  %11979 = vmatprep.mubr.msk.bf16.mxu1 %vm708_vm2, %v12374_v34  ;;  %v12377_v6 = vld [vmem:[%s16901_s0 + $0x6a0] sm:$0xff]  }
 0x1c3   :  { %v14222_v58 = vpop.f32.mrf.mxu0  ;;  %v14224_v29 = vpop.f32.mrf.mxu1 }
 0x1c4   :  { %17450 = vst [vmem:[#allocation204_spill] sm:$0xff] %v14222_v58  ;;  %17451 = vst [vmem:[#allocation205_spill] sm:$0xff] %v14224_v29  ;;  %v12382_v58 = vld [vmem:[%s16901_s0 + $0x9c0] sm:$0xff]  }
 0x1c5   :  { %v14228_v53 = vpop.f32.mrf.mxu0  ;;  %v14230_v39 = vpop.f32.mrf.mxu1 }
 0x1c6   :  { %17452 = vst [vmem:[#allocation206_spill] sm:$0xff] %v14228_v53  ;;  %17453 = vst [vmem:[#allocation207_spill] sm:$0xff] %v14230_v39 }
 0x1c7   :  { %v14246_v13 = vpop.f32.mrf.mxu0  ;;  %v14248_v29 = vpop.f32.mrf.mxu1 }
 0x1c8   :  { %17454 = vst [vmem:[#allocation208_spill] sm:$0xff] %v14246_v13  ;;  %17455 = vst [vmem:[#allocation209_spill] sm:$0xff] %v14248_v29 }
 0x1c9   :  { %v14252_v2 = vpop.f32.mrf.mxu0  ;;  %v14254_v45 = vpop.f32.mrf.mxu1  ;;  %11782 = vmatmul.mubr.msk.bf16.gmra.mxu0 %vm708_vm2, %v12375_v1  ;;  %11980 = vmatmul.mubr.msk.bf16.gmra.mxu1 %vm708_vm2, %v12376_v50  ;;  %v12379_v1 = vld [vmem:[%s16901_s0 + $0x6a8] sm:$0xff]   ;;  %v12380_v50 = vld [vmem:[%s16901_s0 + $0x9b8] sm:$0xff]  }
 0x1ca   :  { %17456 = vst [vmem:[#allocation210_spill] sm:$0xff] %v14252_v2  ;;  %17457 = vst [vmem:[#allocation211_spill] sm:$0xff] %v14254_v45  ;;  %11785 = vmatprep.mubr.msk.bf16.mxu0 %vm708_vm2, %v12377_v6  ;;  %11983 = vmatprep.mubr.msk.bf16.mxu1 %vm708_vm2, %v12378_v61  ;;  %v12381_v6 = vld [vmem:[%s16901_s0 + $0x6b0] sm:$0xff]  }
 0x1cb   :  { %v14262_v39 = vpop.f32.mrf.mxu0  ;;  %v14264_v53 = vpop.f32.mrf.mxu1 }
 0x1cc   :  { %17458 = vst [vmem:[#allocation212_spill] sm:$0xff] %v14262_v39  ;;  %17459 = vst [vmem:[#allocation213_spill] sm:$0xff] %v14264_v53  ;;  %v12386_v39 = vld [vmem:[%s16901_s0 + $0x9d0] sm:$0xff]  }
 0x1cd   :  { %v14268_v29 = vpop.f32.mrf.mxu0  ;;  %v14270_v13 = vpop.f32.mrf.mxu1 }
 0x1ce   :  { %17460 = vst [vmem:[#allocation214_spill] sm:$0xff] %v14268_v29  ;;  %17461 = vst [vmem:[#allocation215_spill] sm:$0xff] %v14270_v13 }
 0x1cf   :  { %v14286_v34 = vpop.f32.mrf.mxu0  ;;  %v14288_v53 = vpop.f32.mrf.mxu1 }
 0x1d0   :  { %17462 = vst [vmem:[#allocation216_spill] sm:$0xff] %v14286_v34  ;;  %17463 = vst [vmem:[#allocation217_spill] sm:$0xff] %v14288_v53 }
 0x1d1   :  { %v14292_v45 = vpop.f32.mrf.mxu0  ;;  %v14294_v2 = vpop.f32.mrf.mxu1  ;;  %11786 = vmatmul.mubr.msk.bf16.gmra.mxu0 %vm708_vm2, %v12379_v1  ;;  %11984 = vmatmul.mubr.msk.bf16.gmra.mxu1 %vm708_vm2, %v12380_v50  ;;  %v12383_v1 = vld [vmem:[%s16901_s0 + $0x6b8] sm:$0xff]   ;;  %v12384_v50 = vld [vmem:[%s16901_s0 + $0x9c8] sm:$0xff]  }
 0x1d2   :  { %17464 = vst [vmem:[#allocation218_spill] sm:$0xff] %v14292_v45  ;;  %17465 = vst [vmem:[#allocation219_spill] sm:$0xff] %v14294_v2  ;;  %11789 = vmatprep.mubr.msk.bf16.mxu0 %vm708_vm2, %v12381_v6  ;;  %11987 = vmatprep.mubr.msk.bf16.mxu1 %vm708_vm2, %v12382_v58  ;;  %v12385_v6 = vld [vmem:[%s16901_s0 + $0x6c0] sm:$0xff]  }
 0x1d3   :  { %v14302_v13 = vpop.f32.mrf.mxu0  ;;  %v14304_v29 = vpop.f32.mrf.mxu1 }
 0x1d4   :  { %17466 = vst [vmem:[#allocation220_spill] sm:$0xff] %v14302_v13  ;;  %17467 = vst [vmem:[#allocation221_spill] sm:$0xff] %v14304_v29  ;;  %v12390_v13 = vld [vmem:[%s16901_s0 + $0x9e0] sm:$0xff]  }
 0x1d5   :  { %v14308_v53 = vpop.f32.mrf.mxu0  ;;  %v14310_v34 = vpop.f32.mrf.mxu1 }
 0x1d6   :  { %17468 = vst [vmem:[#allocation222_spill] sm:$0xff] %v14308_v53  ;;  %17469 = vst [vmem:[#allocation223_spill] sm:$0xff] %v14310_v34 }
 0x1d7   :  { %v14326_v61 = vpop.f32.mrf.mxu0  ;;  %v14328_v29 = vpop.f32.mrf.mxu1 }
 0x1d8   :  { %17470 = vst [vmem:[#allocation224_spill] sm:$0xff] %v14326_v61  ;;  %17471 = vst [vmem:[#allocation225_spill] sm:$0xff] %v14328_v29 }
 0x1d9   :  { %v14332_v2 = vpop.f32.mrf.mxu0  ;;  %v14334_v45 = vpop.f32.mrf.mxu1  ;;  %11790 = vmatmul.mubr.msk.bf16.gmra.mxu0 %vm708_vm2, %v12383_v1  ;;  %11988 = vmatmul.mubr.msk.bf16.gmra.mxu1 %vm708_vm2, %v12384_v50  ;;  %v12387_v1 = vld [vmem:[%s16901_s0 + $0x6c8] sm:$0xff]   ;;  %v12388_v50 = vld [vmem:[%s16901_s0 + $0x9d8] sm:$0xff]  }
 0x1da   :  { %17472 = vst [vmem:[#allocation226_spill] sm:$0xff] %v14332_v2  ;;  %17473 = vst [vmem:[#allocation227_spill] sm:$0xff] %v14334_v45  ;;  %11793 = vmatprep.mubr.msk.bf16.mxu0 %vm708_vm2, %v12385_v6  ;;  %11991 = vmatprep.mubr.msk.bf16.mxu1 %vm708_vm2, %v12386_v39  ;;  %v12389_v6 = vld [vmem:[%s16901_s0 + $0x6d0] sm:$0xff]  }
 0x1db   :  { %v14342_v34 = vpop.f32.mrf.mxu0  ;;  %v14344_v53 = vpop.f32.mrf.mxu1 }
 0x1dc   :  { %17474 = vst [vmem:[#allocation228_spill] sm:$0xff] %v14342_v34  ;;  %17475 = vst [vmem:[#allocation229_spill] sm:$0xff] %v14344_v53  ;;  %v12394_v34 = vld [vmem:[%s16901_s0 + $0x9f0] sm:$0xff]  }
 0x1dd   :  { %v14348_v29 = vpop.f32.mrf.mxu0  ;;  %v14350_v61 = vpop.f32.mrf.mxu1 }
 0x1de   :  { %17476 = vst [vmem:[#allocation230_spill] sm:$0xff] %v14348_v29  ;;  %17477 = vst [vmem:[#allocation231_spill] sm:$0xff] %v14350_v61 }
 0x1df   :  { %v14366_v58 = vpop.f32.mrf.mxu0  ;;  %v14368_v53 = vpop.f32.mrf.mxu1 }
 0x1e0   :  { %17478 = vst [vmem:[#allocation232_spill] sm:$0xff] %v14366_v58  ;;  %17479 = vst [vmem:[#allocation233_spill] sm:$0xff] %v14368_v53 }
 0x1e1   :  { %v14372_v45 = vpop.f32.mrf.mxu0  ;;  %v14374_v2 = vpop.f32.mrf.mxu1  ;;  %11794 = vmatmul.mubr.msk.bf16.gmra.mxu0 %vm708_vm2, %v12387_v1  ;;  %11992 = vmatmul.mubr.msk.bf16.gmra.mxu1 %vm708_vm2, %v12388_v50  ;;  %v12391_v1 = vld [vmem:[%s16901_s0 + $0x6d8] sm:$0xff]   ;;  %v12392_v50 = vld [vmem:[%s16901_s0 + $0x9e8] sm:$0xff]  }
 0x1e2   :  { %17480 = vst [vmem:[#allocation234_spill] sm:$0xff] %v14372_v45  ;;  %17481 = vst [vmem:[#allocation235_spill] sm:$0xff] %v14374_v2  ;;  %11797 = vmatprep.mubr.msk.bf16.mxu0 %vm708_vm2, %v12389_v6  ;;  %11995 = vmatprep.mubr.msk.bf16.mxu1 %vm708_vm2, %v12390_v13  ;;  %v12393_v6 = vld [vmem:[%s16901_s0 + $0x6e0] sm:$0xff]  }
 0x1e3   :  { %v14382_v61 = vpop.f32.mrf.mxu0  ;;  %v14384_v29 = vpop.f32.mrf.mxu1 }
 0x1e4   :  { %17482 = vst [vmem:[#allocation236_spill] sm:$0xff] %v14382_v61  ;;  %17483 = vst [vmem:[#allocation237_spill] sm:$0xff] %v14384_v29  ;;  %v12398_v61 = vld [vmem:[%s16901_s0 + $0xa00] sm:$0xff]  }
 0x1e5   :  { %v14388_v53 = vpop.f32.mrf.mxu0  ;;  %v14390_v58 = vpop.f32.mrf.mxu1 }
 0x1e6   :  { %17484 = vst [vmem:[#allocation238_spill] sm:$0xff] %v14388_v53  ;;  %17485 = vst [vmem:[#allocation239_spill] sm:$0xff] %v14390_v58 }
 0x1e7   :  { %v14406_v39 = vpop.f32.mrf.mxu0  ;;  %v14408_v29 = vpop.f32.mrf.mxu1 }
 0x1e8   :  { %17486 = vst [vmem:[#allocation240_spill] sm:$0xff] %v14406_v39  ;;  %17487 = vst [vmem:[#allocation241_spill] sm:$0xff] %v14408_v29 }
 0x1e9   :  { %v14412_v2 = vpop.f32.mrf.mxu0  ;;  %v14414_v45 = vpop.f32.mrf.mxu1  ;;  %11798 = vmatmul.mubr.msk.bf16.gmra.mxu0 %vm708_vm2, %v12391_v1  ;;  %11996 = vmatmul.mubr.msk.bf16.gmra.mxu1 %vm708_vm2, %v12392_v50  ;;  %v12395_v1 = vld [vmem:[%s16901_s0 + $0x6e8] sm:$0xff]   ;;  %v12396_v50 = vld [vmem:[%s16901_s0 + $0x9f8] sm:$0xff]  }
 0x1ea   :  { %17488 = vst [vmem:[#allocation242_spill] sm:$0xff] %v14412_v2  ;;  %17489 = vst [vmem:[#allocation243_spill] sm:$0xff] %v14414_v45  ;;  %11801 = vmatprep.mubr.msk.bf16.mxu0 %vm708_vm2, %v12393_v6  ;;  %11999 = vmatprep.mubr.msk.bf16.mxu1 %vm708_vm2, %v12394_v34  ;;  %v12397_v6 = vld [vmem:[%s16901_s0 + $0x6f0] sm:$0xff]  }
 0x1eb   :  { %v14422_v58 = vpop.f32.mrf.mxu0  ;;  %v14424_v53 = vpop.f32.mrf.mxu1 }
 0x1ec   :  { %17490 = vst [vmem:[#allocation244_spill] sm:$0xff] %v14422_v58  ;;  %17491 = vst [vmem:[#allocation245_spill] sm:$0xff] %v14424_v53  ;;  %v12402_v58 = vld [vmem:[%s16901_s0 + $0xa10] sm:$0xff]  }
 0x1ed   :  { %v14428_v29 = vpop.f32.mrf.mxu0  ;;  %v14430_v39 = vpop.f32.mrf.mxu1 }
 0x1ee   :  { %17492 = vst [vmem:[#allocation246_spill] sm:$0xff] %v14428_v29  ;;  %17493 = vst [vmem:[#allocation247_spill] sm:$0xff] %v14430_v39 }
 0x1ef   :  { %v14446_v13 = vpop.f32.mrf.mxu0  ;;  %v14448_v53 = vpop.f32.mrf.mxu1 }
 0x1f0   :  { %17494 = vst [vmem:[#allocation248_spill] sm:$0xff] %v14446_v13  ;;  %17495 = vst [vmem:[#allocation249_spill] sm:$0xff] %v14448_v53 }
 0x1f1   :  { %v14452_v45 = vpop.f32.mrf.mxu0  ;;  %v14454_v2 = vpop.f32.mrf.mxu1  ;;  %11802 = vmatmul.mubr.msk.bf16.gmra.mxu0 %vm708_vm2, %v12395_v1  ;;  %12000 = vmatmul.mubr.msk.bf16.gmra.mxu1 %vm708_vm2, %v12396_v50  ;;  %v12399_v1 = vld [vmem:[%s16901_s0 + $0x6f8] sm:$0xff]   ;;  %v12400_v50 = vld [vmem:[%s16901_s0 + $0xa08] sm:$0xff]  }
 0x1f2   :  { %17496 = vst [vmem:[#allocation250_spill] sm:$0xff] %v14452_v45  ;;  %17497 = vst [vmem:[#allocation251_spill] sm:$0xff] %v14454_v2  ;;  %11805 = vmatprep.mubr.msk.bf16.mxu0 %vm708_vm2, %v12397_v6  ;;  %12003 = vmatprep.mubr.msk.bf16.mxu1 %vm708_vm2, %v12398_v61  ;;  %v12401_v6 = vld [vmem:[%s16901_s0 + $0x700] sm:$0xff]  }
 0x1f3   :  { %v14462_v39 = vpop.f32.mrf.mxu0  ;;  %v14464_v29 = vpop.f32.mrf.mxu1 }
 0x1f4   :  { %17498 = vst [vmem:[#allocation252_spill] sm:$0xff] %v14462_v39  ;;  %17499 = vst [vmem:[#allocation253_spill] sm:$0xff] %v14464_v29  ;;  %v12406_v39 = vld [vmem:[%s16901_s0 + $0xa20] sm:$0xff]  }
 0x1f5   :  { %v14468_v53 = vpop.f32.mrf.mxu0  ;;  %v14470_v13 = vpop.f32.mrf.mxu1 }
 0x1f6   :  { %17500 = vst [vmem:[#allocation254_spill] sm:$0xff] %v14468_v53  ;;  %17501 = vst [vmem:[#allocation255_spill] sm:$0xff] %v14470_v13 }
 0x1f7   :  { %v14486_v34 = vpop.f32.mrf.mxu0  ;;  %v14488_v29 = vpop.f32.mrf.mxu1 }
 0x1f8   :  { %17502 = vst [vmem:[#allocation256_spill] sm:$0xff] %v14486_v34  ;;  %17503 = vst [vmem:[#allocation257_spill] sm:$0xff] %v14488_v29 }
 0x1f9   :  { %v14492_v2 = vpop.f32.mrf.mxu0  ;;  %v14494_v45 = vpop.f32.mrf.mxu1  ;;  %11806 = vmatmul.mubr.msk.bf16.gmra.mxu0 %vm708_vm2, %v12399_v1  ;;  %12004 = vmatmul.mubr.msk.bf16.gmra.mxu1 %vm708_vm2, %v12400_v50  ;;  %v12403_v1 = vld [vmem:[%s16901_s0 + $0x708] sm:$0xff]   ;;  %v12404_v50 = vld [vmem:[%s16901_s0 + $0xa18] sm:$0xff]  }
 0x1fa   :  { %17504 = vst [vmem:[#allocation258_spill] sm:$0xff] %v14492_v2  ;;  %17505 = vst [vmem:[#allocation259_spill] sm:$0xff] %v14494_v45  ;;  %11809 = vmatprep.mubr.msk.bf16.mxu0 %vm708_vm2, %v12401_v6  ;;  %12007 = vmatprep.mubr.msk.bf16.mxu1 %vm708_vm2, %v12402_v58  ;;  %v12405_v6 = vld [vmem:[%s16901_s0 + $0x710] sm:$0xff]  }
 0x1fb   :  { %v14502_v13 = vpop.f32.mrf.mxu0  ;;  %v14504_v53 = vpop.f32.mrf.mxu1 }
 0x1fc   :  { %17506 = vst [vmem:[#allocation260_spill] sm:$0xff] %v14502_v13  ;;  %17507 = vst [vmem:[#allocation261_spill] sm:$0xff] %v14504_v53  ;;  %v12410_v13 = vld [vmem:[%s16901_s0 + $0xa30] sm:$0xff]  }
 0x1fd   :  { %v14508_v29 = vpop.f32.mrf.mxu0  ;;  %v14510_v34 = vpop.f32.mrf.mxu1 }
 0x1fe   :  { %17508 = vst [vmem:[#allocation262_spill] sm:$0xff] %v14508_v29  ;;  %17509 = vst [vmem:[#allocation263_spill] sm:$0xff] %v14510_v34 }
 0x1ff   :  { %v14526_v61 = vpop.f32.mrf.mxu0  ;;  %v14528_v53 = vpop.f32.mrf.mxu1 }
 0x200   :  { %17510 = vst [vmem:[#allocation264_spill] sm:$0xff] %v14526_v61  ;;  %17511 = vst [vmem:[#allocation265_spill] sm:$0xff] %v14528_v53 }
 0x201   :  { %v14532_v45 = vpop.f32.mrf.mxu0  ;;  %v14534_v2 = vpop.f32.mrf.mxu1  ;;  %11810 = vmatmul.mubr.msk.bf16.gmra.mxu0 %vm708_vm2, %v12403_v1  ;;  %12008 = vmatmul.mubr.msk.bf16.gmra.mxu1 %vm708_vm2, %v12404_v50  ;;  %v12407_v1 = vld [vmem:[%s16901_s0 + $0x718] sm:$0xff]   ;;  %v12408_v50 = vld [vmem:[%s16901_s0 + $0xa28] sm:$0xff]  }
 0x202   :  { %17512 = vst [vmem:[#allocation266_spill] sm:$0xff] %v14532_v45  ;;  %17513 = vst [vmem:[#allocation267_spill] sm:$0xff] %v14534_v2  ;;  %11813 = vmatprep.mubr.msk.bf16.mxu0 %vm708_vm2, %v12405_v6  ;;  %12011 = vmatprep.mubr.msk.bf16.mxu1 %vm708_vm2, %v12406_v39  ;;  %v12409_v6 = vld [vmem:[%s16901_s0 + $0x720] sm:$0xff]  }
 0x203   :  { %v14542_v34 = vpop.f32.mrf.mxu0  ;;  %v14544_v29 = vpop.f32.mrf.mxu1 }
 0x204   :  { %17514 = vst [vmem:[#allocation268_spill] sm:$0xff] %v14542_v34  ;;  %17515 = vst [vmem:[#allocation269_spill] sm:$0xff] %v14544_v29  ;;  %v12414_v34 = vld [vmem:[%s16901_s0 + $0xa40] sm:$0xff]  }
 0x205   :  { %v14548_v53 = vpop.f32.mrf.mxu0  ;;  %v14550_v61 = vpop.f32.mrf.mxu1 }
 0x206   :  { %17516 = vst [vmem:[#allocation270_spill] sm:$0xff] %v14548_v53  ;;  %17517 = vst [vmem:[#allocation271_spill] sm:$0xff] %v14550_v61 }
 0x207   :  { %v14566_v58 = vpop.f32.mrf.mxu0  ;;  %v14568_v29 = vpop.f32.mrf.mxu1 }
 0x208   :  { %17518 = vst [vmem:[#allocation272_spill] sm:$0xff] %v14566_v58  ;;  %17519 = vst [vmem:[#allocation273_spill] sm:$0xff] %v14568_v29 }
 0x209   :  { %v14572_v2 = vpop.f32.mrf.mxu0  ;;  %v14574_v45 = vpop.f32.mrf.mxu1  ;;  %11814 = vmatmul.mubr.msk.bf16.gmra.mxu0 %vm708_vm2, %v12407_v1  ;;  %12012 = vmatmul.mubr.msk.bf16.gmra.mxu1 %vm708_vm2, %v12408_v50  ;;  %v12411_v1 = vld [vmem:[%s16901_s0 + $0x728] sm:$0xff]   ;;  %v12412_v50 = vld [vmem:[%s16901_s0 + $0xa38] sm:$0xff]  }
 0x20a   :  { %17520 = vst [vmem:[#allocation274_spill] sm:$0xff] %v14572_v2  ;;  %17521 = vst [vmem:[#allocation275_spill] sm:$0xff] %v14574_v45  ;;  %11817 = vmatprep.mubr.msk.bf16.mxu0 %vm708_vm2, %v12409_v6  ;;  %12015 = vmatprep.mubr.msk.bf16.mxu1 %vm708_vm2, %v12410_v13  ;;  %v12413_v6 = vld [vmem:[%s16901_s0 + $0x730] sm:$0xff]  }
 0x20b   :  { %v14582_v61 = vpop.f32.mrf.mxu0  ;;  %v14584_v53 = vpop.f32.mrf.mxu1 }
 0x20c   :  { %17522 = vst [vmem:[#allocation276_spill] sm:$0xff] %v14582_v61  ;;  %17523 = vst [vmem:[#allocation277_spill] sm:$0xff] %v14584_v53  ;;  %v12418_v61 = vld [vmem:[%s16901_s0 + $0xa50] sm:$0xff]  }
 0x20d   :  { %v14588_v29 = vpop.f32.mrf.mxu0  ;;  %v14590_v58 = vpop.f32.mrf.mxu1 }
 0x20e   :  { %17524 = vst [vmem:[#allocation278_spill] sm:$0xff] %v14588_v29  ;;  %17525 = vst [vmem:[#allocation279_spill] sm:$0xff] %v14590_v58 }
 0x20f   :  { %v14606_v39 = vpop.f32.mrf.mxu0  ;;  %v14608_v53 = vpop.f32.mrf.mxu1 }
 0x210   :  { %17526 = vst [vmem:[#allocation280_spill] sm:$0xff] %v14606_v39  ;;  %17527 = vst [vmem:[#allocation281_spill] sm:$0xff] %v14608_v53 }
 0x211   :  { %v14612_v45 = vpop.f32.mrf.mxu0  ;;  %v14614_v2 = vpop.f32.mrf.mxu1  ;;  %11818 = vmatmul.mubr.msk.bf16.gmra.mxu0 %vm708_vm2, %v12411_v1  ;;  %12016 = vmatmul.mubr.msk.bf16.gmra.mxu1 %vm708_vm2, %v12412_v50  ;;  %v12415_v1 = vld [vmem:[%s16901_s0 + $0x738] sm:$0xff]   ;;  %v12416_v50 = vld [vmem:[%s16901_s0 + $0xa48] sm:$0xff]  }
 0x212   :  { %17528 = vst [vmem:[#allocation282_spill] sm:$0xff] %v14612_v45  ;;  %17529 = vst [vmem:[#allocation283_spill] sm:$0xff] %v14614_v2  ;;  %11821 = vmatprep.mubr.msk.bf16.mxu0 %vm708_vm2, %v12413_v6  ;;  %12019 = vmatprep.mubr.msk.bf16.mxu1 %vm708_vm2, %v12414_v34  ;;  %v12417_v6 = vld [vmem:[%s16901_s0 + $0x740] sm:$0xff]  }
 0x213   :  { %v14622_v58 = vpop.f32.mrf.mxu0  ;;  %v14624_v29 = vpop.f32.mrf.mxu1 }
 0x214   :  { %17530 = vst [vmem:[#allocation284_spill] sm:$0xff] %v14622_v58  ;;  %17531 = vst [vmem:[#allocation285_spill] sm:$0xff] %v14624_v29  ;;  %v12422_v58 = vld [vmem:[%s16901_s0 + $0xa60] sm:$0xff]  }
 0x215   :  { %v14628_v53 = vpop.f32.mrf.mxu0  ;;  %v14630_v39 = vpop.f32.mrf.mxu1 }
 0x216   :  { %17532 = vst [vmem:[#allocation286_spill] sm:$0xff] %v14628_v53  ;;  %17533 = vst [vmem:[#allocation287_spill] sm:$0xff] %v14630_v39 }
 0x217   :  { %v14646_v13 = vpop.f32.mrf.mxu0  ;;  %v14648_v29 = vpop.f32.mrf.mxu1 }
 0x218   :  { %17534 = vst [vmem:[#allocation288_spill] sm:$0xff] %v14646_v13  ;;  %17535 = vst [vmem:[#allocation289_spill] sm:$0xff] %v14648_v29 }
 0x219   :  { %v14652_v2 = vpop.f32.mrf.mxu0  ;;  %v14654_v45 = vpop.f32.mrf.mxu1  ;;  %11822 = vmatmul.mubr.msk.bf16.gmra.mxu0 %vm708_vm2, %v12415_v1  ;;  %12020 = vmatmul.mubr.msk.bf16.gmra.mxu1 %vm708_vm2, %v12416_v50  ;;  %v12419_v1 = vld [vmem:[%s16901_s0 + $0x748] sm:$0xff]   ;;  %v12420_v50 = vld [vmem:[%s16901_s0 + $0xa58] sm:$0xff]  }
 0x21a   :  { %17536 = vst [vmem:[#allocation290_spill] sm:$0xff] %v14652_v2  ;;  %17537 = vst [vmem:[#allocation291_spill] sm:$0xff] %v14654_v45  ;;  %11825 = vmatprep.mubr.msk.bf16.mxu0 %vm708_vm2, %v12417_v6  ;;  %12023 = vmatprep.mubr.msk.bf16.mxu1 %vm708_vm2, %v12418_v61  ;;  %v12421_v6 = vld [vmem:[%s16901_s0 + $0x750] sm:$0xff]  }
 0x21b   :  { %v14662_v39 = vpop.f32.mrf.mxu0  ;;  %v14664_v53 = vpop.f32.mrf.mxu1 }
 0x21c   :  { %17538 = vst [vmem:[#allocation292_spill] sm:$0xff] %v14662_v39  ;;  %17539 = vst [vmem:[#allocation293_spill] sm:$0xff] %v14664_v53  ;;  %v12426_v39 = vld [vmem:[%s16901_s0 + $0xa70] sm:$0xff]  }
 0x21d   :  { %v14668_v29 = vpop.f32.mrf.mxu0  ;;  %v14670_v13 = vpop.f32.mrf.mxu1 }
 0x21e   :  { %17540 = vst [vmem:[#allocation294_spill] sm:$0xff] %v14668_v29  ;;  %17541 = vst [vmem:[#allocation295_spill] sm:$0xff] %v14670_v13 }
 0x21f   :  { %v14686_v34 = vpop.f32.mrf.mxu0  ;;  %v14688_v53 = vpop.f32.mrf.mxu1 }
 0x220   :  { %17542 = vst [vmem:[#allocation296_spill] sm:$0xff] %v14686_v34  ;;  %17543 = vst [vmem:[#allocation297_spill] sm:$0xff] %v14688_v53 }
 0x221   :  { %v14692_v45 = vpop.f32.mrf.mxu0  ;;  %v14694_v2 = vpop.f32.mrf.mxu1  ;;  %11826 = vmatmul.mubr.msk.bf16.gmra.mxu0 %vm708_vm2, %v12419_v1  ;;  %12024 = vmatmul.mubr.msk.bf16.gmra.mxu1 %vm708_vm2, %v12420_v50  ;;  %v12423_v1 = vld [vmem:[%s16901_s0 + $0x758] sm:$0xff]   ;;  %v12424_v50 = vld [vmem:[%s16901_s0 + $0xa68] sm:$0xff]  }
 0x222   :  { %17544 = vst [vmem:[#allocation298_spill] sm:$0xff] %v14692_v45  ;;  %17545 = vst [vmem:[#allocation299_spill] sm:$0xff] %v14694_v2  ;;  %11829 = vmatprep.mubr.msk.bf16.mxu0 %vm708_vm2, %v12421_v6  ;;  %12027 = vmatprep.mubr.msk.bf16.mxu1 %vm708_vm2, %v12422_v58  ;;  %v12425_v6 = vld [vmem:[%s16901_s0 + $0x760] sm:$0xff]  }
 0x223   :  { %v14702_v13 = vpop.f32.mrf.mxu0  ;;  %v14704_v29 = vpop.f32.mrf.mxu1 }
 0x224   :  { %17546 = vst [vmem:[#allocation300_spill] sm:$0xff] %v14702_v13  ;;  %17547 = vst [vmem:[#allocation301_spill] sm:$0xff] %v14704_v29  ;;  %v12430_v13 = vld [vmem:[%s16901_s0 + $0xa80] sm:$0xff]  }
 0x225   :  { %v14708_v53 = vpop.f32.mrf.mxu0  ;;  %v14710_v34 = vpop.f32.mrf.mxu1 }
 0x226   :  { %17548 = vst [vmem:[#allocation302_spill] sm:$0xff] %v14708_v53  ;;  %17549 = vst [vmem:[#allocation303_spill] sm:$0xff] %v14710_v34 }
 0x227   :  { %v14726_v61 = vpop.f32.mrf.mxu0  ;;  %v14728_v29 = vpop.f32.mrf.mxu1 }
 0x228   :  { %17550 = vst [vmem:[#allocation304_spill] sm:$0xff] %v14726_v61  ;;  %17551 = vst [vmem:[#allocation305_spill] sm:$0xff] %v14728_v29 }
 0x229   :  { %v14732_v2 = vpop.f32.mrf.mxu0  ;;  %v14734_v45 = vpop.f32.mrf.mxu1  ;;  %11830 = vmatmul.mubr.msk.bf16.gmra.mxu0 %vm708_vm2, %v12423_v1  ;;  %12028 = vmatmul.mubr.msk.bf16.gmra.mxu1 %vm708_vm2, %v12424_v50  ;;  %v12427_v1 = vld [vmem:[%s16901_s0 + $0x768] sm:$0xff]   ;;  %v12428_v50 = vld [vmem:[%s16901_s0 + $0xa78] sm:$0xff]  }
 0x22a   :  { %17552 = vst [vmem:[#allocation306_spill] sm:$0xff] %v14732_v2  ;;  %17553 = vst [vmem:[#allocation307_spill] sm:$0xff] %v14734_v45  ;;  %11833 = vmatprep.mubr.msk.bf16.mxu0 %vm708_vm2, %v12425_v6  ;;  %12031 = vmatprep.mubr.msk.bf16.mxu1 %vm708_vm2, %v12426_v39  ;;  %v12429_v6 = vld [vmem:[%s16901_s0 + $0x770] sm:$0xff]  }
 0x22b   :  { %v14742_v34 = vpop.f32.mrf.mxu0  ;;  %v14744_v53 = vpop.f32.mrf.mxu1 }
 0x22c   :  { %17554 = vst [vmem:[#allocation308_spill] sm:$0xff] %v14742_v34  ;;  %17555 = vst [vmem:[#allocation309_spill] sm:$0xff] %v14744_v53  ;;  %v12434_v34 = vld [vmem:[%s16901_s0 + $0xa90] sm:$0xff]  }
 0x22d   :  { %v14748_v29 = vpop.f32.mrf.mxu0  ;;  %v14750_v61 = vpop.f32.mrf.mxu1 }
 0x22e   :  { %17556 = vst [vmem:[#allocation310_spill] sm:$0xff] %v14748_v29  ;;  %17557 = vst [vmem:[#allocation311_spill] sm:$0xff] %v14750_v61 }
 0x22f   :  { %v14766_v58 = vpop.f32.mrf.mxu0  ;;  %v14768_v53 = vpop.f32.mrf.mxu1 }
 0x230   :  { %17558 = vst [vmem:[#allocation312_spill] sm:$0xff] %v14766_v58  ;;  %17559 = vst [vmem:[#allocation313_spill] sm:$0xff] %v14768_v53 }
 0x231   :  { %v14772_v45 = vpop.f32.mrf.mxu0  ;;  %v14774_v2 = vpop.f32.mrf.mxu1  ;;  %11834 = vmatmul.mubr.msk.bf16.gmra.mxu0 %vm708_vm2, %v12427_v1  ;;  %12032 = vmatmul.mubr.msk.bf16.gmra.mxu1 %vm708_vm2, %v12428_v50  ;;  %v12431_v1 = vld [vmem:[%s16901_s0 + $0x778] sm:$0xff]   ;;  %v12432_v50 = vld [vmem:[%s16901_s0 + $0xa88] sm:$0xff]  }
 0x232   :  { %17560 = vst [vmem:[#allocation314_spill] sm:$0xff] %v14772_v45  ;;  %17561 = vst [vmem:[#allocation315_spill] sm:$0xff] %v14774_v2  ;;  %11837 = vmatprep.mubr.msk.bf16.mxu0 %vm708_vm2, %v12429_v6  ;;  %12035 = vmatprep.mubr.msk.bf16.mxu1 %vm708_vm2, %v12430_v13  ;;  %v12433_v6 = vld [vmem:[%s16901_s0 + $0x780] sm:$0xff]  }
 0x233   :  { %v14782_v61 = vpop.f32.mrf.mxu0  ;;  %v14784_v29 = vpop.f32.mrf.mxu1 }
 0x234   :  { %17562 = vst [vmem:[#allocation316_spill] sm:$0xff] %v14782_v61  ;;  %17563 = vst [vmem:[#allocation317_spill] sm:$0xff] %v14784_v29  ;;  %v12438_v61 = vld [vmem:[%s16901_s0 + $0xaa0] sm:$0xff]  }
 0x235   :  { %v14788_v53 = vpop.f32.mrf.mxu0  ;;  %v14790_v58 = vpop.f32.mrf.mxu1 }
 0x236   :  { %17564 = vst [vmem:[#allocation318_spill] sm:$0xff] %v14788_v53  ;;  %17565 = vst [vmem:[#allocation319_spill] sm:$0xff] %v14790_v58 }
 0x237   :  { %v14806_v39 = vpop.f32.mrf.mxu0  ;;  %v14808_v29 = vpop.f32.mrf.mxu1 }
 0x238   :  { %17566 = vst [vmem:[#allocation320_spill] sm:$0xff] %v14806_v39  ;;  %17567 = vst [vmem:[#allocation321_spill] sm:$0xff] %v14808_v29 }
 0x239   :  { %v14812_v2 = vpop.f32.mrf.mxu0  ;;  %v14814_v45 = vpop.f32.mrf.mxu1  ;;  %11838 = vmatmul.mubr.msk.bf16.gmra.mxu0 %vm708_vm2, %v12431_v1  ;;  %12036 = vmatmul.mubr.msk.bf16.gmra.mxu1 %vm708_vm2, %v12432_v50  ;;  %v12435_v1 = vld [vmem:[%s16901_s0 + $0x788] sm:$0xff]   ;;  %v12436_v50 = vld [vmem:[%s16901_s0 + $0xa98] sm:$0xff]  }
 0x23a   :  { %17568 = vst [vmem:[#allocation322_spill] sm:$0xff] %v14812_v2  ;;  %17569 = vst [vmem:[#allocation323_spill] sm:$0xff] %v14814_v45  ;;  %11841 = vmatprep.mubr.msk.bf16.mxu0 %vm708_vm2, %v12433_v6  ;;  %12039 = vmatprep.mubr.msk.bf16.mxu1 %vm708_vm2, %v12434_v34  ;;  %v12437_v6 = vld [vmem:[%s16901_s0 + $0x790] sm:$0xff]  }
 0x23b   :  { %v14822_v58 = vpop.f32.mrf.mxu0  ;;  %v14824_v53 = vpop.f32.mrf.mxu1 }
 0x23c   :  { %17570 = vst [vmem:[#allocation324_spill] sm:$0xff] %v14822_v58  ;;  %17571 = vst [vmem:[#allocation325_spill] sm:$0xff] %v14824_v53  ;;  %v12442_v58 = vld [vmem:[%s16901_s0 + $0xab0] sm:$0xff]  }
 0x23d   :  { %v14828_v29 = vpop.f32.mrf.mxu0  ;;  %v14830_v39 = vpop.f32.mrf.mxu1 }
 0x23e   :  { %17572 = vst [vmem:[#allocation326_spill] sm:$0xff] %v14828_v29  ;;  %17573 = vst [vmem:[#allocation327_spill] sm:$0xff] %v14830_v39 }
 0x23f   :  { %v14846_v13 = vpop.f32.mrf.mxu0  ;;  %v14848_v53 = vpop.f32.mrf.mxu1 }
 0x240   :  { %17574 = vst [vmem:[#allocation328_spill] sm:$0xff] %v14846_v13  ;;  %17575 = vst [vmem:[#allocation329_spill] sm:$0xff] %v14848_v53 }
 0x241   :  { %v14852_v45 = vpop.f32.mrf.mxu0  ;;  %v14854_v2 = vpop.f32.mrf.mxu1  ;;  %11842 = vmatmul.mubr.msk.bf16.gmra.mxu0 %vm708_vm2, %v12435_v1  ;;  %12040 = vmatmul.mubr.msk.bf16.gmra.mxu1 %vm708_vm2, %v12436_v50  ;;  %v12439_v1 = vld [vmem:[%s16901_s0 + $0x798] sm:$0xff]   ;;  %v12440_v50 = vld [vmem:[%s16901_s0 + $0xaa8] sm:$0xff]  }
 0x242   :  { %17576 = vst [vmem:[#allocation330_spill] sm:$0xff] %v14852_v45  ;;  %17577 = vst [vmem:[#allocation331_spill] sm:$0xff] %v14854_v2  ;;  %11845 = vmatprep.mubr.msk.bf16.mxu0 %vm708_vm2, %v12437_v6  ;;  %12043 = vmatprep.mubr.msk.bf16.mxu1 %vm708_vm2, %v12438_v61  ;;  %v12441_v6 = vld [vmem:[%s16901_s0 + $0x7a0] sm:$0xff]  }
 0x243   :  { %v14862_v39 = vpop.f32.mrf.mxu0  ;;  %v14864_v29 = vpop.f32.mrf.mxu1 }
 0x244   :  { %17578 = vst [vmem:[#allocation332_spill] sm:$0xff] %v14862_v39  ;;  %17579 = vst [vmem:[#allocation333_spill] sm:$0xff] %v14864_v29  ;;  %v12446_v39 = vld [vmem:[%s16901_s0 + $0xac0] sm:$0xff]  }
 0x245   :  { %v14868_v53 = vpop.f32.mrf.mxu0  ;;  %v14870_v13 = vpop.f32.mrf.mxu1 }
 0x246   :  { %17580 = vst [vmem:[#allocation334_spill] sm:$0xff] %v14868_v53  ;;  %17581 = vst [vmem:[#allocation335_spill] sm:$0xff] %v14870_v13 }
 0x247   :  { %v14886_v34 = vpop.f32.mrf.mxu0  ;;  %v14888_v29 = vpop.f32.mrf.mxu1 }
 0x248   :  { %17582 = vst [vmem:[#allocation336_spill] sm:$0xff] %v14886_v34  ;;  %17583 = vst [vmem:[#allocation337_spill] sm:$0xff] %v14888_v29 }
 0x249   :  { %v14892_v2 = vpop.f32.mrf.mxu0  ;;  %v14894_v45 = vpop.f32.mrf.mxu1  ;;  %11846 = vmatmul.mubr.msk.bf16.gmra.mxu0 %vm708_vm2, %v12439_v1  ;;  %12044 = vmatmul.mubr.msk.bf16.gmra.mxu1 %vm708_vm2, %v12440_v50  ;;  %v12443_v1 = vld [vmem:[%s16901_s0 + $0x7a8] sm:$0xff]   ;;  %v12444_v50 = vld [vmem:[%s16901_s0 + $0xab8] sm:$0xff]  }
 0x24a   :  { %17584 = vst [vmem:[#allocation338_spill] sm:$0xff] %v14892_v2  ;;  %17585 = vst [vmem:[#allocation339_spill] sm:$0xff] %v14894_v45  ;;  %11849 = vmatprep.mubr.msk.bf16.mxu0 %vm708_vm2, %v12441_v6  ;;  %12047 = vmatprep.mubr.msk.bf16.mxu1 %vm708_vm2, %v12442_v58  ;;  %v12445_v6 = vld [vmem:[%s16901_s0 + $0x7b0] sm:$0xff]   ;;  %v17592_v58 = vmax.f32 %v12972_v43, %v12975_v44  ;;  %v12447_v43 = vld [vmem:[%s16901_s0 + $0x7b8] sm:$0xff]  }
 0x24b   :  { %v14902_v13 = vpop.f32.mrf.mxu0  ;;  %v14904_v53 = vpop.f32.mrf.mxu1  ;;  %v12448_v44 = vld [vmem:[%s16901_s0 + $0xac8] sm:$0xff]  }
 0x24c   :  { %17586 = vst [vmem:[#allocation340_spill] sm:$0xff] %v14902_v13  ;;  %17587 = vst [vmem:[#allocation341_spill] sm:$0xff] %v14904_v53 }
 0x24d   :  { %v14908_v29 = vpop.f32.mrf.mxu0  ;;  %v14910_v34 = vpop.f32.mrf.mxu1 }
 0x24e   :  { %17588 = vst [vmem:[#allocation342_spill] sm:$0xff] %v14908_v29  ;;  %17589 = vst [vmem:[#allocation343_spill] sm:$0xff] %v14910_v34  ;;  %v14942_v29 = vld [vmem:[%s16902_s2] ss:$0 sm:$0xff] }
 0x24f   :  { %v14926_v61 = vpop.f32.mrf.mxu0  ;;  %v14928_v53 = vpop.f32.mrf.mxu1 }
 0x250   :  { %17590 = vst [vmem:[#allocation344_spill] sm:$0xff] %v14926_v61  ;;  %17591 = vst [vmem:[#allocation345_spill] sm:$0xff] %v14928_v53 }
 0x251   :  { %v11755_v45 = vpop.f32.mrf.mxu0  ;;  %11850 = vmatmul.mubr.msk.bf16.gmra.mxu0 %vm708_vm2, %v12443_v1  ;;  %v11953_v2 = vpop.f32.mrf.mxu1  ;;  %12048 = vmatmul.mubr.msk.bf16.gmra.mxu1 %vm708_vm2, %v12444_v50  ;;  %v17593_v1 = vmax.f32 %v12982_v46, %v12984_v47  ;;  %v12449_v46 = vld [vmem:[%s16901_s0 + $0x7c0] sm:$0xff]   ;;  %v12450_v47 = vld [vmem:[%s16901_s0 + $0xad0] sm:$0xff]  }
 0x252   :  { %v5621_v34 = vmax.f32 %v17592_v58, %v11755_v45  ;;  %11853 = vmatprep.mubr.msk.bf16.mxu0 %vm708_vm2, %v12445_v6  ;;  %12051 = vmatprep.mubr.msk.bf16.mxu1 %vm708_vm2, %v12446_v39 }
 0x253   :  { %v4836_v13 = vpop.f32.mrf.mxu0  ;;  %v6830_v53 = vpop.f32.mrf.mxu1 }
 0x254   :  { %v7615_v61 = vmax.f32 %v5621_v34, %v11953_v2  ;;  %v5619_v50 = vmax.f32 %v17593_v1, %v4836_v13  ;;  %v17594_v2 = vmax.f32 %v12994_v51, %v12996_v52 }
 0x255   :  { %v11756_v5 = vpop.f32.mrf.mxu0  ;;  %v11954_v10 = vpop.f32.mrf.mxu1 }
 0x256   :  { %v7818_v45 = vadd.f32 %v14942_v29, %v7615_v61  ;;  %v7613_v39 = vmax.f32 %v5619_v50, %v6830_v53  ;;  %v5622_v34 = vmax.f32 %v17594_v2, %v11756_v5  ;;  %v17595_v53 = vmax.f32 %v13006_v56, %v13008_v57 }
 0x257   :  { %v4839_v13 = vpop.f32.mrf.mxu0  ;;  %v6833_v58 = vpop.f32.mrf.mxu1  ;;  %v17596_v56 = vmax.f32 %v13012_v59, %v13015_v60  ;;  %v12451_v59 = vld [vmem:[%s16901_s0 + $0x7c8] sm:$0xff]   ;;  %v12452_v60 = vld [vmem:[%s16901_s0 + $0xad8] sm:$0xff]  }
 0x258   :  { %v8014_v6 = vmax.f32 %v7818_v45, 0.0  ;;  %v7816_v1 = vadd.f32 %v14942_v29, %v7613_v39  ;;  %v7616_v32 = vmax.f32 %v5622_v34, %v11954_v10  ;;  %v5620_v61 = vmax.f32 %v17595_v53, %v4839_v13  ;;  %v12454_v53 = vld [vmem:[%s16901_s0 + $0xae0] sm:$0xff]  }
 0x259   :  { %v11759_v51 = vpop.f32.mrf.mxu0  ;;  %11854 = vmatmul.mubr.msk.bf16.gmra.mxu0 %vm708_vm2, %v12447_v43  ;;  %v11957_v52 = vpop.f32.mrf.mxu1  ;;  %12052 = vmatmul.mubr.msk.bf16.gmra.mxu1 %vm708_vm2, %v12448_v44  ;;  %v17597_v39 = vmax.f32 %v13022_v62, %v13024_v63  ;;  %v17598_v63 = vmax.f32 %v13034_v3, %v13036_v4 }
 0x25a   :  { %v10765_v5 = vpack.c.bf16 %v8014_v6, %v8014_v6  ;;  %v8012_v50 = vmax.f32 %v7816_v1, 0.0  ;;  %v7819_v2 = vadd.f32 %v14942_v29, %v7616_v32  ;;  %v7614_v18 = vmax.f32 %v5620_v61, %v6833_v58  ;;  %11857 = vmatprep.mubr.msk.bf16.mxu0 %vm708_vm2, %v12449_v46  ;;  %12055 = vmatprep.mubr.msk.bf16.mxu1 %vm708_vm2, %v12450_v47  ;;  %v12453_v1 = vld [vmem:[%s16901_s0 + $0x7d0] sm:$0xff]  }
 0x25b   :  { %v5625_v57 = vmax.f32 %v17596_v56, %v11759_v51  ;;  %v4852_v10 = vpop.f32.mrf.mxu0  ;;  %v6846_v45 = vpop.f32.mrf.mxu1 }
 0x25c   :  { %8995 = vst.msk [vmem:[%s16903_s3 + $0x8] sm:$0xf] %vm8992_vm3, %v10765_v5  ;;  %v10763_v43 = vpack.c.bf16 %v8012_v50, %v8012_v50  ;;  %v8015_v44 = vmax.f32 %v7819_v2, 0.0  ;;  %v7817_v32 = vadd.f32 %v14942_v29, %v7614_v18  ;;  %v5623_v34 = vmax.f32 %v17597_v39, %v4852_v10 }
 0x25d   :  { %v7619_v46 = vmax.f32 %v5625_v57, %v11957_v52  ;;  %v11760_v47 = vpop.f32.mrf.mxu0  ;;  %v11958_v13 = vpop.f32.mrf.mxu1  ;;  %v17599_v50 = vmax.f32 %v13046_v8, %v13048_v9  ;;  %v17600_v8 = vmax.f32 %v13052_v11, %v13055_v12  ;;  %v17601_v11 = vmax.f32 %v13062_v14, %v13064_v15 }
 0x25e   :  { %8993 = vst.msk [vmem:[%s16903_s3] sm:$0xf] %vm8992_vm3, %v10763_v43  ;;  %v10766_v18 = vpack.c.bf16 %v8015_v44, %v8015_v44  ;;  %v8013_v58 = vmax.f32 %v7817_v32, 0.0  ;;  %v7617_v62 = vmax.f32 %v5623_v34, %v6846_v45  ;;  %v5626_v6 = vmax.f32 %v17598_v63, %v11760_v47 }
 0x25f   :  { %v7822_v61 = vadd.f32 %v14942_v29, %v7619_v46  ;;  %v4855_v51 = vpop.f32.mrf.mxu0  ;;  %v6849_v52 = vpop.f32.mrf.mxu1  ;;  %v17602_v15 = vmax.f32 %v13074_v19, %v13076_v20  ;;  %v17603_v20 = vmax.f32 %v13086_v24, %v13088_v25  ;;  %v17604_v24 = vmax.f32 %v13092_v27, %v13095_v28 }
 0x260   :  { %8996 = vst.msk [vmem:[%s16903_s3 + $0xc] sm:$0xf] %vm8992_vm3, %v10766_v18  ;;  %v10764_v5 = vpack.c.bf16 %v8013_v58, %v8013_v58  ;;  %v7820_v3 = vadd.f32 %v14942_v29, %v7617_v62  ;;  %v7620_v4 = vmax.f32 %v5626_v6, %v11958_v13  ;;  %v5624_v2 = vmax.f32 %v17599_v50, %v4855_v51  ;;  %v12455_v58 = vld [vmem:[%s16901_s0 + $0x7d8] sm:$0xff]   ;;  %v12456_v62 = vld [vmem:[%s16901_s0 + $0xae8] sm:$0xff]  }
 0x261   :  { %v8018_v56 = vmax.f32 %v7822_v61, 0.0  ;;  %v11763_v57 = vpop.f32.mrf.mxu0  ;;  %11858 = vmatmul.mubr.msk.bf16.gmra.mxu0 %vm708_vm2, %v12451_v59  ;;  %v11961_v10 = vpop.f32.mrf.mxu1  ;;  %12056 = vmatmul.mubr.msk.bf16.gmra.mxu1 %vm708_vm2, %v12452_v60  ;;  %v17605_v27 = vmax.f32 %v13102_v30, %v13104_v31  ;;  %v12461_v30 = vld [vmem:[%s16901_s0 + $0x7f0] sm:$0xff]   ;;  %v12462_v31 = vld [vmem:[%s16901_s0 + $0xb00] sm:$0xff]  }
 0x262   :  { %8994 = vst.msk [vmem:[%s16903_s3 + $0x4] sm:$0xf] %vm8992_vm3, %v10764_v5  ;;  %v8016_v45 = vmax.f32 %v7820_v3, 0.0  ;;  %v7823_v43 = vadd.f32 %v14942_v29, %v7620_v4  ;;  %v7618_v44 = vmax.f32 %v5624_v2, %v6849_v52  ;;  %v5629_v9 = vmax.f32 %v17600_v8, %v11763_v57  ;;  %11861 = vmatprep.mubr.msk.bf16.mxu0 %vm708_vm2, %v12453_v1  ;;  %v12458_v5 = vld [vmem:[%s16901_s0 + $0xaf0] sm:$0xff]  }
 0x263   :  { %12059 = vmatprep.mubr.msk.bf16.mxu1 %vm708_vm2, %v12454_v53  ;;  %v10769_v32 = vpack.c.bf16 %v8018_v56, %v8018_v56  ;;  %v4868_v39 = vpop.f32.mrf.mxu0  ;;  %v6862_v34 = vpop.f32.mrf.mxu1  ;;  %v12457_v53 = vld [vmem:[%s16901_s0 + $0x7e0] sm:$0xff]  }
 0x264   :  { %v10767_v46 = vpack.c.bf16 %v8016_v45, %v8016_v45  ;;  %v8019_v47 = vmax.f32 %v7823_v43, 0.0  ;;  %v7821_v13 = vadd.f32 %v14942_v29, %v7618_v44  ;;  %v7623_v59 = vmax.f32 %v5629_v9, %v11961_v10 }
 0x265   :  { %8999 = vst.msk [vmem:[%s16903_s3 + $0x18] sm:$0xf] %vm8992_vm3, %v10769_v32  ;;  %v5627_v12 = vmax.f32 %v17601_v11, %v4868_v39  ;;  %v11764_v60 = vpop.f32.mrf.mxu0  ;;  %v11962_v18 = vpop.f32.mrf.mxu1  ;;  %v12460_v11 = vld [vmem:[%s16901_s0 + $0xaf8] sm:$0xff]  }
 0x266   :  { %8997 = vst.msk [vmem:[%s16903_s3 + $0x10] sm:$0xf] %vm8992_vm3, %v10767_v46  ;;  %v10770_v63 = vpack.c.bf16 %v8019_v47, %v8019_v47  ;;  %v8017_v6 = vmax.f32 %v7821_v13, 0.0  ;;  %v7826_v14 = vadd.f32 %v14942_v29, %v7623_v59  ;;  %v5630_v1 = vmax.f32 %v17602_v15, %v11764_v60  ;;  %v12459_v59 = vld [vmem:[%s16901_s0 + $0x7e8] sm:$0xff]  }
 0x267   :  { %v7621_v61 = vmax.f32 %v5627_v12, %v6862_v34  ;;  %v4871_v51 = vpop.f32.mrf.mxu0  ;;  %v6865_v52 = vpop.f32.mrf.mxu1 }
 0x268   :  { %9000 = vst.msk [vmem:[%s16903_s3 + $0x1c] sm:$0xf] %vm8992_vm3, %v10770_v63  ;;  %v10768_v3 = vpack.c.bf16 %v8017_v6, %v8017_v6  ;;  %v8022_v4 = vmax.f32 %v7826_v14, 0.0  ;;  %v7624_v19 = vmax.f32 %v5630_v1, %v11962_v18  ;;  %v5628_v50 = vmax.f32 %v17603_v20, %v4871_v51 }
 0x269   :  { %v7824_v2 = vadd.f32 %v14942_v29, %v7621_v61  ;;  %v11767_v56 = vpop.f32.mrf.mxu0  ;;  %11862 = vmatmul.mubr.msk.bf16.gmra.mxu0 %vm708_vm2, %v12455_v58  ;;  %v11965_v57 = vpop.f32.mrf.mxu1  ;;  %12060 = vmatmul.mubr.msk.bf16.gmra.mxu1 %vm708_vm2, %v12456_v62  ;;  %v17606_v62 = vmax.f32 %v13114_v35, %v13116_v36  ;;  %v17607_v61 = vmax.f32 %v13126_v40, %v13128_v41 }
 0x26a   :  { %8998 = vst.msk [vmem:[%s16903_s3 + $0x14] sm:$0xf] %vm8992_vm3, %v10768_v3  ;;  %v10773_v10 = vpack.c.bf16 %v8022_v4, %v8022_v4  ;;  %v7827_v45 = vadd.f32 %v14942_v29, %v7624_v19  ;;  %v7622_v43 = vmax.f32 %v5628_v50, %v6865_v52  ;;  %v5633_v25 = vmax.f32 %v17604_v24, %v11767_v56  ;;  %v12463_v24 = vld [vmem:[%s16901_s0 + $0x7f8] sm:$0xff]  }
 0x26b   :  { %11865 = vmatprep.mubr.msk.bf16.mxu0 %vm708_vm2, %v12457_v53  ;;  %v8020_v44 = vmax.f32 %v7824_v2, 0.0  ;;  %v4884_v8 = vpop.f32.mrf.mxu0  ;;  %v6878_v9 = vpop.f32.mrf.mxu1  ;;  %12063 = vmatprep.mubr.msk.bf16.mxu1 %vm708_vm2, %v12458_v5  ;;  %v17608_v19 = vmax.f32 %v13132_v48, %v13135_v49  ;;  %v17609_v48 = vmax.f32 %v13142_v55, %v13144_v0 }
 0x26c   :  { %9003 = vst.msk [vmem:[%s16903_s3 + $0x28] sm:$0xf] %vm8992_vm3, %v10773_v10  ;;  %v8023_v32 = vmax.f32 %v7827_v45, 0.0  ;;  %v7825_v39 = vadd.f32 %v14942_v29, %v7622_v43  ;;  %v7627_v34 = vmax.f32 %v5633_v25, %v11965_v57  ;;  %v5631_v28 = vmax.f32 %v17605_v27, %v4884_v8  ;;  %v12464_v25 = vld [vmem:[%s16901_s0 + $0xb08] sm:$0xff]  }
 0x26d   :  { %v10771_v46 = vpack.c.bf16 %v8020_v44, %v8020_v44  ;;  %v11768_v47 = vpop.f32.mrf.mxu0  ;;  %v11966_v13 = vpop.f32.mrf.mxu1  ;;  %v17610_v8 = vmax.f32 %v13154_v16, %v13156_v17  ;;  %v17611_v16 = vmax.f32 %v13166_v33, %v13168_v38 }
 0x26e   :  { %v10774_v12 = vpack.c.bf16 %v8023_v32, %v8023_v32  ;;  %v8021_v60 = vmax.f32 %v7825_v39, 0.0  ;;  %v7830_v18 = vadd.f32 %v14942_v29, %v7627_v34  ;;  %v7625_v58 = vmax.f32 %v5631_v28, %v6878_v9  ;;  %v12465_v32 = vld [vmem:[%s16901_s0 + $0x800] sm:$0xff]   ;;  %v12466_v39 = vld [vmem:[%s16901_s0 + $0xb10] sm:$0xff]  }
 0x26f   :  { %9001 = vst.msk [vmem:[%s16903_s3 + $0x20] sm:$0xf] %vm8992_vm3, %v10771_v46  ;;  %v5634_v63 = vmax.f32 %v17606_v62, %v11768_v47  ;;  %v4887_v6 = vpop.f32.mrf.mxu0  ;;  %v6881_v14 = vpop.f32.mrf.mxu1 }
 0x270   :  { %9004 = vst.msk [vmem:[%s16903_s3 + $0x2c] sm:$0xf] %vm8992_vm3, %v10774_v12  ;;  %v10772_v15 = vpack.c.bf16 %v8021_v60, %v8021_v60  ;;  %v8026_v1 = vmax.f32 %v7830_v18, 0.0  ;;  %v7828_v53 = vadd.f32 %v14942_v29, %v7625_v58  ;;  %v5632_v51 = vmax.f32 %v17607_v61, %v4887_v6  ;;  %v12467_v61 = vld [vmem:[%s16901_s0 + $0x808] sm:$0xff]  }
 0x271   :  { %v7628_v52 = vmax.f32 %v5634_v63, %v11966_v13  ;;  %v11771_v5 = vpop.f32.mrf.mxu0  ;;  %11866 = vmatmul.mubr.msk.bf16.gmra.mxu0 %vm708_vm2, %v12459_v59  ;;  %v11969_v35 = vpop.f32.mrf.mxu1  ;;  %12064 = vmatmul.mubr.msk.bf16.gmra.mxu1 %vm708_vm2, %v12460_v11 }
 0x272   :  { %9002 = vst.msk [vmem:[%s16903_s3 + $0x24] sm:$0xf] %vm8992_vm3, %v10772_v15  ;;  %v10777_v36 = vpack.c.bf16 %v8026_v1, %v8026_v1  ;;  %v8024_v3 = vmax.f32 %v7828_v53, 0.0  ;;  %v7626_v4 = vmax.f32 %v5632_v51, %v6881_v14  ;;  %v5637_v40 = vmax.f32 %v17608_v19, %v11771_v5  ;;  %11869 = vmatprep.mubr.msk.bf16.mxu0 %vm708_vm2, %v12461_v30  ;;  %v12468_v51 = vld [vmem:[%s16901_s0 + $0xb18] sm:$0xff]  }
 0x273   :  { %12067 = vmatprep.mubr.msk.bf16.mxu1 %vm708_vm2, %v12462_v31  ;;  %v7831_v41 = vadd.f32 %v14942_v29, %v7628_v52  ;;  %v4900_v20 = vpop.f32.mrf.mxu0  ;;  %v6894_v50 = vpop.f32.mrf.mxu1  ;;  %v17612_v30 = vmax.f32 %v13172_v7, %v13175_v22  ;;  %v17613_v15 = vmax.f32 %v13182_v42, %v13184_v37  ;;  %v17614_v5 = vmax.f32 %v13194_v54, %v13196_v23 }
 0x274   :  { %9007 = vst.msk [vmem:[%s16903_s3 + $0x38] sm:$0xf] %vm8992_vm3, %v10777_v36  ;;  %v10775_v2 = vpack.c.bf16 %v8024_v3, %v8024_v3  ;;  %v7829_v56 = vadd.f32 %v14942_v29, %v7626_v4  ;;  %v7631_v57 = vmax.f32 %v5637_v40, %v11969_v35  ;;  %v5635_v49 = vmax.f32 %v17609_v48, %v4900_v20  ;;  %v12469_v36 = vld [vmem:[%s16901_s0 + $0x810] sm:$0xff]   ;;  %v12470_v3 = vld [vmem:[%s16901_s0 + $0xb20] sm:$0xff]  }
 0x275   :  { %v8027_v10 = vmax.f32 %v7831_v41, 0.0  ;;  %v11772_v45 = vpop.f32.mrf.mxu0  ;;  %v11970_v43 = vpop.f32.mrf.mxu1  ;;  %v17615_v20 = vmax.f32 %v13206_v26, %v13208_v21  ;;  %v17616_v21 = vld [vmem:[#allocation2_spill] sm:$0xff]  ;;  %v17617_v26 = vld [vmem:[#allocation3_spill] sm:$0xff] }
 0x276   :  { %9005 = vst.msk [vmem:[%s16903_s3 + $0x30] sm:$0xf] %vm8992_vm3, %v10775_v2  ;;  %v8025_v44 = vmax.f32 %v7829_v56, 0.0  ;;  %v7834_v55 = vadd.f32 %v14942_v29, %v7631_v57  ;;  %v7629_v0 = vmax.f32 %v5635_v49, %v6894_v50  ;;  %v5638_v9 = vmax.f32 %v17610_v8, %v11772_v45 }
 0x277   :  { %v10778_v34 = vpack.c.bf16 %v8027_v10, %v8027_v10  ;;  %v4903_v27 = vpop.f32.mrf.mxu0  ;;  %v6897_v28 = vpop.f32.mrf.mxu1 }
 0x278   :  { %v10776_v46 = vpack.c.bf16 %v8025_v44, %v8025_v44  ;;  %v8030_v47 = vmax.f32 %v7834_v55, 0.0  ;;  %v7832_v13 = vadd.f32 %v14942_v29, %v7629_v0  ;;  %v7632_v59 = vmax.f32 %v5638_v9, %v11970_v43  ;;  %v17619_v9 = vld [vmem:[#allocation4_spill] sm:$0xff] }
 0x279   :  { %9008 = vst.msk [vmem:[%s16903_s3 + $0x3c] sm:$0xf] %vm8992_vm3, %v10778_v34  ;;  %v5636_v17 = vmax.f32 %v17611_v16, %v4903_v27  ;;  %v11775_v11 = vpop.f32.mrf.mxu0  ;;  %11870 = vmatmul.mubr.msk.bf16.gmra.mxu0 %vm708_vm2, %v12463_v24  ;;  %v11973_v12 = vpop.f32.mrf.mxu1  ;;  %12068 = vmatmul.mubr.msk.bf16.gmra.mxu1 %vm708_vm2, %v12464_v25  ;;  %v17618_v43 = vmax.f32 %v17616_v21, %v17617_v26 }
 0x27a   :  { %9006 = vst.msk [vmem:[%s16903_s3 + $0x34] sm:$0xf] %vm8992_vm3, %v10776_v46  ;;  %v10781_v60 = vpack.c.bf16 %v8030_v47, %v8030_v47  ;;  %v8028_v18 = vmax.f32 %v7832_v13, 0.0  ;;  %v7835_v58 = vadd.f32 %v14942_v29, %v7632_v59  ;;  %v5641_v33 = vmax.f32 %v17612_v30, %v11775_v11  ;;  %11873 = vmatprep.mubr.msk.bf16.mxu0 %vm708_vm2, %v12465_v32  ;;  %v17620_v32 = vld [vmem:[#allocation5_spill] sm:$0xff]  ;;  %v12472_v13 = vld [vmem:[%s16901_s0 + $0xb28] sm:$0xff]   ;;  %v17622_v11 = vld [vmem:[#allocation6_spill] sm:$0xff] }
 0x27b   :  { %12071 = vmatprep.mubr.msk.bf16.mxu1 %vm708_vm2, %v12466_v39  ;;  %v7630_v38 = vmax.f32 %v5636_v17, %v6897_v28  ;;  %v4916_v31 = vpop.f32.mrf.mxu0  ;;  %v6910_v62 = vpop.f32.mrf.mxu1  ;;  %v17621_v39 = vmax.f32 %v17619_v9, %v17620_v32  ;;  %v12471_v47 = vld [vmem:[%s16901_s0 + $0x818] sm:$0xff]   ;;  %v12474_v30 = vld [vmem:[%s16901_s0 + $0xb30] sm:$0xff]   ;;  %v12478_v32 = vld [vmem:[%s16901_s0 + $0xb40] sm:$0xff]  }
 0x27c   :  { %9011 = vst.msk [vmem:[%s16903_s3 + $0x48] sm:$0xf] %vm8992_vm3, %v10781_v60  ;;  %v10779_v63 = vpack.c.bf16 %v8028_v18, %v8028_v18  ;;  %v8031_v6 = vmax.f32 %v7835_v58, 0.0  ;;  %v7635_v14 = vmax.f32 %v5641_v33, %v11973_v12  ;;  %v5639_v7 = vmax.f32 %v17613_v15, %v4916_v31  ;;  %v17623_v12 = vld [vmem:[#allocation7_spill] sm:$0xff]  ;;  %v12473_v58 = vld [vmem:[%s16901_s0 + $0x820] sm:$0xff]   ;;  %v17626_v15 = vld [vmem:[#allocation9_spill] sm:$0xff] }
 0x27d   :  { %v7833_v22 = vadd.f32 %v14942_v29, %v7630_v38  ;;  %v11776_v1 = vpop.f32.mrf.mxu0  ;;  %v11974_v53 = vpop.f32.mrf.mxu1  ;;  %v17624_v60 = vmax.f32 %v17622_v11, %v17623_v12 }
 0x27e   :  { %9009 = vst.msk [vmem:[%s16903_s3 + $0x40] sm:$0xf] %vm8992_vm3, %v10779_v63  ;;  %v10782_v52 = vpack.c.bf16 %v8031_v6, %v8031_v6  ;;  %v7838_v37 = vadd.f32 %v14942_v29, %v7635_v14  ;;  %v7633_v42 = vmax.f32 %v5639_v7, %v6910_v62  ;;  %v5642_v35 = vmax.f32 %v17614_v5, %v11776_v1  ;;  %v17625_v14 = vld [vmem:[#allocation8_spill] sm:$0xff]  ;;  %v17629_v5 = vld [vmem:[#allocation11_spill] sm:$0xff] }
 0x27f   :  { %v8029_v4 = vmax.f32 %v7833_v22, 0.0  ;;  %v4919_v19 = vpop.f32.mrf.mxu0  ;;  %v6913_v40 = vpop.f32.mrf.mxu1  ;;  %v17627_v7 = vmax.f32 %v17625_v14, %v17626_v15  ;;  %v17643_v15 = vld [vmem:[#allocation20_spill] sm:$0xff] }
 0x280   :  { %9012 = vst.msk [vmem:[%s16903_s3 + $0x4c] sm:$0xf] %vm8992_vm3, %v10782_v52  ;;  %v8034_v41 = vmax.f32 %v7838_v37, 0.0  ;;  %v7836_v54 = vadd.f32 %v14942_v29, %v7633_v42  ;;  %v7636_v23 = vmax.f32 %v5642_v35, %v11974_v53  ;;  %v5640_v50 = vmax.f32 %v17615_v20, %v4919_v19  ;;  %v17628_v42 = vld [vmem:[#allocation10_spill] sm:$0xff]  ;;  %v17631_v20 = vld [vmem:[#allocation12_spill] sm:$0xff] }
 0x281   :  { %v10780_v2 = vpack.c.bf16 %v8029_v4, %v8029_v4  ;;  %v11779_v56 = vpop.f32.mrf.mxu0  ;;  %11874 = vmatmul.mubr.msk.bf16.gmra.mxu0 %vm708_vm2, %v12467_v61  ;;  %v11977_v57 = vpop.f32.mrf.mxu1  ;;  %12072 = vmatmul.mubr.msk.bf16.gmra.mxu1 %vm708_vm2, %v12468_v51  ;;  %v17630_v35 = vmax.f32 %v17628_v42, %v17629_v5 }
 0x282   :  { %v10785_v48 = vpack.c.bf16 %v8034_v41, %v8034_v41  ;;  %v8032_v49 = vmax.f32 %v7836_v54, 0.0  ;;  %v7839_v10 = vadd.f32 %v14942_v29, %v7636_v23  ;;  %v7634_v45 = vmax.f32 %v5640_v50, %v6913_v40  ;;  %11877 = vmatprep.mubr.msk.bf16.mxu0 %vm708_vm2, %v12469_v36  ;;  %12075 = vmatprep.mubr.msk.bf16.mxu1 %vm708_vm2, %v12470_v3  ;;  %v17632_v50 = vld [vmem:[#allocation13_spill] sm:$0xff] }
 0x283   :  { %9010 = vst.msk [vmem:[%s16903_s3 + $0x44] sm:$0xf] %vm8992_vm3, %v10780_v2  ;;  %v5645_v24 = vmax.f32 %v17618_v43, %v11779_v56  ;;  %v4932_v25 = vpop.f32.mrf.mxu0  ;;  %v6926_v44 = vpop.f32.mrf.mxu1  ;;  %v17633_v2 = vmax.f32 %v17631_v20, %v17632_v50  ;;  %v17634_v43 = vld [vmem:[#allocation14_spill] sm:$0xff] }
 0x284   :  { %9015 = vst.msk [vmem:[%s16903_s3 + $0x58] sm:$0xf] %vm8992_vm3, %v10785_v48  ;;  %v10783_v55 = vpack.c.bf16 %v8032_v49, %v8032_v49  ;;  %v8035_v0 = vmax.f32 %v7839_v10, 0.0  ;;  %v7837_v8 = vadd.f32 %v14942_v29, %v7634_v45  ;;  %v5643_v34 = vmax.f32 %v17621_v39, %v4932_v25  ;;  %v12475_v49 = vld [vmem:[%s16901_s0 + $0x828] sm:$0xff]   ;;  %v12476_v10 = vld [vmem:[%s16901_s0 + $0xb38] sm:$0xff]  }
 0x285   :  { %v7639_v27 = vmax.f32 %v5645_v24, %v11977_v57  ;;  %v11780_v28 = vpop.f32.mrf.mxu0  ;;  %v11978_v46 = vpop.f32.mrf.mxu1  ;;  %v17635_v24 = vld [vmem:[#allocation15_spill] sm:$0xff] }
 0x286   :  { %9013 = vst.msk [vmem:[%s16903_s3 + $0x50] sm:$0xf] %vm8992_vm3, %v10783_v55  ;;  %v10786_v59 = vpack.c.bf16 %v8035_v0, %v8035_v0  ;;  %v8033_v16 = vmax.f32 %v7837_v8, 0.0  ;;  %v7637_v17 = vmax.f32 %v5643_v34, %v6926_v44  ;;  %v5646_v18 = vmax.f32 %v17624_v60, %v11780_v28  ;;  %v12477_v55 = vld [vmem:[%s16901_s0 + $0x830] sm:$0xff]  }
 0x287   :  { %v7842_v33 = vadd.f32 %v14942_v29, %v7639_v27  ;;  %v4935_v38 = vpop.f32.mrf.mxu0  ;;  %v6929_v31 = vpop.f32.mrf.mxu1  ;;  %v17636_v25 = vmax.f32 %v17634_v43, %v17635_v24  ;;  %v17637_v28 = vld [vmem:[#allocation16_spill] sm:$0xff] }
 0x288   :  { %9016 = vst.msk [vmem:[%s16903_s3 + $0x5c] sm:$0xf] %vm8992_vm3, %v10786_v59  ;;  %v10784_v62 = vpack.c.bf16 %v8033_v16, %v8033_v16  ;;  %v7840_v63 = vadd.f32 %v14942_v29, %v7637_v17  ;;  %v7640_v6 = vmax.f32 %v5646_v18, %v11978_v46  ;;  %v5644_v22 = vmax.f32 %v17627_v7, %v4935_v38  ;;  %v17638_v46 = vld [vmem:[#allocation17_spill] sm:$0xff]  ;;  %v17640_v18 = vld [vmem:[#allocation18_spill] sm:$0xff] }
 0x289   :  { %v8038_v1 = vmax.f32 %v7842_v33, 0.0  ;;  %v11783_v53 = vpop.f32.mrf.mxu0  ;;  %11878 = vmatmul.mubr.msk.bf16.gmra.mxu0 %vm708_vm2, %v12471_v47  ;;  %v11981_v61 = vpop.f32.mrf.mxu1  ;;  %12076 = vmatmul.mubr.msk.bf16.gmra.mxu1 %vm708_vm2, %v12472_v13  ;;  %v17639_v47 = vmax.f32 %v17637_v28, %v17638_v46  ;;  %v17644_v7 = vld [vmem:[#allocation21_spill] sm:$0xff]  ;;  %v17655_v46 = vld [vmem:[#allocation28_spill] sm:$0xff] }
 0x28a   :  { %9014 = vst.msk [vmem:[%s16903_s3 + $0x54] sm:$0xf] %vm8992_vm3, %v10784_v62  ;;  %v8036_v51 = vmax.f32 %v7840_v63, 0.0  ;;  %v7843_v52 = vadd.f32 %v14942_v29, %v7640_v6  ;;  %v7638_v37 = vmax.f32 %v5644_v22, %v6929_v31  ;;  %v5649_v36 = vmax.f32 %v17630_v35, %v11783_v53  ;;  %11881 = vmatprep.mubr.msk.bf16.mxu0 %vm708_vm2, %v12473_v58  ;;  %v17641_v58 = vld [vmem:[#allocation19_spill] sm:$0xff] }
 0x28b   :  { %12079 = vmatprep.mubr.msk.bf16.mxu1 %vm708_vm2, %v12474_v30  ;;  %v10789_v3 = vpack.c.bf16 %v8038_v1, %v8038_v1  ;;  %v4948_v4 = vpop.f32.mrf.mxu0  ;;  %v6942_v19 = vpop.f32.mrf.mxu1  ;;  %v17642_v30 = vmax.f32 %v17640_v18, %v17641_v58  ;;  %v17645_v22 = vmax.f32 %v17643_v15, %v17644_v7 }
 0x28c   :  { %v10787_v40 = vpack.c.bf16 %v8036_v51, %v8036_v51  ;;  %v8039_v41 = vmax.f32 %v7843_v52, 0.0  ;;  %v7841_v54 = vadd.f32 %v14942_v29, %v7638_v37  ;;  %v7643_v23 = vmax.f32 %v5649_v36, %v11981_v61  ;;  %v12479_v52 = vld [vmem:[%s16901_s0 + $0x838] sm:$0xff]   ;;  %v12480_v37 = vld [vmem:[%s16901_s0 + $0xb48] sm:$0xff]  }
 0x28d   :  { %9019 = vst.msk [vmem:[%s16903_s3 + $0x68] sm:$0xf] %vm8992_vm3, %v10789_v3  ;;  %v5647_v56 = vmax.f32 %v17633_v2, %v4948_v4  ;;  %v11784_v57 = vpop.f32.mrf.mxu0  ;;  %v11982_v48 = vpop.f32.mrf.mxu1  ;;  %v12481_v3 = vld [vmem:[%s16901_s0 + $0x840] sm:$0xff]   ;;  %v12482_v4 = vld [vmem:[%s16901_s0 + $0xb50] sm:$0xff]  }
 0x28e   :  { %9017 = vst.msk [vmem:[%s16903_s3 + $0x60] sm:$0xf] %vm8992_vm3, %v10787_v40  ;;  %v10790_v45 = vpack.c.bf16 %v8039_v41, %v8039_v41  ;;  %v8037_v21 = vmax.f32 %v7841_v54, 0.0  ;;  %v7846_v26 = vadd.f32 %v14942_v29, %v7643_v23  ;;  %v5650_v44 = vmax.f32 %v17636_v25, %v11784_v57  ;;  %v17647_v40 = vld [vmem:[#allocation23_spill] sm:$0xff]  ;;  %v17649_v57 = vld [vmem:[#allocation24_spill] sm:$0xff] }
 0x28f   :  { %v7641_v0 = vmax.f32 %v5647_v56, %v6942_v19  ;;  %v4951_v8 = vpop.f32.mrf.mxu0  ;;  %v6945_v9 = vpop.f32.mrf.mxu1  ;;  %v17646_v19 = vld [vmem:[#allocation22_spill] sm:$0xff] }
 0x290   :  { %9020 = vst.msk [vmem:[%s16903_s3 + $0x6c] sm:$0xf] %vm8992_vm3, %v10790_v45  ;;  %v10788_v39 = vpack.c.bf16 %v8037_v21, %v8037_v21  ;;  %v8042_v34 = vmax.f32 %v7846_v26, 0.0  ;;  %v7644_v27 = vmax.f32 %v5650_v44, %v11982_v48  ;;  %v5648_v13 = vmax.f32 %v17639_v47, %v4951_v8  ;;  %v17650_v48 = vld [vmem:[#allocation25_spill] sm:$0xff]  ;;  %v17652_v44 = vld [vmem:[#allocation26_spill] sm:$0xff] }
 0x291   :  { %v7844_v59 = vadd.f32 %v14942_v29, %v7641_v0  ;;  %v11787_v16 = vpop.f32.mrf.mxu0  ;;  %11882 = vmatmul.mubr.msk.bf16.gmra.mxu0 %vm708_vm2, %v12475_v49  ;;  %v11985_v17 = vpop.f32.mrf.mxu1  ;;  %12080 = vmatmul.mubr.msk.bf16.gmra.mxu1 %vm708_vm2, %v12476_v10  ;;  %v17648_v41 = vmax.f32 %v17646_v19, %v17647_v40  ;;  %v17651_v49 = vmax.f32 %v17649_v57, %v17650_v48  ;;  %v17656_v47 = vld [vmem:[#allocation29_spill] sm:$0xff]  ;;  %v17664_v19 = vld [vmem:[#allocation34_spill] sm:$0xff]  ;;  %v17665_v40 = vld [vmem:[#allocation35_spill] sm:$0xff] }
 0x292   :  { %9018 = vst.msk [vmem:[%s16903_s3 + $0x64] sm:$0xf] %vm8992_vm3, %v10788_v39  ;;  %v10793_v11 = vpack.c.bf16 %v8042_v34, %v8042_v34  ;;  %v7847_v12 = vadd.f32 %v14942_v29, %v7644_v27  ;;  %v7642_v60 = vmax.f32 %v5648_v13, %v6945_v9  ;;  %v5653_v33 = vmax.f32 %v17642_v30, %v11787_v16  ;;  %v17667_v48 = vld [vmem:[#allocation36_spill] sm:$0xff] }
 0x293   :  { %11885 = vmatprep.mubr.msk.bf16.mxu0 %vm708_vm2, %v12477_v55  ;;  %v8040_v38 = vmax.f32 %v7844_v59, 0.0  ;;  %v4964_v31 = vpop.f32.mrf.mxu0  ;;  %v6958_v62 = vpop.f32.mrf.mxu1  ;;  %12083 = vmatprep.mubr.msk.bf16.mxu1 %vm708_vm2, %v12478_v32  ;;  %v17653_v55 = vld [vmem:[#allocation27_spill] sm:$0xff]  ;;  %v17657_v13 = vmax.f32 %v17655_v46, %v17656_v47 }
 0x294   :  { %9023 = vst.msk [vmem:[%s16903_s3 + $0x78] sm:$0xf] %vm8992_vm3, %v10793_v11  ;;  %v8043_v63 = vmax.f32 %v7847_v12, 0.0  ;;  %v7845_v6 = vadd.f32 %v14942_v29, %v7642_v60  ;;  %v7647_v14 = vmax.f32 %v5653_v33, %v11985_v17  ;;  %v5651_v1 = vmax.f32 %v17645_v22, %v4964_v31  ;;  %v12483_v12 = vld [vmem:[%s16901_s0 + $0x848] sm:$0xff]   ;;  %v12484_v60 = vld [vmem:[%s16901_s0 + $0xb58] sm:$0xff]   ;;  %v17658_v33 = vld [vmem:[#allocation30_spill] sm:$0xff] }
 0x295   :  { %v10791_v53 = vpack.c.bf16 %v8040_v38, %v8040_v38  ;;  %v11788_v61 = vpop.f32.mrf.mxu0  ;;  %v11986_v51 = vpop.f32.mrf.mxu1  ;;  %v17654_v0 = vmax.f32 %v17652_v44, %v17653_v55  ;;  %v17659_v38 = vld [vmem:[#allocation31_spill] sm:$0xff] }
 0x296   :  { %v10794_v42 = vpack.c.bf16 %v8043_v63, %v8043_v63  ;;  %v8041_v5 = vmax.f32 %v7845_v6, 0.0  ;;  %v7850_v35 = vadd.f32 %v14942_v29, %v7647_v14  ;;  %v7645_v36 = vmax.f32 %v5651_v1, %v6958_v62  ;;  %v12485_v63 = vld [vmem:[%s16901_s0 + $0x850] sm:$0xff]   ;;  %v12486_v6 = vld [vmem:[%s16901_s0 + $0xb60] sm:$0xff]  }
 0x297   :  { %9021 = vst.msk [vmem:[%s16903_s3 + $0x70] sm:$0xf] %vm8992_vm3, %v10791_v53  ;;  %v5654_v54 = vmax.f32 %v17648_v41, %v11788_v61  ;;  %v4967_v23 = vpop.f32.mrf.mxu0  ;;  %v6961_v20 = vpop.f32.mrf.mxu1  ;;  %v17660_v31 = vmax.f32 %v17658_v33, %v17659_v38  ;;  %v17666_v41 = vmax.f32 %v17664_v19, %v17665_v40 }
 0x298   :  { %9024 = vst.msk [vmem:[%s16903_s3 + $0x7c] sm:$0xf] %vm8992_vm3, %v10794_v42  ;;  %v10792_v50 = vpack.c.bf16 %v8041_v5, %v8041_v5  ;;  %v8046_v2 = vmax.f32 %v7850_v35, 0.0  ;;  %v7848_v56 = vadd.f32 %v14942_v29, %v7645_v36  ;;  %v5652_v10 = vmax.f32 %v17651_v49, %v4967_v23  ;;  %v17668_v49 = vld [vmem:[#allocation37_spill] sm:$0xff] }
 0x299   :  { %v7648_v45 = vmax.f32 %v5654_v54, %v11986_v51  ;;  %v11791_v21 = vpop.f32.mrf.mxu0  ;;  %11886 = vmatmul.mubr.msk.bf16.gmra.mxu0 %vm708_vm2, %v12479_v52  ;;  %v11989_v26 = vpop.f32.mrf.mxu1  ;;  %12084 = vmatmul.mubr.msk.bf16.gmra.mxu1 %vm708_vm2, %v12480_v37  ;;  %v17661_v51 = vld [vmem:[#allocation32_spill] sm:$0xff]  ;;  %v17662_v52 = vld [vmem:[#allocation33_spill] sm:$0xff] }
 0x29a   :  { %9022 = vst.msk [vmem:[%s16903_s3 + $0x74] sm:$0xf] %vm8992_vm3, %v10792_v50  ;;  %v10797_v43 = vpack.c.bf16 %v8046_v2, %v8046_v2  ;;  %v8044_v24 = vmax.f32 %v7848_v56, 0.0  ;;  %v7646_v25 = vmax.f32 %v5652_v10, %v6961_v20  ;;  %v5657_v8 = vmax.f32 %v17654_v0, %v11791_v21  ;;  %11889 = vmatprep.mubr.msk.bf16.mxu0 %vm708_vm2, %v12481_v3 }
 0x29b   :  { %12087 = vmatprep.mubr.msk.bf16.mxu1 %vm708_vm2, %v12482_v4  ;;  %v7851_v9 = vadd.f32 %v14942_v29, %v7648_v45  ;;  %v4980_v32 = vpop.f32.mrf.mxu0  ;;  %v6974_v39 = vpop.f32.mrf.mxu1  ;;  %v17663_v37 = vmax.f32 %v17661_v51, %v17662_v52  ;;  %v17669_v10 = vmax.f32 %v17667_v48, %v17668_v49  ;;  %v17679_v51 = vld [vmem:[#allocation44_spill] sm:$0xff]  ;;  %v17680_v52 = vld [vmem:[#allocation45_spill] sm:$0xff] }
 0x29c   :  { %9027 = vst.msk [vmem:[%s16903_s3 + $0x88] sm:$0xf] %vm8992_vm3, %v10797_v43  ;;  %v10795_v34 = vpack.c.bf16 %v8044_v24, %v8044_v24  ;;  %v7849_v27 = vadd.f32 %v14942_v29, %v7646_v25  ;;  %v7651_v28 = vmax.f32 %v5657_v8, %v11989_v26  ;;  %v5655_v59 = vmax.f32 %v17657_v13, %v4980_v32  ;;  %v12487_v24 = vld [vmem:[%s16901_s0 + $0x858] sm:$0xff]   ;;  %v12488_v25 = vld [vmem:[%s16901_s0 + $0xb68] sm:$0xff]   ;;  %v17670_v8 = vld [vmem:[#allocation38_spill] sm:$0xff] }
 0x29d   :  { %v8047_v16 = vmax.f32 %v7851_v9, 0.0  ;;  %v11792_v17 = vpop.f32.mrf.mxu0  ;;  %v11990_v11 = vpop.f32.mrf.mxu1  ;;  %v17671_v9 = vld [vmem:[#allocation39_spill] sm:$0xff] }
 0x29e   :  { %9025 = vst.msk [vmem:[%s16903_s3 + $0x80] sm:$0xf] %vm8992_vm3, %v10795_v34  ;;  %v8045_v18 = vmax.f32 %v7849_v27, 0.0  ;;  %v7854_v58 = vadd.f32 %v14942_v29, %v7651_v28  ;;  %v7649_v30 = vmax.f32 %v5655_v59, %v6974_v39  ;;  %v5658_v62 = vmax.f32 %v17660_v31, %v11792_v17  ;;  %v12489_v34 = vld [vmem:[%s16901_s0 + $0x860] sm:$0xff]   ;;  %v12490_v27 = vld [vmem:[%s16901_s0 + $0xb70] sm:$0xff]  }
 0x29f   :  { %v10798_v14 = vpack.c.bf16 %v8047_v16, %v8047_v16  ;;  %v4983_v15 = vpop.f32.mrf.mxu0  ;;  %v6977_v7 = vpop.f32.mrf.mxu1  ;;  %v17672_v32 = vmax.f32 %v17670_v8, %v17671_v9  ;;  %v17673_v17 = vld [vmem:[#allocation40_spill] sm:$0xff] }
 0x2a0   :  { %v10796_v22 = vpack.c.bf16 %v8045_v18, %v8045_v18  ;;  %v8050_v1 = vmax.f32 %v7854_v58, 0.0  ;;  %v7852_v53 = vadd.f32 %v14942_v29, %v7649_v30  ;;  %v7652_v61 = vmax.f32 %v5658_v62, %v11990_v11  ;;  %v17674_v11 = vld [vmem:[#allocation41_spill] sm:$0xff] }
 0x2a1   :  { %9028 = vst.msk [vmem:[%s16903_s3 + $0x8c] sm:$0xf] %vm8992_vm3, %v10798_v14  ;;  %v5656_v42 = vmax.f32 %v17663_v37, %v4983_v15  ;;  %v11795_v5 = vpop.f32.mrf.mxu0  ;;  %11890 = vmatmul.mubr.msk.bf16.gmra.mxu0 %vm708_vm2, %v12483_v12  ;;  %v11993_v35 = vpop.f32.mrf.mxu1  ;;  %12088 = vmatmul.mubr.msk.bf16.gmra.mxu1 %vm708_vm2, %v12484_v60  ;;  %v17675_v12 = vmax.f32 %v17673_v17, %v17674_v11 }
 0x2a2   :  { %9026 = vst.msk [vmem:[%s16903_s3 + $0x84] sm:$0xf] %vm8992_vm3, %v10796_v22  ;;  %v10801_v36 = vpack.c.bf16 %v8050_v1, %v8050_v1  ;;  %v8048_v3 = vmax.f32 %v7852_v53, 0.0  ;;  %v7855_v4 = vadd.f32 %v14942_v29, %v7652_v61  ;;  %v5661_v54 = vmax.f32 %v17666_v41, %v11795_v5  ;;  %11893 = vmatprep.mubr.msk.bf16.mxu0 %vm708_vm2, %v12485_v63  ;;  %v17676_v63 = vld [vmem:[#allocation42_spill] sm:$0xff] }
 0x2a3   :  { %12091 = vmatprep.mubr.msk.bf16.mxu1 %vm708_vm2, %v12486_v6  ;;  %v7650_v23 = vmax.f32 %v5656_v42, %v6977_v7  ;;  %v4996_v20 = vpop.f32.mrf.mxu0  ;;  %v6990_v50 = vpop.f32.mrf.mxu1  ;;  %v17677_v6 = vld [vmem:[#allocation43_spill] sm:$0xff]  ;;  %v17681_v37 = vmax.f32 %v17679_v51, %v17680_v52  ;;  %v12498_v52 = vld [vmem:[%s16901_s0 + $0xb90] sm:$0xff]  }
 0x2a4   :  { %9031 = vst.msk [vmem:[%s16903_s3 + $0x98] sm:$0xf] %vm8992_vm3, %v10801_v36  ;;  %v10799_v2 = vpack.c.bf16 %v8048_v3, %v8048_v3  ;;  %v8051_v56 = vmax.f32 %v7855_v4, 0.0  ;;  %v7655_v57 = vmax.f32 %v5661_v54, %v11993_v35  ;;  %v5659_v45 = vmax.f32 %v17669_v10, %v4996_v20  ;;  %v12491_v3 = vld [vmem:[%s16901_s0 + $0x868] sm:$0xff]   ;;  %v12492_v4 = vld [vmem:[%s16901_s0 + $0xb78] sm:$0xff]   ;;  %v17682_v54 = vld [vmem:[#allocation46_spill] sm:$0xff] }
 0x2a5   :  { %v7853_v21 = vadd.f32 %v14942_v29, %v7650_v23  ;;  %v11796_v26 = vpop.f32.mrf.mxu0  ;;  %v11994_v43 = vpop.f32.mrf.mxu1  ;;  %v17678_v14 = vmax.f32 %v17676_v63, %v17677_v6  ;;  %v17683_v23 = vld [vmem:[#allocation47_spill] sm:$0xff] }
 0x2a6   :  { %9029 = vst.msk [vmem:[%s16903_s3 + $0x90] sm:$0xf] %vm8992_vm3, %v10799_v2  ;;  %v10802_v44 = vpack.c.bf16 %v8051_v56, %v8051_v56  ;;  %v7858_v55 = vadd.f32 %v14942_v29, %v7655_v57  ;;  %v7653_v0 = vmax.f32 %v5659_v45, %v6990_v50  ;;  %v5662_v39 = vmax.f32 %v17672_v32, %v11796_v26  ;;  %v12493_v2 = vld [vmem:[%s16901_s0 + $0x870] sm:$0xff]   ;;  %v12494_v56 = vld [vmem:[%s16901_s0 + $0xb80] sm:$0xff]  }
 0x2a7   :  { %v8049_v28 = vmax.f32 %v7853_v21, 0.0  ;;  %v4999_v46 = vpop.f32.mrf.mxu0  ;;  %v6993_v47 = vpop.f32.mrf.mxu1  ;;  %v17684_v20 = vmax.f32 %v17682_v54, %v17683_v23  ;;  %v17685_v26 = vld [vmem:[#allocation48_spill] sm:$0xff] }
 0x2a8   :  { %9032 = vst.msk [vmem:[%s16903_s3 + $0x9c] sm:$0xf] %vm8992_vm3, %v10802_v44  ;;  %v8054_v13 = vmax.f32 %v7858_v55, 0.0  ;;  %v7856_v59 = vadd.f32 %v14942_v29, %v7653_v0  ;;  %v7656_v16 = vmax.f32 %v5662_v39, %v11994_v43  ;;  %v5660_v60 = vmax.f32 %v17675_v12, %v4999_v46  ;;  %v17686_v43 = vld [vmem:[#allocation49_spill] sm:$0xff]  ;;  %v17688_v39 = vld [vmem:[#allocation50_spill] sm:$0xff]  ;;  %v17691_v12 = vld [vmem:[#allocation52_spill] sm:$0xff] }
 0x2a9   :  { %v10800_v18 = vpack.c.bf16 %v8049_v28, %v8049_v28  ;;  %v11799_v58 = vpop.f32.mrf.mxu0  ;;  %11894 = vmatmul.mubr.msk.bf16.gmra.mxu0 %vm708_vm2, %v12487_v24  ;;  %v11997_v30 = vpop.f32.mrf.mxu1  ;;  %12092 = vmatmul.mubr.msk.bf16.gmra.mxu1 %vm708_vm2, %v12488_v25  ;;  %v17687_v24 = vmax.f32 %v17685_v26, %v17686_v43  ;;  %v17703_v43 = vld [vmem:[#allocation60_spill] sm:$0xff] }
 0x2aa   :  { %v10805_v33 = vpack.c.bf16 %v8054_v13, %v8054_v13  ;;  %v8052_v38 = vmax.f32 %v7856_v59, 0.0  ;;  %v7859_v31 = vadd.f32 %v14942_v29, %v7656_v16  ;;  %v7654_v62 = vmax.f32 %v5660_v60, %v6993_v47  ;;  %11897 = vmatprep.mubr.msk.bf16.mxu0 %vm708_vm2, %v12489_v34  ;;  %12095 = vmatprep.mubr.msk.bf16.mxu1 %vm708_vm2, %v12490_v27  ;;  %v17689_v34 = vld [vmem:[#allocation51_spill] sm:$0xff]  ;;  %v17692_v60 = vld [vmem:[#allocation53_spill] sm:$0xff] }
 0x2ab   :  { %9030 = vst.msk [vmem:[%s16903_s3 + $0x94] sm:$0xf] %vm8992_vm3, %v10800_v18  ;;  %v5665_v15 = vmax.f32 %v17678_v14, %v11799_v58  ;;  %v5012_v7 = vpop.f32.mrf.mxu0  ;;  %v7006_v22 = vpop.f32.mrf.mxu1  ;;  %v17690_v27 = vmax.f32 %v17688_v39, %v17689_v34  ;;  %v17693_v18 = vmax.f32 %v17691_v12, %v17692_v60  ;;  %v17694_v14 = vld [vmem:[#allocation54_spill] sm:$0xff] }
 0x2ac   :  { %9035 = vst.msk [vmem:[%s16903_s3 + $0xa8] sm:$0xf] %vm8992_vm3, %v10805_v33  ;;  %v10803_v1 = vpack.c.bf16 %v8052_v38, %v8052_v38  ;;  %v8055_v53 = vmax.f32 %v7859_v31, 0.0  ;;  %v7857_v61 = vadd.f32 %v14942_v29, %v7654_v62  ;;  %v5663_v42 = vmax.f32 %v17681_v37, %v5012_v7  ;;  %v12495_v38 = vld [vmem:[%s16901_s0 + $0x878] sm:$0xff]   ;;  %v12496_v31 = vld [vmem:[%s16901_s0 + $0xb88] sm:$0xff]  }
 0x2ad   :  { %v7659_v5 = vmax.f32 %v5665_v15, %v11997_v30  ;;  %v11800_v35 = vpop.f32.mrf.mxu0  ;;  %v11998_v36 = vpop.f32.mrf.mxu1  ;;  %v17695_v15 = vld [vmem:[#allocation55_spill] sm:$0xff] }
 0x2ae   :  { %9033 = vst.msk [vmem:[%s16903_s3 + $0xa0] sm:$0xf] %vm8992_vm3, %v10803_v1  ;;  %v10806_v19 = vpack.c.bf16 %v8055_v53, %v8055_v53  ;;  %v8053_v40 = vmax.f32 %v7857_v61, 0.0  ;;  %v7657_v41 = vmax.f32 %v5663_v42, %v7006_v22  ;;  %v5666_v50 = vmax.f32 %v17684_v20, %v11800_v35  ;;  %v12497_v1 = vld [vmem:[%s16901_s0 + $0x880] sm:$0xff]   ;;  %v17697_v35 = vld [vmem:[#allocation56_spill] sm:$0xff] }
 0x2af   :  { %v7862_v57 = vadd.f32 %v14942_v29, %v7659_v5  ;;  %v5015_v48 = vpop.f32.mrf.mxu0  ;;  %v7009_v49 = vpop.f32.mrf.mxu1  ;;  %v17696_v7 = vmax.f32 %v17694_v14, %v17695_v15 }
 0x2b0   :  { %9036 = vst.msk [vmem:[%s16903_s3 + $0xac] sm:$0xf] %vm8992_vm3, %v10806_v19  ;;  %v10804_v10 = vpack.c.bf16 %v8053_v40, %v8053_v40  ;;  %v7860_v45 = vadd.f32 %v14942_v29, %v7657_v41  ;;  %v7660_v21 = vmax.f32 %v5666_v50, %v11998_v36  ;;  %v5664_v25 = vmax.f32 %v17687_v24, %v5015_v48  ;;  %v17698_v36 = vld [vmem:[#allocation57_spill] sm:$0xff]  ;;  %v17700_v50 = vld [vmem:[#allocation58_spill] sm:$0xff] }
 0x2b1   :  { %v8058_v44 = vmax.f32 %v7862_v57, 0.0  ;;  %v11803_v55 = vpop.f32.mrf.mxu0  ;;  %11898 = vmatmul.mubr.msk.bf16.gmra.mxu0 %vm708_vm2, %v12491_v3  ;;  %v12001_v0 = vpop.f32.mrf.mxu1  ;;  %12096 = vmatmul.mubr.msk.bf16.gmra.mxu1 %vm708_vm2, %v12492_v4  ;;  %v17699_v3 = vmax.f32 %v17697_v35, %v17698_v36  ;;  %v17704_v24 = vld [vmem:[#allocation61_spill] sm:$0xff]  ;;  %v17715_v36 = vld [vmem:[#allocation68_spill] sm:$0xff] }
 0x2b2   :  { %9034 = vst.msk [vmem:[%s16903_s3 + $0xa4] sm:$0xf] %vm8992_vm3, %v10804_v10  ;;  %v8056_v8 = vmax.f32 %v7860_v45, 0.0  ;;  %v7863_v9 = vadd.f32 %v14942_v29, %v7660_v21  ;;  %v7658_v32 = vmax.f32 %v5664_v25, %v7009_v49  ;;  %v5669_v28 = vmax.f32 %v17690_v27, %v11803_v55  ;;  %11901 = vmatprep.mubr.msk.bf16.mxu0 %vm708_vm2, %v12493_v2  ;;  %v17701_v2 = vld [vmem:[#allocation59_spill] sm:$0xff] }
 0x2b3   :  { %12099 = vmatprep.mubr.msk.bf16.mxu1 %vm708_vm2, %v12494_v56  ;;  %v10809_v46 = vpack.c.bf16 %v8058_v44, %v8058_v44  ;;  %v5028_v47 = vpop.f32.mrf.mxu0  ;;  %v7022_v13 = vpop.f32.mrf.mxu1  ;;  %v17702_v56 = vmax.f32 %v17700_v50, %v17701_v2  ;;  %v17705_v25 = vmax.f32 %v17703_v43, %v17704_v24 }
 0x2b4   :  { %v10807_v59 = vpack.c.bf16 %v8056_v8, %v8056_v8  ;;  %v8059_v16 = vmax.f32 %v7863_v9, 0.0  ;;  %v7861_v17 = vadd.f32 %v14942_v29, %v7658_v32  ;;  %v7663_v11 = vmax.f32 %v5669_v28, %v12001_v0  ;;  %v12499_v9 = vld [vmem:[%s16901_s0 + $0x888] sm:$0xff]   ;;  %v12500_v32 = vld [vmem:[%s16901_s0 + $0xb98] sm:$0xff]  }
 0x2b5   :  { %9039 = vst.msk [vmem:[%s16903_s3 + $0xb8] sm:$0xf] %vm8992_vm3, %v10809_v46  ;;  %v5667_v58 = vmax.f32 %v17693_v18, %v5028_v47  ;;  %v11804_v30 = vpop.f32.mrf.mxu0  ;;  %v12002_v33 = vpop.f32.mrf.mxu1  ;;  %v12501_v46 = vld [vmem:[%s16901_s0 + $0x890] sm:$0xff]   ;;  %v12502_v47 = vld [vmem:[%s16901_s0 + $0xba0] sm:$0xff]  }
 0x2b6   :  { %9037 = vst.msk [vmem:[%s16903_s3 + $0xb0] sm:$0xf] %vm8992_vm3, %v10807_v59  ;;  %v10810_v62 = vpack.c.bf16 %v8059_v16, %v8059_v16  ;;  %v8057_v63 = vmax.f32 %v7861_v17, 0.0  ;;  %v7866_v6 = vadd.f32 %v14942_v29, %v7663_v11  ;;  %v5670_v22 = vmax.f32 %v17696_v7, %v11804_v30  ;;  %v17707_v59 = vld [vmem:[#allocation63_spill] sm:$0xff]  ;;  %v17709_v30 = vld [vmem:[#allocation64_spill] sm:$0xff] }
 0x2b7   :  { %v7661_v53 = vmax.f32 %v5667_v58, %v7022_v13  ;;  %v5031_v61 = vpop.f32.mrf.mxu0  ;;  %v7025_v51 = vpop.f32.mrf.mxu1  ;;  %v17706_v13 = vld [vmem:[#allocation62_spill] sm:$0xff] }
 0x2b8   :  { %9040 = vst.msk [vmem:[%s16903_s3 + $0xbc] sm:$0xf] %vm8992_vm3, %v10810_v62  ;;  %v10808_v37 = vpack.c.bf16 %v8057_v63, %v8057_v63  ;;  %v8062_v42 = vmax.f32 %v7866_v6, 0.0  ;;  %v7664_v5 = vmax.f32 %v5670_v22, %v12002_v33  ;;  %v5668_v4 = vmax.f32 %v17699_v3, %v5031_v61  ;;  %v17710_v33 = vld [vmem:[#allocation65_spill] sm:$0xff]  ;;  %v17712_v22 = vld [vmem:[#allocation66_spill] sm:$0xff] }
 0x2b9   :  { %v7864_v19 = vadd.f32 %v14942_v29, %v7661_v53  ;;  %v11807_v40 = vpop.f32.mrf.mxu0  ;;  %11902 = vmatmul.mubr.msk.bf16.gmra.mxu0 %vm708_vm2, %v12495_v38  ;;  %v12005_v41 = vpop.f32.mrf.mxu1  ;;  %12100 = vmatmul.mubr.msk.bf16.gmra.mxu1 %vm708_vm2, %v12496_v31  ;;  %v17708_v16 = vmax.f32 %v17706_v13, %v17707_v59  ;;  %v17711_v38 = vmax.f32 %v17709_v30, %v17710_v33  ;;  %v17716_v3 = vld [vmem:[#allocation69_spill] sm:$0xff]  ;;  %v17724_v13 = vld [vmem:[#allocation74_spill] sm:$0xff]  ;;  %v17725_v59 = vld [vmem:[#allocation75_spill] sm:$0xff] }
 0x2ba   :  { %9038 = vst.msk [vmem:[%s16903_s3 + $0xb4] sm:$0xf] %vm8992_vm3, %v10808_v37  ;;  %v10813_v54 = vpack.c.bf16 %v8062_v42, %v8062_v42  ;;  %v7867_v23 = vadd.f32 %v14942_v29, %v7664_v5  ;;  %v7662_v20 = vmax.f32 %v5668_v4, %v7025_v51  ;;  %v5673_v57 = vmax.f32 %v17702_v56, %v11807_v40  ;;  %v15558_v29 = vld [vmem:[%s16902_s2] ss:$0 sm:$0xff]  ;;  %v17727_v33 = vld [vmem:[#allocation76_spill] sm:$0xff] }
 0x2bb   :  { %11905 = vmatprep.mubr.msk.bf16.mxu0 %vm708_vm2, %v12497_v1  ;;  %v8060_v48 = vmax.f32 %v7864_v19, 0.0  ;;  %v5044_v49 = vpop.f32.mrf.mxu0  ;;  %v7038_v10 = vpop.f32.mrf.mxu1  ;;  %12103 = vmatprep.mubr.msk.bf16.mxu1 %vm708_vm2, %v12498_v52  ;;  %v17713_v1 = vld [vmem:[#allocation67_spill] sm:$0xff]  ;;  %v17717_v4 = vmax.f32 %v17715_v36, %v17716_v3 }
 0x2bc   :  { %9043 = vst.msk [vmem:[%s16903_s3 + $0xc8] sm:$0xf] %vm8992_vm3, %v10813_v54  ;;  %v8063_v45 = vmax.f32 %v7867_v23, 0.0  ;;  %v7865_v21 = vadd.f32 %v15558_v29, %v7662_v20  ;;  %v7667_v26 = vmax.f32 %v5673_v57, %v12005_v41  ;;  %v5671_v44 = vmax.f32 %v17705_v25, %v5044_v49  ;;  %v12503_v23 = vld [vmem:[%s16901_s0 + $0x898] sm:$0xff]   ;;  %v12504_v20 = vld [vmem:[%s16901_s0 + $0xba8] sm:$0xff]   ;;  %v17718_v57 = vld [vmem:[#allocation70_spill] sm:$0xff] }
 0x2bd   :  { %v10811_v55 = vpack.c.bf16 %v8060_v48, %v8060_v48  ;;  %v11808_v0 = vpop.f32.mrf.mxu0  ;;  %v12006_v8 = vpop.f32.mrf.mxu1  ;;  %v17714_v53 = vmax.f32 %v17712_v22, %v17713_v1  ;;  %v17719_v48 = vld [vmem:[#allocation71_spill] sm:$0xff] }
 0x2be   :  { %v10814_v39 = vpack.c.bf16 %v8063_v45, %v8063_v45  ;;  %v8061_v34 = vmax.f32 %v7865_v21, 0.0  ;;  %v7870_v27 = vadd.f32 %v15558_v29, %v7667_v26  ;;  %v7665_v28 = vmax.f32 %v5671_v44, %v7038_v10  ;;  %v12505_v45 = vld [vmem:[%s16901_s0 + $0x8a0] sm:$0xff]   ;;  %v12506_v21 = vld [vmem:[%s16901_s0 + $0xbb0] sm:$0xff]  }
 0x2bf   :  { %9041 = vst.msk [vmem:[%s16903_s3 + $0xc0] sm:$0xf] %vm8992_vm3, %v10811_v55  ;;  %v5674_v17 = vmax.f32 %v17708_v16, %v11808_v0  ;;  %v5047_v11 = vpop.f32.mrf.mxu0  ;;  %v7041_v12 = vpop.f32.mrf.mxu1  ;;  %v17720_v49 = vmax.f32 %v17718_v57, %v17719_v48  ;;  %v17726_v16 = vmax.f32 %v17724_v13, %v17725_v59 }
 0x2c0   :  { %9044 = vst.msk [vmem:[%s16903_s3 + $0xcc] sm:$0xf] %vm8992_vm3, %v10814_v39  ;;  %v10812_v60 = vpack.c.bf16 %v8061_v34, %v8061_v34  ;;  %v8066_v18 = vmax.f32 %v7870_v27, 0.0  ;;  %v7868_v58 = vadd.f32 %v15558_v29, %v7665_v28  ;;  %v5672_v31 = vmax.f32 %v17711_v38, %v5047_v11  ;;  %v17728_v38 = vld [vmem:[#allocation77_spill] sm:$0xff] }
 0x2c1   :  { %v7668_v62 = vmax.f32 %v5674_v17, %v12006_v8  ;;  %v11811_v63 = vpop.f32.mrf.mxu0  ;;  %11906 = vmatmul.mubr.msk.bf16.gmra.mxu0 %vm708_vm2, %v12499_v9  ;;  %v12009_v6 = vpop.f32.mrf.mxu1  ;;  %12104 = vmatmul.mubr.msk.bf16.gmra.mxu1 %vm708_vm2, %v12500_v32  ;;  %v17721_v8 = vld [vmem:[#allocation72_spill] sm:$0xff]  ;;  %v17722_v9 = vld [vmem:[#allocation73_spill] sm:$0xff] }
 0x2c2   :  { %9042 = vst.msk [vmem:[%s16903_s3 + $0xc4] sm:$0xf] %vm8992_vm3, %v10812_v60  ;;  %v10817_v14 = vpack.c.bf16 %v8066_v18, %v8066_v18  ;;  %v8064_v15 = vmax.f32 %v7868_v58, 0.0  ;;  %v7666_v7 = vmax.f32 %v5672_v31, %v7041_v12  ;;  %v5677_v61 = vmax.f32 %v17714_v53, %v11811_v63  ;;  %11909 = vmatprep.mubr.msk.bf16.mxu0 %vm708_vm2, %v12501_v46 }
 0x2c3   :  { %12107 = vmatprep.mubr.msk.bf16.mxu1 %vm708_vm2, %v12502_v47  ;;  %v7871_v51 = vadd.f32 %v15558_v29, %v7668_v62  ;;  %v5060_v52 = vpop.f32.mrf.mxu0  ;;  %v7054_v37 = vpop.f32.mrf.mxu1  ;;  %v17723_v32 = vmax.f32 %v17721_v8, %v17722_v9  ;;  %v17729_v31 = vmax.f32 %v17727_v33, %v17728_v38  ;;  %v17739_v8 = vld [vmem:[#allocation84_spill] sm:$0xff]  ;;  %v17740_v9 = vld [vmem:[#allocation85_spill] sm:$0xff] }
 0x2c4   :  { %9047 = vst.msk [vmem:[%s16903_s3 + $0xd8] sm:$0xf] %vm8992_vm3, %v10817_v14  ;;  %v10815_v42 = vpack.c.bf16 %v8064_v15, %v8064_v15  ;;  %v7869_v5 = vadd.f32 %v15558_v29, %v7666_v7  ;;  %v7671_v35 = vmax.f32 %v5677_v61, %v12009_v6  ;;  %v5675_v19 = vmax.f32 %v17717_v4, %v5060_v52  ;;  %v12507_v15 = vld [vmem:[%s16901_s0 + $0x8a8] sm:$0xff]   ;;  %v12508_v7 = vld [vmem:[%s16901_s0 + $0xbb8] sm:$0xff]   ;;  %v17730_v61 = vld [vmem:[#allocation78_spill] sm:$0xff] }
 0x2c5   :  { %v8067_v40 = vmax.f32 %v7871_v51, 0.0  ;;  %v11812_v41 = vpop.f32.mrf.mxu0  ;;  %v12010_v54 = vpop.f32.mrf.mxu1  ;;  %v17731_v51 = vld [vmem:[#allocation79_spill] sm:$0xff] }
 0x2c6   :  { %9045 = vst.msk [vmem:[%s16903_s3 + $0xd0] sm:$0xf] %vm8992_vm3, %v10815_v42  ;;  %v8065_v50 = vmax.f32 %v7869_v5, 0.0  ;;  %v7874_v2 = vadd.f32 %v15558_v29, %v7671_v35  ;;  %v7669_v56 = vmax.f32 %v5675_v19, %v7054_v37  ;;  %v5678_v10 = vmax.f32 %v17720_v49, %v11812_v41  ;;  %v12509_v42 = vld [vmem:[%s16901_s0 + $0x8b0] sm:$0xff]   ;;  %v12510_v5 = vld [vmem:[%s16901_s0 + $0xbc0] sm:$0xff]  }
 0x2c7   :  { %v10818_v26 = vpack.c.bf16 %v8067_v40, %v8067_v40  ;;  %v5063_v43 = vpop.f32.mrf.mxu0  ;;  %v7057_v24 = vpop.f32.mrf.mxu1  ;;  %v17732_v52 = vmax.f32 %v17730_v61, %v17731_v51  ;;  %v17733_v41 = vld [vmem:[#allocation80_spill] sm:$0xff] }
 0x2c8   :  { %v10816_v25 = vpack.c.bf16 %v8065_v50, %v8065_v50  ;;  %v8070_v44 = vmax.f32 %v7874_v2, 0.0  ;;  %v7872_v55 = vadd.f32 %v15558_v29, %v7669_v56  ;;  %v7672_v0 = vmax.f32 %v5678_v10, %v12010_v54  ;;  %v17734_v54 = vld [vmem:[#allocation81_spill] sm:$0xff] }
 0x2c9   :  { %9048 = vst.msk [vmem:[%s16903_s3 + $0xdc] sm:$0xf] %vm8992_vm3, %v10818_v26  ;;  %v5676_v39 = vmax.f32 %v17723_v32, %v5063_v43  ;;  %v11815_v34 = vpop.f32.mrf.mxu0  ;;  %11910 = vmatmul.mubr.msk.bf16.gmra.mxu0 %vm708_vm2, %v12503_v23  ;;  %v12013_v27 = vpop.f32.mrf.mxu1  ;;  %12108 = vmatmul.mubr.msk.bf16.gmra.mxu1 %vm708_vm2, %v12504_v20  ;;  %v17735_v23 = vmax.f32 %v17733_v41, %v17734_v54 }
 0x2ca   :  { %9046 = vst.msk [vmem:[%s16903_s3 + $0xd4] sm:$0xf] %vm8992_vm3, %v10816_v25  ;;  %v10821_v28 = vpack.c.bf16 %v8070_v44, %v8070_v44  ;;  %v8068_v46 = vmax.f32 %v7872_v55, 0.0  ;;  %v7875_v47 = vadd.f32 %v15558_v29, %v7672_v0  ;;  %v5681_v17 = vmax.f32 %v17726_v16, %v11815_v34  ;;  %11913 = vmatprep.mubr.msk.bf16.mxu0 %vm708_vm2, %v12505_v45  ;;  %v17736_v45 = vld [vmem:[#allocation82_spill] sm:$0xff] }
 0x2cb   :  { %12111 = vmatprep.mubr.msk.bf16.mxu1 %vm708_vm2, %v12506_v21  ;;  %v7670_v11 = vmax.f32 %v5676_v39, %v7057_v24  ;;  %v5076_v12 = vpop.f32.mrf.mxu0  ;;  %v7070_v60 = vpop.f32.mrf.mxu1  ;;  %v17737_v21 = vld [vmem:[#allocation83_spill] sm:$0xff]  ;;  %v17741_v32 = vmax.f32 %v17739_v8, %v17740_v9  ;;  %v12518_v9 = vld [vmem:[%s16901_s0 + $0xbe0] sm:$0xff]  }
 0x2cc   :  { %9051 = vst.msk [vmem:[%s16903_s3 + $0xe8] sm:$0xf] %vm8992_vm3, %v10821_v28  ;;  %v10819_v18 = vpack.c.bf16 %v8068_v46, %v8068_v46  ;;  %v8071_v58 = vmax.f32 %v7875_v47, 0.0  ;;  %v7675_v30 = vmax.f32 %v5681_v17, %v12013_v27  ;;  %v5679_v62 = vmax.f32 %v17729_v31, %v5076_v12  ;;  %v12511_v46 = vld [vmem:[%s16901_s0 + $0x8b8] sm:$0xff]   ;;  %v12512_v47 = vld [vmem:[%s16901_s0 + $0xbc8] sm:$0xff]   ;;  %v17742_v17 = vld [vmem:[#allocation86_spill] sm:$0xff] }
 0x2cd   :  { %v7873_v63 = vadd.f32 %v15558_v29, %v7670_v11  ;;  %v11816_v6 = vpop.f32.mrf.mxu0  ;;  %v12014_v14 = vpop.f32.mrf.mxu1  ;;  %v17738_v26 = vmax.f32 %v17736_v45, %v17737_v21  ;;  %v17743_v11 = vld [vmem:[#allocation87_spill] sm:$0xff] }
 0x2ce   :  { %9049 = vst.msk [vmem:[%s16903_s3 + $0xe0] sm:$0xf] %vm8992_vm3, %v10819_v18  ;;  %v10822_v22 = vpack.c.bf16 %v8071_v58, %v8071_v58  ;;  %v7878_v1 = vadd.f32 %v15558_v29, %v7675_v30  ;;  %v7673_v53 = vmax.f32 %v5679_v62, %v7070_v60  ;;  %v5682_v37 = vmax.f32 %v17732_v52, %v11816_v6  ;;  %v12513_v18 = vld [vmem:[%s16901_s0 + $0x8c0] sm:$0xff]   ;;  %v12514_v58 = vld [vmem:[%s16901_s0 + $0xbd0] sm:$0xff]  }
 0x2cf   :  { %v8069_v35 = vmax.f32 %v7873_v63, 0.0  ;;  %v5079_v36 = vpop.f32.mrf.mxu0  ;;  %v7073_v3 = vpop.f32.mrf.mxu1  ;;  %v17744_v12 = vmax.f32 %v17742_v17, %v17743_v11  ;;  %v17745_v6 = vld [vmem:[#allocation88_spill] sm:$0xff] }
 0x2d0   :  { %9052 = vst.msk [vmem:[%s16903_s3 + $0xec] sm:$0xf] %vm8992_vm3, %v10822_v22  ;;  %v8074_v4 = vmax.f32 %v7878_v1, 0.0  ;;  %v7876_v19 = vadd.f32 %v15558_v29, %v7673_v53  ;;  %v7676_v40 = vmax.f32 %v5682_v37, %v12014_v14  ;;  %v5680_v20 = vmax.f32 %v17735_v23, %v5079_v36  ;;  %v17746_v14 = vld [vmem:[#allocation89_spill] sm:$0xff]  ;;  %v17748_v37 = vld [vmem:[#allocation90_spill] sm:$0xff]  ;;  %v17751_v23 = vld [vmem:[#allocation92_spill] sm:$0xff] }
 0x2d1   :  { %v10820_v50 = vpack.c.bf16 %v8069_v35, %v8069_v35  ;;  %v11819_v2 = vpop.f32.mrf.mxu0  ;;  %11914 = vmatmul.mubr.msk.bf16.gmra.mxu0 %vm708_vm2, %v12507_v15  ;;  %v12017_v56 = vpop.f32.mrf.mxu1  ;;  %12112 = vmatmul.mubr.msk.bf16.gmra.mxu1 %vm708_vm2, %v12508_v7  ;;  %v17747_v15 = vmax.f32 %v17745_v6, %v17746_v14  ;;  %v17763_v14 = vld [vmem:[#allocation100_spill] sm:$0xff] }
 0x2d2   :  { %v10825_v57 = vpack.c.bf16 %v8074_v4, %v8074_v4  ;;  %v8072_v48 = vmax.f32 %v7876_v19, 0.0  ;;  %v7879_v49 = vadd.f32 %v15558_v29, %v7676_v40  ;;  %v7674_v10 = vmax.f32 %v5680_v20, %v7073_v3  ;;  %11917 = vmatprep.mubr.msk.bf16.mxu0 %vm708_vm2, %v12509_v42  ;;  %12115 = vmatprep.mubr.msk.bf16.mxu1 %vm708_vm2, %v12510_v5  ;;  %v17749_v42 = vld [vmem:[#allocation91_spill] sm:$0xff]  ;;  %v17752_v20 = vld [vmem:[#allocation93_spill] sm:$0xff] }
 0x2d3   :  { %9050 = vst.msk [vmem:[%s16903_s3 + $0xe4] sm:$0xf] %vm8992_vm3, %v10820_v50  ;;  %v5685_v43 = vmax.f32 %v17738_v26, %v11819_v2  ;;  %v5092_v24 = vpop.f32.mrf.mxu0  ;;  %v7086_v25 = vpop.f32.mrf.mxu1  ;;  %v17750_v5 = vmax.f32 %v17748_v37, %v17749_v42  ;;  %v17753_v50 = vmax.f32 %v17751_v23, %v17752_v20  ;;  %v17754_v26 = vld [vmem:[#allocation94_spill] sm:$0xff] }
 0x2d4   :  { %9055 = vst.msk [vmem:[%s16903_s3 + $0xf8] sm:$0xf] %vm8992_vm3, %v10825_v57  ;;  %v10823_v44 = vpack.c.bf16 %v8072_v48, %v8072_v48  ;;  %v8075_v55 = vmax.f32 %v7879_v49, 0.0  ;;  %v7877_v0 = vadd.f32 %v15558_v29, %v7674_v10  ;;  %v5683_v39 = vmax.f32 %v17741_v32, %v5092_v24  ;;  %v12515_v48 = vld [vmem:[%s16901_s0 + $0x8c8] sm:$0xff]   ;;  %v12516_v49 = vld [vmem:[%s16901_s0 + $0xbd8] sm:$0xff]  }
 0x2d5   :  { %v7679_v34 = vmax.f32 %v5685_v43, %v12017_v56  ;;  %v11820_v27 = vpop.f32.mrf.mxu0  ;;  %v12018_v28 = vpop.f32.mrf.mxu1  ;;  %v17755_v43 = vld [vmem:[#allocation95_spill] sm:$0xff] }
 0x2d6   :  { %9053 = vst.msk [vmem:[%s16903_s3 + $0xf0] sm:$0xf] %vm8992_vm3, %v10823_v44  ;;  %v10826_v13 = vpack.c.bf16 %v8075_v55, %v8075_v55  ;;  %v8073_v59 = vmax.f32 %v7877_v0, 0.0  ;;  %v7677_v16 = vmax.f32 %v5683_v39, %v7086_v25  ;;  %v5686_v60 = vmax.f32 %v17744_v12, %v11820_v27  ;;  %v12517_v44 = vld [vmem:[%s16901_s0 + $0x8d0] sm:$0xff]  }
 0x2d7   :  { %v7882_v30 = vadd.f32 %v15558_v29, %v7679_v34  ;;  %v5095_v33 = vpop.f32.mrf.mxu0  ;;  %v7089_v38 = vpop.f32.mrf.mxu1  ;;  %v17756_v24 = vmax.f32 %v17754_v26, %v17755_v43  ;;  %v17757_v27 = vld [vmem:[#allocation96_spill] sm:$0xff] }
 0x2d8   :  { %9056 = vst.msk [vmem:[%s16903_s3 + $0xfc] sm:$0xf] %vm8992_vm3, %v10826_v13  ;;  %v10824_v31 = vpack.c.bf16 %v8073_v59, %v8073_v59  ;;  %v7880_v62 = vadd.f32 %v15558_v29, %v7677_v16  ;;  %v7680_v63 = vmax.f32 %v5686_v60, %v12018_v28  ;;  %v5684_v7 = vmax.f32 %v17747_v15, %v5095_v33  ;;  %v17758_v28 = vld [vmem:[#allocation97_spill] sm:$0xff]  ;;  %v17760_v60 = vld [vmem:[#allocation98_spill] sm:$0xff] }
 0x2d9   :  { %v8078_v22 = vmax.f32 %v7882_v30, 0.0  ;;  %v11823_v1 = vpop.f32.mrf.mxu0  ;;  %11918 = vmatmul.mubr.msk.bf16.gmra.mxu0 %vm708_vm2, %v12511_v46  ;;  %v12021_v53 = vpop.f32.mrf.mxu1  ;;  %12116 = vmatmul.mubr.msk.bf16.gmra.mxu1 %vm708_vm2, %v12512_v47  ;;  %v17759_v46 = vmax.f32 %v17757_v27, %v17758_v28  ;;  %v17764_v15 = vld [vmem:[#allocation101_spill] sm:$0xff]  ;;  %v17775_v28 = vld [vmem:[#allocation108_spill] sm:$0xff] }
 0x2da   :  { %9054 = vst.msk [vmem:[%s16903_s3 + $0xf4] sm:$0xf] %vm8992_vm3, %v10824_v31  ;;  %v8076_v61 = vmax.f32 %v7880_v62, 0.0  ;;  %v7883_v51 = vadd.f32 %v15558_v29, %v7680_v63  ;;  %v7678_v52 = vmax.f32 %v5684_v7, %v7089_v38  ;;  %v5689_v35 = vmax.f32 %v17750_v5, %v11823_v1  ;;  %11921 = vmatprep.mubr.msk.bf16.mxu0 %vm708_vm2, %v12513_v18  ;;  %v17761_v18 = vld [vmem:[#allocation99_spill] sm:$0xff] }
 0x2db   :  { %12119 = vmatprep.mubr.msk.bf16.mxu1 %vm708_vm2, %v12514_v58  ;;  %v10829_v36 = vpack.c.bf16 %v8078_v22, %v8078_v22  ;;  %v5108_v3 = vpop.f32.mrf.mxu0  ;;  %v7102_v4 = vpop.f32.mrf.mxu1  ;;  %v17762_v58 = vmax.f32 %v17760_v60, %v17761_v18  ;;  %v17765_v7 = vmax.f32 %v17763_v14, %v17764_v15 }
 0x2dc   :  { %v10827_v19 = vpack.c.bf16 %v8076_v61, %v8076_v61  ;;  %v8079_v40 = vmax.f32 %v7883_v51, 0.0  ;;  %v7881_v41 = vadd.f32 %v15558_v29, %v7678_v52  ;;  %v7683_v54 = vmax.f32 %v5689_v35, %v12021_v53  ;;  %v12519_v51 = vld [vmem:[%s16901_s0 + $0x8d8] sm:$0xff]   ;;  %v12520_v52 = vld [vmem:[%s16901_s0 + $0xbe8] sm:$0xff]  }
 0x2dd   :  { %9059 = vst.msk [vmem:[%s16903_s3 + $0x108] sm:$0xf] %vm8992_vm3, %v10829_v36  ;;  %v5687_v2 = vmax.f32 %v17753_v50, %v5108_v3  ;;  %v11824_v56 = vpop.f32.mrf.mxu0  ;;  %v12022_v57 = vpop.f32.mrf.mxu1  ;;  %v12521_v36 = vld [vmem:[%s16901_s0 + $0x8e0] sm:$0xff]   ;;  %v12522_v3 = vld [vmem:[%s16901_s0 + $0xbf0] sm:$0xff]  }
 0x2de   :  { %9057 = vst.msk [vmem:[%s16903_s3 + $0x100] sm:$0xf] %vm8992_vm3, %v10827_v19  ;;  %v10830_v10 = vpack.c.bf16 %v8079_v40, %v8079_v40  ;;  %v8077_v45 = vmax.f32 %v7881_v41, 0.0  ;;  %v7886_v21 = vadd.f32 %v15558_v29, %v7683_v54  ;;  %v5690_v25 = vmax.f32 %v17756_v24, %v11824_v56  ;;  %v17767_v19 = vld [vmem:[#allocation103_spill] sm:$0xff]  ;;  %v17769_v56 = vld [vmem:[#allocation104_spill] sm:$0xff] }
 0x2df   :  { %v7681_v55 = vmax.f32 %v5687_v2, %v7102_v4  ;;  %v5111_v0 = vpop.f32.mrf.mxu0  ;;  %v7105_v8 = vpop.f32.mrf.mxu1  ;;  %v17766_v4 = vld [vmem:[#allocation102_spill] sm:$0xff] }
 0x2e0   :  { %9060 = vst.msk [vmem:[%s16903_s3 + $0x10c] sm:$0xf] %vm8992_vm3, %v10830_v10  ;;  %v10828_v32 = vpack.c.bf16 %v8077_v45, %v8077_v45  ;;  %v8082_v39 = vmax.f32 %v7886_v21, 0.0  ;;  %v7684_v34 = vmax.f32 %v5690_v25, %v12022_v57  ;;  %v5688_v47 = vmax.f32 %v17759_v46, %v5111_v0  ;;  %v17770_v57 = vld [vmem:[#allocation105_spill] sm:$0xff]  ;;  %v17772_v25 = vld [vmem:[#allocation106_spill] sm:$0xff] }
 0x2e1   :  { %v7884_v13 = vadd.f32 %v15558_v29, %v7681_v55  ;;  %v11827_v59 = vpop.f32.mrf.mxu0  ;;  %11922 = vmatmul.mubr.msk.bf16.gmra.mxu0 %vm708_vm2, %v12515_v48  ;;  %v12025_v16 = vpop.f32.mrf.mxu1  ;;  %12120 = vmatmul.mubr.msk.bf16.gmra.mxu1 %vm708_vm2, %v12516_v49  ;;  %v17768_v40 = vmax.f32 %v17766_v4, %v17767_v19  ;;  %v17771_v48 = vmax.f32 %v17769_v56, %v17770_v57  ;;  %v17776_v46 = vld [vmem:[#allocation109_spill] sm:$0xff]  ;;  %v17784_v4 = vld [vmem:[#allocation114_spill] sm:$0xff]  ;;  %v17785_v19 = vld [vmem:[#allocation115_spill] sm:$0xff] }
 0x2e2   :  { %9058 = vst.msk [vmem:[%s16903_s3 + $0x104] sm:$0xf] %vm8992_vm3, %v10828_v32  ;;  %v10833_v17 = vpack.c.bf16 %v8082_v39, %v8082_v39  ;;  %v7887_v11 = vadd.f32 %v15558_v29, %v7684_v34  ;;  %v7682_v12 = vmax.f32 %v5688_v47, %v7105_v8  ;;  %v5693_v30 = vmax.f32 %v17762_v58, %v11827_v59  ;;  %v17787_v57 = vld [vmem:[#allocation116_spill] sm:$0xff] }
 0x2e3   :  { %11925 = vmatprep.mubr.msk.bf16.mxu0 %vm708_vm2, %v12517_v44  ;;  %v8080_v33 = vmax.f32 %v7884_v13, 0.0  ;;  %v5124_v38 = vpop.f32.mrf.mxu0  ;;  %v7118_v31 = vpop.f32.mrf.mxu1  ;;  %12123 = vmatprep.mubr.msk.bf16.mxu1 %vm708_vm2, %v12518_v9  ;;  %v17773_v44 = vld [vmem:[#allocation107_spill] sm:$0xff]  ;;  %v17777_v47 = vmax.f32 %v17775_v28, %v17776_v46 }
 0x2e4   :  { %9063 = vst.msk [vmem:[%s16903_s3 + $0x118] sm:$0xf] %vm8992_vm3, %v10833_v17  ;;  %v8083_v62 = vmax.f32 %v7887_v11, 0.0  ;;  %v7885_v63 = vadd.f32 %v15558_v29, %v7682_v12  ;;  %v7687_v6 = vmax.f32 %v5693_v30, %v12025_v16  ;;  %v5691_v22 = vmax.f32 %v17765_v7, %v5124_v38  ;;  %v12523_v11 = vld [vmem:[%s16901_s0 + $0x8e8] sm:$0xff]   ;;  %v12524_v12 = vld [vmem:[%s16901_s0 + $0xbf8] sm:$0xff]   ;;  %v17778_v30 = vld [vmem:[#allocation110_spill] sm:$0xff] }
 0x2e5   :  { %v10831_v1 = vpack.c.bf16 %v8080_v33, %v8080_v33  ;;  %v11828_v53 = vpop.f32.mrf.mxu0  ;;  %v12026_v61 = vpop.f32.mrf.mxu1  ;;  %v17774_v55 = vmax.f32 %v17772_v25, %v17773_v44  ;;  %v17779_v33 = vld [vmem:[#allocation111_spill] sm:$0xff] }
 0x2e6   :  { %v10834_v37 = vpack.c.bf16 %v8083_v62, %v8083_v62  ;;  %v8081_v42 = vmax.f32 %v7885_v63, 0.0  ;;  %v7890_v5 = vadd.f32 %v15558_v29, %v7687_v6  ;;  %v7685_v35 = vmax.f32 %v5691_v22, %v7118_v31  ;;  %v12525_v62 = vld [vmem:[%s16901_s0 + $0x8f0] sm:$0xff]   ;;  %v12526_v63 = vld [vmem:[%s16901_s0 + $0xc00] sm:$0xff]  }
 0x2e7   :  { %9061 = vst.msk [vmem:[%s16903_s3 + $0x110] sm:$0xf] %vm8992_vm3, %v10831_v1  ;;  %v5694_v41 = vmax.f32 %v17768_v40, %v11828_v53  ;;  %v5127_v54 = vpop.f32.mrf.mxu0  ;;  %v7121_v23 = vpop.f32.mrf.mxu1  ;;  %v17780_v38 = vmax.f32 %v17778_v30, %v17779_v33  ;;  %v17786_v40 = vmax.f32 %v17784_v4, %v17785_v19 }
 0x2e8   :  { %9064 = vst.msk [vmem:[%s16903_s3 + $0x11c] sm:$0xf] %vm8992_vm3, %v10834_v37  ;;  %v10832_v20 = vpack.c.bf16 %v8081_v42, %v8081_v42  ;;  %v8086_v50 = vmax.f32 %v7890_v5, 0.0  ;;  %v7888_v2 = vadd.f32 %v15558_v29, %v7685_v35  ;;  %v5692_v49 = vmax.f32 %v17771_v48, %v5127_v54  ;;  %v17788_v48 = vld [vmem:[#allocation117_spill] sm:$0xff] }
 0x2e9   :  { %v7688_v10 = vmax.f32 %v5694_v41, %v12026_v61  ;;  %v11831_v45 = vpop.f32.mrf.mxu0  ;;  %11926 = vmatmul.mubr.msk.bf16.gmra.mxu0 %vm708_vm2, %v12519_v51  ;;  %v12029_v21 = vpop.f32.mrf.mxu1  ;;  %12124 = vmatmul.mubr.msk.bf16.gmra.mxu1 %vm708_vm2, %v12520_v52  ;;  %v17781_v61 = vld [vmem:[#allocation112_spill] sm:$0xff]  ;;  %v17782_v51 = vld [vmem:[#allocation113_spill] sm:$0xff] }
 0x2ea   :  { %9062 = vst.msk [vmem:[%s16903_s3 + $0x114] sm:$0xf] %vm8992_vm3, %v10832_v20  ;;  %v10837_v26 = vpack.c.bf16 %v8086_v50, %v8086_v50  ;;  %v8084_v43 = vmax.f32 %v7888_v2, 0.0  ;;  %v7686_v24 = vmax.f32 %v5692_v49, %v7121_v23  ;;  %v5697_v0 = vmax.f32 %v17774_v55, %v11831_v45  ;;  %11929 = vmatprep.mubr.msk.bf16.mxu0 %vm708_vm2, %v12521_v36 }
 0x2eb   :  { %12127 = vmatprep.mubr.msk.bf16.mxu1 %vm708_vm2, %v12522_v3  ;;  %v7891_v8 = vadd.f32 %v15558_v29, %v7688_v10  ;;  %v5140_v9 = vpop.f32.mrf.mxu0  ;;  %v7134_v32 = vpop.f32.mrf.mxu1  ;;  %v17783_v52 = vmax.f32 %v17781_v61, %v17782_v51  ;;  %v17789_v49 = vmax.f32 %v17787_v57, %v17788_v48  ;;  %v17799_v61 = vld [vmem:[#allocation124_spill] sm:$0xff]  ;;  %v17800_v51 = vld [vmem:[#allocation125_spill] sm:$0xff] }
 0x2ec   :  { %9067 = vst.msk [vmem:[%s16903_s3 + $0x128] sm:$0xf] %vm8992_vm3, %v10837_v26  ;;  %v10835_v39 = vpack.c.bf16 %v8084_v43, %v8084_v43  ;;  %v7889_v34 = vadd.f32 %v15558_v29, %v7686_v24  ;;  %v7691_v27 = vmax.f32 %v5697_v0, %v12029_v21  ;;  %v5695_v13 = vmax.f32 %v17777_v47, %v5140_v9  ;;  %v12527_v43 = vld [vmem:[%s16901_s0 + $0x8f8] sm:$0xff]   ;;  %v12528_v24 = vld [vmem:[%s16901_s0 + $0xc08] sm:$0xff]   ;;  %v17790_v0 = vld [vmem:[#allocation118_spill] sm:$0xff] }
 0x2ed   :  { %v8087_v59 = vmax.f32 %v7891_v8, 0.0  ;;  %v11832_v16 = vpop.f32.mrf.mxu0  ;;  %v12030_v17 = vpop.f32.mrf.mxu1  ;;  %v17791_v8 = vld [vmem:[#allocation119_spill] sm:$0xff] }
 0x2ee   :  { %9065 = vst.msk [vmem:[%s16903_s3 + $0x120] sm:$0xf] %vm8992_vm3, %v10835_v39  ;;  %v8085_v60 = vmax.f32 %v7889_v34, 0.0  ;;  %v7894_v18 = vadd.f32 %v15558_v29, %v7691_v27  ;;  %v7689_v58 = vmax.f32 %v5695_v13, %v7134_v32  ;;  %v5698_v31 = vmax.f32 %v17780_v38, %v11832_v16  ;;  %v12529_v39 = vld [vmem:[%s16901_s0 + $0x900] sm:$0xff]   ;;  %v12530_v34 = vld [vmem:[%s16901_s0 + $0xc10] sm:$0xff]  }
 0x2ef   :  { %v10838_v6 = vpack.c.bf16 %v8087_v59, %v8087_v59  ;;  %v5143_v14 = vpop.f32.mrf.mxu0  ;;  %v7137_v15 = vpop.f32.mrf.mxu1  ;;  %v17792_v9 = vmax.f32 %v17790_v0, %v17791_v8  ;;  %v17793_v16 = vld [vmem:[#allocation120_spill] sm:$0xff] }
 0x2f0   :  { %v10836_v7 = vpack.c.bf16 %v8085_v60, %v8085_v60  ;;  %v8090_v22 = vmax.f32 %v7894_v18, 0.0  ;;  %v7892_v1 = vadd.f32 %v15558_v29, %v7689_v58  ;;  %v7692_v53 = vmax.f32 %v5698_v31, %v12030_v17  ;;  %v17794_v17 = vld [vmem:[#allocation121_spill] sm:$0xff] }
 0x2f1   :  { %9068 = vst.msk [vmem:[%s16903_s3 + $0x12c] sm:$0xf] %vm8992_vm3, %v10838_v6  ;;  %v5696_v37 = vmax.f32 %v17783_v52, %v5143_v14  ;;  %v11835_v42 = vpop.f32.mrf.mxu0  ;;  %11930 = vmatmul.mubr.msk.bf16.gmra.mxu0 %vm708_vm2, %v12523_v11  ;;  %v12033_v5 = vpop.f32.mrf.mxu1  ;;  %12128 = vmatmul.mubr.msk.bf16.gmra.mxu1 %vm708_vm2, %v12524_v12  ;;  %v17795_v11 = vmax.f32 %v17793_v16, %v17794_v17 }
 0x2f2   :  { %9066 = vst.msk [vmem:[%s16903_s3 + $0x124] sm:$0xf] %vm8992_vm3, %v10836_v7  ;;  %v10841_v35 = vpack.c.bf16 %v8090_v22, %v8090_v22  ;;  %v8088_v36 = vmax.f32 %v7892_v1, 0.0  ;;  %v7895_v3 = vadd.f32 %v15558_v29, %v7692_v53  ;;  %v5701_v41 = vmax.f32 %v17786_v40, %v11835_v42  ;;  %11933 = vmatprep.mubr.msk.bf16.mxu0 %vm708_vm2, %v12525_v62  ;;  %v17796_v62 = vld [vmem:[#allocation122_spill] sm:$0xff] }
 0x2f3   :  { %12131 = vmatprep.mubr.msk.bf16.mxu1 %vm708_vm2, %v12526_v63  ;;  %v7690_v54 = vmax.f32 %v5696_v37, %v7137_v15  ;;  %v5156_v23 = vpop.f32.mrf.mxu0  ;;  %v7150_v20 = vpop.f32.mrf.mxu1  ;;  %v17797_v63 = vld [vmem:[#allocation123_spill] sm:$0xff]  ;;  %v17801_v52 = vmax.f32 %v17799_v61, %v17800_v51  ;;  %v12538_v51 = vld [vmem:[%s16901_s0 + $0xc30] sm:$0xff]  }
 0x2f4   :  { %9071 = vst.msk [vmem:[%s16903_s3 + $0x138] sm:$0xf] %vm8992_vm3, %v10841_v35  ;;  %v10839_v50 = vpack.c.bf16 %v8088_v36, %v8088_v36  ;;  %v8091_v2 = vmax.f32 %v7895_v3, 0.0  ;;  %v7695_v56 = vmax.f32 %v5701_v41, %v12033_v5  ;;  %v5699_v10 = vmax.f32 %v17789_v49, %v5156_v23  ;;  %v12531_v36 = vld [vmem:[%s16901_s0 + $0x908] sm:$0xff]   ;;  %v12532_v3 = vld [vmem:[%s16901_s0 + $0xc18] sm:$0xff]   ;;  %v17802_v41 = vld [vmem:[#allocation126_spill] sm:$0xff] }
 0x2f5   :  { %v7893_v45 = vadd.f32 %v15558_v29, %v7690_v54  ;;  %v11836_v21 = vpop.f32.mrf.mxu0  ;;  %v12034_v26 = vpop.f32.mrf.mxu1  ;;  %v17798_v6 = vmax.f32 %v17796_v62, %v17797_v63  ;;  %v17803_v54 = vld [vmem:[#allocation127_spill] sm:$0xff] }
 0x2f6   :  { %9069 = vst.msk [vmem:[%s16903_s3 + $0x130] sm:$0xf] %vm8992_vm3, %v10839_v50  ;;  %v10842_v25 = vpack.c.bf16 %v8091_v2, %v8091_v2  ;;  %v7898_v44 = vadd.f32 %v15558_v29, %v7695_v56  ;;  %v7693_v55 = vmax.f32 %v5699_v10, %v7150_v20  ;;  %v5702_v32 = vmax.f32 %v17792_v9, %v11836_v21  ;;  %v12533_v50 = vld [vmem:[%s16901_s0 + $0x910] sm:$0xff]   ;;  %v12534_v2 = vld [vmem:[%s16901_s0 + $0xc20] sm:$0xff]  }
 0x2f7   :  { %v8089_v27 = vmax.f32 %v7893_v45, 0.0  ;;  %v5159_v28 = vpop.f32.mrf.mxu0  ;;  %v7153_v46 = vpop.f32.mrf.mxu1  ;;  %v17804_v23 = vmax.f32 %v17802_v41, %v17803_v54  ;;  %v17805_v21 = vld [vmem:[#allocation128_spill] sm:$0xff] }
 0x2f8   :  { %9072 = vst.msk [vmem:[%s16903_s3 + $0x13c] sm:$0xf] %vm8992_vm3, %v10842_v25  ;;  %v8094_v47 = vmax.f32 %v7898_v44, 0.0  ;;  %v7896_v13 = vadd.f32 %v15558_v29, %v7693_v55  ;;  %v7696_v59 = vmax.f32 %v5702_v32, %v12034_v26  ;;  %v5700_v12 = vmax.f32 %v17795_v11, %v5159_v28  ;;  %v17806_v26 = vld [vmem:[#allocation129_spill] sm:$0xff]  ;;  %v17808_v32 = vld [vmem:[#allocation130_spill] sm:$0xff]  ;;  %v17811_v11 = vld [vmem:[#allocation132_spill] sm:$0xff] }
 0x2f9   :  { %v10840_v60 = vpack.c.bf16 %v8089_v27, %v8089_v27  ;;  %v11839_v18 = vpop.f32.mrf.mxu0  ;;  %11934 = vmatmul.mubr.msk.bf16.gmra.mxu0 %vm708_vm2, %v12527_v43  ;;  %v12037_v58 = vpop.f32.mrf.mxu1  ;;  %12132 = vmatmul.mubr.msk.bf16.gmra.mxu1 %vm708_vm2, %v12528_v24  ;;  %v17807_v43 = vmax.f32 %v17805_v21, %v17806_v26  ;;  %v17823_v26 = vld [vmem:[#allocation140_spill] sm:$0xff] }
 0x2fa   :  { %v10845_v30 = vpack.c.bf16 %v8094_v47, %v8094_v47  ;;  %v8092_v33 = vmax.f32 %v7896_v13, 0.0  ;;  %v7899_v38 = vadd.f32 %v15558_v29, %v7696_v59  ;;  %v7694_v31 = vmax.f32 %v5700_v12, %v7153_v46  ;;  %11937 = vmatprep.mubr.msk.bf16.mxu0 %vm708_vm2, %v12529_v39  ;;  %12135 = vmatprep.mubr.msk.bf16.mxu1 %vm708_vm2, %v12530_v34  ;;  %v17809_v39 = vld [vmem:[#allocation131_spill] sm:$0xff]  ;;  %v17812_v12 = vld [vmem:[#allocation133_spill] sm:$0xff] }
 0x2fb   :  { %9070 = vst.msk [vmem:[%s16903_s3 + $0x134] sm:$0xf] %vm8992_vm3, %v10840_v60  ;;  %v5705_v14 = vmax.f32 %v17798_v6, %v11839_v18  ;;  %v5172_v15 = vpop.f32.mrf.mxu0  ;;  %v7166_v7 = vpop.f32.mrf.mxu1  ;;  %v17810_v34 = vmax.f32 %v17808_v32, %v17809_v39  ;;  %v17813_v60 = vmax.f32 %v17811_v11, %v17812_v12  ;;  %v17814_v6 = vld [vmem:[#allocation134_spill] sm:$0xff] }
 0x2fc   :  { %9075 = vst.msk [vmem:[%s16903_s3 + $0x148] sm:$0xf] %vm8992_vm3, %v10845_v30  ;;  %v10843_v22 = vpack.c.bf16 %v8092_v33, %v8092_v33  ;;  %v8095_v1 = vmax.f32 %v7899_v38, 0.0  ;;  %v7897_v53 = vadd.f32 %v15558_v29, %v7694_v31  ;;  %v5703_v37 = vmax.f32 %v17801_v52, %v5172_v15  ;;  %v12535_v33 = vld [vmem:[%s16901_s0 + $0x918] sm:$0xff]   ;;  %v12536_v38 = vld [vmem:[%s16901_s0 + $0xc28] sm:$0xff]  }
 0x2fd   :  { %v7699_v42 = vmax.f32 %v5705_v14, %v12037_v58  ;;  %v11840_v5 = vpop.f32.mrf.mxu0  ;;  %v12038_v35 = vpop.f32.mrf.mxu1  ;;  %v17815_v14 = vld [vmem:[#allocation135_spill] sm:$0xff] }
 0x2fe   :  { %9073 = vst.msk [vmem:[%s16903_s3 + $0x140] sm:$0xf] %vm8992_vm3, %v10843_v22  ;;  %v10846_v4 = vpack.c.bf16 %v8095_v1, %v8095_v1  ;;  %v8093_v19 = vmax.f32 %v7897_v53, 0.0  ;;  %v7697_v40 = vmax.f32 %v5703_v37, %v7166_v7  ;;  %v5706_v20 = vmax.f32 %v17804_v23, %v11840_v5  ;;  %v12537_v22 = vld [vmem:[%s16901_s0 + $0x920] sm:$0xff]   ;;  %v17817_v5 = vld [vmem:[#allocation136_spill] sm:$0xff] }
 0x2ff   :  { %v7902_v56 = vadd.f32 %v15558_v29, %v7699_v42  ;;  %v5175_v57 = vpop.f32.mrf.mxu0  ;;  %v7169_v48 = vpop.f32.mrf.mxu1  ;;  %v17816_v15 = vmax.f32 %v17814_v6, %v17815_v14  ;;  %v17832_v14 = vld [vmem:[#allocation146_spill] sm:$0xff] }
 0x300   :  { %9076 = vst.msk [vmem:[%s16903_s3 + $0x14c] sm:$0xf] %vm8992_vm3, %v10846_v4  ;;  %v10844_v49 = vpack.c.bf16 %v8093_v19, %v8093_v19  ;;  %v7900_v10 = vadd.f32 %v15558_v29, %v7697_v40  ;;  %v7700_v45 = vmax.f32 %v5706_v20, %v12038_v35  ;;  %v5704_v24 = vmax.f32 %v17807_v43, %v5175_v57  ;;  %v17818_v35 = vld [vmem:[#allocation137_spill] sm:$0xff]  ;;  %v17820_v20 = vld [vmem:[#allocation138_spill] sm:$0xff] }
 0x301   :  { %v8098_v25 = vmax.f32 %v7902_v56, 0.0  ;;  %v11843_v44 = vpop.f32.mrf.mxu0  ;;  %11938 = vmatmul.mubr.msk.bf16.gmra.mxu0 %vm708_vm2, %v12531_v36  ;;  %v12041_v55 = vpop.f32.mrf.mxu1  ;;  %12136 = vmatmul.mubr.msk.bf16.gmra.mxu1 %vm708_vm2, %v12532_v3  ;;  %v17819_v36 = vmax.f32 %v17817_v5, %v17818_v35  ;;  %v17824_v43 = vld [vmem:[#allocation141_spill] sm:$0xff] }
 0x302   :  { %9074 = vst.msk [vmem:[%s16903_s3 + $0x144] sm:$0xf] %vm8992_vm3, %v10844_v49  ;;  %v8096_v0 = vmax.f32 %v7900_v10, 0.0  ;;  %v7903_v8 = vadd.f32 %v15558_v29, %v7700_v45  ;;  %v7698_v9 = vmax.f32 %v5704_v24, %v7169_v48  ;;  %v5709_v27 = vmax.f32 %v17810_v34, %v11843_v44  ;;  %11941 = vmatprep.mubr.msk.bf16.mxu0 %vm708_vm2, %v12533_v50  ;;  %v17821_v50 = vld [vmem:[#allocation139_spill] sm:$0xff]  ;;  %v17836_v5 = vld [vmem:[#allocation149_spill] sm:$0xff] }
 0x303   :  { %12139 = vmatprep.mubr.msk.bf16.mxu1 %vm708_vm2, %v12534_v2  ;;  %v10849_v28 = vpack.c.bf16 %v8098_v25, %v8098_v25  ;;  %v5188_v46 = vpop.f32.mrf.mxu0  ;;  %v7182_v47 = vpop.f32.mrf.mxu1  ;;  %v17822_v2 = vmax.f32 %v17820_v20, %v17821_v50  ;;  %v17825_v24 = vmax.f32 %v17823_v26, %v17824_v43  ;;  %v17839_v20 = vld [vmem:[#allocation151_spill] sm:$0xff]  ;;  %v17841_v26 = vld [vmem:[#allocation152_spill] sm:$0xff]  ;;  %v17842_v43 = vld [vmem:[#allocation153_spill] sm:$0xff] }
 0x304   :  { %v10847_v13 = vpack.c.bf16 %v8096_v0, %v8096_v0  ;;  %v8099_v59 = vmax.f32 %v7903_v8, 0.0  ;;  %v7901_v16 = vadd.f32 %v15558_v29, %v7698_v9  ;;  %v7703_v17 = vmax.f32 %v5709_v27, %v12041_v55  ;;  %v12539_v8 = vld [vmem:[%s16901_s0 + $0x928] sm:$0xff]   ;;  %v12540_v9 = vld [vmem:[%s16901_s0 + $0xc38] sm:$0xff]  }
 0x305   :  { %9079 = vst.msk [vmem:[%s16903_s3 + $0x158] sm:$0xf] %vm8992_vm3, %v10849_v28  ;;  %v5707_v18 = vmax.f32 %v17813_v60, %v5188_v46  ;;  %v11844_v58 = vpop.f32.mrf.mxu0  ;;  %v12042_v30 = vpop.f32.mrf.mxu1  ;;  %v17826_v28 = vld [vmem:[#allocation142_spill] sm:$0xff]  ;;  %v17827_v46 = vld [vmem:[#allocation143_spill] sm:$0xff]  ;;  %v17829_v60 = vld [vmem:[#allocation144_spill] sm:$0xff] }
 0x306   :  { %9077 = vst.msk [vmem:[%s16903_s3 + $0x150] sm:$0xf] %vm8992_vm3, %v10847_v13  ;;  %v10850_v31 = vpack.c.bf16 %v8099_v59, %v8099_v59  ;;  %v8097_v62 = vmax.f32 %v7901_v16, 0.0  ;;  %v7906_v63 = vadd.f32 %v15558_v29, %v7703_v17  ;;  %v5710_v7 = vmax.f32 %v17816_v15, %v11844_v58  ;;  %v17833_v15 = vld [vmem:[#allocation147_spill] sm:$0xff] }
 0x307   :  { %v7701_v1 = vmax.f32 %v5707_v18, %v7182_v47  ;;  %v5191_v53 = vpop.f32.mrf.mxu0  ;;  %v7185_v61 = vpop.f32.mrf.mxu1  ;;  %v17828_v47 = vmax.f32 %v17826_v28, %v17827_v46  ;;  %v17830_v18 = vld [vmem:[#allocation145_spill] sm:$0xff] }
 0x308   :  { %9080 = vst.msk [vmem:[%s16903_s3 + $0x15c] sm:$0xf] %vm8992_vm3, %v10850_v31  ;;  %v10848_v52 = vpack.c.bf16 %v8097_v62, %v8097_v62  ;;  %v8102_v37 = vmax.f32 %v7906_v63, 0.0  ;;  %v7704_v42 = vmax.f32 %v5710_v7, %v12042_v30  ;;  %v5708_v3 = vmax.f32 %v17819_v36, %v5191_v53 }
 0x309   :  { %v7904_v4 = vadd.f32 %v15558_v29, %v7701_v1  ;;  %v11847_v19 = vpop.f32.mrf.mxu0  ;;  %11942 = vmatmul.mubr.msk.bf16.gmra.mxu0 %vm708_vm2, %v12535_v33  ;;  %v12045_v40 = vpop.f32.mrf.mxu1  ;;  %12140 = vmatmul.mubr.msk.bf16.gmra.mxu1 %vm708_vm2, %v12536_v38  ;;  %v17831_v58 = vmax.f32 %v17829_v60, %v17830_v18  ;;  %v17834_v7 = vmax.f32 %v17832_v14, %v17833_v15 }
 0x30a   :  { %9078 = vst.msk [vmem:[%s16903_s3 + $0x154] sm:$0xf] %vm8992_vm3, %v10848_v52  ;;  %v10853_v41 = vpack.c.bf16 %v8102_v37, %v8102_v37  ;;  %v7907_v54 = vadd.f32 %v15558_v29, %v7704_v42  ;;  %v7702_v23 = vmax.f32 %v5708_v3, %v7185_v61  ;;  %v5713_v56 = vmax.f32 %v17822_v2, %v11847_v19  ;;  %v17835_v42 = vld [vmem:[#allocation148_spill] sm:$0xff] }
 0x30b   :  { %11945 = vmatprep.mubr.msk.bf16.mxu0 %vm708_vm2, %v12537_v22  ;;  %v8100_v57 = vmax.f32 %v7904_v4, 0.0  ;;  %v5204_v48 = vpop.f32.mrf.mxu0  ;;  %v7198_v49 = vpop.f32.mrf.mxu1  ;;  %12143 = vmatprep.mubr.msk.bf16.mxu1 %vm708_vm2, %v12538_v51  ;;  %v17837_v35 = vmax.f32 %v17835_v42, %v17836_v5 }
 0x30c   :  { %9083 = vst.msk [vmem:[%s16903_s3 + $0x168] sm:$0xf] %vm8992_vm3, %v10853_v41  ;;  %v8103_v10 = vmax.f32 %v7907_v54, 0.0  ;;  %v7905_v45 = vadd.f32 %v15558_v29, %v7702_v23  ;;  %v7707_v21 = vmax.f32 %v5713_v56, %v12045_v40  ;;  %v5711_v25 = vmax.f32 %v17825_v24, %v5204_v48  ;;  %v17838_v23 = vld [vmem:[#allocation150_spill] sm:$0xff] }
 0x30d   :  { %v10851_v44 = vpack.c.bf16 %v8100_v57, %v8100_v57  ;;  %v11848_v55 = vpop.f32.mrf.mxu0  ;;  %v12046_v0 = vpop.f32.mrf.mxu1  ;;  %v17840_v50 = vmax.f32 %v17838_v23, %v17839_v20  ;;  %v17843_v24 = vmax.f32 %v17841_v26, %v17842_v43 }
 0x30e   :  { %v10854_v32 = vpack.c.bf16 %v8103_v10, %v8103_v10  ;;  %v8101_v39 = vmax.f32 %v7905_v45, 0.0  ;;  %v7910_v34 = vadd.f32 %v15558_v29, %v7707_v21  ;;  %v7705_v27 = vmax.f32 %v5711_v25, %v7198_v49 }
 0x30f   :  { %9081 = vst.msk [vmem:[%s16903_s3 + $0x160] sm:$0xf] %vm8992_vm3, %v10851_v44  ;;  %v5714_v13 = vmax.f32 %v17828_v47, %v11848_v55  ;;  %v5207_v59 = vpop.f32.mrf.mxu0  ;;  %v7201_v16 = vpop.f32.mrf.mxu1 }
 0x310   :  { %9084 = vst.msk [vmem:[%s16903_s3 + $0x16c] sm:$0xf] %vm8992_vm3, %v10854_v32  ;;  %v10852_v17 = vpack.c.bf16 %v8101_v39, %v8101_v39  ;;  %v8106_v11 = vmax.f32 %v7910_v34, 0.0  ;;  %v7908_v12 = vadd.f32 %v15558_v29, %v7705_v27  ;;  %v5712_v30 = vmax.f32 %v17831_v58, %v5207_v59  ;;  %v17844_v32 = vld [vmem:[#allocation154_spill] sm:$0xff]  ;;  %v17845_v39 = vld [vmem:[#allocation155_spill] sm:$0xff] }
 0x311   :  { %v7708_v33 = vmax.f32 %v5714_v13, %v12046_v0  ;;  %v11851_v38 = vpop.f32.mrf.mxu0  ;;  %11946 = vmatmul.mubr.msk.bf16.gmra.mxu0 %vm708_vm2, %v12539_v8  ;;  %v12049_v31 = vpop.f32.mrf.mxu1  ;;  %12144 = vmatmul.mubr.msk.bf16.gmra.mxu1 %vm708_vm2, %v12540_v9  ;;  %v17846_v34 = vmax.f32 %v17844_v32, %v17845_v39 }
 0x312   :  { %9082 = vst.msk [vmem:[%s16903_s3 + $0x164] sm:$0xf] %vm8992_vm3, %v10852_v17  ;;  %v10857_v62 = vpack.c.bf16 %v8106_v11, %v8106_v11  ;;  %v8104_v63 = vmax.f32 %v7908_v12, 0.0  ;;  %v7706_v6 = vmax.f32 %v5712_v30, %v7201_v16  ;;  %v5717_v22 = vmax.f32 %v17834_v7, %v11851_v38  ;;  %v17847_v17 = vld [vmem:[#allocation156_spill] sm:$0xff]  ;;  %v17848_v11 = vld [vmem:[#allocation157_spill] sm:$0xff] }
 0x313   :  { %v7911_v1 = vadd.f32 %v15558_v29, %v7708_v33  ;;  %v5220_v53 = vpop.f32.mrf.mxu0  ;;  %v7214_v61 = vpop.f32.mrf.mxu1  ;;  %v17849_v12 = vmax.f32 %v17847_v17, %v17848_v11 }
 0x314   :  { %9087 = vst.msk [vmem:[%s16903_s3 + $0x178] sm:$0xf] %vm8992_vm3, %v10857_v62  ;;  %v10855_v51 = vpack.c.bf16 %v8104_v63, %v8104_v63  ;;  %v7909_v52 = vadd.f32 %v15558_v29, %v7706_v6  ;;  %v7711_v37 = vmax.f32 %v5717_v22, %v12049_v31  ;;  %v5715_v36 = vmax.f32 %v17837_v35, %v5220_v53  ;;  %v17850_v62 = vld [vmem:[#allocation158_spill] sm:$0xff]  ;;  %v17851_v63 = vld [vmem:[#allocation159_spill] sm:$0xff] }
 0x315   :  { %v8107_v3 = vmax.f32 %v7911_v1, 0.0  ;;  %v11852_v4 = vpop.f32.mrf.mxu0  ;;  %v12050_v19 = vpop.f32.mrf.mxu1  ;;  %v17852_v6 = vmax.f32 %v17850_v62, %v17851_v63 }
 0x316   :  { %9085 = vst.msk [vmem:[%s16903_s3 + $0x170] sm:$0xf] %vm8992_vm3, %v10855_v51  ;;  %v8105_v40 = vmax.f32 %v7909_v52, 0.0  ;;  %v7914_v41 = vadd.f32 %v15558_v29, %v7711_v37  ;;  %v7709_v54 = vmax.f32 %v5715_v36, %v7214_v61  ;;  %v5718_v2 = vmax.f32 %v17840_v50, %v11852_v4  ;;  %v17853_v51 = vld [vmem:[#allocation160_spill] sm:$0xff]  ;;  %v17854_v52 = vld [vmem:[#allocation161_spill] sm:$0xff] }
 0x317   :  { %v10858_v56 = vpack.c.bf16 %v8107_v3, %v8107_v3  ;;  %v5223_v57 = vpop.f32.mrf.mxu0  ;;  %v7217_v48 = vpop.f32.mrf.mxu1  ;;  %v17855_v37 = vmax.f32 %v17853_v51, %v17854_v52 }
 0x318   :  { %v10856_v49 = vpack.c.bf16 %v8105_v40, %v8105_v40  ;;  %v8110_v10 = vmax.f32 %v7914_v41, 0.0  ;;  %v7912_v45 = vadd.f32 %v15558_v29, %v7709_v54  ;;  %v7712_v21 = vmax.f32 %v5718_v2, %v12050_v19  ;;  %v17856_v41 = vld [vmem:[#allocation162_spill] sm:$0xff]  ;;  %v17857_v54 = vld [vmem:[#allocation163_spill] sm:$0xff] }
 0x319   :  { %9088 = vst.msk [vmem:[%s16903_s3 + $0x17c] sm:$0xf] %vm8992_vm3, %v10858_v56  ;;  %v5716_v25 = vmax.f32 %v17843_v24, %v5223_v57  ;;  %v11855_v44 = vpop.f32.mrf.mxu0  ;;  %v12053_v55 = vpop.f32.mrf.mxu1  ;;  %v17858_v23 = vmax.f32 %v17856_v41, %v17857_v54 }
 0x31a   :  { %9086 = vst.msk [vmem:[%s16903_s3 + $0x174] sm:$0xf] %vm8992_vm3, %v10856_v49  ;;  %v10861_v0 = vpack.c.bf16 %v8110_v10, %v8110_v10  ;;  %v8108_v8 = vmax.f32 %v7912_v45, 0.0  ;;  %v7915_v9 = vadd.f32 %v15558_v29, %v7712_v21  ;;  %v5721_v27 = vmax.f32 %v17846_v34, %v11855_v44  ;;  %v17859_v49 = vld [vmem:[#allocation164_spill] sm:$0xff]  ;;  %v17860_v10 = vld [vmem:[#allocation165_spill] sm:$0xff] }
 0x31b   :  { %v7710_v28 = vmax.f32 %v5716_v25, %v7217_v48  ;;  %v5236_v46 = vpop.f32.mrf.mxu0  ;;  %v7230_v47 = vpop.f32.mrf.mxu1  ;;  %v17861_v45 = vmax.f32 %v17859_v49, %v17860_v10 }
 0x31c   :  { %9091 = vst.msk [vmem:[%s16903_s3 + $0x188] sm:$0xf] %vm8992_vm3, %v10861_v0  ;;  %v10859_v13 = vpack.c.bf16 %v8108_v8, %v8108_v8  ;;  %v8111_v59 = vmax.f32 %v7915_v9, 0.0  ;;  %v7715_v16 = vmax.f32 %v5721_v27, %v12053_v55  ;;  %v5719_v60 = vmax.f32 %v17849_v12, %v5236_v46  ;;  %v17862_v0 = vld [vmem:[#allocation166_spill] sm:$0xff]  ;;  %v17863_v8 = vld [vmem:[#allocation167_spill] sm:$0xff] }
 0x31d   :  { %v7913_v18 = vadd.f32 %v15558_v29, %v7710_v28  ;;  %v11856_v58 = vpop.f32.mrf.mxu0  ;;  %v12054_v30 = vpop.f32.mrf.mxu1  ;;  %v17864_v9 = vmax.f32 %v17862_v0, %v17863_v8  ;;  %v16163_v46 = vld [vmem:[%s16902_s2] ss:$0 sm:$0xff] }
 0x31e   :  { %9089 = vst.msk [vmem:[%s16903_s3 + $0x180] sm:$0xf] %vm8992_vm3, %v10859_v13  ;;  %v10862_v33 = vpack.c.bf16 %v8111_v59, %v8111_v59  ;;  %v7918_v38 = vadd.f32 %v15558_v29, %v7715_v16  ;;  %v7713_v31 = vmax.f32 %v5719_v60, %v7230_v47  ;;  %v5722_v14 = vmax.f32 %v17852_v6, %v11856_v58  ;;  %v17865_v59 = vld [vmem:[#allocation168_spill] sm:$0xff]  ;;  %v17866_v16 = vld [vmem:[#allocation169_spill] sm:$0xff] }
 0x31f   :  { %v8109_v15 = vmax.f32 %v7913_v18, 0.0  ;;  %v5239_v7 = vpop.f32.mrf.mxu0  ;;  %v7233_v22 = vpop.f32.mrf.mxu1  ;;  %v17867_v17 = vmax.f32 %v17865_v59, %v17866_v16 }
 0x320   :  { %9092 = vst.msk [vmem:[%s16903_s3 + $0x18c] sm:$0xf] %vm8992_vm3, %v10862_v33  ;;  %v8114_v1 = vmax.f32 %v7918_v38, 0.0  ;;  %v7916_v53 = vadd.f32 %v15558_v29, %v7713_v31  ;;  %v7716_v61 = vmax.f32 %v5722_v14, %v12054_v30  ;;  %v5720_v42 = vmax.f32 %v17855_v37, %v5239_v7  ;;  %v17868_v33 = vld [vmem:[#allocation170_spill] sm:$0xff]  ;;  %v17869_v38 = vld [vmem:[#allocation171_spill] sm:$0xff] }
 0x321   :  { %v10860_v5 = vpack.c.bf16 %v8109_v15, %v8109_v15  ;;  %v11859_v35 = vpop.f32.mrf.mxu0  ;;  %v12057_v36 = vpop.f32.mrf.mxu1  ;;  %v17870_v31 = vmax.f32 %v17868_v33, %v17869_v38 }
 0x322   :  { %v10865_v3 = vpack.c.bf16 %v8114_v1, %v8114_v1  ;;  %v8112_v4 = vmax.f32 %v7916_v53, 0.0  ;;  %v7919_v19 = vadd.f32 %v15558_v29, %v7716_v61  ;;  %v7714_v40 = vmax.f32 %v5720_v42, %v7233_v22  ;;  %v17871_v53 = vld [vmem:[#allocation172_spill] sm:$0xff]  ;;  %v17872_v61 = vld [vmem:[#allocation173_spill] sm:$0xff] }
 0x323   :  { %9090 = vst.msk [vmem:[%s16903_s3 + $0x184] sm:$0xf] %vm8992_vm3, %v10860_v5  ;;  %v5725_v20 = vmax.f32 %v17858_v23, %v11859_v35  ;;  %v5252_v50 = vpop.f32.mrf.mxu0  ;;  %v7246_v2 = vpop.f32.mrf.mxu1  ;;  %v17873_v51 = vmax.f32 %v17871_v53, %v17872_v61 }
 0x324   :  { %9095 = vst.msk [vmem:[%s16903_s3 + $0x198] sm:$0xf] %vm8992_vm3, %v10865_v3  ;;  %v10863_v56 = vpack.c.bf16 %v8112_v4, %v8112_v4  ;;  %v8115_v57 = vmax.f32 %v7919_v19, 0.0  ;;  %v7917_v48 = vadd.f32 %v15558_v29, %v7714_v40  ;;  %v5723_v21 = vmax.f32 %v17861_v45, %v5252_v50  ;;  %v17874_v3 = vld [vmem:[#allocation174_spill] sm:$0xff]  ;;  %v17875_v4 = vld [vmem:[#allocation175_spill] sm:$0xff] }
 0x325   :  { %v7719_v26 = vmax.f32 %v5725_v20, %v12057_v36  ;;  %v11860_v43 = vpop.f32.mrf.mxu0  ;;  %v12058_v24 = vpop.f32.mrf.mxu1  ;;  %v17876_v19 = vmax.f32 %v17874_v3, %v17875_v4 }
 0x326   :  { %9093 = vst.msk [vmem:[%s16903_s3 + $0x190] sm:$0xf] %vm8992_vm3, %v10863_v56  ;;  %v10866_v25 = vpack.c.bf16 %v8115_v57, %v8115_v57  ;;  %v8113_v44 = vmax.f32 %v7917_v48, 0.0  ;;  %v7717_v55 = vmax.f32 %v5723_v21, %v7246_v2  ;;  %v5726_v32 = vmax.f32 %v17864_v9, %v11860_v43  ;;  %v17877_v56 = vld [vmem:[#allocation176_spill] sm:$0xff]  ;;  %v17878_v57 = vld [vmem:[#allocation177_spill] sm:$0xff] }
 0x327   :  { %v7922_v39 = vadd.f32 %v15558_v29, %v7719_v26  ;;  %v5255_v34 = vpop.f32.mrf.mxu0  ;;  %v7249_v27 = vpop.f32.mrf.mxu1  ;;  %v17879_v48 = vmax.f32 %v17877_v56, %v17878_v57 }
 0x328   :  { %9096 = vst.msk [vmem:[%s16903_s3 + $0x19c] sm:$0xf] %vm8992_vm3, %v10866_v25  ;;  %v10864_v28 = vpack.c.bf16 %v8113_v44, %v8113_v44  ;;  %v7920_v47 = vadd.f32 %v16163_v46, %v7717_v55  ;;  %v7720_v13 = vmax.f32 %v5726_v32, %v12058_v24  ;;  %v5724_v29 = vmax.f32 %v17867_v17, %v5255_v34  ;;  %v17880_v25 = vld [vmem:[#allocation178_spill] sm:$0xff]  ;;  %v17881_v44 = vld [vmem:[#allocation179_spill] sm:$0xff] }
 0x329   :  { %v8118_v11 = vmax.f32 %v7922_v39, 0.0  ;;  %v11863_v12 = vpop.f32.mrf.mxu0  ;;  %v12061_v60 = vpop.f32.mrf.mxu1  ;;  %v17882_v55 = vmax.f32 %v17880_v25, %v17881_v44 }
 0x32a   :  { %9094 = vst.msk [vmem:[%s16903_s3 + $0x194] sm:$0xf] %vm8992_vm3, %v10864_v28  ;;  %v8116_v18 = vmax.f32 %v7920_v47, 0.0  ;;  %v7923_v58 = vadd.f32 %v16163_v46, %v7720_v13  ;;  %v7718_v30 = vmax.f32 %v5724_v29, %v7249_v27  ;;  %v5729_v62 = vmax.f32 %v17870_v31, %v11863_v12  ;;  %v17883_v28 = vld [vmem:[#allocation180_spill] sm:$0xff]  ;;  %v17884_v47 = vld [vmem:[#allocation181_spill] sm:$0xff] }
 0x32b   :  { %v10869_v63 = vpack.c.bf16 %v8118_v11, %v8118_v11  ;;  %v5268_v6 = vpop.f32.mrf.mxu0  ;;  %v7262_v14 = vpop.f32.mrf.mxu1  ;;  %v17885_v13 = vmax.f32 %v17883_v28, %v17884_v47 }
 0x32c   :  { %v10867_v15 = vpack.c.bf16 %v8116_v18, %v8116_v18  ;;  %v8119_v7 = vmax.f32 %v7923_v58, 0.0  ;;  %v7921_v22 = vadd.f32 %v16163_v46, %v7718_v30  ;;  %v7723_v1 = vmax.f32 %v5729_v62, %v12061_v60  ;;  %v17886_v58 = vld [vmem:[#allocation182_spill] sm:$0xff]  ;;  %v17887_v30 = vld [vmem:[#allocation183_spill] sm:$0xff] }
 0x32d   :  { %9099 = vst.msk [vmem:[%s16903_s3 + $0x1a8] sm:$0xf] %vm8992_vm3, %v10869_v63  ;;  %v5727_v52 = vmax.f32 %v17873_v51, %v5268_v6  ;;  %v11864_v37 = vpop.f32.mrf.mxu0  ;;  %v12062_v42 = vpop.f32.mrf.mxu1  ;;  %v17888_v33 = vmax.f32 %v17886_v58, %v17887_v30 }
 0x32e   :  { %9097 = vst.msk [vmem:[%s16903_s3 + $0x1a0] sm:$0xf] %vm8992_vm3, %v10867_v15  ;;  %v10870_v5 = vpack.c.bf16 %v8119_v7, %v8119_v7  ;;  %v8117_v35 = vmax.f32 %v7921_v22, 0.0  ;;  %v7926_v36 = vadd.f32 %v16163_v46, %v7723_v1  ;;  %v5730_v40 = vmax.f32 %v17876_v19, %v11864_v37  ;;  %v17889_v15 = vld [vmem:[#allocation184_spill] sm:$0xff]  ;;  %v17890_v7 = vld [vmem:[#allocation185_spill] sm:$0xff] }
 0x32f   :  { %v7721_v41 = vmax.f32 %v5727_v52, %v7262_v14  ;;  %v5271_v54 = vpop.f32.mrf.mxu0  ;;  %v7265_v23 = vpop.f32.mrf.mxu1  ;;  %v17891_v22 = vmax.f32 %v17889_v15, %v17890_v7 }
 0x330   :  { %9100 = vst.msk [vmem:[%s16903_s3 + $0x1ac] sm:$0xf] %vm8992_vm3, %v10870_v5  ;;  %v10868_v20 = vpack.c.bf16 %v8117_v35, %v8117_v35  ;;  %v8122_v50 = vmax.f32 %v7926_v36, 0.0  ;;  %v7724_v2 = vmax.f32 %v5730_v40, %v12062_v42  ;;  %v5728_v49 = vmax.f32 %v17879_v48, %v5271_v54  ;;  %v17892_v5 = vld [vmem:[#allocation186_spill] sm:$0xff]  ;;  %v17893_v35 = vld [vmem:[#allocation187_spill] sm:$0xff] }
 0x331   :  { %v7924_v10 = vadd.f32 %v16163_v46, %v7721_v41  ;;  %v11867_v45 = vpop.f32.mrf.mxu0  ;;  %v12065_v21 = vpop.f32.mrf.mxu1  ;;  %v17894_v36 = vmax.f32 %v17892_v5, %v17893_v35 }
 0x332   :  { %9098 = vst.msk [vmem:[%s16903_s3 + $0x1a4] sm:$0xf] %vm8992_vm3, %v10868_v20  ;;  %v10873_v26 = vpack.c.bf16 %v8122_v50, %v8122_v50  ;;  %v7927_v43 = vadd.f32 %v16163_v46, %v7724_v2  ;;  %v7722_v24 = vmax.f32 %v5728_v49, %v7265_v23  ;;  %v5733_v0 = vmax.f32 %v17882_v55, %v11867_v45  ;;  %v17895_v20 = vld [vmem:[#allocation188_spill] sm:$0xff]  ;;  %v17896_v50 = vld [vmem:[#allocation189_spill] sm:$0xff] }
 0x333   :  { %v8120_v8 = vmax.f32 %v7924_v10, 0.0  ;;  %v5284_v9 = vpop.f32.mrf.mxu0  ;;  %v7278_v32 = vpop.f32.mrf.mxu1  ;;  %v17897_v2 = vmax.f32 %v17895_v20, %v17896_v50 }
 0x334   :  { %9103 = vst.msk [vmem:[%s16903_s3 + $0x1b8] sm:$0xf] %vm8992_vm3, %v10873_v26  ;;  %v8123_v39 = vmax.f32 %v7927_v43, 0.0  ;;  %v7925_v34 = vadd.f32 %v16163_v46, %v7722_v24  ;;  %v7727_v27 = vmax.f32 %v5733_v0, %v12065_v21  ;;  %v5731_v59 = vmax.f32 %v17885_v13, %v5284_v9  ;;  %v17898_v26 = vld [vmem:[#allocation190_spill] sm:$0xff]  ;;  %v17899_v43 = vld [vmem:[#allocation191_spill] sm:$0xff] }
 0x335   :  { %v10871_v16 = vpack.c.bf16 %v8120_v8, %v8120_v8  ;;  %v11868_v17 = vpop.f32.mrf.mxu0  ;;  %v12066_v29 = vpop.f32.mrf.mxu1  ;;  %v17900_v24 = vmax.f32 %v17898_v26, %v17899_v43 }
 0x336   :  { %v10874_v11 = vpack.c.bf16 %v8123_v39, %v8123_v39  ;;  %v8121_v12 = vmax.f32 %v7925_v34, 0.0  ;;  %v7930_v60 = vadd.f32 %v16163_v46, %v7727_v27  ;;  %v7725_v18 = vmax.f32 %v5731_v59, %v7278_v32  ;;  %v17901_v34 = vld [vmem:[#allocation192_spill] sm:$0xff]  ;;  %v17902_v27 = vld [vmem:[#allocation193_spill] sm:$0xff] }
 0x337   :  { %9101 = vst.msk [vmem:[%s16903_s3 + $0x1b0] sm:$0xf] %vm8992_vm3, %v10871_v16  ;;  %v5734_v38 = vmax.f32 %v17888_v33, %v11868_v17  ;;  %v5287_v31 = vpop.f32.mrf.mxu0  ;;  %v7281_v62 = vpop.f32.mrf.mxu1  ;;  %v17903_v28 = vmax.f32 %v17901_v34, %v17902_v27 }
 0x338   :  { %9104 = vst.msk [vmem:[%s16903_s3 + $0x1bc] sm:$0xf] %vm8992_vm3, %v10874_v11  ;;  %v10872_v63 = vpack.c.bf16 %v8121_v12, %v8121_v12  ;;  %v8126_v6 = vmax.f32 %v7930_v60, 0.0  ;;  %v7928_v14 = vadd.f32 %v16163_v46, %v7725_v18  ;;  %v5732_v1 = vmax.f32 %v17891_v22, %v5287_v31  ;;  %v17904_v11 = vld [vmem:[#allocation194_spill] sm:$0xff]  ;;  %v17905_v12 = vld [vmem:[#allocation195_spill] sm:$0xff] }
 0x339   :  { %v7728_v53 = vmax.f32 %v5734_v38, %v12066_v29  ;;  %v11871_v61 = vpop.f32.mrf.mxu0  ;;  %v12069_v51 = vpop.f32.mrf.mxu1  ;;  %v17906_v60 = vmax.f32 %v17904_v11, %v17905_v12 }
 0x33a   :  { %9102 = vst.msk [vmem:[%s16903_s3 + $0x1b4] sm:$0xf] %vm8992_vm3, %v10872_v63  ;;  %v10877_v52 = vpack.c.bf16 %v8126_v6, %v8126_v6  ;;  %v8124_v37 = vmax.f32 %v7928_v14, 0.0  ;;  %v7726_v42 = vmax.f32 %v5732_v1, %v7281_v62  ;;  %v5737_v3 = vmax.f32 %v17894_v36, %v11871_v61  ;;  %v17907_v63 = vld [vmem:[#allocation196_spill] sm:$0xff]  ;;  %v17908_v6 = vld [vmem:[#allocation197_spill] sm:$0xff] }
 0x33b   :  { %v7931_v4 = vadd.f32 %v16163_v46, %v7728_v53  ;;  %v5300_v19 = vpop.f32.mrf.mxu0  ;;  %v7294_v40 = vpop.f32.mrf.mxu1  ;;  %v17909_v14 = vmax.f32 %v17907_v63, %v17908_v6 }
 0x33c   :  { %9107 = vst.msk [vmem:[%s16903_s3 + $0x1c8] sm:$0xf] %vm8992_vm3, %v10877_v52  ;;  %v10875_v41 = vpack.c.bf16 %v8124_v37, %v8124_v37  ;;  %v7929_v54 = vadd.f32 %v16163_v46, %v7726_v42  ;;  %v7731_v23 = vmax.f32 %v5737_v3, %v12069_v51  ;;  %v5735_v56 = vmax.f32 %v17897_v2, %v5300_v19  ;;  %v17910_v52 = vld [vmem:[#allocation198_spill] sm:$0xff]  ;;  %v17911_v37 = vld [vmem:[#allocation199_spill] sm:$0xff] }
 0x33d   :  { %v8127_v57 = vmax.f32 %v7931_v4, 0.0  ;;  %v11872_v48 = vpop.f32.mrf.mxu0  ;;  %v12070_v49 = vpop.f32.mrf.mxu1  ;;  %v17912_v42 = vmax.f32 %v17910_v52, %v17911_v37 }
 0x33e   :  { %9105 = vst.msk [vmem:[%s16903_s3 + $0x1c0] sm:$0xf] %vm8992_vm3, %v10875_v41  ;;  %v8125_v10 = vmax.f32 %v7929_v54, 0.0  ;;  %v7934_v45 = vadd.f32 %v16163_v46, %v7731_v23  ;;  %v7729_v21 = vmax.f32 %v5735_v56, %v7294_v40  ;;  %v5738_v25 = vmax.f32 %v17900_v24, %v11872_v48  ;;  %v17913_v41 = vld [vmem:[#allocation200_spill] sm:$0xff]  ;;  %v17914_v54 = vld [vmem:[#allocation201_spill] sm:$0xff] }
 0x33f   :  { %v10878_v44 = vpack.c.bf16 %v8127_v57, %v8127_v57  ;;  %v5303_v55 = vpop.f32.mrf.mxu0  ;;  %v7297_v0 = vpop.f32.mrf.mxu1  ;;  %v17915_v23 = vmax.f32 %v17913_v41, %v17914_v54 }
 0x340   :  { %v10876_v8 = vpack.c.bf16 %v8125_v10, %v8125_v10  ;;  %v8130_v9 = vmax.f32 %v7934_v45, 0.0  ;;  %v7932_v32 = vadd.f32 %v16163_v46, %v7729_v21  ;;  %v7732_v39 = vmax.f32 %v5738_v25, %v12070_v49  ;;  %v17916_v45 = vld [vmem:[#allocation202_spill] sm:$0xff]  ;;  %v17917_v21 = vld [vmem:[#allocation203_spill] sm:$0xff] }
 0x341   :  { %9108 = vst.msk [vmem:[%s16903_s3 + $0x1cc] sm:$0xf] %vm8992_vm3, %v10878_v44  ;;  %v5736_v47 = vmax.f32 %v17903_v28, %v5303_v55  ;;  %v11875_v13 = vpop.f32.mrf.mxu0  ;;  %v12073_v59 = vpop.f32.mrf.mxu1  ;;  %v17918_v26 = vmax.f32 %v17916_v45, %v17917_v21 }
 0x342   :  { %9106 = vst.msk [vmem:[%s16903_s3 + $0x1c4] sm:$0xf] %vm8992_vm3, %v10876_v8  ;;  %v10881_v16 = vpack.c.bf16 %v8130_v9, %v8130_v9  ;;  %v8128_v17 = vmax.f32 %v7932_v32, 0.0  ;;  %v7935_v29 = vadd.f32 %v16163_v46, %v7732_v39  ;;  %v5741_v18 = vmax.f32 %v17906_v60, %v11875_v13  ;;  %v17919_v8 = vld [vmem:[#allocation204_spill] sm:$0xff]  ;;  %v17920_v9 = vld [vmem:[#allocation205_spill] sm:$0xff] }
 0x343   :  { %v7730_v58 = vmax.f32 %v5736_v47, %v7297_v0  ;;  %v5316_v30 = vpop.f32.mrf.mxu0  ;;  %v7310_v33 = vpop.f32.mrf.mxu1  ;;  %v17921_v32 = vmax.f32 %v17919_v8, %v17920_v9 }
 0x344   :  { %9111 = vst.msk [vmem:[%s16903_s3 + $0x1d8] sm:$0xf] %vm8992_vm3, %v10881_v16  ;;  %v10879_v38 = vpack.c.bf16 %v8128_v17, %v8128_v17  ;;  %v8131_v31 = vmax.f32 %v7935_v29, 0.0  ;;  %v7735_v62 = vmax.f32 %v5741_v18, %v12073_v59  ;;  %v5739_v15 = vmax.f32 %v17909_v14, %v5316_v30  ;;  %v17922_v16 = vld [vmem:[#allocation206_spill] sm:$0xff]  ;;  %v17923_v17 = vld [vmem:[#allocation207_spill] sm:$0xff] }
 0x345   :  { %v7933_v7 = vadd.f32 %v16163_v46, %v7730_v58  ;;  %v11876_v22 = vpop.f32.mrf.mxu0  ;;  %v12074_v1 = vpop.f32.mrf.mxu1  ;;  %v17924_v29 = vmax.f32 %v17922_v16, %v17923_v17 }
 0x346   :  { %9109 = vst.msk [vmem:[%s16903_s3 + $0x1d0] sm:$0xf] %vm8992_vm3, %v10879_v38  ;;  %v10882_v53 = vpack.c.bf16 %v8131_v31, %v8131_v31  ;;  %v7938_v61 = vadd.f32 %v16163_v46, %v7735_v62  ;;  %v7733_v51 = vmax.f32 %v5739_v15, %v7310_v33  ;;  %v5742_v5 = vmax.f32 %v17912_v42, %v11876_v22  ;;  %v17925_v38 = vld [vmem:[#allocation208_spill] sm:$0xff]  ;;  %v17926_v31 = vld [vmem:[#allocation209_spill] sm:$0xff] }
 0x347   :  { %v8129_v35 = vmax.f32 %v7933_v7, 0.0  ;;  %v5319_v36 = vpop.f32.mrf.mxu0  ;;  %v7313_v3 = vpop.f32.mrf.mxu1  ;;  %v17927_v62 = vmax.f32 %v17925_v38, %v17926_v31 }
 0x348   :  { %9112 = vst.msk [vmem:[%s16903_s3 + $0x1dc] sm:$0xf] %vm8992_vm3, %v10882_v53  ;;  %v8134_v4 = vmax.f32 %v7938_v61, 0.0  ;;  %v7936_v19 = vadd.f32 %v16163_v46, %v7733_v51  ;;  %v7736_v40 = vmax.f32 %v5742_v5, %v12074_v1  ;;  %v5740_v20 = vmax.f32 %v17915_v23, %v5319_v36  ;;  %v17928_v53 = vld [vmem:[#allocation210_spill] sm:$0xff]  ;;  %v17929_v61 = vld [vmem:[#allocation211_spill] sm:$0xff] }
 0x349   :  { %v10880_v50 = vpack.c.bf16 %v8129_v35, %v8129_v35  ;;  %v11879_v2 = vpop.f32.mrf.mxu0  ;;  %v12077_v56 = vpop.f32.mrf.mxu1  ;;  %v17930_v51 = vmax.f32 %v17928_v53, %v17929_v61 }
 0x34a   :  { %v10885_v57 = vpack.c.bf16 %v8134_v4, %v8134_v4  ;;  %v8132_v48 = vmax.f32 %v7936_v19, 0.0  ;;  %v7939_v49 = vadd.f32 %v16163_v46, %v7736_v40  ;;  %v7734_v10 = vmax.f32 %v5740_v20, %v7313_v3  ;;  %v17931_v19 = vld [vmem:[#allocation212_spill] sm:$0xff]  ;;  %v17932_v40 = vld [vmem:[#allocation213_spill] sm:$0xff] }
 0x34b   :  { %9110 = vst.msk [vmem:[%s16903_s3 + $0x1d4] sm:$0xf] %vm8992_vm3, %v10880_v50  ;;  %v5745_v43 = vmax.f32 %v17918_v26, %v11879_v2  ;;  %v5332_v24 = vpop.f32.mrf.mxu0  ;;  %v7326_v25 = vpop.f32.mrf.mxu1  ;;  %v17933_v41 = vmax.f32 %v17931_v19, %v17932_v40 }
 0x34c   :  { %9115 = vst.msk [vmem:[%s16903_s3 + $0x1e8] sm:$0xf] %vm8992_vm3, %v10885_v57  ;;  %v10883_v44 = vpack.c.bf16 %v8132_v48, %v8132_v48  ;;  %v8135_v55 = vmax.f32 %v7939_v49, 0.0  ;;  %v7937_v0 = vadd.f32 %v16163_v46, %v7734_v10  ;;  %v5743_v39 = vmax.f32 %v17921_v32, %v5332_v24  ;;  %v17934_v57 = vld [vmem:[#allocation214_spill] sm:$0xff]  ;;  %v17935_v48 = vld [vmem:[#allocation215_spill] sm:$0xff] }
 0x34d   :  { %v7739_v34 = vmax.f32 %v5745_v43, %v12077_v56  ;;  %v11880_v27 = vpop.f32.mrf.mxu0  ;;  %v12078_v28 = vpop.f32.mrf.mxu1  ;;  %v17936_v49 = vmax.f32 %v17934_v57, %v17935_v48 }
 0x34e   :  { %9113 = vst.msk [vmem:[%s16903_s3 + $0x1e0] sm:$0xf] %vm8992_vm3, %v10883_v44  ;;  %v10886_v47 = vpack.c.bf16 %v8135_v55, %v8135_v55  ;;  %v8133_v13 = vmax.f32 %v7937_v0, 0.0  ;;  %v7737_v59 = vmax.f32 %v5743_v39, %v7326_v25  ;;  %v5746_v11 = vmax.f32 %v17924_v29, %v11880_v27  ;;  %v17937_v44 = vld [vmem:[#allocation216_spill] sm:$0xff]  ;;  %v17938_v55 = vld [vmem:[#allocation217_spill] sm:$0xff] }
 0x34f   :  { %v7942_v12 = vadd.f32 %v16163_v46, %v7739_v34  ;;  %v5335_v60 = vpop.f32.mrf.mxu0  ;;  %v7329_v18 = vpop.f32.mrf.mxu1  ;;  %v17939_v0 = vmax.f32 %v17937_v44, %v17938_v55 }
 0x350   :  { %9116 = vst.msk [vmem:[%s16903_s3 + $0x1ec] sm:$0xf] %vm8992_vm3, %v10886_v47  ;;  %v10884_v58 = vpack.c.bf16 %v8133_v13, %v8133_v13  ;;  %v7940_v30 = vadd.f32 %v16163_v46, %v7737_v59  ;;  %v7740_v33 = vmax.f32 %v5746_v11, %v12078_v28  ;;  %v5744_v63 = vmax.f32 %v17927_v62, %v5335_v60  ;;  %v17940_v47 = vld [vmem:[#allocation218_spill] sm:$0xff]  ;;  %v17941_v13 = vld [vmem:[#allocation219_spill] sm:$0xff] }
 0x351   :  { %v8138_v6 = vmax.f32 %v7942_v12, 0.0  ;;  %v11883_v14 = vpop.f32.mrf.mxu0  ;;  %v12081_v15 = vpop.f32.mrf.mxu1  ;;  %v17942_v59 = vmax.f32 %v17940_v47, %v17941_v13 }
 0x352   :  { %9114 = vst.msk [vmem:[%s16903_s3 + $0x1e4] sm:$0xf] %vm8992_vm3, %v10884_v58  ;;  %v8136_v7 = vmax.f32 %v7940_v30, 0.0  ;;  %v7943_v22 = vadd.f32 %v16163_v46, %v7740_v33  ;;  %v7738_v1 = vmax.f32 %v5744_v63, %v7329_v18  ;;  %v5749_v52 = vmax.f32 %v17930_v51, %v11883_v14  ;;  %v17943_v58 = vld [vmem:[#allocation220_spill] sm:$0xff]  ;;  %v17944_v30 = vld [vmem:[#allocation221_spill] sm:$0xff] }
 0x353   :  { %v10889_v37 = vpack.c.bf16 %v8138_v6, %v8138_v6  ;;  %v5348_v42 = vpop.f32.mrf.mxu0  ;;  %v7342_v5 = vpop.f32.mrf.mxu1  ;;  %v17945_v33 = vmax.f32 %v17943_v58, %v17944_v30 }
 0x354   :  { %v10887_v35 = vpack.c.bf16 %v8136_v7, %v8136_v7  ;;  %v8139_v36 = vmax.f32 %v7943_v22, 0.0  ;;  %v7941_v3 = vadd.f32 %v16163_v46, %v7738_v1  ;;  %v7743_v4 = vmax.f32 %v5749_v52, %v12081_v15  ;;  %v17946_v22 = vld [vmem:[#allocation222_spill] sm:$0xff]  ;;  %v17947_v1 = vld [vmem:[#allocation223_spill] sm:$0xff] }
 0x355   :  { %9119 = vst.msk [vmem:[%s16903_s3 + $0x1f8] sm:$0xf] %vm8992_vm3, %v10889_v37  ;;  %v5747_v54 = vmax.f32 %v17933_v41, %v5348_v42  ;;  %v11884_v23 = vpop.f32.mrf.mxu0  ;;  %v12082_v20 = vpop.f32.mrf.mxu1  ;;  %v17948_v53 = vmax.f32 %v17946_v22, %v17947_v1 }
 0x356   :  { %9117 = vst.msk [vmem:[%s16903_s3 + $0x1f0] sm:$0xf] %vm8992_vm3, %v10887_v35  ;;  %v10890_v50 = vpack.c.bf16 %v8139_v36, %v8139_v36  ;;  %v8137_v2 = vmax.f32 %v7941_v3, 0.0  ;;  %v7946_v56 = vadd.f32 %v16163_v46, %v7743_v4  ;;  %v5750_v10 = vmax.f32 %v17936_v49, %v11884_v23  ;;  %v17949_v35 = vld [vmem:[#allocation224_spill] sm:$0xff]  ;;  %v17950_v36 = vld [vmem:[#allocation225_spill] sm:$0xff] }
 0x357   :  { %v7741_v45 = vmax.f32 %v5747_v54, %v7342_v5  ;;  %v5351_v21 = vpop.f32.mrf.mxu0  ;;  %v7345_v26 = vpop.f32.mrf.mxu1  ;;  %v17951_v3 = vmax.f32 %v17949_v35, %v17950_v36 }
 0x358   :  { %9120 = vst.msk [vmem:[%s16903_s3 + $0x1fc] sm:$0xf] %vm8992_vm3, %v10890_v50  ;;  %v10888_v43 = vpack.c.bf16 %v8137_v2, %v8137_v2  ;;  %v8142_v24 = vmax.f32 %v7946_v56, 0.0  ;;  %v7744_v25 = vmax.f32 %v5750_v10, %v12082_v20  ;;  %v5748_v8 = vmax.f32 %v17939_v0, %v5351_v21  ;;  %v17952_v50 = vld [vmem:[#allocation226_spill] sm:$0xff]  ;;  %v17953_v2 = vld [vmem:[#allocation227_spill] sm:$0xff] }
 0x359   :  { %v7944_v9 = vadd.f32 %v16163_v46, %v7741_v45  ;;  %v11887_v32 = vpop.f32.mrf.mxu0  ;;  %v12085_v39 = vpop.f32.mrf.mxu1  ;;  %v17954_v56 = vmax.f32 %v17952_v50, %v17953_v2 }
 0x35a   :  { %9118 = vst.msk [vmem:[%s16903_s3 + $0x1f4] sm:$0xf] %vm8992_vm3, %v10888_v43  ;;  %v10893_v34 = vpack.c.bf16 %v8142_v24, %v8142_v24  ;;  %v7947_v27 = vadd.f32 %v16163_v46, %v7744_v25  ;;  %v7742_v28 = vmax.f32 %v5748_v8, %v7345_v26  ;;  %v5753_v16 = vmax.f32 %v17942_v59, %v11887_v32  ;;  %v17955_v43 = vld [vmem:[#allocation228_spill] sm:$0xff]  ;;  %v17956_v24 = vld [vmem:[#allocation229_spill] sm:$0xff] }
 0x35b   :  { %v8140_v17 = vmax.f32 %v7944_v9, 0.0  ;;  %v5364_v29 = vpop.f32.mrf.mxu0  ;;  %v7358_v11 = vpop.f32.mrf.mxu1  ;;  %v17957_v25 = vmax.f32 %v17955_v43, %v17956_v24 }
 0x35c   :  { %9123 = vst.msk [vmem:[%s16903_s3 + $0x208] sm:$0xf] %vm8992_vm3, %v10893_v34  ;;  %v8143_v12 = vmax.f32 %v7947_v27, 0.0  ;;  %v7945_v60 = vadd.f32 %v16163_v46, %v7742_v28  ;;  %v7747_v18 = vmax.f32 %v5753_v16, %v12085_v39  ;;  %v5751_v38 = vmax.f32 %v17945_v33, %v5364_v29  ;;  %v17958_v34 = vld [vmem:[#allocation230_spill] sm:$0xff]  ;;  %v17959_v27 = vld [vmem:[#allocation231_spill] sm:$0xff] }
 0x35d   :  { %v10891_v31 = vpack.c.bf16 %v8140_v17, %v8140_v17  ;;  %v11888_v62 = vpop.f32.mrf.mxu0  ;;  %v12086_v63 = vpop.f32.mrf.mxu1  ;;  %v17960_v28 = vmax.f32 %v17958_v34, %v17959_v27 }
 0x35e   :  { %v10894_v6 = vpack.c.bf16 %v8143_v12, %v8143_v12  ;;  %v8141_v14 = vmax.f32 %v7945_v60, 0.0  ;;  %v7950_v15 = vadd.f32 %v16163_v46, %v7747_v18  ;;  %v7745_v7 = vmax.f32 %v5751_v38, %v7358_v11  ;;  %v17961_v60 = vld [vmem:[#allocation232_spill] sm:$0xff]  ;;  %v17962_v18 = vld [vmem:[#allocation233_spill] sm:$0xff] }
 0x35f   :  { %9121 = vst.msk [vmem:[%s16903_s3 + $0x200] sm:$0xf] %vm8992_vm3, %v10891_v31  ;;  %v5754_v61 = vmax.f32 %v17948_v53, %v11888_v62  ;;  %v5367_v51 = vpop.f32.mrf.mxu0  ;;  %v7361_v52 = vpop.f32.mrf.mxu1  ;;  %v17963_v58 = vmax.f32 %v17961_v60, %v17962_v18 }
 0x360   :  { %9124 = vst.msk [vmem:[%s16903_s3 + $0x20c] sm:$0xf] %vm8992_vm3, %v10894_v6  ;;  %v10892_v37 = vpack.c.bf16 %v8141_v14, %v8141_v14  ;;  %v8146_v42 = vmax.f32 %v7950_v15, 0.0  ;;  %v7948_v5 = vadd.f32 %v16163_v46, %v7745_v7  ;;  %v5752_v4 = vmax.f32 %v17951_v3, %v5367_v51  ;;  %v17964_v6 = vld [vmem:[#allocation234_spill] sm:$0xff]  ;;  %v17965_v14 = vld [vmem:[#allocation235_spill] sm:$0xff] }
 0x361   :  { %v7748_v19 = vmax.f32 %v5754_v61, %v12086_v63  ;;  %v11891_v40 = vpop.f32.mrf.mxu0  ;;  %v12089_v41 = vpop.f32.mrf.mxu1  ;;  %v17966_v15 = vmax.f32 %v17964_v6, %v17965_v14 }
 0x362   :  { %9122 = vst.msk [vmem:[%s16903_s3 + $0x204] sm:$0xf] %vm8992_vm3, %v10892_v37  ;;  %v10897_v54 = vpack.c.bf16 %v8146_v42, %v8146_v42  ;;  %v8144_v23 = vmax.f32 %v7948_v5, 0.0  ;;  %v7746_v20 = vmax.f32 %v5752_v4, %v7361_v52  ;;  %v5757_v57 = vmax.f32 %v17954_v56, %v11891_v40  ;;  %v17967_v37 = vld [vmem:[#allocation236_spill] sm:$0xff]  ;;  %v17968_v42 = vld [vmem:[#allocation237_spill] sm:$0xff] }
 0x363   :  { %v7951_v48 = vadd.f32 %v16163_v46, %v7748_v19  ;;  %v5380_v49 = vpop.f32.mrf.mxu0  ;;  %v7374_v10 = vpop.f32.mrf.mxu1  ;;  %v17969_v5 = vmax.f32 %v17967_v37, %v17968_v42 }
 0x364   :  { %9127 = vst.msk [vmem:[%s16903_s3 + $0x218] sm:$0xf] %vm8992_vm3, %v10897_v54  ;;  %v10895_v45 = vpack.c.bf16 %v8144_v23, %v8144_v23  ;;  %v7949_v21 = vadd.f32 %v16163_v46, %v7746_v20  ;;  %v7751_v26 = vmax.f32 %v5757_v57, %v12089_v41  ;;  %v5755_v44 = vmax.f32 %v17957_v25, %v5380_v49  ;;  %v17970_v54 = vld [vmem:[#allocation238_spill] sm:$0xff]  ;;  %v17971_v23 = vld [vmem:[#allocation239_spill] sm:$0xff] }
 0x365   :  { %v8147_v55 = vmax.f32 %v7951_v48, 0.0  ;;  %v11892_v0 = vpop.f32.mrf.mxu0  ;;  %v12090_v8 = vpop.f32.mrf.mxu1  ;;  %v17972_v20 = vmax.f32 %v17970_v54, %v17971_v23 }
 0x366   :  { %9125 = vst.msk [vmem:[%s16903_s3 + $0x210] sm:$0xf] %vm8992_vm3, %v10895_v45  ;;  %v8145_v9 = vmax.f32 %v7949_v21, 0.0  ;;  %v7954_v32 = vadd.f32 %v16163_v46, %v7751_v26  ;;  %v7749_v39 = vmax.f32 %v5755_v44, %v7374_v10  ;;  %v5758_v47 = vmax.f32 %v17960_v28, %v11892_v0  ;;  %v17973_v45 = vld [vmem:[#allocation240_spill] sm:$0xff]  ;;  %v17974_v21 = vld [vmem:[#allocation241_spill] sm:$0xff] }
 0x367   :  { %v10898_v13 = vpack.c.bf16 %v8147_v55, %v8147_v55  ;;  %v5383_v59 = vpop.f32.mrf.mxu0  ;;  %v7377_v16 = vpop.f32.mrf.mxu1  ;;  %v17975_v26 = vmax.f32 %v17973_v45, %v17974_v21 }
 0x368   :  { %v10896_v17 = vpack.c.bf16 %v8145_v9, %v8145_v9  ;;  %v8150_v29 = vmax.f32 %v7954_v32, 0.0  ;;  %v7952_v11 = vadd.f32 %v16163_v46, %v7749_v39  ;;  %v7752_v12 = vmax.f32 %v5758_v47, %v12090_v8  ;;  %v17976_v32 = vld [vmem:[#allocation242_spill] sm:$0xff]  ;;  %v17977_v39 = vld [vmem:[#allocation243_spill] sm:$0xff] }
 0x369   :  { %9128 = vst.msk [vmem:[%s16903_s3 + $0x21c] sm:$0xf] %vm8992_vm3, %v10898_v13  ;;  %v5756_v30 = vmax.f32 %v17963_v58, %v5383_v59  ;;  %v11895_v33 = vpop.f32.mrf.mxu0  ;;  %v12093_v38 = vpop.f32.mrf.mxu1  ;;  %v17978_v34 = vmax.f32 %v17976_v32, %v17977_v39 }
 0x36a   :  { %9126 = vst.msk [vmem:[%s16903_s3 + $0x214] sm:$0xf] %vm8992_vm3, %v10896_v17  ;;  %v10901_v31 = vpack.c.bf16 %v8150_v29, %v8150_v29  ;;  %v8148_v62 = vmax.f32 %v7952_v11, 0.0  ;;  %v7955_v63 = vadd.f32 %v16163_v46, %v7752_v12  ;;  %v5761_v7 = vmax.f32 %v17966_v15, %v11895_v33  ;;  %v17979_v17 = vld [vmem:[#allocation244_spill] sm:$0xff]  ;;  %v17980_v29 = vld [vmem:[#allocation245_spill] sm:$0xff] }
 0x36b   :  { %v7750_v22 = vmax.f32 %v5756_v30, %v7377_v16  ;;  %v5396_v1 = vpop.f32.mrf.mxu0  ;;  %v7390_v53 = vpop.f32.mrf.mxu1  ;;  %v17981_v11 = vmax.f32 %v17979_v17, %v17980_v29 }
 0x36c   :  { %9131 = vst.msk [vmem:[%s16903_s3 + $0x228] sm:$0xf] %vm8992_vm3, %v10901_v31  ;;  %v10899_v61 = vpack.c.bf16 %v8148_v62, %v8148_v62  ;;  %v8151_v51 = vmax.f32 %v7955_v63, 0.0  ;;  %v7755_v52 = vmax.f32 %v5761_v7, %v12093_v38  ;;  %v5759_v35 = vmax.f32 %v17969_v5, %v5396_v1  ;;  %v17982_v31 = vld [vmem:[#allocation246_spill] sm:$0xff]  ;;  %v17983_v62 = vld [vmem:[#allocation247_spill] sm:$0xff] }
 0x36d   :  { %v7953_v36 = vadd.f32 %v16163_v46, %v7750_v22  ;;  %v11896_v3 = vpop.f32.mrf.mxu0  ;;  %v12094_v4 = vpop.f32.mrf.mxu1  ;;  %v17984_v63 = vmax.f32 %v17982_v31, %v17983_v62 }
 0x36e   :  { %9129 = vst.msk [vmem:[%s16903_s3 + $0x220] sm:$0xf] %vm8992_vm3, %v10899_v61  ;;  %v10902_v19 = vpack.c.bf16 %v8151_v51, %v8151_v51  ;;  %v7958_v40 = vadd.f32 %v16163_v46, %v7755_v52  ;;  %v7753_v41 = vmax.f32 %v5759_v35, %v7390_v53  ;;  %v5762_v50 = vmax.f32 %v17972_v20, %v11896_v3  ;;  %v17985_v61 = vld [vmem:[#allocation248_spill] sm:$0xff]  ;;  %v17986_v51 = vld [vmem:[#allocation249_spill] sm:$0xff] }
 0x36f   :  { %v8149_v2 = vmax.f32 %v7953_v36, 0.0  ;;  %v5399_v56 = vpop.f32.mrf.mxu0  ;;  %v7393_v57 = vpop.f32.mrf.mxu1  ;;  %v17987_v52 = vmax.f32 %v17985_v61, %v17986_v51 }
 0x370   :  { %9132 = vst.msk [vmem:[%s16903_s3 + $0x22c] sm:$0xf] %vm8992_vm3, %v10902_v19  ;;  %v8154_v48 = vmax.f32 %v7958_v40, 0.0  ;;  %v7956_v49 = vadd.f32 %v16163_v46, %v7753_v41  ;;  %v7756_v10 = vmax.f32 %v5762_v50, %v12094_v4  ;;  %v5760_v43 = vmax.f32 %v17975_v26, %v5399_v56  ;;  %v17988_v19 = vld [vmem:[#allocation250_spill] sm:$0xff]  ;;  %v17989_v40 = vld [vmem:[#allocation251_spill] sm:$0xff] }
 0x371   :  { %v10900_v24 = vpack.c.bf16 %v8149_v2, %v8149_v2  ;;  %v11899_v25 = vpop.f32.mrf.mxu0  ;;  %v12097_v44 = vpop.f32.mrf.mxu1  ;;  %v17990_v41 = vmax.f32 %v17988_v19, %v17989_v40 }
 0x372   :  { %v10905_v55 = vpack.c.bf16 %v8154_v48, %v8154_v48  ;;  %v8152_v0 = vmax.f32 %v7956_v49, 0.0  ;;  %v7959_v8 = vadd.f32 %v16163_v46, %v7756_v10  ;;  %v7754_v9 = vmax.f32 %v5760_v43, %v7393_v57  ;;  %v17991_v49 = vld [vmem:[#allocation252_spill] sm:$0xff]  ;;  %v17992_v10 = vld [vmem:[#allocation253_spill] sm:$0xff] }
 0x373   :  { %9130 = vst.msk [vmem:[%s16903_s3 + $0x224] sm:$0xf] %vm8992_vm3, %v10900_v24  ;;  %v5765_v27 = vmax.f32 %v17978_v34, %v11899_v25  ;;  %v5412_v28 = vpop.f32.mrf.mxu0  ;;  %v7406_v47 = vpop.f32.mrf.mxu1  ;;  %v17993_v45 = vmax.f32 %v17991_v49, %v17992_v10 }
 0x374   :  { %9135 = vst.msk [vmem:[%s16903_s3 + $0x238] sm:$0xf] %vm8992_vm3, %v10905_v55  ;;  %v10903_v13 = vpack.c.bf16 %v8152_v0, %v8152_v0  ;;  %v8155_v59 = vmax.f32 %v7959_v8, 0.0  ;;  %v7957_v16 = vadd.f32 %v16163_v46, %v7754_v9  ;;  %v5763_v12 = vmax.f32 %v17981_v11, %v5412_v28  ;;  %v17994_v55 = vld [vmem:[#allocation254_spill] sm:$0xff]  ;;  %v17995_v0 = vld [vmem:[#allocation255_spill] sm:$0xff] }
 0x375   :  { %v7759_v60 = vmax.f32 %v5765_v27, %v12097_v44  ;;  %v11900_v18 = vpop.f32.mrf.mxu0  ;;  %v12098_v58 = vpop.f32.mrf.mxu1  ;;  %v17996_v8 = vmax.f32 %v17994_v55, %v17995_v0 }
 0x376   :  { %9133 = vst.msk [vmem:[%s16903_s3 + $0x230] sm:$0xf] %vm8992_vm3, %v10903_v13  ;;  %v10906_v30 = vpack.c.bf16 %v8155_v59, %v8155_v59  ;;  %v8153_v33 = vmax.f32 %v7957_v16, 0.0  ;;  %v7757_v38 = vmax.f32 %v5763_v12, %v7406_v47  ;;  %v5766_v6 = vmax.f32 %v17984_v63, %v11900_v18  ;;  %v17997_v13 = vld [vmem:[#allocation256_spill] sm:$0xff]  ;;  %v17998_v59 = vld [vmem:[#allocation257_spill] sm:$0xff] }
 0x377   :  { %v7962_v14 = vadd.f32 %v16163_v46, %v7759_v60  ;;  %v5415_v15 = vpop.f32.mrf.mxu0  ;;  %v7409_v7 = vpop.f32.mrf.mxu1  ;;  %v17999_v16 = vmax.f32 %v17997_v13, %v17998_v59 }
 0x378   :  { %9136 = vst.msk [vmem:[%s16903_s3 + $0x23c] sm:$0xf] %vm8992_vm3, %v10906_v30  ;;  %v10904_v22 = vpack.c.bf16 %v8153_v33, %v8153_v33  ;;  %v7960_v1 = vadd.f32 %v16163_v46, %v7757_v38  ;;  %v7760_v53 = vmax.f32 %v5766_v6, %v12098_v58  ;;  %v5764_v37 = vmax.f32 %v17987_v52, %v5415_v15  ;;  %v18000_v30 = vld [vmem:[#allocation258_spill] sm:$0xff]  ;;  %v18001_v33 = vld [vmem:[#allocation259_spill] sm:$0xff] }
 0x379   :  { %v8158_v42 = vmax.f32 %v7962_v14, 0.0  ;;  %v11903_v5 = vpop.f32.mrf.mxu0  ;;  %v12101_v35 = vpop.f32.mrf.mxu1  ;;  %v18002_v38 = vmax.f32 %v18000_v30, %v18001_v33 }
 0x37a   :  { %9134 = vst.msk [vmem:[%s16903_s3 + $0x234] sm:$0xf] %vm8992_vm3, %v10904_v22  ;;  %v8156_v36 = vmax.f32 %v7960_v1, 0.0  ;;  %v7963_v3 = vadd.f32 %v16163_v46, %v7760_v53  ;;  %v7758_v4 = vmax.f32 %v5764_v37, %v7409_v7  ;;  %v5769_v54 = vmax.f32 %v17990_v41, %v11903_v5  ;;  %v18003_v22 = vld [vmem:[#allocation260_spill] sm:$0xff]  ;;  %v18004_v1 = vld [vmem:[#allocation261_spill] sm:$0xff] }
 0x37b   :  { %v10909_v23 = vpack.c.bf16 %v8158_v42, %v8158_v42  ;;  %v5428_v20 = vpop.f32.mrf.mxu0  ;;  %v7422_v50 = vpop.f32.mrf.mxu1  ;;  %v18005_v53 = vmax.f32 %v18003_v22, %v18004_v1 }
 0x37c   :  { %v10907_v2 = vpack.c.bf16 %v8156_v36, %v8156_v36  ;;  %v8159_v56 = vmax.f32 %v7963_v3, 0.0  ;;  %v7961_v57 = vadd.f32 %v16163_v46, %v7758_v4  ;;  %v7763_v48 = vmax.f32 %v5769_v54, %v12101_v35  ;;  %v18006_v3 = vld [vmem:[#allocation262_spill] sm:$0xff]  ;;  %v18007_v4 = vld [vmem:[#allocation263_spill] sm:$0xff] }
 0x37d   :  { %9139 = vst.msk [vmem:[%s16903_s3 + $0x248] sm:$0xf] %vm8992_vm3, %v10909_v23  ;;  %v5767_v21 = vmax.f32 %v17993_v45, %v5428_v20  ;;  %v11904_v26 = vpop.f32.mrf.mxu0  ;;  %v12102_v43 = vpop.f32.mrf.mxu1  ;;  %v18008_v19 = vmax.f32 %v18006_v3, %v18007_v4 }
 0x37e   :  { %9137 = vst.msk [vmem:[%s16903_s3 + $0x240] sm:$0xf] %vm8992_vm3, %v10907_v2  ;;  %v10910_v24 = vpack.c.bf16 %v8159_v56, %v8159_v56  ;;  %v8157_v25 = vmax.f32 %v7961_v57, 0.0  ;;  %v7966_v44 = vadd.f32 %v16163_v46, %v7763_v48  ;;  %v5770_v9 = vmax.f32 %v17996_v8, %v11904_v26  ;;  %v18009_v2 = vld [vmem:[#allocation264_spill] sm:$0xff]  ;;  %v18010_v56 = vld [vmem:[#allocation265_spill] sm:$0xff] }
 0x37f   :  { %v7761_v32 = vmax.f32 %v5767_v21, %v7422_v50  ;;  %v5431_v39 = vpop.f32.mrf.mxu0  ;;  %v7425_v34 = vpop.f32.mrf.mxu1  ;;  %v18011_v57 = vmax.f32 %v18009_v2, %v18010_v56 }
 0x380   :  { %9140 = vst.msk [vmem:[%s16903_s3 + $0x24c] sm:$0xf] %vm8992_vm3, %v10910_v24  ;;  %v10908_v27 = vpack.c.bf16 %v8157_v25, %v8157_v25  ;;  %v8162_v28 = vmax.f32 %v7966_v44, 0.0  ;;  %v7764_v47 = vmax.f32 %v5770_v9, %v12102_v43  ;;  %v5768_v17 = vmax.f32 %v17999_v16, %v5431_v39  ;;  %v18012_v24 = vld [vmem:[#allocation266_spill] sm:$0xff]  ;;  %v18013_v25 = vld [vmem:[#allocation267_spill] sm:$0xff] }
 0x381   :  { %v7964_v29 = vadd.f32 %v16163_v46, %v7761_v32  ;;  %v11907_v11 = vpop.f32.mrf.mxu0  ;;  %v12105_v12 = vpop.f32.mrf.mxu1  ;;  %v18014_v44 = vmax.f32 %v18012_v24, %v18013_v25 }
 0x382   :  { %9138 = vst.msk [vmem:[%s16903_s3 + $0x244] sm:$0xf] %vm8992_vm3, %v10908_v27  ;;  %v10913_v60 = vpack.c.bf16 %v8162_v28, %v8162_v28  ;;  %v7967_v18 = vadd.f32 %v16163_v46, %v7764_v47  ;;  %v7762_v58 = vmax.f32 %v5768_v17, %v7425_v34  ;;  %v5773_v31 = vmax.f32 %v18002_v38, %v11907_v11  ;;  %v18015_v27 = vld [vmem:[#allocation268_spill] sm:$0xff]  ;;  %v18016_v28 = vld [vmem:[#allocation269_spill] sm:$0xff] }
 0x383   :  { %v8160_v62 = vmax.f32 %v7964_v29, 0.0  ;;  %v5444_v63 = vpop.f32.mrf.mxu0  ;;  %v7438_v6 = vpop.f32.mrf.mxu1  ;;  %v18017_v47 = vmax.f32 %v18015_v27, %v18016_v28 }
 0x384   :  { %9143 = vst.msk [vmem:[%s16903_s3 + $0x258] sm:$0xf] %vm8992_vm3, %v10913_v60  ;;  %v8163_v14 = vmax.f32 %v7967_v18, 0.0  ;;  %v7965_v15 = vadd.f32 %v16163_v46, %v7762_v58  ;;  %v7767_v7 = vmax.f32 %v5773_v31, %v12105_v12  ;;  %v5771_v61 = vmax.f32 %v18005_v53, %v5444_v63  ;;  %v18018_v60 = vld [vmem:[#allocation270_spill] sm:$0xff]  ;;  %v18019_v18 = vld [vmem:[#allocation271_spill] sm:$0xff] }
 0x385   :  { %v10911_v51 = vpack.c.bf16 %v8160_v62, %v8160_v62  ;;  %v11908_v52 = vpop.f32.mrf.mxu0  ;;  %v12106_v37 = vpop.f32.mrf.mxu1  ;;  %v18020_v58 = vmax.f32 %v18018_v60, %v18019_v18 }
 0x386   :  { %v10914_v42 = vpack.c.bf16 %v8163_v14, %v8163_v14  ;;  %v8161_v5 = vmax.f32 %v7965_v15, 0.0  ;;  %v7970_v35 = vadd.f32 %v16163_v46, %v7767_v7  ;;  %v7765_v36 = vmax.f32 %v5771_v61, %v7438_v6  ;;  %v18021_v15 = vld [vmem:[#allocation272_spill] sm:$0xff]  ;;  %v18022_v7 = vld [vmem:[#allocation273_spill] sm:$0xff] }
 0x387   :  { %9141 = vst.msk [vmem:[%s16903_s3 + $0x250] sm:$0xf] %vm8992_vm3, %v10911_v51  ;;  %v5774_v40 = vmax.f32 %v18008_v19, %v11908_v52  ;;  %v5447_v41 = vpop.f32.mrf.mxu0  ;;  %v7441_v54 = vpop.f32.mrf.mxu1  ;;  %v18023_v22 = vmax.f32 %v18021_v15, %v18022_v7 }
 0x388   :  { %9144 = vst.msk [vmem:[%s16903_s3 + $0x25c] sm:$0xf] %vm8992_vm3, %v10914_v42  ;;  %v10912_v23 = vpack.c.bf16 %v8161_v5, %v8161_v5  ;;  %v8166_v20 = vmax.f32 %v7970_v35, 0.0  ;;  %v7968_v50 = vadd.f32 %v16163_v46, %v7765_v36  ;;  %v5772_v48 = vmax.f32 %v18011_v57, %v5447_v41  ;;  %v18024_v42 = vld [vmem:[#allocation274_spill] sm:$0xff]  ;;  %v18025_v5 = vld [vmem:[#allocation275_spill] sm:$0xff] }
 0x389   :  { %v7768_v49 = vmax.f32 %v5774_v40, %v12106_v37  ;;  %v11911_v10 = vpop.f32.mrf.mxu0  ;;  %v12109_v45 = vpop.f32.mrf.mxu1  ;;  %v18026_v35 = vmax.f32 %v18024_v42, %v18025_v5 }
 0x38a   :  { %9142 = vst.msk [vmem:[%s16903_s3 + $0x254] sm:$0xf] %vm8992_vm3, %v10912_v23  ;;  %v10917_v21 = vpack.c.bf16 %v8166_v20, %v8166_v20  ;;  %v8164_v26 = vmax.f32 %v7968_v50, 0.0  ;;  %v7766_v43 = vmax.f32 %v5772_v48, %v7441_v54  ;;  %v5777_v55 = vmax.f32 %v18014_v44, %v11911_v10  ;;  %v18027_v23 = vld [vmem:[#allocation276_spill] sm:$0xff]  ;;  %v18028_v20 = vld [vmem:[#allocation277_spill] sm:$0xff] }
 0x38b   :  { %v7971_v0 = vadd.f32 %v16163_v46, %v7768_v49  ;;  %v5460_v8 = vpop.f32.mrf.mxu0  ;;  %v7454_v9 = vpop.f32.mrf.mxu1  ;;  %v18029_v50 = vmax.f32 %v18027_v23, %v18028_v20 }
 0x38c   :  { %9147 = vst.msk [vmem:[%s16903_s3 + $0x268] sm:$0xf] %vm8992_vm3, %v10917_v21  ;;  %v10915_v32 = vpack.c.bf16 %v8164_v26, %v8164_v26  ;;  %v7969_v39 = vadd.f32 %v16163_v46, %v7766_v43  ;;  %v7771_v34 = vmax.f32 %v5777_v55, %v12109_v45  ;;  %v5775_v13 = vmax.f32 %v18017_v47, %v5460_v8  ;;  %v18030_v21 = vld [vmem:[#allocation278_spill] sm:$0xff]  ;;  %v18031_v26 = vld [vmem:[#allocation279_spill] sm:$0xff] }
 0x38d   :  { %v8167_v59 = vmax.f32 %v7971_v0, 0.0  ;;  %v11912_v16 = vpop.f32.mrf.mxu0  ;;  %v12110_v17 = vpop.f32.mrf.mxu1  ;;  %v18032_v43 = vmax.f32 %v18030_v21, %v18031_v26 }
 0x38e   :  { %9145 = vst.msk [vmem:[%s16903_s3 + $0x260] sm:$0xf] %vm8992_vm3, %v10915_v32  ;;  %v8165_v29 = vmax.f32 %v7969_v39, 0.0  ;;  %v7974_v11 = vadd.f32 %v16163_v46, %v7771_v34  ;;  %v7769_v12 = vmax.f32 %v5775_v13, %v7454_v9  ;;  %v5778_v30 = vmax.f32 %v18020_v58, %v11912_v16  ;;  %v18033_v32 = vld [vmem:[#allocation280_spill] sm:$0xff]  ;;  %v18034_v39 = vld [vmem:[#allocation281_spill] sm:$0xff] }
 0x38f   :  { %v10918_v33 = vpack.c.bf16 %v8167_v59, %v8167_v59  ;;  %v5463_v38 = vpop.f32.mrf.mxu0  ;;  %v7457_v31 = vpop.f32.mrf.mxu1  ;;  %v18035_v34 = vmax.f32 %v18033_v32, %v18034_v39 }
 0x390   :  { %v10916_v62 = vpack.c.bf16 %v8165_v29, %v8165_v29  ;;  %v8170_v63 = vmax.f32 %v7974_v11, 0.0  ;;  %v7972_v6 = vadd.f32 %v16163_v46, %v7769_v12  ;;  %v7772_v14 = vmax.f32 %v5778_v30, %v12110_v17  ;;  %v18036_v11 = vld [vmem:[#allocation282_spill] sm:$0xff]  ;;  %v18037_v12 = vld [vmem:[#allocation283_spill] sm:$0xff] }
 0x391   :  { %9148 = vst.msk [vmem:[%s16903_s3 + $0x26c] sm:$0xf] %vm8992_vm3, %v10918_v33  ;;  %v5776_v1 = vmax.f32 %v18023_v22, %v5463_v38  ;;  %v11915_v53 = vpop.f32.mrf.mxu0  ;;  %v12113_v61 = vpop.f32.mrf.mxu1  ;;  %v18038_v60 = vmax.f32 %v18036_v11, %v18037_v12 }
 0x392   :  { %9146 = vst.msk [vmem:[%s16903_s3 + $0x264] sm:$0xf] %vm8992_vm3, %v10916_v62  ;;  %v10921_v51 = vpack.c.bf16 %v8170_v63, %v8170_v63  ;;  %v8168_v52 = vmax.f32 %v7972_v6, 0.0  ;;  %v7975_v37 = vadd.f32 %v16163_v46, %v7772_v14  ;;  %v5781_v36 = vmax.f32 %v18026_v35, %v11915_v53  ;;  %v18039_v62 = vld [vmem:[#allocation284_spill] sm:$0xff]  ;;  %v18040_v63 = vld [vmem:[#allocation285_spill] sm:$0xff] }
 0x393   :  { %v7770_v3 = vmax.f32 %v5776_v1, %v7457_v31  ;;  %v5476_v4 = vpop.f32.mrf.mxu0  ;;  %v7470_v19 = vpop.f32.mrf.mxu1  ;;  %v18041_v6 = vmax.f32 %v18039_v62, %v18040_v63 }
 0x394   :  { %9151 = vst.msk [vmem:[%s16903_s3 + $0x278] sm:$0xf] %vm8992_vm3, %v10921_v51  ;;  %v10919_v40 = vpack.c.bf16 %v8168_v52, %v8168_v52  ;;  %v8171_v41 = vmax.f32 %v7975_v37, 0.0  ;;  %v7775_v54 = vmax.f32 %v5781_v36, %v12113_v61  ;;  %v5779_v2 = vmax.f32 %v18029_v50, %v5476_v4  ;;  %v18042_v51 = vld [vmem:[#allocation286_spill] sm:$0xff]  ;;  %v18043_v52 = vld [vmem:[#allocation287_spill] sm:$0xff] }
 0x395   :  { %v7973_v56 = vadd.f32 %v16163_v46, %v7770_v3  ;;  %v11916_v57 = vpop.f32.mrf.mxu0  ;;  %v12114_v48 = vpop.f32.mrf.mxu1  ;;  %v18044_v37 = vmax.f32 %v18042_v51, %v18043_v52 }
 0x396   :  { %9149 = vst.msk [vmem:[%s16903_s3 + $0x270] sm:$0xf] %vm8992_vm3, %v10919_v40  ;;  %v10922_v49 = vpack.c.bf16 %v8171_v41, %v8171_v41  ;;  %v7978_v10 = vadd.f32 %v16163_v46, %v7775_v54  ;;  %v7773_v45 = vmax.f32 %v5779_v2, %v7470_v19  ;;  %v5782_v24 = vmax.f32 %v18032_v43, %v11916_v57  ;;  %v18045_v40 = vld [vmem:[#allocation288_spill] sm:$0xff]  ;;  %v18046_v41 = vld [vmem:[#allocation289_spill] sm:$0xff] }
 0x397   :  { %v8169_v25 = vmax.f32 %v7973_v56, 0.0  ;;  %v5479_v44 = vpop.f32.mrf.mxu0  ;;  %v7473_v55 = vpop.f32.mrf.mxu1  ;;  %v18047_v54 = vmax.f32 %v18045_v40, %v18046_v41 }
 0x398   :  { %9152 = vst.msk [vmem:[%s16903_s3 + $0x27c] sm:$0xf] %vm8992_vm3, %v10922_v49  ;;  %v8174_v0 = vmax.f32 %v7978_v10, 0.0  ;;  %v7976_v8 = vadd.f32 %v16163_v46, %v7773_v45  ;;  %v7776_v9 = vmax.f32 %v5782_v24, %v12114_v48  ;;  %v5780_v27 = vmax.f32 %v18035_v34, %v5479_v44  ;;  %v18048_v49 = vld [vmem:[#allocation290_spill] sm:$0xff]  ;;  %v18049_v10 = vld [vmem:[#allocation291_spill] sm:$0xff] }
 0x399   :  { %v10920_v28 = vpack.c.bf16 %v8169_v25, %v8169_v25  ;;  %v11919_v47 = vpop.f32.mrf.mxu0  ;;  %v12117_v13 = vpop.f32.mrf.mxu1  ;;  %v18050_v45 = vmax.f32 %v18048_v49, %v18049_v10 }
 0x39a   :  { %v10925_v59 = vpack.c.bf16 %v8174_v0, %v8174_v0  ;;  %v8172_v16 = vmax.f32 %v7976_v8, 0.0  ;;  %v7979_v17 = vadd.f32 %v16163_v46, %v7776_v9  ;;  %v7774_v29 = vmax.f32 %v5780_v27, %v7473_v55  ;;  %v18051_v8 = vld [vmem:[#allocation292_spill] sm:$0xff]  ;;  %v18052_v9 = vld [vmem:[#allocation293_spill] sm:$0xff] }
 0x39b   :  { %9150 = vst.msk [vmem:[%s16903_s3 + $0x274] sm:$0xf] %vm8992_vm3, %v10920_v28  ;;  %v5785_v18 = vmax.f32 %v18038_v60, %v11919_v47  ;;  %v5492_v58 = vpop.f32.mrf.mxu0  ;;  %v7486_v30 = vpop.f32.mrf.mxu1  ;;  %v18053_v32 = vmax.f32 %v18051_v8, %v18052_v9 }
 0x39c   :  { %9155 = vst.msk [vmem:[%s16903_s3 + $0x288] sm:$0xf] %vm8992_vm3, %v10925_v59  ;;  %v10923_v33 = vpack.c.bf16 %v8172_v16, %v8172_v16  ;;  %v8175_v38 = vmax.f32 %v7979_v17, 0.0  ;;  %v7977_v31 = vadd.f32 %v16163_v46, %v7774_v29  ;;  %v5783_v14 = vmax.f32 %v18041_v6, %v5492_v58  ;;  %v18054_v59 = vld [vmem:[#allocation294_spill] sm:$0xff]  ;;  %v18055_v16 = vld [vmem:[#allocation295_spill] sm:$0xff] }
 0x39d   :  { %v7779_v15 = vmax.f32 %v5785_v18, %v12117_v13  ;;  %v11920_v7 = vpop.f32.mrf.mxu0  ;;  %v12118_v22 = vpop.f32.mrf.mxu1  ;;  %v18056_v17 = vmax.f32 %v18054_v59, %v18055_v16 }
 0x39e   :  { %9153 = vst.msk [vmem:[%s16903_s3 + $0x280] sm:$0xf] %vm8992_vm3, %v10923_v33  ;;  %v10926_v1 = vpack.c.bf16 %v8175_v38, %v8175_v38  ;;  %v8173_v53 = vmax.f32 %v7977_v31, 0.0  ;;  %v7777_v61 = vmax.f32 %v5783_v14, %v7486_v30  ;;  %v5786_v42 = vmax.f32 %v18044_v37, %v11920_v7  ;;  %v18057_v33 = vld [vmem:[#allocation296_spill] sm:$0xff]  ;;  %v18058_v38 = vld [vmem:[#allocation297_spill] sm:$0xff] }
 0x39f   :  { %v7982_v5 = vadd.f32 %v16163_v46, %v7779_v15  ;;  %v5495_v35 = vpop.f32.mrf.mxu0  ;;  %v7489_v36 = vpop.f32.mrf.mxu1  ;;  %v18059_v31 = vmax.f32 %v18057_v33, %v18058_v38 }
 0x3a0   :  { %9156 = vst.msk [vmem:[%s16903_s3 + $0x28c] sm:$0xf] %vm8992_vm3, %v10926_v1  ;;  %v10924_v3 = vpack.c.bf16 %v8173_v53, %v8173_v53  ;;  %v7980_v4 = vadd.f32 %v16163_v46, %v7777_v61  ;;  %v7780_v19 = vmax.f32 %v5786_v42, %v12118_v22  ;;  %v5784_v23 = vmax.f32 %v18047_v54, %v5495_v35  ;;  %v18060_v1 = vld [vmem:[#allocation298_spill] sm:$0xff]  ;;  %v18061_v53 = vld [vmem:[#allocation299_spill] sm:$0xff] }
 0x3a1   :  { %v8178_v20 = vmax.f32 %v7982_v5, 0.0  ;;  %v11923_v50 = vpop.f32.mrf.mxu0  ;;  %v12121_v2 = vpop.f32.mrf.mxu1  ;;  %v18062_v61 = vmax.f32 %v18060_v1, %v18061_v53 }
 0x3a2   :  { %9154 = vst.msk [vmem:[%s16903_s3 + $0x284] sm:$0xf] %vm8992_vm3, %v10924_v3  ;;  %v8176_v56 = vmax.f32 %v7980_v4, 0.0  ;;  %v7983_v57 = vadd.f32 %v16163_v46, %v7780_v19  ;;  %v7778_v48 = vmax.f32 %v5784_v23, %v7489_v36  ;;  %v5789_v21 = vmax.f32 %v18050_v45, %v11923_v50  ;;  %v18063_v3 = vld [vmem:[#allocation300_spill] sm:$0xff]  ;;  %v18064_v4 = vld [vmem:[#allocation301_spill] sm:$0xff] }
 0x3a3   :  { %v10929_v26 = vpack.c.bf16 %v8178_v20, %v8178_v20  ;;  %v5508_v43 = vpop.f32.mrf.mxu0  ;;  %v7502_v24 = vpop.f32.mrf.mxu1  ;;  %v18065_v19 = vmax.f32 %v18063_v3, %v18064_v4 }
 0x3a4   :  { %v10927_v25 = vpack.c.bf16 %v8176_v56, %v8176_v56  ;;  %v8179_v44 = vmax.f32 %v7983_v57, 0.0  ;;  %v7981_v55 = vadd.f32 %v16163_v46, %v7778_v48  ;;  %v7783_v0 = vmax.f32 %v5789_v21, %v12121_v2  ;;  %v18066_v57 = vld [vmem:[#allocation302_spill] sm:$0xff]  ;;  %v18067_v48 = vld [vmem:[#allocation303_spill] sm:$0xff] }
 0x3a5   :  { %9159 = vst.msk [vmem:[%s16903_s3 + $0x298] sm:$0xf] %vm8992_vm3, %v10929_v26  ;;  %v5787_v39 = vmax.f32 %v18053_v32, %v5508_v43  ;;  %v11924_v34 = vpop.f32.mrf.mxu0  ;;  %v12122_v27 = vpop.f32.mrf.mxu1  ;;  %v18068_v49 = vmax.f32 %v18066_v57, %v18067_v48 }
 0x3a6   :  { %9157 = vst.msk [vmem:[%s16903_s3 + $0x290] sm:$0xf] %vm8992_vm3, %v10927_v25  ;;  %v10930_v28 = vpack.c.bf16 %v8179_v44, %v8179_v44  ;;  %v8177_v47 = vmax.f32 %v7981_v55, 0.0  ;;  %v7986_v13 = vadd.f32 %v16163_v46, %v7783_v0  ;;  %v5790_v29 = vmax.f32 %v18056_v17, %v11924_v34  ;;  %v16683_v46 = vld [vmem:[%s16902_s2] ss:$0 sm:$0xff]  ;;  %v18069_v25 = vld [vmem:[#allocation304_spill] sm:$0xff] }
 0x3a7   :  { %v7781_v11 = vmax.f32 %v5787_v39, %v7502_v24  ;;  %v5511_v12 = vpop.f32.mrf.mxu0  ;;  %v7505_v60 = vpop.f32.mrf.mxu1  ;;  %v18070_v44 = vld [vmem:[#allocation305_spill] sm:$0xff] }
 0x3a8   :  { %9160 = vst.msk [vmem:[%s16903_s3 + $0x29c] sm:$0xf] %vm8992_vm3, %v10930_v28  ;;  %v10928_v18 = vpack.c.bf16 %v8177_v47, %v8177_v47  ;;  %v8182_v58 = vmax.f32 %v7986_v13, 0.0  ;;  %v7784_v30 = vmax.f32 %v5790_v29, %v12122_v27  ;;  %v5788_v62 = vmax.f32 %v18059_v31, %v5511_v12  ;;  %v18072_v28 = vld [vmem:[#allocation306_spill] sm:$0xff]  ;;  %v18073_v47 = vld [vmem:[#allocation307_spill] sm:$0xff] }
 0x3a9   :  { %v7984_v63 = vadd.f32 %v16683_v46, %v7781_v11  ;;  %v11927_v6 = vpop.f32.mrf.mxu0  ;;  %v12125_v14 = vpop.f32.mrf.mxu1  ;;  %v18071_v55 = vmax.f32 %v18069_v25, %v18070_v44  ;;  %v18074_v13 = vmax.f32 %v18072_v28, %v18073_v47 }
 0x3aa   :  { %9158 = vst.msk [vmem:[%s16903_s3 + $0x294] sm:$0xf] %vm8992_vm3, %v10928_v18  ;;  %v10933_v15 = vpack.c.bf16 %v8182_v58, %v8182_v58  ;;  %v7987_v7 = vadd.f32 %v16683_v46, %v7784_v30  ;;  %v7782_v22 = vmax.f32 %v5788_v62, %v7505_v60  ;;  %v5793_v51 = vmax.f32 %v18062_v61, %v11927_v6  ;;  %v18075_v18 = vld [vmem:[#allocation308_spill] sm:$0xff]  ;;  %v18076_v58 = vld [vmem:[#allocation309_spill] sm:$0xff] }
 0x3ab   :  { %v8180_v52 = vmax.f32 %v7984_v63, 0.0  ;;  %v5524_v37 = vpop.f32.mrf.mxu0  ;;  %v7518_v42 = vpop.f32.mrf.mxu1  ;;  %v18077_v30 = vmax.f32 %v18075_v18, %v18076_v58 }
 0x3ac   :  { %9163 = vst.msk [vmem:[%s16903_s3 + $0x2a8] sm:$0xf] %vm8992_vm3, %v10933_v15  ;;  %v8183_v5 = vmax.f32 %v7987_v7, 0.0  ;;  %v7985_v35 = vadd.f32 %v16683_v46, %v7782_v22  ;;  %v7787_v36 = vmax.f32 %v5793_v51, %v12125_v14  ;;  %v5791_v40 = vmax.f32 %v18065_v19, %v5524_v37  ;;  %v18078_v15 = vld [vmem:[#allocation310_spill] sm:$0xff]  ;;  %v18079_v7 = vld [vmem:[#allocation311_spill] sm:$0xff] }
 0x3ad   :  { %v10931_v41 = vpack.c.bf16 %v8180_v52, %v8180_v52  ;;  %v11928_v54 = vpop.f32.mrf.mxu0  ;;  %v12126_v23 = vpop.f32.mrf.mxu1  ;;  %v18080_v22 = vmax.f32 %v18078_v15, %v18079_v7 }
 0x3ae   :  { %v10934_v20 = vpack.c.bf16 %v8183_v5, %v8183_v5  ;;  %v8181_v50 = vmax.f32 %v7985_v35, 0.0  ;;  %v7990_v2 = vadd.f32 %v16683_v46, %v7787_v36  ;;  %v7785_v56 = vmax.f32 %v5791_v40, %v7518_v42  ;;  %v18081_v35 = vld [vmem:[#allocation312_spill] sm:$0xff]  ;;  %v18082_v36 = vld [vmem:[#allocation313_spill] sm:$0xff] }
 0x3af   :  { %9161 = vst.msk [vmem:[%s16903_s3 + $0x2a0] sm:$0xf] %vm8992_vm3, %v10931_v41  ;;  %v5794_v10 = vmax.f32 %v18068_v49, %v11928_v54  ;;  %v5527_v45 = vpop.f32.mrf.mxu0  ;;  %v7521_v21 = vpop.f32.mrf.mxu1  ;;  %v18083_v3 = vmax.f32 %v18081_v35, %v18082_v36 }
 0x3b0   :  { %9164 = vst.msk [vmem:[%s16903_s3 + $0x2ac] sm:$0xf] %vm8992_vm3, %v10934_v20  ;;  %v10932_v26 = vpack.c.bf16 %v8181_v50, %v8181_v50  ;;  %v8186_v43 = vmax.f32 %v7990_v2, 0.0  ;;  %v7988_v24 = vadd.f32 %v16683_v46, %v7785_v56  ;;  %v5792_v0 = vmax.f32 %v18071_v55, %v5527_v45  ;;  %v18084_v20 = vld [vmem:[#allocation314_spill] sm:$0xff]  ;;  %v18085_v50 = vld [vmem:[#allocation315_spill] sm:$0xff] }
 0x3b1   :  { %v7788_v8 = vmax.f32 %v5794_v10, %v12126_v23  ;;  %v11931_v9 = vpop.f32.mrf.mxu0  ;;  %v12129_v32 = vpop.f32.mrf.mxu1  ;;  %v18086_v2 = vmax.f32 %v18084_v20, %v18085_v50 }
 0x3b2   :  { %9162 = vst.msk [vmem:[%s16903_s3 + $0x2a4] sm:$0xf] %vm8992_vm3, %v10932_v26  ;;  %v10937_v39 = vpack.c.bf16 %v8186_v43, %v8186_v43  ;;  %v8184_v34 = vmax.f32 %v7988_v24, 0.0  ;;  %v7786_v27 = vmax.f32 %v5792_v0, %v7521_v21  ;;  %v5797_v59 = vmax.f32 %v18074_v13, %v11931_v9  ;;  %v18087_v26 = vld [vmem:[#allocation316_spill] sm:$0xff]  ;;  %v18088_v43 = vld [vmem:[#allocation317_spill] sm:$0xff] }
 0x3b3   :  { %v7991_v16 = vadd.f32 %v16683_v46, %v7788_v8  ;;  %v5540_v17 = vpop.f32.mrf.mxu0  ;;  %v7534_v29 = vpop.f32.mrf.mxu1  ;;  %v18089_v24 = vmax.f32 %v18087_v26, %v18088_v43 }
 0x3b4   :  { %9167 = vst.msk [vmem:[%s16903_s3 + $0x2b8] sm:$0xf] %vm8992_vm3, %v10937_v39  ;;  %v10935_v11 = vpack.c.bf16 %v8184_v34, %v8184_v34  ;;  %v7989_v12 = vadd.f32 %v16683_v46, %v7786_v27  ;;  %v7791_v60 = vmax.f32 %v5797_v59, %v12129_v32  ;;  %v5795_v33 = vmax.f32 %v18077_v30, %v5540_v17  ;;  %v18090_v39 = vld [vmem:[#allocation318_spill] sm:$0xff]  ;;  %v18091_v34 = vld [vmem:[#allocation319_spill] sm:$0xff] }
 0x3b5   :  { %v8187_v38 = vmax.f32 %v7991_v16, 0.0  ;;  %v11932_v31 = vpop.f32.mrf.mxu0  ;;  %v12130_v62 = vpop.f32.mrf.mxu1  ;;  %v18092_v27 = vmax.f32 %v18090_v39, %v18091_v34 }
 0x3b6   :  { %9165 = vst.msk [vmem:[%s16903_s3 + $0x2b0] sm:$0xf] %vm8992_vm3, %v10935_v11  ;;  %v8185_v63 = vmax.f32 %v7989_v12, 0.0  ;;  %v7994_v6 = vadd.f32 %v16683_v46, %v7791_v60  ;;  %v7789_v14 = vmax.f32 %v5795_v33, %v7534_v29  ;;  %v5798_v1 = vmax.f32 %v18080_v22, %v11932_v31  ;;  %v18093_v11 = vld [vmem:[#allocation320_spill] sm:$0xff]  ;;  %v18094_v12 = vld [vmem:[#allocation321_spill] sm:$0xff] }
 0x3b7   :  { %v10938_v53 = vpack.c.bf16 %v8187_v38, %v8187_v38  ;;  %v5543_v61 = vpop.f32.mrf.mxu0  ;;  %v7537_v51 = vpop.f32.mrf.mxu1  ;;  %v18095_v60 = vmax.f32 %v18093_v11, %v18094_v12 }
 0x3b8   :  { %v10936_v52 = vpack.c.bf16 %v8185_v63, %v8185_v63  ;;  %v8190_v37 = vmax.f32 %v7994_v6, 0.0  ;;  %v7992_v42 = vadd.f32 %v16683_v46, %v7789_v14  ;;  %v7792_v5 = vmax.f32 %v5798_v1, %v12130_v62  ;;  %v18096_v6 = vld [vmem:[#allocation322_spill] sm:$0xff]  ;;  %v18097_v14 = vld [vmem:[#allocation323_spill] sm:$0xff] }
 0x3b9   :  { %9168 = vst.msk [vmem:[%s16903_s3 + $0x2bc] sm:$0xf] %vm8992_vm3, %v10938_v53  ;;  %v5796_v4 = vmax.f32 %v18083_v3, %v5543_v61  ;;  %v11935_v19 = vpop.f32.mrf.mxu0  ;;  %v12133_v40 = vpop.f32.mrf.mxu1  ;;  %v18098_v15 = vmax.f32 %v18096_v6, %v18097_v14 }
 0x3ba   :  { %9166 = vst.msk [vmem:[%s16903_s3 + $0x2b4] sm:$0xf] %vm8992_vm3, %v10936_v52  ;;  %v10941_v41 = vpack.c.bf16 %v8190_v37, %v8190_v37  ;;  %v8188_v54 = vmax.f32 %v7992_v42, 0.0  ;;  %v7995_v23 = vadd.f32 %v16683_v46, %v7792_v5  ;;  %v5801_v56 = vmax.f32 %v18086_v2, %v11935_v19  ;;  %v18099_v52 = vld [vmem:[#allocation324_spill] sm:$0xff]  ;;  %v18100_v37 = vld [vmem:[#allocation325_spill] sm:$0xff] }
 0x3bb   :  { %v7790_v57 = vmax.f32 %v5796_v4, %v7537_v51  ;;  %v5556_v48 = vpop.f32.mrf.mxu0  ;;  %v7550_v49 = vpop.f32.mrf.mxu1  ;;  %v18101_v42 = vmax.f32 %v18099_v52, %v18100_v37 }
 0x3bc   :  { %9171 = vst.msk [vmem:[%s16903_s3 + $0x2c8] sm:$0xf] %vm8992_vm3, %v10941_v41  ;;  %v10939_v10 = vpack.c.bf16 %v8188_v54, %v8188_v54  ;;  %v8191_v45 = vmax.f32 %v7995_v23, 0.0  ;;  %v7795_v21 = vmax.f32 %v5801_v56, %v12133_v40  ;;  %v5799_v25 = vmax.f32 %v18089_v24, %v5556_v48  ;;  %v18102_v41 = vld [vmem:[#allocation326_spill] sm:$0xff]  ;;  %v18103_v54 = vld [vmem:[#allocation327_spill] sm:$0xff] }
 0x3bd   :  { %v7993_v44 = vadd.f32 %v16683_v46, %v7790_v57  ;;  %v11936_v55 = vpop.f32.mrf.mxu0  ;;  %v12134_v0 = vpop.f32.mrf.mxu1  ;;  %v18104_v23 = vmax.f32 %v18102_v41, %v18103_v54 }
 0x3be   :  { %9169 = vst.msk [vmem:[%s16903_s3 + $0x2c0] sm:$0xf] %vm8992_vm3, %v10939_v10  ;;  %v10942_v8 = vpack.c.bf16 %v8191_v45, %v8191_v45  ;;  %v7998_v9 = vadd.f32 %v16683_v46, %v7795_v21  ;;  %v7793_v32 = vmax.f32 %v5799_v25, %v7550_v49  ;;  %v5802_v28 = vmax.f32 %v18092_v27, %v11936_v55  ;;  %v18105_v10 = vld [vmem:[#allocation328_spill] sm:$0xff]  ;;  %v18106_v45 = vld [vmem:[#allocation329_spill] sm:$0xff] }
 0x3bf   :  { %v8189_v47 = vmax.f32 %v7993_v44, 0.0  ;;  %v5559_v13 = vpop.f32.mrf.mxu0  ;;  %v7553_v59 = vpop.f32.mrf.mxu1  ;;  %v18107_v21 = vmax.f32 %v18105_v10, %v18106_v45 }
 0x3c0   :  { %9172 = vst.msk [vmem:[%s16903_s3 + $0x2cc] sm:$0xf] %vm8992_vm3, %v10942_v8  ;;  %v8194_v16 = vmax.f32 %v7998_v9, 0.0  ;;  %v7996_v17 = vadd.f32 %v16683_v46, %v7793_v32  ;;  %v7796_v29 = vmax.f32 %v5802_v28, %v12134_v0  ;;  %v5800_v18 = vmax.f32 %v18095_v60, %v5559_v13  ;;  %v18108_v8 = vld [vmem:[#allocation330_spill] sm:$0xff]  ;;  %v18109_v9 = vld [vmem:[#allocation331_spill] sm:$0xff] }
 0x3c1   :  { %v10940_v58 = vpack.c.bf16 %v8189_v47, %v8189_v47  ;;  %v11939_v30 = vpop.f32.mrf.mxu0  ;;  %v12137_v33 = vpop.f32.mrf.mxu1  ;;  %v18110_v32 = vmax.f32 %v18108_v8, %v18109_v9 }
 0x3c2   :  { %v10945_v38 = vpack.c.bf16 %v8194_v16, %v8194_v16  ;;  %v8192_v31 = vmax.f32 %v7996_v17, 0.0  ;;  %v7999_v62 = vadd.f32 %v16683_v46, %v7796_v29  ;;  %v7794_v63 = vmax.f32 %v5800_v18, %v7553_v59  ;;  %v18111_v17 = vld [vmem:[#allocation332_spill] sm:$0xff]  ;;  %v18112_v29 = vld [vmem:[#allocation333_spill] sm:$0xff] }
 0x3c3   :  { %9170 = vst.msk [vmem:[%s16903_s3 + $0x2c4] sm:$0xf] %vm8992_vm3, %v10940_v58  ;;  %v5805_v7 = vmax.f32 %v18098_v15, %v11939_v30  ;;  %v5572_v22 = vpop.f32.mrf.mxu0  ;;  %v7566_v1 = vpop.f32.mrf.mxu1  ;;  %v18113_v11 = vmax.f32 %v18111_v17, %v18112_v29 }
 0x3c4   :  { %9175 = vst.msk [vmem:[%s16903_s3 + $0x2d8] sm:$0xf] %vm8992_vm3, %v10945_v38  ;;  %v10943_v53 = vpack.c.bf16 %v8192_v31, %v8192_v31  ;;  %v8195_v61 = vmax.f32 %v7999_v62, 0.0  ;;  %v7997_v51 = vadd.f32 %v16683_v46, %v7794_v63  ;;  %v5803_v5 = vmax.f32 %v18101_v42, %v5572_v22  ;;  %v18114_v38 = vld [vmem:[#allocation334_spill] sm:$0xff]  ;;  %v18115_v31 = vld [vmem:[#allocation335_spill] sm:$0xff] }
 0x3c5   :  { %v7799_v35 = vmax.f32 %v5805_v7, %v12137_v33  ;;  %v11940_v36 = vpop.f32.mrf.mxu0  ;;  %v12138_v3 = vpop.f32.mrf.mxu1  ;;  %v18116_v62 = vmax.f32 %v18114_v38, %v18115_v31 }
 0x3c6   :  { %9173 = vst.msk [vmem:[%s16903_s3 + $0x2d0] sm:$0xf] %vm8992_vm3, %v10943_v53  ;;  %v10946_v4 = vpack.c.bf16 %v8195_v61, %v8195_v61  ;;  %v8193_v19 = vmax.f32 %v7997_v51, 0.0  ;;  %v7797_v40 = vmax.f32 %v5803_v5, %v7566_v1  ;;  %v5806_v20 = vmax.f32 %v18104_v23, %v11940_v36  ;;  %v18117_v53 = vld [vmem:[#allocation336_spill] sm:$0xff]  ;;  %v18118_v61 = vld [vmem:[#allocation337_spill] sm:$0xff] }
 0x3c7   :  { %v8002_v50 = vadd.f32 %v16683_v46, %v7799_v35  ;;  %v5575_v2 = vpop.f32.mrf.mxu0  ;;  %v7569_v56 = vpop.f32.mrf.mxu1  ;;  %v18119_v51 = vmax.f32 %v18117_v53, %v18118_v61 }
 0x3c8   :  { %9176 = vst.msk [vmem:[%s16903_s3 + $0x2dc] sm:$0xf] %vm8992_vm3, %v10946_v4  ;;  %v10944_v57 = vpack.c.bf16 %v8193_v19, %v8193_v19  ;;  %v8000_v48 = vadd.f32 %v16683_v46, %v7797_v40  ;;  %v7800_v49 = vmax.f32 %v5806_v20, %v12138_v3  ;;  %v5804_v26 = vmax.f32 %v18107_v21, %v5575_v2  ;;  %v18120_v4 = vld [vmem:[#allocation338_spill] sm:$0xff]  ;;  %v18121_v19 = vld [vmem:[#allocation339_spill] sm:$0xff] }
 0x3c9   :  { %v8198_v43 = vmax.f32 %v8002_v50, 0.0  ;;  %v11943_v24 = vpop.f32.mrf.mxu0  ;;  %v12141_v25 = vpop.f32.mrf.mxu1  ;;  %v18122_v40 = vmax.f32 %v18120_v4, %v18121_v19 }
 0x3ca   :  { %9174 = vst.msk [vmem:[%s16903_s3 + $0x2d4] sm:$0xf] %vm8992_vm3, %v10944_v57  ;;  %v8196_v44 = vmax.f32 %v8000_v48, 0.0  ;;  %v8003_v55 = vadd.f32 %v16683_v46, %v7800_v49  ;;  %v7798_v0 = vmax.f32 %v5804_v26, %v7569_v56  ;;  %v5809_v39 = vmax.f32 %v18110_v32, %v11943_v24  ;;  %v18123_v57 = vld [vmem:[#allocation340_spill] sm:$0xff]  ;;  %v18124_v48 = vld [vmem:[#allocation341_spill] sm:$0xff] }
 0x3cb   :  { %v10949_v34 = vpack.c.bf16 %v8198_v43, %v8198_v43  ;;  %v5588_v27 = vpop.f32.mrf.mxu0  ;;  %v7582_v28 = vpop.f32.mrf.mxu1  ;;  %v18125_v49 = vmax.f32 %v18123_v57, %v18124_v48 }
 0x3cc   :  { %v10947_v47 = vpack.c.bf16 %v8196_v44, %v8196_v44  ;;  %v8199_v13 = vmax.f32 %v8003_v55, 0.0  ;;  %v8001_v59 = vadd.f32 %v16683_v46, %v7798_v0  ;;  %v7803_v16 = vmax.f32 %v5809_v39, %v12141_v25  ;;  %v18126_v55 = vld [vmem:[#allocation342_spill] sm:$0xff]  ;;  %v18127_v0 = vld [vmem:[#allocation343_spill] sm:$0xff] }
 0x3cd   :  { %9179 = vst.msk [vmem:[%s16903_s3 + $0x2e8] sm:$0xf] %vm8992_vm3, %v10949_v34  ;;  %v5807_v12 = vmax.f32 %v18113_v11, %v5588_v27  ;;  %v11944_v60 = vpop.f32.mrf.mxu0  ;;  %v12142_v18 = vpop.f32.mrf.mxu1  ;;  %v18128_v8 = vmax.f32 %v18126_v55, %v18127_v0 }
 0x3ce   :  { %9177 = vst.msk [vmem:[%s16903_s3 + $0x2e0] sm:$0xf] %vm8992_vm3, %v10947_v47  ;;  %v10950_v58 = vpack.c.bf16 %v8199_v13, %v8199_v13  ;;  %v8197_v30 = vmax.f32 %v8001_v59, 0.0  ;;  %v8006_v33 = vadd.f32 %v16683_v46, %v7803_v16  ;;  %v5810_v63 = vmax.f32 %v18116_v62, %v11944_v60  ;;  %v18130_v47 = vld [vmem:[#allocation345_spill] sm:$0xff] }
 0x3cf   :  { %v7801_v6 = vmax.f32 %v5807_v12, %v7582_v28  ;;  %v5591_v14 = vpop.f32.mrf.mxu0  ;;  %v7585_v15 = vpop.f32.mrf.mxu1  ;;  %v18129_v28 = vld [vmem:[#allocation344_spill] sm:$0xff] }
 0x3d0   :  { %9180 = vst.msk [vmem:[%s16903_s3 + $0x2ec] sm:$0xf] %vm8992_vm3, %v10950_v58  ;;  %v10948_v7 = vpack.c.bf16 %v8197_v30, %v8197_v30  ;;  %v8202_v22 = vmax.f32 %v8006_v33, 0.0  ;;  %v7804_v1 = vmax.f32 %v5810_v63, %v12142_v18  ;;  %v5808_v52 = vmax.f32 %v18119_v51, %v5591_v14 }
 0x3d1   :  { %v8004_v37 = vadd.f32 %v16683_v46, %v7801_v6  ;;  %v11947_v42 = vpop.f32.mrf.mxu0  ;;  %v12145_v5 = vpop.f32.mrf.mxu1  ;;  %v18131_v13 = vmax.f32 %v18129_v28, %v18130_v47 }
 0x3d2   :  { %9178 = vst.msk [vmem:[%s16903_s3 + $0x2e4] sm:$0xf] %vm8992_vm3, %v10948_v7  ;;  %v10953_v35 = vpack.c.bf16 %v8202_v22, %v8202_v22  ;;  %v8007_v36 = vadd.f32 %v16683_v46, %v7804_v1  ;;  %v7802_v3 = vmax.f32 %v5808_v52, %v7585_v15  ;;  %v5813_v41 = vmax.f32 %v18122_v40, %v11947_v42 }
 0x3d3   :  { %v8200_v54 = vmax.f32 %v8004_v37, 0.0  ;;  %v5604_v23 = vpop.f32.mrf.mxu0  ;;  %v7598_v20 = vpop.f32.mrf.mxu1 }
 0x3d4   :  { %9183 = vst.msk [vmem:[%s16903_s3 + $0x2f8] sm:$0xf] %vm8992_vm3, %v10953_v35  ;;  %v8203_v50 = vmax.f32 %v8007_v36, 0.0  ;;  %v8005_v2 = vadd.f32 %v16683_v46, %v7802_v3  ;;  %v7807_v56 = vmax.f32 %v5813_v41, %v12145_v5  ;;  %v5811_v10 = vmax.f32 %v18125_v49, %v5604_v23 }
 0x3d5   :  { %v10951_v45 = vpack.c.bf16 %v8200_v54, %v8200_v54  ;;  %v11948_v21 = vpop.f32.mrf.mxu0  ;;  %v12146_v26 = vpop.f32.mrf.mxu1 }
 0x3d6   :  { %v10954_v43 = vpack.c.bf16 %v8203_v50, %v8203_v50  ;;  %v8201_v24 = vmax.f32 %v8005_v2, 0.0  ;;  %v8010_v25 = vadd.f32 %v16683_v46, %v7807_v56  ;;  %v7805_v44 = vmax.f32 %v5811_v10, %v7598_v20 }
 0x3d7   :  { %9181 = vst.msk [vmem:[%s16903_s3 + $0x2f0] sm:$0xf] %vm8992_vm3, %v10951_v45  ;;  %v5814_v9 = vmax.f32 %v18128_v8, %v11948_v21  ;;  %v5607_v32 = vpop.f32.mrf.mxu0  ;;  %v7601_v17 = vpop.f32.mrf.mxu1 }
 0x3d8   :  { %9184 = vst.msk [vmem:[%s16903_s3 + $0x2fc] sm:$0xf] %vm8992_vm3, %v10954_v43  ;;  %v10952_v39 = vpack.c.bf16 %v8201_v24, %v8201_v24  ;;  %v8206_v34 = vmax.f32 %v8010_v25, 0.0  ;;  %v8008_v27 = vadd.f32 %v16683_v46, %v7805_v44  ;;  %v5812_v59 = vmax.f32 %v18131_v13, %v5607_v32 }
 0x3d9   :  { %v7808_v16 = vmax.f32 %v5814_v9, %v12146_v26 }
 0x3da   :  { %9182 = vst.msk [vmem:[%s16903_s3 + $0x2f4] sm:$0xf] %vm8992_vm3, %v10952_v39  ;;  %v10957_v29 = vpack.c.bf16 %v8206_v34, %v8206_v34  ;;  %v8204_v11 = vmax.f32 %v8008_v27, 0.0  ;;  %v7806_v12 = vmax.f32 %v5812_v59, %v7601_v17 }
 0x3db   :  { %v8011_v60 = vadd.f32 %v16683_v46, %v7808_v16 }
 0x3dc   :  { %9187 = vst.msk [vmem:[%s16903_s3 + $0x308] sm:$0xf] %vm8992_vm3, %v10957_v29  ;;  %v10955_v18 = vpack.c.bf16 %v8204_v11, %v8204_v11  ;;  %v8009_v58 = vadd.f32 %v16683_v46, %v7806_v12 }
 0x3dd   :  { %v8207_v30 = vmax.f32 %v8011_v60, 0.0 }
 0x3de   :  { %9185 = vst.msk [vmem:[%s16903_s3 + $0x300] sm:$0xf] %vm8992_vm3, %v10955_v18  ;;  %v8205_v33 = vmax.f32 %v8009_v58, 0.0 }
 0x3df   :  { %v10958_v38 = vpack.c.bf16 %v8207_v30, %v8207_v30 }
 0x3e0   :  { %v10956_v31 = vpack.c.bf16 %v8205_v33, %v8205_v33 }
 0x3e1   :  { %9188 = vst.msk [vmem:[%s16903_s3 + $0x30c] sm:$0xf] %vm8992_vm3, %v10958_v38 }
 0x3e2   :  { %9186 = vst.msk [vmem:[%s16903_s3 + $0x304] sm:$0xf] %vm8992_vm3, %v10956_v31 }

// kernel: cnn_forward.5
= control target key start
LH: loop header
LB: loop body
LE: loop exit
PB: predicated region body
PF: predicated region fallthrough
CT: control target
= control target key end

     0   :  { %v9376_v0 = vmov 0   ;;  %v9389_v1 = vmov 0.0   ;;  %vm6472_vm0 = vmmov 0   ;;  %vm627_vm1 = vcmask 261120   ;;  %s9372_s1 = inlined_call_operand.vmem [shape: bf16[288,64], index: 1, kind: input, shape index: {}]   ;;  %s9373_s0 = inlined_call_operand.vmem [shape: bf16[4,392,288], index: 0, kind: input, shape index: {}]   ;;  %s9374_s2 = inlined_call_operand.vmem [shape: f32[1,64], index: 2, kind: input, shape index: {}]   ;;  %s9375_s3 = inlined_call_operand.vmem [shape: bf16[392,64], index: 3, kind: output, shape index: {}]  }
   0x1   :  { %703 = vmatprep.subr.bf16.mxu0 %v9376_v0  ;;  %5613 = vmatprep.subr.bf16.mxu1 %v9389_v1  ;;  %v6036_v2 = vld [vmem:[%s9372_s1 + $0x38] sm:$0xff]   ;;  %v6501_v3 = vld [vmem:[%s9372_s1 + $0x88] sm:$0xff]   ;;  %v6038_v4 = vld [vmem:[%s9372_s1 + $0x30] sm:$0xff]   ;;  %vm4640_vm2 = vcmask 519168  }
   0x2   :  { %5617 = vmatprep.mubr.msk.bf16.mxu1 %vm6472_vm0, %v9389_v1  ;;  %704 = vmatpush1.bf16.msra.mxu0 %v6036_v2  ;;  %v6513_v5 = vld [vmem:[%s9372_s1 + $0x80] sm:$0xff]   ;;  %v6040_v6 = vld [vmem:[%s9373_s0 + $0x8] ss:$12 sps:$4 sm:$0xff]   ;;  %v6044_v10 = vld [vmem:[%s9372_s1 + $0x18] sm:$0xff]  }
   0x3   :  { %5614 = vmatpush3.bf16.msra.mxu1 %v6501_v3  ;;  %705 = vmatprep.subr.bf16.mxu0 %v9376_v0  ;;  %v6041_v7 = vld [vmem:[%s9372_s1 + $0x28] sm:$0xff]   ;;  %v6042_v8 = vld [vmem:[%s9372_s1 + $0x20] sm:$0xff]   ;;  %v6045_v11 = vld [vmem:[%s9372_s1 + $0x10] sm:$0xff]  }
   0x4   :  { %5615 = vmatprep.subr.bf16.mxu1 %v9389_v1  ;;  %v6043_v9 = vld [vmem:[%s9373_s0 + $0x20] ss:$12 sps:$4 sm:$0xff]   ;;  %v6046_v12 = vld [vmem:[%s9373_s0 + $0x38] ss:$12 sps:$4 sm:$0xff]   ;;  %v6049_v16 = vld [vmem:[%s9373_s0 + $0x50] ss:$12 sps:$4 sm:$0xff]  }
   0x5   :  { %v6047_v13 = vld [vmem:[%s9372_s1 + $0x8] sm:$0xff]   ;;  %v6048_v14 = vld [vmem:[%s9372_s1] sm:$0xff]   ;;  %v6050_v17 = vld [vmem:[%s9372_s1 + $0x78] sm:$0xff]  }
   0x6   :  { %706 = vmatpush1.bf16.msra.mxu0 %v6038_v4  ;;  %v6063_v15 = vld [vmem:[%s9373_s0 + $0x4] ss:$12 sps:$4 sm:$0xff]   ;;  %v6052_v19 = vld [vmem:[%s9373_s0 + $0x68] ss:$12 sps:$4 sm:$0xff]   ;;  %v6055_v22 = vld [vmem:[%s9373_s0 + $0x80] ss:$12 sps:$4 sm:$0xff]  }
   0x7   :  { %5616 = vmatpush3.bf16.msra.mxu1 %v6513_v5  ;;  %707 = vmatprep.subr.bf16.mxu0 %v9376_v0  ;;  %v6051_v18 = vld [vmem:[%s9372_s1 + $0x70] sm:$0xff]   ;;  %v6053_v20 = vld [vmem:[%s9372_s1 + $0x68] sm:$0xff]   ;;  %v6054_v21 = vld [vmem:[%s9372_s1 + $0x60] sm:$0xff]  }
   0x8   :  { %1711 = vmatprep.subr.bf16.mxu1 %v9376_v0  ;;  %735 = vmatprep.mubr.bf16.mxu0 %v6063_v15  ;;  %v6056_v23 = vld [vmem:[%s9372_s1 + $0x58] sm:$0xff]   ;;  %v6057_v24 = vld [vmem:[%s9372_s1 + $0x50] sm:$0xff]   ;;  %v6059_v26 = vld [vmem:[%s9372_s1 + $0x48] sm:$0xff]  }
   0x9   :  { %v6058_v25 = vld [vmem:[%s9373_s0 + $0x98] ss:$12 sps:$4 sm:$0xff]   ;;  %v6061_v28 = vld [vmem:[%s9373_s0] ss:$12 sps:$4 sm:$0xff]   ;;  %v6064_v29 = vld [vmem:[%s9373_s0 + $0xb0] ss:$12 sps:$4 sm:$0xff]  }
   0xa   :  { %5618 = vmatmul.mubr.msk.bf16.vlgmr.msra.gmra.mxu1 %vm627_vm1, %v6040_v6  ;;  %708 = vmatpush1.bf16.msra.mxu0 %v6041_v7  ;;  %v6060_v27 = vld [vmem:[%s9372_s1 + $0x40] sm:$0xff]   ;;  %v6065_v30 = vld [vmem:[%s9373_s0 + $0x1c] ss:$12 sps:$4 sm:$0xff]   ;;  %v6073_v36 = vld [vmem:[%s9373_s0 + $0x4c] ss:$12 sps:$4 sm:$0xff]  }
   0xb   :  { %709 = vmatprep.subr.bf16.mxu0 %v9376_v0  ;;  %5621 = vmatprep.mubr.msk.bf16.mxu1 %vm6472_vm0, %v9389_v1  ;;  %v6067_v31 = vld [vmem:[%s9373_s0 + $0x18] ss:$12 sps:$4 sm:$0xff]   ;;  %v6068_v32 = vld [vmem:[%s9373_s0 + $0xc8] ss:$12 sps:$4 sm:$0xff]   ;;  %v6071_v34 = vld [vmem:[%s9373_s0 + $0x30] ss:$12 sps:$4 sm:$0xff]  }
   0xc   :  { %1712 = vmatpush1.bf16.msra.mxu1 %v6036_v2  ;;  %v6069_v33 = vld [vmem:[%s9373_s0 + $0x34] ss:$12 sps:$4 sm:$0xff]   ;;  %v6076_v38 = vld [vmem:[%s9373_s0 + $0xf8] ss:$12 sps:$4 sm:$0xff]   ;;  %v6080_v41 = vld [vmem:[%s9373_s0 + $0x110] ss:$12 sps:$4 sm:$0xff]  }
   0xd   :  { %1713 = vmatprep.subr.bf16.mxu1 %v9376_v0  ;;  %v6072_v35 = vld [vmem:[%s9373_s0 + $0xe0] ss:$12 sps:$4 sm:$0xff]   ;;  %v6075_v37 = vld [vmem:[%s9373_s0 + $0x48] ss:$12 sps:$4 sm:$0xff]   ;;  %v6077_v39 = vld [vmem:[%s9373_s0 + $0x64] ss:$12 sps:$4 sm:$0xff]  }
   0xe   :  { %710 = vmatpush1.bf16.msra.mxu0 %v6042_v8  ;;  %v6079_v40 = vld [vmem:[%s9373_s0 + $0x60] ss:$12 sps:$4 sm:$0xff]   ;;  %v6081_v42 = vld [vmem:[%s9373_s0 + $0x7c] ss:$12 sps:$4 sm:$0xff]   ;;  %v6083_v43 = vld [vmem:[%s9373_s0 + $0x78] ss:$12 sps:$4 sm:$0xff]  }
   0xf   :  { %711 = vmatprep.subr.bf16.mxu0 %v9376_v0  ;;  %v6084_v44 = vld [vmem:[%s9373_s0 + $0x128] ss:$12 sps:$4 sm:$0xff]   ;;  %v6087_v46 = vld [vmem:[%s9373_s0 + $0x90] ss:$12 sps:$4 sm:$0xff]   ;;  %v6088_v47 = vld [vmem:[%s9373_s0 + $0x140] ss:$12 sps:$4 sm:$0xff]  }
  0x10   :  { %1714 = vmatpush1.bf16.msra.mxu1 %v6038_v4  ;;  %v6085_v45 = vld [vmem:[%s9373_s0 + $0x94] ss:$12 sps:$4 sm:$0xff]   ;;  %v6089_v48 = vld [vmem:[%s9373_s0 + $0xac] ss:$12 sps:$4 sm:$0xff]   ;;  %v6093_v51 = vld [vmem:[%s9373_s0 + $0xc4] ss:$12 sps:$4 sm:$0xff]  }
  0x11   :  { %1715 = vmatprep.subr.bf16.mxu1 %v9376_v0  ;;  %v6091_v49 = vld [vmem:[%s9373_s0 + $0xa8] ss:$12 sps:$4 sm:$0xff]   ;;  %v6092_v50 = vld [vmem:[%s9373_s0 + $0x158] ss:$12 sps:$4 sm:$0xff]   ;;  %v6095_v52 = vld [vmem:[%s9373_s0 + $0xc0] ss:$12 sps:$4 sm:$0xff]  }
  0x12   :  { %5622 = vmatmul.mubr.msk.bf16.gmra.mxu1 %vm627_vm1, %v6043_v9  ;;  %712 = vmatpush1.bf16.msra.mxu0 %v6044_v10  ;;  %v6096_v53 = vld [vmem:[%s9373_s0 + $0x170] ss:$12 sps:$4 sm:$0xff]   ;;  %v6099_v55 = vld [vmem:[%s9373_s0 + $0xd8] ss:$12 sps:$4 sm:$0xff]   ;;  %v6100_v56 = vld [vmem:[%s9373_s0 + $0x188] ss:$12 sps:$4 sm:$0xff]  }
  0x13   :  { %713 = vmatprep.subr.bf16.mxu0 %v9376_v0  ;;  %5625 = vmatprep.mubr.msk.bf16.mxu1 %vm6472_vm0, %v9389_v1  ;;  %v6097_v54 = vld [vmem:[%s9373_s0 + $0xdc] ss:$12 sps:$4 sm:$0xff]   ;;  %v6101_v57 = vld [vmem:[%s9373_s0 + $0xf4] ss:$12 sps:$4 sm:$0xff]   ;;  %v6105_v60 = vld [vmem:[%s9373_s0 + $0x10c] ss:$12 sps:$4 sm:$0xff]  }
  0x14   :  { %1716 = vmatpush1.bf16.msra.mxu1 %v6041_v7  ;;  %v6103_v58 = vld [vmem:[%s9373_s0 + $0xf0] ss:$12 sps:$4 sm:$0xff]   ;;  %v6104_v59 = vld [vmem:[%s9373_s0 + $0x1a0] ss:$12 sps:$4 sm:$0xff]   ;;  %v6107_v61 = vld [vmem:[%s9373_s0 + $0x108] ss:$12 sps:$4 sm:$0xff]  }
  0x15   :  { %1717 = vmatprep.subr.bf16.mxu1 %v9376_v0  ;;  %v6108_v62 = vld [vmem:[%s9373_s0 + $0x1b8] ss:$12 sps:$4 sm:$0xff]   ;;  %v6111_v2 = vld [vmem:[%s9373_s0 + $0x120] ss:$12 sps:$4 sm:$0xff]   ;;  %v6113_v4 = vld [vmem:[%s9373_s0 + $0x13c] ss:$12 sps:$4 sm:$0xff]  }
  0x16   :  { %714 = vmatpush1.bf16.msra.mxu0 %v6045_v11  ;;  %v6109_v63 = vld [vmem:[%s9373_s0 + $0x124] ss:$12 sps:$4 sm:$0xff]   ;;  %v6116_v6 = vld [vmem:[%s9373_s0 + $0x1e8] ss:$12 sps:$4 sm:$0xff]   ;;  %v6120_v9 = vld [vmem:[%s9373_s0 + $0x200] ss:$12 sps:$4 sm:$0xff]  }
  0x17   :  { %715 = vmatprep.subr.bf16.mxu0 %v9376_v0  ;;  %v6117_v7 = vld [vmem:[%s9373_s0 + $0x154] ss:$12 sps:$4 sm:$0xff]   ;;  %v6128_v15 = vld [vmem:[%s9373_s0 + $0x230] ss:$12 sps:$4 sm:$0xff]  }
  0x18   :  { %1718 = vmatpush1.bf16.msra.mxu1 %v6042_v8  ;;  %v6119_v8 = vld [vmem:[%s9373_s0 + $0x150] ss:$12 sps:$4 sm:$0xff]  }
  0x19   :  { %1719 = vmatprep.subr.bf16.mxu1 %v9376_v0 }
  0x1a   :  { %5626 = vmatmul.mubr.msk.bf16.gmra.mxu1 %vm627_vm1, %v6046_v12  ;;  %716 = vmatpush1.bf16.msra.mxu0 %v6047_v13  ;;  %v6124_v12 = vld [vmem:[%s9373_s0 + $0x218] ss:$12 sps:$4 sm:$0xff]  }
  0x1b   :  { %717 = vmatprep.subr.bf16.mxu0 %v9376_v0  ;;  %5629 = vmatprep.mubr.msk.bf16.mxu1 %vm6472_vm0, %v9389_v1 }
  0x1c   :  { %1720 = vmatpush1.bf16.msra.mxu1 %v6044_v10  ;;  %v6121_v10 = vld [vmem:[%s9373_s0 + $0x16c] ss:$12 sps:$4 sm:$0xff]  }
  0x1d   :  { %1721 = vmatprep.subr.bf16.mxu1 %v9376_v0 }
  0x1e   :  { %718 = vmatpush1.bf16.msra.mxu0 %v6048_v14 }
  0x1f   :  { %719 = vmatprep.subr.bf16.mxu0 %v9376_v0 }
  0x20   :  { %1722 = vmatpush1.bf16.msra.mxu1 %v6045_v11  ;;  %v6123_v11 = vld [vmem:[%s9373_s0 + $0x168] ss:$12 sps:$4 sm:$0xff]  }
  0x21   :  { %1723 = vmatprep.subr.bf16.mxu1 %v9376_v0 }
  0x22   :  { %5630 = vmatmul.mubr.msk.bf16.gmra.mxu1 %vm627_vm1, %v6049_v16  ;;  %720 = vmatpush2.bf16.msra.mxu0 %v6050_v17  ;;  %v6129_v16 = vld [vmem:[%s9373_s0 + $0x19c] ss:$12 sps:$4 sm:$0xff]  }
  0x23   :  { %721 = vmatprep.subr.bf16.mxu0 %v9376_v0  ;;  %5633 = vmatprep.mubr.msk.bf16.mxu1 %vm6472_vm0, %v9389_v1 }
  0x24   :  { %1724 = vmatpush1.bf16.msra.mxu1 %v6047_v13  ;;  %v6125_v13 = vld [vmem:[%s9373_s0 + $0x184] ss:$12 sps:$4 sm:$0xff]  }
  0x25   :  { %1725 = vmatprep.subr.bf16.mxu1 %v9376_v0 }
  0x26   :  { %722 = vmatpush2.bf16.msra.mxu0 %v6051_v18 }
  0x27   :  { %723 = vmatprep.subr.bf16.mxu0 %v9376_v0 }
  0x28   :  { %1726 = vmatpush1.bf16.msra.mxu1 %v6048_v14  ;;  %v6127_v14 = vld [vmem:[%s9373_s0 + $0x180] ss:$12 sps:$4 sm:$0xff]  }
  0x29   :  { %1727 = vmatprep.subr.bf16.mxu1 %v9376_v0 }
  0x2a   :  { %5634 = vmatmul.mubr.msk.bf16.gmra.mxu1 %vm627_vm1, %v6052_v19  ;;  %724 = vmatpush2.bf16.msra.mxu0 %v6053_v20  ;;  %v6133_v19 = vld [vmem:[%s9373_s0 + $0x1b4] ss:$12 sps:$4 sm:$0xff]  }
  0x2b   :  { %725 = vmatprep.subr.bf16.mxu0 %v9376_v0  ;;  %5637 = vmatprep.mubr.msk.bf16.mxu1 %vm6472_vm0, %v9389_v1 }
  0x2c   :  { %1728 = vmatpush2.bf16.msra.mxu1 %v6050_v17  ;;  %v6131_v17 = vld [vmem:[%s9373_s0 + $0x198] ss:$12 sps:$4 sm:$0xff]  }
  0x2d   :  { %1729 = vmatprep.subr.bf16.mxu1 %v9376_v0 }
  0x2e   :  { %726 = vmatpush2.bf16.msra.mxu0 %v6054_v21 }
  0x2f   :  { %727 = vmatprep.subr.bf16.mxu0 %v9376_v0 }
  0x30   :  { %1730 = vmatpush2.bf16.msra.mxu1 %v6051_v18  ;;  %v6132_v18 = vld [vmem:[%s9373_s0 + $0x248] ss:$0 sps:$4 sm:$0xff]  }
  0x31   :  { %1731 = vmatprep.subr.bf16.mxu1 %v9376_v0 }
  0x32   :  { %5638 = vmatmul.mubr.msk.bf16.gmra.mxu1 %vm627_vm1, %v6055_v22  ;;  %728 = vmatpush2.bf16.msra.mxu0 %v6056_v23 }
  0x33   :  { %729 = vmatprep.subr.bf16.mxu0 %v9376_v0  ;;  %5641 = vmatprep.mubr.msk.bf16.mxu1 %vm6472_vm0, %v9389_v1 }
  0x34   :  { %1732 = vmatpush2.bf16.msra.mxu1 %v6053_v20  ;;  %v6137_v20 = vld [vmem:[%s9373_s0 + $0x250] ss:$12 sps:$4 sm:$0xff]  }
  0x35   :  { %1733 = vmatprep.subr.bf16.mxu1 %v9376_v0 }
  0x36   :  { %730 = vmatpush2.bf16.msra.mxu0 %v6057_v24 }
  0x37   :  { %731 = vmatprep.subr.bf16.mxu0 %v9376_v0 }
  0x38   :  { %1734 = vmatpush2.bf16.msra.mxu1 %v6054_v21 }
  0x39   :  { %1735 = vmatprep.subr.bf16.mxu1 %v9376_v0 }
  0x3a   :  { %5642 = vmatmul.mubr.msk.bf16.gmra.mxu1 %vm627_vm1, %v6058_v25  ;;  %732 = vmatpush2.bf16.msra.mxu0 %v6059_v26  ;;  %v6135_v25 = vld [vmem:[%s9373_s0 + $0x24c] ss:$12 sps:$4 sm:$0xff]  }
  0x3b   :  { %733 = vmatprep.subr.bf16.mxu0 %v9376_v0  ;;  %5645 = vmatprep.mubr.msk.bf16.mxu1 %vm6472_vm0, %v9389_v1 }
  0x3c   :  { %1736 = vmatpush2.bf16.msra.mxu1 %v6056_v23  ;;  %v6138_v23 = vld [vmem:[%s9373_s0 + $0x1b0] ss:$12 sps:$4 sm:$0xff]  }
  0x3d   :  { %1737 = vmatprep.subr.bf16.mxu1 %v9376_v0 }
  0x3e   :  { %734 = vmatpush2.bf16.msra.mxu0 %v6060_v27 }
  0x3f   :  { %5717 = vmatprep.subr.bf16.mxu0 %v9389_v1 }
  0x40   :  { %1738 = vmatpush2.bf16.msra.mxu1 %v6057_v24 }
  0x41   :  { %736 = vmatmul.mubr.bf16.vlgmr.msra.gmra.mxu0 %v6061_v28  ;;  %1739 = vmatprep.subr.bf16.mxu1 %v9376_v0 }
  0x42   :  { %5646 = vmatmul.mubr.msk.bf16.gmra.mxu1 %vm627_vm1, %v6064_v29  ;;  %5718 = vmatpush3.bf16.msra.mxu0 %v6501_v3  ;;  %v6112_v3 = vld [vmem:[%s9373_s0 + $0x1d0] ss:$12 sps:$4 sm:$0xff]  }
  0x43   :  { %743 = vmatprep.mubr.bf16.mxu0 %v6065_v30  ;;  %5649 = vmatprep.mubr.msk.bf16.mxu1 %vm6472_vm0, %v9389_v1  ;;  %v6878_v30 = vld [vmem:[%s9372_s1 + $0x38] sm:$0xff]  }
  0x44   :  { %5719 = vmatprep.subr.bf16.mxu0 %v9389_v1  ;;  %1740 = vmatpush2.bf16.msra.mxu1 %v6059_v26  ;;  %v6139_v26 = vld [vmem:[%s9373_s0 + $0x1cc] ss:$12 sps:$4 sm:$0xff]  }
  0x45   :  { %1741 = vmatprep.subr.bf16.mxu1 %v9376_v0 }
  0x46   :  { %5720 = vmatpush3.bf16.msra.mxu0 %v6513_v5  ;;  %v6115_v5 = vld [vmem:[%s9373_s0 + $0x138] ss:$12 sps:$4 sm:$0xff]  }
  0x47   :  { %5821 = vmatprep.subr.bf16.mxu0 %v9389_v1 }
  0x48   :  { %1742 = vmatpush2.bf16.msra.mxu1 %v6060_v27  ;;  %v6141_v27 = vld [vmem:[%s9373_s0 + $0x268] ss:$12 sps:$4 sm:$0xff]  }
  0x49   :  { %744 = vmatmul.mubr.bf16.gmra.mxu0 %v6067_v31  ;;  %2768 = vmatprep.subr.bf16.mxu1 %v9376_v0 }
  0x4a   :  { %5650 = vmatmul.mubr.msk.bf16.gmra.mxu1 %vm627_vm1, %v6068_v32  ;;  %751 = vmatprep.mubr.bf16.mxu0 %v6069_v33  ;;  %v6143_v32 = vld [vmem:[%s9373_s0 + $0x1c8] ss:$12 sps:$4 sm:$0xff]  }
  0x4b   :  { %5653 = vmatprep.mubr.msk.bf16.mxu1 %vm6472_vm0, %v9389_v1 }
  0x51   :  { %752 = vmatmul.mubr.bf16.gmra.mxu0 %v6071_v34  ;;  %v6144_v34 = vld [vmem:[%s9373_s0 + $0x264] ss:$12 sps:$4 sm:$0xff]  }
  0x52   :  { %5654 = vmatmul.mubr.msk.bf16.gmra.mxu1 %vm627_vm1, %v6072_v35  ;;  %759 = vmatprep.mubr.bf16.mxu0 %v6073_v36  ;;  %v6145_v35 = vld [vmem:[%s9373_s0 + $0x1e4] ss:$12 sps:$4 sm:$0xff]   ;;  %v6147_v36 = vld [vmem:[%s9373_s0 + $0x280] ss:$12 sps:$4 sm:$0xff]  }
  0x53   :  { %5657 = vmatprep.mubr.msk.bf16.mxu1 %vm6472_vm0, %v9389_v1 }
  0x59   :  { %760 = vmatmul.mubr.bf16.gmra.mxu0 %v6075_v37  ;;  %v6899_v37 = vld [vmem:[%s9372_s1 + $0x30] sm:$0xff]  }
  0x5a   :  { %5658 = vmatmul.mubr.msk.bf16.gmra.mxu1 %vm627_vm1, %v6076_v38  ;;  %767 = vmatprep.mubr.bf16.mxu0 %v6077_v39 }
  0x5b   :  { %5661 = vmatprep.mubr.msk.bf16.mxu1 %vm6472_vm0, %v9389_v1 }
  0x61   :  { %768 = vmatmul.mubr.bf16.gmra.mxu0 %v6079_v40  ;;  %v6908_v40 = vld [vmem:[%s9372_s1 + $0x28] sm:$0xff]  }
  0x62   :  { %5662 = vmatmul.mubr.msk.bf16.gmra.mxu1 %vm627_vm1, %v6080_v41  ;;  %775 = vmatprep.mubr.bf16.mxu0 %v6081_v42  ;;  %v6149_v42 = vld [vmem:[%s9373_s0 + $0x1e0] ss:$12 sps:$4 sm:$0xff]  }
  0x63   :  { %5665 = vmatprep.mubr.msk.bf16.mxu1 %vm6472_vm0, %v9389_v1 }
  0x69   :  { %776 = vmatmul.mubr.bf16.gmra.mxu0 %v6083_v43 }
  0x6a   :  { %5666 = vmatmul.mubr.msk.bf16.gmra.mxu1 %vm627_vm1, %v6084_v44  ;;  %783 = vmatprep.mubr.bf16.mxu0 %v6085_v45  ;;  %v6150_v44 = vld [vmem:[%s9373_s0 + $0x27c] ss:$12 sps:$4 sm:$0xff]  }
  0x6b   :  { %5669 = vmatprep.mubr.msk.bf16.mxu1 %vm6472_vm0, %v9389_v1  ;;  %v6151_v45 = vld [vmem:[%s9373_s0 + $0x1fc] ss:$12 sps:$4 sm:$0xff]  }
  0x71   :  { %784 = vmatmul.mubr.bf16.gmra.mxu0 %v6087_v46  ;;  %v6155_v46 = vld [vmem:[%s9373_s0 + $0x298] ss:$12 sps:$4 sm:$0xff]  }
  0x72   :  { %5670 = vmatmul.mubr.msk.bf16.gmra.mxu1 %vm627_vm1, %v6088_v47  ;;  %791 = vmatprep.mubr.bf16.mxu0 %v6089_v48  ;;  %v6929_v47 = vld [vmem:[%s9372_s1 + $0x20] sm:$0xff]  }
  0x73   :  { %5673 = vmatprep.mubr.msk.bf16.mxu1 %vm6472_vm0, %v9389_v1 }
  0x79   :  { %792 = vmatmul.mubr.bf16.gmra.mxu0 %v6091_v49 }
  0x7a   :  { %5674 = vmatmul.mubr.msk.bf16.gmra.mxu1 %vm627_vm1, %v6092_v50  ;;  %799 = vmatprep.mubr.bf16.mxu0 %v6093_v51  ;;  %v6938_v50 = vld [vmem:[%s9372_s1 + $0x18] sm:$0xff]  }
  0x7b   :  { %5677 = vmatprep.mubr.msk.bf16.mxu1 %vm6472_vm0, %v9389_v1 }
  0x81   :  { %800 = vmatmul.mubr.bf16.gmra.mxu0 %v6095_v52  ;;  %v6156_v52 = vld [vmem:[%s9373_s0 + $0x1f8] ss:$12 sps:$4 sm:$0xff]  }
  0x82   :  { %5678 = vmatmul.mubr.msk.bf16.gmra.mxu1 %vm627_vm1, %v6096_v53  ;;  %807 = vmatprep.mubr.bf16.mxu0 %v6097_v54  ;;  %v6153_v54 = vld [vmem:[%s9373_s0 + $0x294] ss:$12 sps:$4 sm:$0xff]  }
  0x83   :  { %5681 = vmatprep.mubr.msk.bf16.mxu1 %vm6472_vm0, %v9389_v1 }
  0x89   :  { %808 = vmatmul.mubr.bf16.gmra.mxu0 %v6099_v55  ;;  %v6157_v55 = vld [vmem:[%s9373_s0 + $0x214] ss:$12 sps:$4 sm:$0xff]  }
  0x8a   :  { %5682 = vmatmul.mubr.msk.bf16.gmra.mxu1 %vm627_vm1, %v6100_v56  ;;  %815 = vmatprep.mubr.bf16.mxu0 %v6101_v57  ;;  %v6161_v56 = vld [vmem:[%s9373_s0 + $0x2b0] ss:$12 sps:$4 sm:$0xff]  }
  0x8b   :  { %5685 = vmatprep.mubr.msk.bf16.mxu1 %vm6472_vm0, %v9389_v1  ;;  %v6959_v57 = vld [vmem:[%s9372_s1 + $0x10] sm:$0xff]  }
  0x91   :  { %816 = vmatmul.mubr.bf16.gmra.mxu0 %v6103_v58 }
  0x92   :  { %5686 = vmatmul.mubr.msk.bf16.gmra.mxu1 %vm627_vm1, %v6104_v59  ;;  %823 = vmatprep.mubr.bf16.mxu0 %v6105_v60  ;;  %v6968_v60 = vld [vmem:[%s9372_s1 + $0x8] sm:$0xff]  }
  0x93   :  { %5689 = vmatprep.mubr.msk.bf16.mxu1 %vm6472_vm0, %v9389_v1 }
  0x99   :  { %824 = vmatmul.mubr.bf16.gmra.mxu0 %v6107_v61 }
  0x9a   :  { %5690 = vmatmul.mubr.msk.bf16.gmra.mxu1 %vm627_vm1, %v6108_v62  ;;  %831 = vmatprep.mubr.bf16.mxu0 %v6109_v63  ;;  %v6162_v62 = vld [vmem:[%s9373_s0 + $0x210] ss:$12 sps:$4 sm:$0xff]  }
  0x9b   :  { %5693 = vmatprep.mubr.msk.bf16.mxu1 %vm6472_vm0, %v9389_v1 }
  0xa1   :  { %832 = vmatmul.mubr.bf16.gmra.mxu0 %v6111_v2  ;;  %v6159_v2 = vld [vmem:[%s9373_s0 + $0x2ac] ss:$12 sps:$4 sm:$0xff]  }
  0xa2   :  { %5694 = vmatmul.mubr.msk.bf16.gmra.mxu1 %vm627_vm1, %v6112_v3  ;;  %839 = vmatprep.mubr.bf16.mxu0 %v6113_v4  ;;  %v6163_v3 = vld [vmem:[%s9373_s0 + $0x22c] ss:$12 sps:$4 sm:$0xff]   ;;  %v6167_v4 = vld [vmem:[%s9373_s0 + $0x2c8] ss:$12 sps:$4 sm:$0xff]  }
  0xa3   :  { %5697 = vmatprep.mubr.msk.bf16.mxu1 %vm6472_vm0, %v9389_v1 }
  0xa9   :  { %840 = vmatmul.mubr.bf16.gmra.mxu0 %v6115_v5  ;;  %v6989_v5 = vld [vmem:[%s9372_s1] sm:$0xff]  }
  0xaa   :  { %5698 = vmatmul.mubr.msk.bf16.gmra.mxu1 %vm627_vm1, %v6116_v6  ;;  %847 = vmatprep.mubr.bf16.mxu0 %v6117_v7 }
  0xab   :  { %5701 = vmatprep.mubr.msk.bf16.mxu1 %vm6472_vm0, %v9389_v1 }
  0xb1   :  { %848 = vmatmul.mubr.bf16.gmra.mxu0 %v6119_v8  ;;  %v147_v8 = vld [vmem:[%s9373_s0 + $0x240] sm:$0xff] }
  0xb2   :  { %5702 = vmatmul.mubr.msk.bf16.gmra.mxu1 %vm627_vm1, %v6120_v9  ;;  %855 = vmatprep.mubr.bf16.mxu0 %v6121_v10  ;;  %v7001_v9 = vld [vmem:[%s9372_s1 + $0x78] sm:$0xff]  }
  0xb3   :  { %5705 = vmatprep.mubr.msk.bf16.mxu1 %vm6472_vm0, %v9389_v1 }
  0xb9   :  { %856 = vmatmul.mubr.bf16.gmra.mxu0 %v6123_v11  ;;  %v6168_v11 = vld [vmem:[%s9373_s0 + $0x228] ss:$12 sps:$4 sm:$0xff]  }
  0xba   :  { %5706 = vmatmul.mubr.msk.bf16.gmra.mxu1 %vm627_vm1, %v6124_v12  ;;  %863 = vmatprep.mubr.bf16.mxu0 %v6125_v13  ;;  %v6165_v13 = vld [vmem:[%s9373_s0 + $0x2c4] ss:$12 sps:$4 sm:$0xff]  }
  0xbb   :  { %5709 = vmatprep.mubr.msk.bf16.mxu1 %vm6472_vm0, %v9389_v1 }
  0xc1   :  { %864 = vmatmul.mubr.bf16.gmra.mxu0 %v6127_v14  ;;  %v4767_v14 = vcombine.high %v147_v8, %v147_v8 }
  0xc2   :  { %5710 = vmatmul.mubr.msk.bf16.gmra.mxu1 %vm627_vm1, %v6128_v15  ;;  %871 = vmatprep.mubr.bf16.mxu0 %v6129_v16  ;;  %v6172_v15 = vld [vmem:[%s9373_s0 + $0x2e0] ss:$12 sps:$4 sm:$0xff]   ;;  %v7019_v16 = vld [vmem:[%s9372_s1 + $0x70] sm:$0xff]  }
  0xc3   :  { %5713 = vmatprep.mubr.msk.bf16.mxu1 %vm6472_vm0, %v9389_v1 }
  0xc9   :  { %872 = vmatmul.mubr.bf16.gmra.mxu0 %v6131_v17 }
  0xca   :  { %v6856_v21 = vpop.f32.mrf.mxu1  ;;  %5714 = vmatmul.mubr.msk.bf16.gmra.mxu1 %vm627_vm1, %v6132_v18  ;;  %879 = vmatprep.mubr.bf16.mxu0 %v6133_v19  ;;  %v7028_v19 = vld [vmem:[%s9372_s1 + $0x68] sm:$0xff]  }
  0xcb   :  { %1743 = vmatprep.mubr.bf16.mxu1 %v6137_v20 }
  0xcc   :  { %v5619_v22 = vpop.f32.mrf.mxu1 }
  0xcd   :  { %v4766_v22 = vcombine.low %v147_v8, %v147_v8  ;;  %v7118_v8 = vld [vmem:[%s9372_s1 + $0x80] sm:$0xff]  }
  0xce   :  { %v6862_v24 = vpop.f32.mrf.mxu1 }
  0xd0   :  { %v5620_v28 = vpop.f32.mrf.mxu1 }
  0xd1   :  { %880 = vmatmul.mubr.bf16.gmra.mxu0 %v6138_v23 }
  0xd2   :  { %v6873_v29 = vpop.f32.mrf.mxu1  ;;  %1744 = vmatmul.mubr.bf16.vlgmr.msra.gmra.mxu1 %v6135_v25  ;;  %887 = vmatprep.mubr.bf16.mxu0 %v6139_v26  ;;  %v6170_v25 = vld [vmem:[%s9373_s0 + $0x2dc] ss:$12 sps:$4 sm:$0xff]   ;;  %v6176_v26 = vld [vmem:[%s9373_s0 + $0x2f8] ss:$12 sps:$4 sm:$0xff]  }
  0xd3   :  { %1751 = vmatprep.mubr.bf16.mxu1 %v6141_v27  ;;  %2769 = vmatpush1.bf16.msra.mxu1 %v6878_v30  ;;  %v7043_v27 = vld [vmem:[%s9372_s1 + $0x60] sm:$0xff]  }
  0xd4   :  { %v5623_v31 = vpop.f32.mrf.mxu1  ;;  %2770 = vmatprep.subr.bf16.mxu1 %v9376_v0 }
  0xd6   :  { %v6885_v33 = vpop.f32.mrf.mxu1 }
  0xd7   :  { %2771 = vmatpush1.bf16.msra.mxu1 %v6899_v37 }
  0xd8   :  { %v5624_v38 = vpop.f32.mrf.mxu1  ;;  %2772 = vmatprep.subr.bf16.mxu1 %v9376_v0 }
  0xd9   :  { %888 = vmatmul.mubr.bf16.gmra.mxu0 %v6143_v32 }
  0xda   :  { %v6903_v39 = vpop.f32.mrf.mxu1  ;;  %1752 = vmatmul.mubr.bf16.gmra.mxu1 %v6144_v34  ;;  %895 = vmatprep.mubr.bf16.mxu0 %v6145_v35 }
  0xdb   :  { %1759 = vmatprep.mubr.bf16.mxu1 %v6147_v36  ;;  %2773 = vmatpush1.bf16.msra.mxu1 %v6908_v40  ;;  %v7057_v36 = vld [vmem:[%s9372_s1 + $0x58] sm:$0xff]  }
  0xdc   :  { %v5627_v41 = vpop.f32.mrf.mxu1  ;;  %2774 = vmatprep.subr.bf16.mxu1 %v9376_v0 }
  0xdd   :  { %v6177_v41 = vld [vmem:[%s9373_s0 + $0x254] ss:$12 sps:$4 sm:$0xff]  }
  0xde   :  { %v6915_v43 = vpop.f32.mrf.mxu1 }
  0xdf   :  { %2775 = vmatpush1.bf16.msra.mxu1 %v6929_v47 }
  0xe0   :  { %v5628_v48 = vpop.f32.mrf.mxu1  ;;  %2776 = vmatprep.subr.bf16.mxu1 %v9376_v0 }
  0xe1   :  { %896 = vmatmul.mubr.bf16.gmra.mxu0 %v6149_v42  ;;  %v6180_v48 = vld [vmem:[%s9373_s0 + $0x310] ss:$12 sps:$4 sm:$0xff]  }
  0xe2   :  { %v6933_v49 = vpop.f32.mrf.mxu1  ;;  %1760 = vmatmul.mubr.bf16.gmra.mxu1 %v6150_v44  ;;  %903 = vmatprep.mubr.bf16.mxu0 %v6151_v45  ;;  %v6174_v45 = vld [vmem:[%s9373_s0 + $0x2f4] ss:$12 sps:$4 sm:$0xff]  }
  0xe3   :  { %1767 = vmatprep.mubr.bf16.mxu1 %v6155_v46  ;;  %2777 = vmatpush1.bf16.msra.mxu1 %v6938_v50 }
  0xe4   :  { %v5631_v51 = vpop.f32.mrf.mxu1  ;;  %2778 = vmatprep.subr.bf16.mxu1 %v9376_v0 }
  0xe5   :  { %v7078_v51 = vld [vmem:[%s9372_s1 + $0x50] sm:$0xff]  }
  0xe6   :  { %v6945_v53 = vpop.f32.mrf.mxu1 }
  0xe7   :  { %2779 = vmatpush1.bf16.msra.mxu1 %v6959_v57 }
  0xe8   :  { %v5632_v58 = vpop.f32.mrf.mxu1  ;;  %2780 = vmatprep.subr.bf16.mxu1 %v9376_v0 }
  0xe9   :  { %904 = vmatmul.mubr.bf16.gmra.mxu0 %v6156_v52 }
  0xea   :  { %v6963_v59 = vpop.f32.mrf.mxu1  ;;  %1768 = vmatmul.mubr.bf16.gmra.mxu1 %v6153_v54  ;;  %911 = vmatprep.mubr.bf16.mxu0 %v6157_v55 }
  0xeb   :  { %1775 = vmatprep.mubr.bf16.mxu1 %v6161_v56  ;;  %2781 = vmatpush1.bf16.msra.mxu1 %v6968_v60  ;;  %v7091_v56 = vld [vmem:[%s9372_s1 + $0x88] sm:$0xff]  }
  0xec   :  { %v5635_v61 = vpop.f32.mrf.mxu1  ;;  %2782 = vmatprep.subr.bf16.mxu1 %v9376_v0 }
  0xee   :  { %v6975_v63 = vpop.f32.mrf.mxu1 }
  0xef   :  { %2783 = vmatpush1.bf16.msra.mxu1 %v6989_v5 }
  0xf0   :  { %v5636_v6 = vpop.f32.mrf.mxu1  ;;  %2784 = vmatprep.subr.bf16.mxu1 %v9376_v0 }
  0xf1   :  { %912 = vmatmul.mubr.bf16.gmra.mxu0 %v6162_v62  ;;  %v6178_v6 = vld [vmem:[%s9373_s0 + $0x30c] ss:$12 sps:$4 sm:$0xff]  }
  0xf2   :  { %v6993_v7 = vpop.f32.mrf.mxu1  ;;  %1776 = vmatmul.mubr.bf16.gmra.mxu1 %v6159_v2  ;;  %919 = vmatprep.mubr.bf16.mxu0 %v6163_v3  ;;  %v6181_v2 = vld [vmem:[%s9373_s0 + $0x26c] ss:$12 sps:$4 sm:$0xff]  }
  0xf3   :  { %1783 = vmatprep.mubr.bf16.mxu1 %v6167_v4  ;;  %2785 = vmatpush2.bf16.msra.mxu1 %v7001_v9 }
  0xf4   :  { %v5639_v10 = vpop.f32.mrf.mxu1  ;;  %2786 = vmatprep.subr.bf16.mxu1 %v9376_v0 }
  0xf6   :  { %v7008_v12 = vpop.f32.mrf.mxu1 }
  0xf7   :  { %2787 = vmatpush2.bf16.msra.mxu1 %v7019_v16 }
  0xf8   :  { %v5640_v17 = vpop.f32.mrf.mxu1  ;;  %2788 = vmatprep.subr.bf16.mxu1 %v9376_v0 }
  0xf9   :  { %920 = vmatmul.mubr.bf16.gmra.mxu0 %v6168_v11  ;;  %v6184_v11 = vld [vmem:[%s9373_s0 + $0x328] ss:$12 sps:$4 sm:$0xff]  }
  0xfa   :  { %v7023_v18 = vpop.f32.mrf.mxu1  ;;  %1784 = vmatmul.mubr.bf16.gmra.mxu1 %v6165_v13  ;;  %927 = vmatprep.mubr.bf16.mxu0 %v4767_v14  ;;  %v7128_v13 = vld [vmem:[%s9372_s1 + $0x40] sm:$0xff]  }
  0xfb   :  { %1791 = vmatprep.mubr.bf16.mxu1 %v6172_v15  ;;  %2789 = vmatpush2.bf16.msra.mxu1 %v7028_v19 }
  0xfc   :  { %v5643_v20 = vpop.f32.mrf.mxu1  ;;  %2790 = vmatprep.subr.bf16.mxu1 %v9376_v0 }
  0xfe   :  { %v7032_v23 = vpop.f32.mrf.mxu1 }
  0xff   :  { %2791 = vmatpush2.bf16.msra.mxu1 %v7043_v27 }
 0x100   :  { %v5644_v28 = vpop.f32.mrf.mxu1  ;;  %2792 = vmatprep.subr.bf16.mxu1 %v9376_v0 }
 0x101   :  { %v737_v31 = vpop.f32.mrf.mxu0  ;;  %928 = vmatmul.mubr.bf16.gmra.mxu0 %v4766_v22 }
 0x102   :  { %v7048_v32 = vadd.f32 %v6856_v21, %v737_v31  ;;  %v7050_v34 = vpop.f32.mrf.mxu1  ;;  %1792 = vmatmul.mubr.bf16.gmra.mxu1 %v6170_v25  ;;  %5721 = vmatprep.mubr.msk.bf16.mxu0 %vm6472_vm0, %v9389_v1 }
 0x103   :  { %v739_v35 = vpop.f32.mrf.mxu0  ;;  %1799 = vmatprep.mubr.bf16.mxu1 %v6176_v26  ;;  %2793 = vmatpush2.bf16.msra.mxu1 %v7057_v36  ;;  %v6185_v26 = vld [vmem:[%s9373_s0 + $0x284] ss:$12 sps:$4 sm:$0xff]  }
 0x104   :  { %v5647_v38 = vpop.f32.mrf.mxu1  ;;  %2794 = vmatprep.subr.bf16.mxu1 %v9376_v0 }
 0x105   :  { %v740_v21 = vpop.f32.mrf.mxu0  ;;  %v6188_v38 = vld [vmem:[%s9373_s0 + $0x340] ss:$12 sps:$4 sm:$0xff]  }
 0x106   :  { %v7065_v42 = vadd.f32 %v6862_v24, %v740_v21  ;;  %v7067_v44 = vpop.f32.mrf.mxu1 }
 0x107   :  { %v742_v46 = vpop.f32.mrf.mxu0  ;;  %2795 = vmatpush2.bf16.msra.mxu1 %v7078_v51 }
 0x108   :  { %v5648_v24 = vpop.f32.mrf.mxu1  ;;  %2796 = vmatprep.subr.bf16.mxu1 %v9376_v0 }
 0x109   :  { %v745_v52 = vpop.f32.mrf.mxu0  ;;  %5722 = vmatmul.mubr.msk.bf16.vlgmr.msra.gmra.mxu0 %vm627_vm1, %v6177_v41 }
 0x10a   :  { %v7084_v54 = vadd.f32 %v6873_v29, %v745_v52  ;;  %v7086_v55 = vpop.f32.mrf.mxu1  ;;  %1800 = vmatmul.mubr.bf16.gmra.mxu1 %v6174_v45  ;;  %5822 = vmatpush3.bf16.msra.mxu0 %v7091_v56  ;;  %v7100_v29 = vld [vmem:[%s9372_s1 + $0x48] sm:$0xff]  }
 0x10b   :  { %v747_v58 = vpop.f32.mrf.mxu0  ;;  %1807 = vmatprep.mubr.bf16.mxu1 %v6180_v48  ;;  %5725 = vmatprep.mubr.msk.bf16.mxu0 %vm6472_vm0, %v9389_v1  ;;  %v6189_v52 = vld [vmem:[%s9373_s0 + $0x29c] ss:$12 sps:$4 sm:$0xff]  }
 0x10c   :  { %v5651_v61 = vpop.f32.mrf.mxu1  ;;  %5823 = vmatprep.subr.bf16.mxu0 %v9389_v1  ;;  %2797 = vmatpush2.bf16.msra.mxu1 %v7100_v29 }
 0x10d   :  { %v748_v62 = vpop.f32.mrf.mxu0  ;;  %2798 = vmatprep.subr.bf16.mxu1 %v9376_v0 }
 0x10e   :  { %v7108_v3 = vadd.f32 %v6885_v33, %v748_v62  ;;  %v7110_v4 = vpop.f32.mrf.mxu1  ;;  %5824 = vmatpush3.bf16.msra.mxu0 %v7118_v8 }
 0x10f   :  { %v750_v10 = vpop.f32.mrf.mxu0  ;;  %5925 = vmatprep.subr.bf16.mxu0 %v9389_v1 }
 0x110   :  { %v5652_v33 = vpop.f32.mrf.mxu1  ;;  %2799 = vmatpush2.bf16.msra.mxu1 %v7128_v13 }
 0x111   :  { %v753_v14 = vpop.f32.mrf.mxu0  ;;  %5726 = vmatmul.mubr.msk.bf16.gmra.mxu0 %vm627_vm1, %v6181_v2  ;;  %3825 = vmatprep.subr.bf16.mxu1 %v9376_v0  ;;  %v6192_v2 = vld [vmem:[%s9373_s0 + $0x358] ss:$12 sps:$4 sm:$0xff]  }
 0x112   :  { %v7134_v15 = vadd.f32 %v6903_v39, %v753_v14  ;;  %v7136_v17 = vpop.f32.mrf.mxu1  ;;  %1808 = vmatmul.mubr.bf16.gmra.mxu1 %v6178_v6  ;;  %5729 = vmatprep.mubr.msk.bf16.mxu0 %vm6472_vm0, %v9389_v1  ;;  %v6182_v39 = vld [vmem:[%s9373_s0 + $0x324] ss:$12 sps:$4 sm:$0xff]  }
 0x113   :  { %v755_v20 = vpop.f32.mrf.mxu0  ;;  %1815 = vmatprep.mubr.bf16.mxu1 %v6184_v11 }
 0x114   :  { %v5655_v22 = vpop.f32.mrf.mxu1 }
 0x115   :  { %v756_v25 = vpop.f32.mrf.mxu0  ;;  %v6193_v22 = vld [vmem:[%s9373_s0 + $0x2b4] ss:$12 sps:$4 sm:$0xff]  }
 0x116   :  { %v7144_v28 = vadd.f32 %v6915_v43, %v756_v25  ;;  %v7146_v31 = vpop.f32.mrf.mxu1 }
 0x117   :  { %v758_v35 = vpop.f32.mrf.mxu0 }
 0x118   :  { %v5656_v21 = vpop.f32.mrf.mxu1  ;;  %v6196_v35 = vld [vmem:[%s9373_s0 + $0x370] ss:$12 sps:$4 sm:$0xff]  }
 0x119   :  { %v761_v41 = vpop.f32.mrf.mxu0  ;;  %5730 = vmatmul.mubr.msk.bf16.gmra.mxu0 %vm627_vm1, %v6185_v26 }
 0x11a   :  { %v7156_v45 = vadd.f32 %v6933_v49, %v761_v41  ;;  %v7158_v43 = vpop.f32.mrf.mxu1  ;;  %1816 = vmatmul.mubr.bf16.gmra.mxu1 %v6182_v39  ;;  %5733 = vmatprep.mubr.msk.bf16.mxu0 %vm6472_vm0, %v9389_v1  ;;  %v6186_v49 = vld [vmem:[%s9373_s0 + $0x33c] ss:$12 sps:$4 sm:$0xff]  }
 0x11b   :  { %v763_v46 = vpop.f32.mrf.mxu0  ;;  %1823 = vmatprep.mubr.bf16.mxu1 %v6188_v38 }
 0x11c   :  { %9443 = vst [vmem:[#allocation2_spill] sm:$0xff] %v7156_v45  ;;  %v5659_v48 = vpop.f32.mrf.mxu1 }
 0x11d   :  { %v764_v24 = vpop.f32.mrf.mxu0 }
 0x11e   :  { %v7166_v58 = vadd.f32 %v6945_v53, %v764_v24  ;;  %v7168_v61 = vpop.f32.mrf.mxu1 }
 0x11f   :  { %v766_v62 = vpop.f32.mrf.mxu0 }
 0x120   :  { %v5660_v6 = vpop.f32.mrf.mxu1 }
 0x121   :  { %v769_v10 = vpop.f32.mrf.mxu0  ;;  %5734 = vmatmul.mubr.msk.bf16.gmra.mxu0 %vm627_vm1, %v6189_v52  ;;  %v6197_v52 = vld [vmem:[%s9373_s0 + $0x2cc] ss:$12 sps:$4 sm:$0xff]   ;;  %v6200_v6 = vld [vmem:[%s9373_s0 + $0x388] ss:$12 sps:$4 sm:$0xff]  }
 0x122   :  { %v7178_v11 = vadd.f32 %v6963_v59, %v769_v10  ;;  %v7180_v53 = vpop.f32.mrf.mxu1  ;;  %1824 = vmatmul.mubr.bf16.gmra.mxu1 %v6186_v49  ;;  %5737 = vmatprep.mubr.msk.bf16.mxu0 %vm6472_vm0, %v9389_v1  ;;  %v6190_v59 = vld [vmem:[%s9373_s0 + $0x354] ss:$12 sps:$4 sm:$0xff]  }
 0x123   :  { %v771_v33 = vpop.f32.mrf.mxu0  ;;  %1831 = vmatprep.mubr.bf16.mxu1 %v6192_v2 }
 0x124   :  { %9444 = vst [vmem:[#allocation3_spill] sm:$0xff] %v7178_v11  ;;  %v5663_v14 = vpop.f32.mrf.mxu1 }
 0x125   :  { %v772_v20 = vpop.f32.mrf.mxu0 }
 0x126   :  { %v7188_v25 = vadd.f32 %v6975_v63, %v772_v20  ;;  %v7190_v26 = vpop.f32.mrf.mxu1 }
 0x127   :  { %v774_v39 = vpop.f32.mrf.mxu0 }
 0x128   :  { %v5664_v38 = vpop.f32.mrf.mxu1  ;;  %v6201_v39 = vld [vmem:[%s9373_s0 + $0x2e4] ss:$12 sps:$4 sm:$0xff]  }
 0x129   :  { %v777_v21 = vpop.f32.mrf.mxu0  ;;  %5738 = vmatmul.mubr.msk.bf16.gmra.mxu0 %vm627_vm1, %v6193_v22 }
 0x12a   :  { %v7200_v41 = vadd.f32 %v6993_v7, %v777_v21  ;;  %v7202_v63 = vpop.f32.mrf.mxu1  ;;  %1832 = vmatmul.mubr.bf16.gmra.mxu1 %v6190_v59  ;;  %5741 = vmatprep.mubr.msk.bf16.mxu0 %vm6472_vm0, %v9389_v1  ;;  %v6194_v7 = vld [vmem:[%s9373_s0 + $0x36c] ss:$12 sps:$4 sm:$0xff]  }
 0x12b   :  { %v779_v46 = vpop.f32.mrf.mxu0  ;;  %1839 = vmatprep.mubr.bf16.mxu1 %v6196_v35 }
 0x12c   :  { %9445 = vst [vmem:[#allocation4_spill] sm:$0xff] %v7200_v41  ;;  %v5667_v48 = vpop.f32.mrf.mxu1  ;;  %v6204_v46 = vld [vmem:[%s9373_s0 + $0x3a0] ss:$12 sps:$4 sm:$0xff]  }
 0x12d   :  { %v780_v24 = vpop.f32.mrf.mxu0 }
 0x12e   :  { %v7210_v49 = vadd.f32 %v7008_v12, %v780_v24  ;;  %v7212_v62 = vpop.f32.mrf.mxu1 }
 0x12f   :  { %v782_v2 = vpop.f32.mrf.mxu0 }
 0x130   :  { %v5668_v10 = vpop.f32.mrf.mxu1 }
 0x131   :  { %v785_v33 = vpop.f32.mrf.mxu0  ;;  %5742 = vmatmul.mubr.msk.bf16.gmra.mxu0 %vm627_vm1, %v6197_v52  ;;  %v6205_v10 = vld [vmem:[%s9373_s0 + $0x2fc] ss:$12 sps:$4 sm:$0xff]  }
 0x132   :  { %v7222_v14 = vadd.f32 %v7023_v18, %v785_v33  ;;  %v7224_v12 = vpop.f32.mrf.mxu1  ;;  %1840 = vmatmul.mubr.bf16.gmra.mxu1 %v6194_v7  ;;  %5745 = vmatprep.mubr.msk.bf16.mxu0 %vm6472_vm0, %v9389_v1  ;;  %v6198_v18 = vld [vmem:[%s9373_s0 + $0x384] ss:$12 sps:$4 sm:$0xff]  }
 0x133   :  { %v787_v20 = vpop.f32.mrf.mxu0  ;;  %1847 = vmatprep.mubr.bf16.mxu1 %v6200_v6 }
 0x134   :  { %9446 = vst [vmem:[#allocation5_spill] sm:$0xff] %v7222_v14  ;;  %v5671_v22 = vpop.f32.mrf.mxu1 }
 0x135   :  { %v788_v59 = vpop.f32.mrf.mxu0 }
 0x136   :  { %v7232_v35 = vadd.f32 %v7032_v23, %v788_v59  ;;  %v7234_v38 = vpop.f32.mrf.mxu1  ;;  %v6208_v59 = vld [vmem:[%s9373_s0 + $0x3b8] ss:$12 sps:$4 sm:$0xff]  }
 0x137   :  { %v790_v21 = vpop.f32.mrf.mxu0 }
 0x138   :  { %v5672_v48 = vpop.f32.mrf.mxu1 }
 0x139   :  { %v793_v24 = vpop.f32.mrf.mxu0  ;;  %5746 = vmatmul.mubr.msk.bf16.gmra.mxu0 %vm627_vm1, %v6201_v39 }
 0x13a   :  { %v7244_v52 = vadd.f32 %v7050_v34, %v793_v24  ;;  %v7246_v23 = vpop.f32.mrf.mxu1  ;;  %1848 = vmatmul.mubr.bf16.gmra.mxu1 %v6198_v18  ;;  %5749 = vmatprep.mubr.msk.bf16.mxu0 %vm6472_vm0, %v9389_v1  ;;  %v6202_v34 = vld [vmem:[%s9373_s0 + $0x39c] ss:$12 sps:$4 sm:$0xff]  }
 0x13b   :  { %v795_v7 = vpop.f32.mrf.mxu0  ;;  %1855 = vmatprep.mubr.bf16.mxu1 %v6204_v46 }
 0x13c   :  { %9447 = vst [vmem:[#allocation6_spill] sm:$0xff] %v7244_v52  ;;  %v5675_v2 = vpop.f32.mrf.mxu1  ;;  %v6209_v7 = vld [vmem:[%s9373_s0 + $0x314] ss:$12 sps:$4 sm:$0xff]  }
 0x13d   :  { %v796_v6 = vpop.f32.mrf.mxu0 }
 0x13e   :  { %v7254_v33 = vadd.f32 %v7067_v44, %v796_v6  ;;  %v7256_v20 = vpop.f32.mrf.mxu1 }
 0x13f   :  { %v798_v22 = vpop.f32.mrf.mxu0 }
 0x140   :  { %9448 = vst [vmem:[#allocation7_spill] sm:$0xff] %v7254_v33  ;;  %v5676_v39 = vpop.f32.mrf.mxu1 }
 0x141   :  { %v801_v18 = vpop.f32.mrf.mxu0  ;;  %5750 = vmatmul.mubr.msk.bf16.gmra.mxu0 %vm627_vm1, %v6205_v10 }
 0x142   :  { %v7266_v21 = vadd.f32 %v7086_v55, %v801_v18  ;;  %v7268_v44 = vpop.f32.mrf.mxu1  ;;  %1856 = vmatmul.mubr.bf16.gmra.mxu1 %v6202_v34  ;;  %5753 = vmatprep.mubr.msk.bf16.mxu0 %vm6472_vm0, %v9389_v1  ;;  %v6206_v55 = vld [vmem:[%s9373_s0 + $0x3b4] ss:$12 sps:$4 sm:$0xff]   ;;  %v6212_v34 = vld [vmem:[%s9373_s0 + $0x3d0] ss:$12 sps:$4 sm:$0xff]  }
 0x143   :  { %v803_v46 = vpop.f32.mrf.mxu0  ;;  %1863 = vmatprep.mubr.bf16.mxu1 %v6208_v59 }
 0x144   :  { %9449 = vst [vmem:[#allocation8_spill] sm:$0xff] %v7266_v21  ;;  %v5679_v48 = vpop.f32.mrf.mxu1 }
 0x145   :  { %v804_v24 = vpop.f32.mrf.mxu0 }
 0x146   :  { %v7276_v2 = vadd.f32 %v7110_v4, %v804_v24  ;;  %v7278_v6 = vpop.f32.mrf.mxu1  ;;  %v6213_v24 = vld [vmem:[%s9373_s0 + $0x32c] ss:$12 sps:$4 sm:$0xff]  }
 0x147   :  { %v806_v10 = vpop.f32.mrf.mxu0 }
 0x148   :  { %9450 = vst [vmem:[#allocation9_spill] sm:$0xff] %v7276_v2  ;;  %v5680_v22 = vpop.f32.mrf.mxu1 }
 0x149   :  { %v809_v59 = vpop.f32.mrf.mxu0  ;;  %5754 = vmatmul.mubr.msk.bf16.gmra.mxu0 %vm627_vm1, %v6209_v7 }
 0x14a   :  { %v7288_v39 = vadd.f32 %v7136_v17, %v809_v59  ;;  %v7290_v4 = vpop.f32.mrf.mxu1  ;;  %1864 = vmatmul.mubr.bf16.gmra.mxu1 %v6206_v55  ;;  %5757 = vmatprep.mubr.msk.bf16.mxu0 %vm6472_vm0, %v9389_v1  ;;  %v6210_v17 = vld [vmem:[%s9373_s0 + $0x3cc] ss:$12 sps:$4 sm:$0xff]  }
 0x14b   :  { %v811_v18 = vpop.f32.mrf.mxu0  ;;  %1871 = vmatprep.mubr.bf16.mxu1 %v6212_v34  ;;  %v6216_v34 = vld [vmem:[%s9373_s0 + $0x3e8] ss:$12 sps:$4 sm:$0xff]  }
 0x14c   :  { %9451 = vst [vmem:[#allocation10_spill] sm:$0xff] %v7288_v39  ;;  %v5683_v46 = vpop.f32.mrf.mxu1 }
 0x14d   :  { %v812_v48 = vpop.f32.mrf.mxu0 }
 0x14e   :  { %v7298_v10 = vadd.f32 %v7146_v31, %v812_v48  ;;  %v7300_v7 = vpop.f32.mrf.mxu1 }
 0x14f   :  { %v814_v55 = vpop.f32.mrf.mxu0 }
 0x150   :  { %9452 = vst [vmem:[#allocation11_spill] sm:$0xff] %v7298_v10  ;;  %v5684_v22 = vpop.f32.mrf.mxu1 }
 0x151   :  { %v817_v59 = vpop.f32.mrf.mxu0  ;;  %5758 = vmatmul.mubr.msk.bf16.gmra.mxu0 %vm627_vm1, %v6213_v24  ;;  %v6217_v22 = vld [vmem:[%s9373_s0 + $0x344] ss:$12 sps:$4 sm:$0xff]  }
 0x152   :  { %v7310_v18 = vadd.f32 %v7158_v43, %v817_v59  ;;  %v7312_v31 = vpop.f32.mrf.mxu1  ;;  %1872 = vmatmul.mubr.bf16.gmra.mxu1 %v6210_v17  ;;  %5761 = vmatprep.mubr.msk.bf16.mxu0 %vm6472_vm0, %v9389_v1  ;;  %v6214_v43 = vld [vmem:[%s9373_s0 + $0x3e4] ss:$12 sps:$4 sm:$0xff]  }
 0x153   :  { %v819_v46 = vpop.f32.mrf.mxu0  ;;  %1879 = vmatprep.mubr.bf16.mxu1 %v6216_v34  ;;  %v6220_v34 = vld [vmem:[%s9373_s0 + $0x400] ss:$12 sps:$4 sm:$0xff]  }
 0x154   :  { %9453 = vst [vmem:[#allocation12_spill] sm:$0xff] %v7310_v18  ;;  %v5687_v48 = vpop.f32.mrf.mxu1 }
 0x155   :  { %v820_v55 = vpop.f32.mrf.mxu0 }
 0x156   :  { %v7320_v0 = vadd.f32 %v7168_v61, %v820_v55  ;;  %v7322_v24 = vpop.f32.mrf.mxu1 }
 0x157   :  { %v822_v17 = vpop.f32.mrf.mxu0 }
 0x158   :  { %9454 = vst [vmem:[#allocation13_spill] sm:$0xff] %v7320_v0  ;;  %v5688_v59 = vpop.f32.mrf.mxu1 }
 0x159   :  { %v825_v46 = vpop.f32.mrf.mxu0  ;;  %5762 = vmatmul.mubr.msk.bf16.gmra.mxu0 %vm627_vm1, %v6217_v22  ;;  %v6221_v59 = vld [vmem:[%s9373_s0 + $0x35c] ss:$12 sps:$4 sm:$0xff]  }
 0x15a   :  { %v7332_v48 = vadd.f32 %v7180_v53, %v825_v46  ;;  %v7334_v61 = vpop.f32.mrf.mxu1  ;;  %1880 = vmatmul.mubr.bf16.gmra.mxu1 %v6214_v43  ;;  %5765 = vmatprep.mubr.msk.bf16.mxu0 %vm6472_vm0, %v9389_v1  ;;  %v6218_v53 = vld [vmem:[%s9373_s0 + $0x3fc] ss:$12 sps:$4 sm:$0xff]  }
 0x15b   :  { %v827_v55 = vpop.f32.mrf.mxu0  ;;  %1887 = vmatprep.mubr.bf16.mxu1 %v6220_v34  ;;  %v6224_v34 = vld [vmem:[%s9373_s0 + $0x418] ss:$12 sps:$4 sm:$0xff]  }
 0x15c   :  { %9455 = vst [vmem:[#allocation14_spill] sm:$0xff] %v7332_v48  ;;  %v5691_v17 = vpop.f32.mrf.mxu1 }
 0x15d   :  { %v828_v0 = vpop.f32.mrf.mxu0 }
 0x15e   :  { %v7342_v18 = vadd.f32 %v7190_v26, %v828_v0  ;;  %v7344_v22 = vpop.f32.mrf.mxu1 }
 0x15f   :  { %v830_v43 = vpop.f32.mrf.mxu0 }
 0x160   :  { %9456 = vst [vmem:[#allocation15_spill] sm:$0xff] %v7342_v18  ;;  %v5692_v46 = vpop.f32.mrf.mxu1 }
 0x161   :  { %v833_v55 = vpop.f32.mrf.mxu0  ;;  %5766 = vmatmul.mubr.msk.bf16.gmra.mxu0 %vm627_vm1, %v6221_v59  ;;  %v6225_v46 = vld [vmem:[%s9373_s0 + $0x374] ss:$12 sps:$4 sm:$0xff]  }
 0x162   :  { %v7354_v17 = vadd.f32 %v7202_v63, %v833_v55  ;;  %v7356_v0 = vpop.f32.mrf.mxu1  ;;  %1888 = vmatmul.mubr.bf16.gmra.mxu1 %v6218_v53  ;;  %5769 = vmatprep.mubr.msk.bf16.mxu0 %vm6472_vm0, %v9389_v1  ;;  %v6222_v63 = vld [vmem:[%s9373_s0 + $0x414] ss:$12 sps:$4 sm:$0xff]  }
 0x163   :  { %v835_v26 = vpop.f32.mrf.mxu0  ;;  %1895 = vmatprep.mubr.bf16.mxu1 %v6224_v34  ;;  %v6228_v34 = vld [vmem:[%s9373_s0 + $0x430] ss:$12 sps:$4 sm:$0xff]  }
 0x164   :  { %9457 = vst [vmem:[#allocation16_spill] sm:$0xff] %v7354_v17  ;;  %v5695_v43 = vpop.f32.mrf.mxu1 }
 0x165   :  { %v836_v18 = vpop.f32.mrf.mxu0 }
 0x166   :  { %v7364_v48 = vadd.f32 %v7212_v62, %v836_v18  ;;  %v7366_v59 = vpop.f32.mrf.mxu1 }
 0x167   :  { %v838_v53 = vpop.f32.mrf.mxu0 }
 0x168   :  { %9458 = vst [vmem:[#allocation17_spill] sm:$0xff] %v7364_v48  ;;  %v5696_v55 = vpop.f32.mrf.mxu1 }
 0x169   :  { %v841_v26 = vpop.f32.mrf.mxu0  ;;  %5770 = vmatmul.mubr.msk.bf16.gmra.mxu0 %vm627_vm1, %v6225_v46  ;;  %v6229_v55 = vld [vmem:[%s9373_s0 + $0x38c] ss:$12 sps:$4 sm:$0xff]  }
 0x16a   :  { %v7376_v43 = vadd.f32 %v7224_v12, %v841_v26  ;;  %v7378_v62 = vpop.f32.mrf.mxu1  ;;  %1896 = vmatmul.mubr.bf16.gmra.mxu1 %v6222_v63  ;;  %5773 = vmatprep.mubr.msk.bf16.mxu0 %vm6472_vm0, %v9389_v1  ;;  %v6226_v12 = vld [vmem:[%s9373_s0 + $0x42c] ss:$12 sps:$4 sm:$0xff]  }
 0x16b   :  { %v843_v18 = vpop.f32.mrf.mxu0  ;;  %1903 = vmatprep.mubr.bf16.mxu1 %v6228_v34  ;;  %v6232_v34 = vld [vmem:[%s9373_s0 + $0x448] ss:$12 sps:$4 sm:$0xff]  }
 0x16c   :  { %9459 = vst [vmem:[#allocation18_spill] sm:$0xff] %v7376_v43  ;;  %v5699_v53 = vpop.f32.mrf.mxu1 }
 0x16d   :  { %v844_v48 = vpop.f32.mrf.mxu0 }
 0x16e   :  { %v7386_v17 = vadd.f32 %v7234_v38, %v844_v48  ;;  %v7388_v46 = vpop.f32.mrf.mxu1 }
 0x16f   :  { %v846_v63 = vpop.f32.mrf.mxu0 }
 0x170   :  { %9460 = vst [vmem:[#allocation19_spill] sm:$0xff] %v7386_v17  ;;  %v5700_v26 = vpop.f32.mrf.mxu1 }
 0x171   :  { %v849_v18 = vpop.f32.mrf.mxu0  ;;  %5774 = vmatmul.mubr.msk.bf16.gmra.mxu0 %vm627_vm1, %v6229_v55  ;;  %v6233_v26 = vld [vmem:[%s9373_s0 + $0x3a4] ss:$12 sps:$4 sm:$0xff]  }
 0x172   :  { %v7398_v53 = vadd.f32 %v7246_v23, %v849_v18  ;;  %v7400_v38 = vpop.f32.mrf.mxu1  ;;  %1904 = vmatmul.mubr.bf16.gmra.mxu1 %v6226_v12  ;;  %5777 = vmatprep.mubr.msk.bf16.mxu0 %vm6472_vm0, %v9389_v1  ;;  %v6230_v23 = vld [vmem:[%s9373_s0 + $0x444] ss:$12 sps:$4 sm:$0xff]  }
 0x173   :  { %v851_v48 = vpop.f32.mrf.mxu0  ;;  %1911 = vmatprep.mubr.bf16.mxu1 %v6232_v34  ;;  %v6236_v34 = vld [vmem:[%s9373_s0 + $0x460] ss:$12 sps:$4 sm:$0xff]  }
 0x174   :  { %9461 = vst [vmem:[#allocation20_spill] sm:$0xff] %v7398_v53  ;;  %v5703_v63 = vpop.f32.mrf.mxu1 }
 0x175   :  { %v852_v17 = vpop.f32.mrf.mxu0 }
 0x176   :  { %v7408_v43 = vadd.f32 %v7256_v20, %v852_v17  ;;  %v7410_v55 = vpop.f32.mrf.mxu1 }
 0x177   :  { %v854_v12 = vpop.f32.mrf.mxu0 }
 0x178   :  { %9462 = vst [vmem:[#allocation21_spill] sm:$0xff] %v7408_v43  ;;  %v5704_v18 = vpop.f32.mrf.mxu1 }
 0x179   :  { %v857_v48 = vpop.f32.mrf.mxu0  ;;  %5778 = vmatmul.mubr.msk.bf16.gmra.mxu0 %vm627_vm1, %v6233_v26  ;;  %v6237_v18 = vld [vmem:[%s9373_s0 + $0x3bc] ss:$12 sps:$4 sm:$0xff]  }
 0x17a   :  { %v7420_v63 = vadd.f32 %v7268_v44, %v857_v48  ;;  %v7422_v20 = vpop.f32.mrf.mxu1  ;;  %1912 = vmatmul.mubr.bf16.gmra.mxu1 %v6230_v23  ;;  %5781 = vmatprep.mubr.msk.bf16.mxu0 %vm6472_vm0, %v9389_v1  ;;  %v6234_v44 = vld [vmem:[%s9373_s0 + $0x45c] ss:$12 sps:$4 sm:$0xff]  }
 0x17b   :  { %v859_v17 = vpop.f32.mrf.mxu0  ;;  %1919 = vmatprep.mubr.bf16.mxu1 %v6236_v34  ;;  %v6240_v34 = vld [vmem:[%s9373_s0 + $0x478] ss:$12 sps:$4 sm:$0xff]  }
 0x17c   :  { %9463 = vst [vmem:[#allocation22_spill] sm:$0xff] %v7420_v63  ;;  %v5707_v12 = vpop.f32.mrf.mxu1 }
 0x17d   :  { %v860_v43 = vpop.f32.mrf.mxu0 }
 0x17e   :  { %v7430_v53 = vadd.f32 %v7278_v6, %v860_v43  ;;  %v7432_v26 = vpop.f32.mrf.mxu1 }
 0x17f   :  { %v862_v23 = vpop.f32.mrf.mxu0 }
 0x180   :  { %9464 = vst [vmem:[#allocation23_spill] sm:$0xff] %v7430_v53  ;;  %v5708_v48 = vpop.f32.mrf.mxu1  ;;  %v4908_v53 = vld [vmem:[%s9373_s0 + $0x48c] sm:$0xff] }
 0x181   :  { %v865_v17 = vpop.f32.mrf.mxu0  ;;  %5782 = vmatmul.mubr.msk.bf16.gmra.mxu0 %vm627_vm1, %v6237_v18  ;;  %v6241_v18 = vld [vmem:[%s9373_s0 + $0x3d4] ss:$12 sps:$4 sm:$0xff]  }
 0x182   :  { %v7442_v12 = vadd.f32 %v7290_v4, %v865_v17  ;;  %v7444_v6 = vpop.f32.mrf.mxu1  ;;  %1920 = vmatmul.mubr.bf16.gmra.mxu1 %v6234_v44  ;;  %5785 = vmatprep.mubr.msk.bf16.mxu0 %vm6472_vm0, %v9389_v1  ;;  %v6238_v44 = vld [vmem:[%s9373_s0 + $0x474] ss:$12 sps:$4 sm:$0xff]  }
 0x183   :  { %v867_v43 = vpop.f32.mrf.mxu0  ;;  %1927 = vmatprep.mubr.bf16.mxu1 %v6240_v34 }
 0x184   :  { %9465 = vst [vmem:[#allocation24_spill] sm:$0xff] %v7442_v12  ;;  %v5711_v23 = vpop.f32.mrf.mxu1  ;;  %v4983_v43 = vcombine.high %v4908_v53, %v4908_v53 }
 0x185   :  { %v868_v48 = vpop.f32.mrf.mxu0 }
 0x186   :  { %v7455_v4 = vadd.f32 %v7300_v7, %v868_v48  ;;  %v7457_v17 = vpop.f32.mrf.mxu1  ;;  %v9468_v7 = vmov 0.0  }
 0x187   :  { %v870_v34 = vpop.f32.mrf.mxu0 }
 0x188   :  { %9466 = vst [vmem:[#allocation25_spill] sm:$0xff] %v7455_v4  ;;  %v5712_v23 = vpop.f32.mrf.mxu1  ;;  %v6244_v34 = vld [vmem:[%s9373_s0 + $0x3ec] ss:$12 sps:$4 sm:$0xff]  }
 0x189   :  { %v873_v1 = vpop.f32.mrf.mxu0  ;;  %5786 = vmatmul.mubr.msk.bf16.gmra.mxu0 %vm627_vm1, %v6241_v18 }
 0x18a   :  { %v7464_v12 = vadd.f32 %v7312_v31, %v873_v1  ;;  %v7466_v63 = vpop.f32.mrf.mxu1  ;;  %1928 = vmatmul.mubr.bf16.gmra.mxu1 %v6238_v44  ;;  %5789 = vmatprep.mubr.msk.bf16.mxu0 %vm6472_vm0, %v9468_v7  ;;  %v4982_v1 = vcombine.low %v4908_v53, %v4908_v53  ;;  %v6247_v44 = vld [vmem:[%s9373_s0 + $0x49c] ss:$12 sps:$4 sm:$0xff]  }
 0x18b   :  { %v875_v48 = vpop.f32.mrf.mxu0  ;;  %1935 = vmatprep.mubr.bf16.mxu1 %v4983_v43 }
 0x18c   :  { %9467 = vst [vmem:[#allocation26_spill] sm:$0xff] %v7464_v12  ;;  %v5715_v4 = vpop.f32.mrf.mxu1 }
 0x18d   :  { %v876_v10 = vpop.f32.mrf.mxu0 }
 0x18e   :  { %v7474_v23 = vadd.f32 %v7322_v24, %v876_v10  ;;  %v1164_v18 = vpop.f32.mrf.mxu1 }
 0x18f   :  { %v878_v31 = vpop.f32.mrf.mxu0  ;;  %v6251_v18 = vld [vmem:[%s9373_s0 + $0x4b4] ss:$12 sps:$4 sm:$0xff]  }
 0x190   :  { %v5716_v12 = vpop.f32.mrf.mxu1 }
 0x191   :  { %v881_v39 = vpop.f32.mrf.mxu0  ;;  %5790 = vmatmul.mubr.msk.bf16.gmra.mxu0 %vm627_vm1, %v6244_v34  ;;  %v6248_v12 = vld [vmem:[%s9373_s0 + $0x404] ss:$12 sps:$4 sm:$0xff]  }
 0x192   :  { %v7481_v4 = vadd.f32 %v7334_v61, %v881_v39  ;;  %v7483_v43 = vpop.f32.mrf.mxu1  ;;  %1936 = vmatmul.mubr.bf16.gmra.mxu1 %v4982_v1  ;;  %5793 = vmatprep.mubr.msk.bf16.mxu0 %vm6472_vm0, %v9468_v7  ;;  %v6245_v39 = vld [vmem:[%s9373_s0 + $0x498] ss:$12 sps:$4 sm:$0xff]  }
 0x193   :  { %v883_v10 = vpop.f32.mrf.mxu0  ;;  %2800 = vmatprep.mubr.bf16.mxu1 %v6247_v44 }
 0x194   :  { %v1747_v24 = vpop.f32.mrf.mxu1 }
 0x195   :  { %v884_v53 = vpop.f32.mrf.mxu0 }
 0x196   :  { %v7491_v48 = vadd.f32 %v7344_v22, %v884_v53  ;;  %v7493_v34 = vpop.f32.mrf.mxu1  ;;  %v9470_v53 = vmov 0  }
 0x197   :  { %v886_v61 = vpop.f32.mrf.mxu0 }
 0x198   :  { %v1750_v1 = vpop.f32.mrf.mxu1 }
 0x199   :  { %v889_v31 = vpop.f32.mrf.mxu0  ;;  %5794 = vmatmul.mubr.msk.bf16.gmra.mxu0 %vm627_vm1, %v6248_v12  ;;  %v6252_v12 = vld [vmem:[%s9373_s0 + $0x41c] ss:$12 sps:$4 sm:$0xff]  }
 0x19a   :  { %v7503_v44 = vadd.f32 %v7356_v0, %v889_v31  ;;  %v7505_v22 = vpop.f32.mrf.mxu1  ;;  %2801 = vmatmul.mubr.bf16.vlgmr.msra.gmra.mxu1 %v6245_v39  ;;  %5797 = vmatprep.mubr.msk.bf16.mxu0 %vm6472_vm0, %v9468_v7  ;;  %v6249_v39 = vld [vmem:[%s9373_s0 + $0x4b0] ss:$12 sps:$4 sm:$0xff]  }
 0x19b   :  { %v891_v10 = vpop.f32.mrf.mxu0  ;;  %2808 = vmatprep.mubr.bf16.mxu1 %v6251_v18  ;;  %3826 = vmatpush1.bf16.msra.mxu1 %v6878_v30  ;;  %v6255_v30 = vld [vmem:[%s9373_s0 + $0x4cc] ss:$12 sps:$4 sm:$0xff]  }
 0x19c   :  { %9469 = vst [vmem:[#allocation27_spill] sm:$0xff] %v7503_v44  ;;  %v1755_v24 = vpop.f32.mrf.mxu1  ;;  %3827 = vmatprep.subr.bf16.mxu1 %v9470_v53 }
 0x19d   :  { %v892_v61 = vpop.f32.mrf.mxu0 }
 0x19e   :  { %v7515_v0 = vadd.f32 %v7366_v59, %v892_v61  ;;  %v7517_v1 = vpop.f32.mrf.mxu1 }
 0x19f   :  { %v894_v18 = vpop.f32.mrf.mxu0  ;;  %3828 = vmatpush1.bf16.msra.mxu1 %v6899_v37 }
 0x1a0   :  { %v1758_v31 = vpop.f32.mrf.mxu1  ;;  %3829 = vmatprep.subr.bf16.mxu1 %v9470_v53 }
 0x1a1   :  { %v897_v10 = vpop.f32.mrf.mxu0  ;;  %5798 = vmatmul.mubr.msk.bf16.gmra.mxu0 %vm627_vm1, %v6252_v12  ;;  %v6256_v12 = vld [vmem:[%s9373_s0 + $0x434] ss:$12 sps:$4 sm:$0xff]  }
 0x1a2   :  { %v7529_v59 = vadd.f32 %v7378_v62, %v897_v10  ;;  %v7531_v24 = vpop.f32.mrf.mxu1  ;;  %2809 = vmatmul.mubr.bf16.gmra.mxu1 %v6249_v39  ;;  %5801 = vmatprep.mubr.msk.bf16.mxu0 %vm6472_vm0, %v9468_v7  ;;  %v6253_v39 = vld [vmem:[%s9373_s0 + $0x4c8] ss:$12 sps:$4 sm:$0xff]  }
 0x1a3   :  { %v899_v61 = vpop.f32.mrf.mxu0  ;;  %2816 = vmatprep.mubr.bf16.mxu1 %v6255_v30  ;;  %3830 = vmatpush1.bf16.msra.mxu1 %v6908_v40  ;;  %v6259_v40 = vld [vmem:[%s9373_s0 + $0x4e4] ss:$12 sps:$4 sm:$0xff]  }
 0x1a4   :  { %9471 = vst [vmem:[#allocation28_spill] sm:$0xff] %v7529_v59  ;;  %v1763_v37 = vpop.f32.mrf.mxu1  ;;  %3831 = vmatprep.subr.bf16.mxu1 %v9470_v53 }
 0x1a5   :  { %v900_v18 = vpop.f32.mrf.mxu0 }
 0x1a6   :  { %v7541_v62 = vadd.f32 %v7388_v46, %v900_v18  ;;  %v7543_v31 = vpop.f32.mrf.mxu1 }
 0x1a7   :  { %v902_v30 = vpop.f32.mrf.mxu0  ;;  %3832 = vmatpush1.bf16.msra.mxu1 %v6929_v47 }
 0x1a8   :  { %v1766_v10 = vpop.f32.mrf.mxu1  ;;  %3833 = vmatprep.subr.bf16.mxu1 %v9470_v53 }
 0x1a9   :  { %v905_v61 = vpop.f32.mrf.mxu0  ;;  %5802 = vmatmul.mubr.msk.bf16.gmra.mxu0 %vm627_vm1, %v6256_v12  ;;  %v6260_v12 = vld [vmem:[%s9373_s0 + $0x44c] ss:$12 sps:$4 sm:$0xff]  }
 0x1aa   :  { %v7555_v46 = vadd.f32 %v7400_v38, %v905_v61  ;;  %v7557_v37 = vpop.f32.mrf.mxu1  ;;  %2817 = vmatmul.mubr.bf16.gmra.mxu1 %v6253_v39  ;;  %5805 = vmatprep.mubr.msk.bf16.mxu0 %vm6472_vm0, %v9468_v7  ;;  %v6257_v39 = vld [vmem:[%s9373_s0 + $0x4e0] ss:$12 sps:$4 sm:$0xff]  }
 0x1ab   :  { %v907_v18 = vpop.f32.mrf.mxu0  ;;  %2824 = vmatprep.mubr.bf16.mxu1 %v6259_v40  ;;  %3834 = vmatpush1.bf16.msra.mxu1 %v6938_v50  ;;  %v6263_v50 = vld [vmem:[%s9373_s0 + $0x4fc] ss:$12 sps:$4 sm:$0xff]  }
 0x1ac   :  { %9472 = vst [vmem:[#allocation29_spill] sm:$0xff] %v7555_v46  ;;  %v1771_v47 = vpop.f32.mrf.mxu1  ;;  %3835 = vmatprep.subr.bf16.mxu1 %v9470_v53 }
 0x1ad   :  { %v908_v30 = vpop.f32.mrf.mxu0 }
 0x1ae   :  { %v7567_v38 = vadd.f32 %v7410_v55, %v908_v30  ;;  %v7569_v10 = vpop.f32.mrf.mxu1 }
 0x1af   :  { %v910_v40 = vpop.f32.mrf.mxu0  ;;  %3836 = vmatpush1.bf16.msra.mxu1 %v6959_v57 }
 0x1b0   :  { %v1774_v61 = vpop.f32.mrf.mxu1  ;;  %3837 = vmatprep.subr.bf16.mxu1 %v9470_v53 }
 0x1b1   :  { %v913_v18 = vpop.f32.mrf.mxu0  ;;  %5806 = vmatmul.mubr.msk.bf16.gmra.mxu0 %vm627_vm1, %v6260_v12  ;;  %v6264_v12 = vld [vmem:[%s9373_s0 + $0x464] ss:$12 sps:$4 sm:$0xff]  }
 0x1b2   :  { %v7581_v55 = vadd.f32 %v7422_v20, %v913_v18  ;;  %v7583_v47 = vpop.f32.mrf.mxu1  ;;  %2825 = vmatmul.mubr.bf16.gmra.mxu1 %v6257_v39  ;;  %5809 = vmatprep.mubr.msk.bf16.mxu0 %vm6472_vm0, %v9468_v7  ;;  %v6261_v39 = vld [vmem:[%s9373_s0 + $0x4f8] ss:$12 sps:$4 sm:$0xff]  }
 0x1b3   :  { %v915_v30 = vpop.f32.mrf.mxu0  ;;  %2832 = vmatprep.mubr.bf16.mxu1 %v6263_v50  ;;  %3838 = vmatpush1.bf16.msra.mxu1 %v6968_v60  ;;  %v6267_v60 = vld [vmem:[%s9373_s0 + $0x514] ss:$12 sps:$4 sm:$0xff]  }
 0x1b4   :  { %9473 = vst [vmem:[#allocation30_spill] sm:$0xff] %v7581_v55  ;;  %v1779_v57 = vpop.f32.mrf.mxu1  ;;  %3839 = vmatprep.subr.bf16.mxu1 %v9470_v53 }
 0x1b5   :  { %v916_v40 = vpop.f32.mrf.mxu0 }
 0x1b6   :  { %v7593_v20 = vadd.f32 %v7432_v26, %v916_v40  ;;  %v7595_v61 = vpop.f32.mrf.mxu1 }
 0x1b7   :  { %v918_v50 = vpop.f32.mrf.mxu0  ;;  %3840 = vmatpush1.bf16.msra.mxu1 %v6989_v5 }
 0x1b8   :  { %v1782_v18 = vpop.f32.mrf.mxu1  ;;  %3841 = vmatprep.subr.bf16.mxu1 %v9470_v53 }
 0x1b9   :  { %v921_v30 = vpop.f32.mrf.mxu0  ;;  %5810 = vmatmul.mubr.msk.bf16.gmra.mxu0 %vm627_vm1, %v6264_v12  ;;  %v6268_v12 = vld [vmem:[%s9373_s0 + $0x47c] ss:$12 sps:$4 sm:$0xff]  }
 0x1ba   :  { %v7607_v26 = vadd.f32 %v7444_v6, %v921_v30  ;;  %v7609_v57 = vpop.f32.mrf.mxu1  ;;  %2833 = vmatmul.mubr.bf16.gmra.mxu1 %v6261_v39  ;;  %5813 = vmatprep.mubr.msk.bf16.mxu0 %vm6472_vm0, %v9468_v7  ;;  %v6265_v39 = vld [vmem:[%s9373_s0 + $0x510] ss:$12 sps:$4 sm:$0xff]  }
 0x1bb   :  { %v923_v40 = vpop.f32.mrf.mxu0  ;;  %2840 = vmatprep.mubr.bf16.mxu1 %v6267_v60  ;;  %3842 = vmatpush2.bf16.msra.mxu1 %v7001_v9  ;;  %v6271_v9 = vld [vmem:[%s9373_s0 + $0x52c] ss:$12 sps:$4 sm:$0xff]  }
 0x1bc   :  { %9474 = vst [vmem:[#allocation31_spill] sm:$0xff] %v7607_v26  ;;  %v1787_v5 = vpop.f32.mrf.mxu1  ;;  %3843 = vmatprep.subr.bf16.mxu1 %v9470_v53 }
 0x1bd   :  { %v924_v50 = vpop.f32.mrf.mxu0 }
 0x1be   :  { %v7619_v6 = vadd.f32 %v7457_v17, %v924_v50  ;;  %v7621_v18 = vpop.f32.mrf.mxu1 }
 0x1bf   :  { %v926_v60 = vpop.f32.mrf.mxu0  ;;  %3844 = vmatpush2.bf16.msra.mxu1 %v7019_v16 }
 0x1c0   :  { %v1790_v30 = vpop.f32.mrf.mxu1  ;;  %3845 = vmatprep.subr.bf16.mxu1 %v9470_v53 }
 0x1c1   :  { %v929_v40 = vpop.f32.mrf.mxu0  ;;  %5814 = vmatmul.mubr.msk.bf16.gmra.mxu0 %vm627_vm1, %v6268_v12  ;;  %v6272_v12 = vld [vmem:[%s9373_s0 + $0x494] ss:$0 sps:$4 sm:$0xff]  }
 0x1c2   :  { %v7633_v17 = vadd.f32 %v7466_v63, %v929_v40  ;;  %v7635_v5 = vpop.f32.mrf.mxu1  ;;  %2841 = vmatmul.mubr.bf16.gmra.mxu1 %v6265_v39  ;;  %5817 = vmatprep.mubr.msk.bf16.mxu0 %vm6472_vm0, %v9468_v7  ;;  %v6269_v39 = vld [vmem:[%s9373_s0 + $0x528] ss:$12 sps:$4 sm:$0xff]  }
 0x1c3   :  { %v931_v50 = vpop.f32.mrf.mxu0  ;;  %2848 = vmatprep.mubr.bf16.mxu1 %v6271_v9  ;;  %3846 = vmatpush2.bf16.msra.mxu1 %v7028_v19  ;;  %v6275_v9 = vld [vmem:[%s9373_s0 + $0x544] ss:$12 sps:$4 sm:$0xff]  }
 0x1c4   :  { %9475 = vst [vmem:[#allocation32_spill] sm:$0xff] %v7633_v17  ;;  %v1795_v16 = vpop.f32.mrf.mxu1  ;;  %3847 = vmatprep.subr.bf16.mxu1 %v9470_v53 }
 0x1c5   :  { %v932_v60 = vpop.f32.mrf.mxu0 }
 0x1c6   :  { %v7644_v63 = vpop.f32.mrf.mxu1 }
 0x1c7   :  { %v933_v30 = vpop.f32.mrf.mxu0  ;;  %3848 = vmatpush2.bf16.msra.mxu1 %v7043_v27 }
 0x1c8   :  { %v1798_v19 = vpop.f32.mrf.mxu1  ;;  %3849 = vmatprep.subr.bf16.mxu1 %v9470_v53 }
 0x1c9   :  { %v1977_v40 = vpop.f32.mrf.mxu0  ;;  %5818 = vmatmul.mubr.msk.bf16.gmra.mxu0 %vm627_vm1, %v6272_v12 }
 0x1ca   :  { %v7655_v50 = vpop.f32.mrf.mxu1  ;;  %v7658_v16 = vadd.f32 %v1977_v40, %v7483_v43  ;;  %2849 = vmatmul.mubr.bf16.gmra.mxu1 %v6269_v39  ;;  %5825 = vmatprep.mubr.msk.bf16.mxu0 %vm6472_vm0, %v9468_v7  ;;  %v6276_v43 = vld [vmem:[%s9373_s0 + $0x4a0] ss:$12 sps:$4 sm:$0xff]   ;;  %v6279_v40 = vld [vmem:[%s9373_s0 + $0x55c] ss:$12 sps:$4 sm:$0xff]  }
 0x1cb   :  { %v5723_v60 = vpop.f32.mrf.mxu0  ;;  %2856 = vmatprep.mubr.bf16.mxu1 %v6275_v9  ;;  %3850 = vmatpush2.bf16.msra.mxu1 %v7057_v36  ;;  %v6273_v36 = vld [vmem:[%s9373_s0 + $0x540] ss:$12 sps:$4 sm:$0xff]  }
 0x1cc   :  { %v1803_v30 = vpop.f32.mrf.mxu1  ;;  %3851 = vmatprep.subr.bf16.mxu1 %v9470_v53 }
 0x1cd   :  { %v1980_v12 = vpop.f32.mrf.mxu0 }
 0x1ce   :  { %v7669_v19 = vpop.f32.mrf.mxu1  ;;  %v7672_v39 = vadd.f32 %v1980_v12, %v7493_v34 }
 0x1cf   :  { %v5724_v9 = vpop.f32.mrf.mxu0  ;;  %3852 = vmatpush2.bf16.msra.mxu1 %v7078_v51 }
 0x1d0   :  { %v1806_v30 = vpop.f32.mrf.mxu1  ;;  %3853 = vmatprep.subr.bf16.mxu1 %v9470_v53 }
 0x1d1   :  { %v1985_v27 = vpop.f32.mrf.mxu0  ;;  %5826 = vmatmul.mubr.msk.bf16.vlgmr.msra.gmra.mxu0 %vm627_vm1, %v6276_v43 }
 0x1d2   :  { %v7685_v34 = vpop.f32.mrf.mxu1  ;;  %v7688_v12 = vadd.f32 %v1985_v27, %v7505_v22  ;;  %2857 = vmatmul.mubr.bf16.gmra.mxu1 %v6273_v36  ;;  %5926 = vmatpush3.bf16.msra.mxu0 %v7091_v56  ;;  %v6280_v22 = vld [vmem:[%s9373_s0 + $0x4b8] ss:$12 sps:$4 sm:$0xff]  }
 0x1d3   :  { %v5727_v9 = vpop.f32.mrf.mxu0  ;;  %2864 = vmatprep.mubr.bf16.mxu1 %v6279_v40  ;;  %5829 = vmatprep.mubr.msk.bf16.mxu0 %vm6472_vm0, %v9468_v7  ;;  %v6277_v36 = vld [vmem:[%s9373_s0 + $0x558] ss:$12 sps:$4 sm:$0xff]  }
 0x1d4   :  { %v1811_v30 = vpop.f32.mrf.mxu1  ;;  %5927 = vmatprep.subr.bf16.mxu0 %v9468_v7  ;;  %3854 = vmatpush2.bf16.msra.mxu1 %v7100_v29  ;;  %v6283_v29 = vld [vmem:[%s9373_s0 + $0x574] ss:$12 sps:$4 sm:$0xff]  }
 0x1d5   :  { %v1988_v43 = vpop.f32.mrf.mxu0  ;;  %3855 = vmatprep.subr.bf16.mxu1 %v9470_v53 }
 0x1d6   :  { %v7701_v56 = vpop.f32.mrf.mxu1  ;;  %v7704_v27 = vadd.f32 %v1988_v43, %v7517_v1  ;;  %5928 = vmatpush3.bf16.msra.mxu0 %v7118_v8 }
 0x1d7   :  { %v5728_v40 = vpop.f32.mrf.mxu0 }
 0x1d8   :  { %v1814_v53 = vpop.f32.mrf.mxu1  ;;  %3856 = vmatpush2.bf16.msra.mxu1 %v7128_v13 }
 0x1d9   :  { %v1993_v30 = vpop.f32.mrf.mxu0  ;;  %5830 = vmatmul.mubr.msk.bf16.gmra.mxu0 %vm627_vm1, %v6280_v22  ;;  %6029 = vmatprep.subr.bf16.mxu1 %v9468_v7  ;;  %v6284_v22 = vld [vmem:[%s9373_s0 + $0x4d0] ss:$12 sps:$4 sm:$0xff]  }
 0x1da   :  { %v7718_v1 = vpop.f32.mrf.mxu1  ;;  %v7721_v8 = vadd.f32 %v1993_v30, %v7531_v24  ;;  %2865 = vmatmul.mubr.bf16.gmra.mxu1 %v6277_v36  ;;  %5833 = vmatprep.mubr.msk.bf16.mxu0 %vm6472_vm0, %v9468_v7  ;;  %v6281_v36 = vld [vmem:[%s9373_s0 + $0x570] ss:$12 sps:$4 sm:$0xff]  }
 0x1db   :  { %v5731_v43 = vpop.f32.mrf.mxu0  ;;  %2872 = vmatprep.mubr.bf16.mxu1 %v6283_v29  ;;  %v6287_v29 = vld [vmem:[%s9373_s0 + $0x58c] ss:$12 sps:$4 sm:$0xff]  }
 0x1dc   :  { %v1819_v13 = vpop.f32.mrf.mxu1 }
 0x1dd   :  { %v1996_v53 = vpop.f32.mrf.mxu0 }
 0x1de   :  { %v7730_v9 = vpop.f32.mrf.mxu1  ;;  %v7733_v24 = vadd.f32 %v1996_v53, %v7543_v31 }
 0x1df   :  { %v5732_v30 = vpop.f32.mrf.mxu0 }
 0x1e0   :  { %v1822_v13 = vpop.f32.mrf.mxu1 }
 0x1e1   :  { %v2001_v40 = vpop.f32.mrf.mxu0  ;;  %5834 = vmatmul.mubr.msk.bf16.gmra.mxu0 %vm627_vm1, %v6284_v22  ;;  %v6288_v22 = vld [vmem:[%s9373_s0 + $0x4e8] ss:$12 sps:$4 sm:$0xff]  }
 0x1e2   :  { %v7744_v51 = vpop.f32.mrf.mxu1  ;;  %v7747_v31 = vadd.f32 %v2001_v40, %v7557_v37  ;;  %2873 = vmatmul.mubr.bf16.gmra.mxu1 %v6281_v36  ;;  %5837 = vmatprep.mubr.msk.bf16.mxu0 %vm6472_vm0, %v9468_v7  ;;  %v6285_v40 = vld [vmem:[%s9373_s0 + $0x588] ss:$12 sps:$4 sm:$0xff]  }
 0x1e3   :  { %v5735_v53 = vpop.f32.mrf.mxu0  ;;  %2880 = vmatprep.mubr.bf16.mxu1 %v6287_v29  ;;  %v6291_v29 = vld [vmem:[%s9373_s0 + $0x5a4] ss:$12 sps:$4 sm:$0xff]  }
 0x1e4   :  { %9476 = vst [vmem:[#allocation33_spill] sm:$0xff] %v7747_v31  ;;  %v1827_v60 = vpop.f32.mrf.mxu1 }
 0x1e5   :  { %v2004_v43 = vpop.f32.mrf.mxu0 }
 0x1e6   :  { %v7756_v13 = vpop.f32.mrf.mxu1  ;;  %v7759_v37 = vadd.f32 %v2004_v43, %v7569_v10 }
 0x1e7   :  { %v5736_v36 = vpop.f32.mrf.mxu0 }
 0x1e8   :  { %v1830_v53 = vpop.f32.mrf.mxu1 }
 0x1e9   :  { %v2009_v30 = vpop.f32.mrf.mxu0  ;;  %5838 = vmatmul.mubr.msk.bf16.gmra.mxu0 %vm627_vm1, %v6288_v22  ;;  %v6292_v22 = vld [vmem:[%s9373_s0 + $0x500] ss:$12 sps:$4 sm:$0xff]  }
 0x1ea   :  { %v7770_v31 = vpop.f32.mrf.mxu1  ;;  %v7773_v10 = vadd.f32 %v2009_v30, %v7583_v47  ;;  %2881 = vmatmul.mubr.bf16.gmra.mxu1 %v6285_v40  ;;  %5841 = vmatprep.mubr.msk.bf16.mxu0 %vm6472_vm0, %v9468_v7  ;;  %v6289_v30 = vld [vmem:[%s9373_s0 + $0x5a0] ss:$12 sps:$4 sm:$0xff]  }
 0x1eb   :  { %v5739_v43 = vpop.f32.mrf.mxu0  ;;  %2888 = vmatprep.mubr.bf16.mxu1 %v6291_v29  ;;  %v6295_v29 = vld [vmem:[%s9373_s0 + $0x5bc] ss:$12 sps:$4 sm:$0xff]  }
 0x1ec   :  { %9477 = vst [vmem:[#allocation34_spill] sm:$0xff] %v7773_v10  ;;  %v1835_v45 = vpop.f32.mrf.mxu1 }
 0x1ed   :  { %v2012_v60 = vpop.f32.mrf.mxu0 }
 0x1ee   :  { %v7782_v53 = vpop.f32.mrf.mxu1  ;;  %v7785_v47 = vadd.f32 %v2012_v60, %v7595_v61 }
 0x1ef   :  { %v5740_v40 = vpop.f32.mrf.mxu0 }
 0x1f0   :  { %v1838_v43 = vpop.f32.mrf.mxu1 }
 0x1f1   :  { %v2017_v36 = vpop.f32.mrf.mxu0  ;;  %5842 = vmatmul.mubr.msk.bf16.gmra.mxu0 %vm627_vm1, %v6292_v22  ;;  %v6296_v22 = vld [vmem:[%s9373_s0 + $0x518] ss:$12 sps:$4 sm:$0xff]  }
 0x1f2   :  { %v7796_v10 = vpop.f32.mrf.mxu1  ;;  %v7799_v61 = vadd.f32 %v2017_v36, %v7609_v57  ;;  %2889 = vmatmul.mubr.bf16.gmra.mxu1 %v6289_v30  ;;  %5845 = vmatprep.mubr.msk.bf16.mxu0 %vm6472_vm0, %v9468_v7  ;;  %v6293_v36 = vld [vmem:[%s9373_s0 + $0x5b8] ss:$12 sps:$4 sm:$0xff]  }
 0x1f3   :  { %v5743_v60 = vpop.f32.mrf.mxu0  ;;  %2896 = vmatprep.mubr.bf16.mxu1 %v6295_v29  ;;  %v6299_v29 = vld [vmem:[%s9373_s0 + $0x5d4] ss:$12 sps:$4 sm:$0xff]  }
 0x1f4   :  { %9478 = vst [vmem:[#allocation35_spill] sm:$0xff] %v7799_v61  ;;  %v1843_v11 = vpop.f32.mrf.mxu1 }
 0x1f5   :  { %v2020_v45 = vpop.f32.mrf.mxu0 }
 0x1f6   :  { %v7808_v43 = vpop.f32.mrf.mxu1  ;;  %v7811_v57 = vadd.f32 %v2020_v45, %v7621_v18 }
 0x1f7   :  { %v5744_v30 = vpop.f32.mrf.mxu0 }
 0x1f8   :  { %v1846_v60 = vpop.f32.mrf.mxu1 }
 0x1f9   :  { %v2025_v40 = vpop.f32.mrf.mxu0  ;;  %5846 = vmatmul.mubr.msk.bf16.gmra.mxu0 %vm627_vm1, %v6296_v22  ;;  %v6300_v22 = vld [vmem:[%s9373_s0 + $0x530] ss:$12 sps:$4 sm:$0xff]  }
 0x1fa   :  { %v7822_v61 = vpop.f32.mrf.mxu1  ;;  %v7825_v18 = vadd.f32 %v2025_v40, %v7635_v5  ;;  %2897 = vmatmul.mubr.bf16.gmra.mxu1 %v6293_v36  ;;  %5849 = vmatprep.mubr.msk.bf16.mxu0 %vm6472_vm0, %v9468_v7  ;;  %v6297_v40 = vld [vmem:[%s9373_s0 + $0x5d0] ss:$12 sps:$4 sm:$0xff]  }
 0x1fb   :  { %v5747_v45 = vpop.f32.mrf.mxu0  ;;  %2904 = vmatprep.mubr.bf16.mxu1 %v6299_v29  ;;  %v6303_v29 = vld [vmem:[%s9373_s0 + $0x5ec] ss:$12 sps:$4 sm:$0xff]  }
 0x1fc   :  { %9479 = vst [vmem:[#allocation36_spill] sm:$0xff] %v7825_v18  ;;  %v1851_v41 = vpop.f32.mrf.mxu1 }
 0x1fd   :  { %v2028_v11 = vpop.f32.mrf.mxu0 }
 0x1fe   :  { %v7834_v60 = vpop.f32.mrf.mxu1  ;;  %v7837_v5 = vadd.f32 %v2028_v11, %v7644_v63 }
 0x1ff   :  { %v5748_v36 = vpop.f32.mrf.mxu0 }
 0x200   :  { %v1854_v45 = vpop.f32.mrf.mxu1 }
 0x201   :  { %v2033_v30 = vpop.f32.mrf.mxu0  ;;  %5850 = vmatmul.mubr.msk.bf16.gmra.mxu0 %vm627_vm1, %v6300_v22  ;;  %v6304_v22 = vld [vmem:[%s9373_s0 + $0x548] ss:$12 sps:$4 sm:$0xff]  }
 0x202   :  { %v7848_v18 = vpop.f32.mrf.mxu1  ;;  %v7851_v63 = vadd.f32 %v2033_v30, %v7655_v50  ;;  %2905 = vmatmul.mubr.bf16.gmra.mxu1 %v6297_v40  ;;  %5853 = vmatprep.mubr.msk.bf16.mxu0 %vm6472_vm0, %v9468_v7  ;;  %v6301_v30 = vld [vmem:[%s9373_s0 + $0x5e8] ss:$12 sps:$4 sm:$0xff]  }
 0x203   :  { %v5751_v11 = vpop.f32.mrf.mxu0  ;;  %2912 = vmatprep.mubr.bf16.mxu1 %v6303_v29  ;;  %v6307_v29 = vld [vmem:[%s9373_s0 + $0x604] ss:$12 sps:$4 sm:$0xff]  }
 0x204   :  { %9480 = vst [vmem:[#allocation37_spill] sm:$0xff] %v7851_v63  ;;  %v1859_v14 = vpop.f32.mrf.mxu1 }
 0x205   :  { %v2036_v41 = vpop.f32.mrf.mxu0 }
 0x206   :  { %v7860_v45 = vpop.f32.mrf.mxu1  ;;  %v7863_v50 = vadd.f32 %v2036_v41, %v7669_v19 }
 0x207   :  { %v5752_v40 = vpop.f32.mrf.mxu0 }
 0x208   :  { %9481 = vst [vmem:[#allocation38_spill] sm:$0xff] %v7863_v50  ;;  %v1862_v11 = vpop.f32.mrf.mxu1 }
 0x209   :  { %v2041_v36 = vpop.f32.mrf.mxu0  ;;  %5854 = vmatmul.mubr.msk.bf16.gmra.mxu0 %vm627_vm1, %v6304_v22  ;;  %v6308_v22 = vld [vmem:[%s9373_s0 + $0x560] ss:$12 sps:$4 sm:$0xff]  }
 0x20a   :  { %v7874_v63 = vpop.f32.mrf.mxu1  ;;  %v7877_v19 = vadd.f32 %v2041_v36, %v7685_v34  ;;  %2913 = vmatmul.mubr.bf16.gmra.mxu1 %v6301_v30  ;;  %5857 = vmatprep.mubr.msk.bf16.mxu0 %vm6472_vm0, %v9468_v7  ;;  %v6305_v36 = vld [vmem:[%s9373_s0 + $0x600] ss:$12 sps:$4 sm:$0xff]  }
 0x20b   :  { %v5755_v41 = vpop.f32.mrf.mxu0  ;;  %2920 = vmatprep.mubr.bf16.mxu1 %v6307_v29  ;;  %v6311_v29 = vld [vmem:[%s9373_s0 + $0x61c] ss:$12 sps:$4 sm:$0xff]  }
 0x20c   :  { %9482 = vst [vmem:[#allocation39_spill] sm:$0xff] %v7877_v19  ;;  %v1867_v52 = vpop.f32.mrf.mxu1 }
 0x20d   :  { %v2044_v14 = vpop.f32.mrf.mxu0 }
 0x20e   :  { %v7886_v11 = vpop.f32.mrf.mxu1  ;;  %v7889_v34 = vadd.f32 %v2044_v14, %v7701_v56 }
 0x20f   :  { %v5756_v30 = vpop.f32.mrf.mxu0 }
 0x210   :  { %9483 = vst [vmem:[#allocation40_spill] sm:$0xff] %v7889_v34  ;;  %v1870_v41 = vpop.f32.mrf.mxu1 }
 0x211   :  { %v2049_v40 = vpop.f32.mrf.mxu0  ;;  %5858 = vmatmul.mubr.msk.bf16.gmra.mxu0 %vm627_vm1, %v6308_v22  ;;  %v6312_v22 = vld [vmem:[%s9373_s0 + $0x578] ss:$12 sps:$4 sm:$0xff]  }
 0x212   :  { %v7900_v19 = vpop.f32.mrf.mxu1  ;;  %v7903_v56 = vadd.f32 %v2049_v40, %v7718_v1  ;;  %2921 = vmatmul.mubr.bf16.gmra.mxu1 %v6305_v36  ;;  %5861 = vmatprep.mubr.msk.bf16.mxu0 %vm6472_vm0, %v9468_v7  ;;  %v6309_v40 = vld [vmem:[%s9373_s0 + $0x618] ss:$12 sps:$4 sm:$0xff]  }
 0x213   :  { %v5759_v14 = vpop.f32.mrf.mxu0  ;;  %2928 = vmatprep.mubr.bf16.mxu1 %v6311_v29  ;;  %v6315_v29 = vld [vmem:[%s9373_s0 + $0x634] ss:$12 sps:$4 sm:$0xff]  }
 0x214   :  { %9484 = vst [vmem:[#allocation41_spill] sm:$0xff] %v7903_v56  ;;  %v1875_v50 = vpop.f32.mrf.mxu1 }
 0x215   :  { %v2052_v52 = vpop.f32.mrf.mxu0 }
 0x216   :  { %v7912_v41 = vpop.f32.mrf.mxu1  ;;  %v7915_v1 = vadd.f32 %v2052_v52, %v7730_v9 }
 0x217   :  { %v5760_v36 = vpop.f32.mrf.mxu0 }
 0x218   :  { %9486 = vst [vmem:[#allocation42_spill] sm:$0xff] %v7915_v1  ;;  %v1878_v21 = vpop.f32.mrf.mxu1 }
 0x219   :  { %v2057_v56 = vpop.f32.mrf.mxu0  ;;  %5862 = vmatmul.mubr.msk.bf16.gmra.mxu0 %vm627_vm1, %v6312_v22  ;;  %v6316_v21 = vld [vmem:[%s9373_s0 + $0x590] ss:$12 sps:$4 sm:$0xff]  }
 0x21a   :  { %v7926_v30 = vpop.f32.mrf.mxu1  ;;  %v7929_v9 = vadd.f32 %v2057_v56, %v7744_v51  ;;  %2929 = vmatmul.mubr.bf16.gmra.mxu1 %v6309_v40  ;;  %5865 = vmatprep.mubr.msk.bf16.mxu0 %vm6472_vm0, %v9468_v7  ;;  %v6313_v56 = vld [vmem:[%s9373_s0 + $0x630] ss:$12 sps:$4 sm:$0xff]  }
 0x21b   :  { %v5763_v52 = vpop.f32.mrf.mxu0  ;;  %2936 = vmatprep.mubr.bf16.mxu1 %v6315_v29  ;;  %v6319_v29 = vld [vmem:[%s9373_s0 + $0x64c] ss:$12 sps:$4 sm:$0xff]  }
 0x21c   :  { %9488 = vst [vmem:[#allocation43_spill] sm:$0xff] %v7929_v9  ;;  %v1883_v2 = vpop.f32.mrf.mxu1 }
 0x21d   :  { %v2060_v14 = vpop.f32.mrf.mxu0 }
 0x21e   :  { %v7938_v22 = vpop.f32.mrf.mxu1  ;;  %v7941_v51 = vadd.f32 %v2060_v14, %v7756_v13 }
 0x21f   :  { %v5764_v40 = vpop.f32.mrf.mxu0 }
 0x220   :  { %9490 = vst [vmem:[#allocation44_spill] sm:$0xff] %v7941_v51  ;;  %v1886_v34 = vpop.f32.mrf.mxu1 }
 0x221   :  { %v2065_v9 = vpop.f32.mrf.mxu0  ;;  %5866 = vmatmul.mubr.msk.bf16.gmra.mxu0 %vm627_vm1, %v6316_v21  ;;  %v6320_v34 = vld [vmem:[%s9373_s0 + $0x5a8] ss:$12 sps:$4 sm:$0xff]  }
 0x222   :  { %v7952_v36 = vpop.f32.mrf.mxu1  ;;  %v7955_v13 = vadd.f32 %v2065_v9, %v7770_v31  ;;  %2937 = vmatmul.mubr.bf16.gmra.mxu1 %v6313_v56  ;;  %5869 = vmatprep.mubr.msk.bf16.mxu0 %vm6472_vm0, %v9468_v7  ;;  %v6317_v9 = vld [vmem:[%s9373_s0 + $0x648] ss:$12 sps:$4 sm:$0xff]  }
 0x223   :  { %v5767_v14 = vpop.f32.mrf.mxu0  ;;  %2944 = vmatprep.mubr.bf16.mxu1 %v6319_v29  ;;  %v6323_v29 = vld [vmem:[%s9373_s0 + $0x664] ss:$12 sps:$4 sm:$0xff]  }
 0x224   :  { %9492 = vst [vmem:[#allocation45_spill] sm:$0xff] %v7955_v13  ;;  %v1891_v50 = vpop.f32.mrf.mxu1 }
 0x225   :  { %v2068_v52 = vpop.f32.mrf.mxu0 }
 0x226   :  { %v7964_v21 = vpop.f32.mrf.mxu1  ;;  %v7967_v31 = vadd.f32 %v2068_v52, %v7782_v53 }
 0x227   :  { %v5768_v56 = vpop.f32.mrf.mxu0 }
 0x228   :  { %9494 = vst [vmem:[#allocation46_spill] sm:$0xff] %v7967_v31  ;;  %v1894_v1 = vpop.f32.mrf.mxu1 }
 0x229   :  { %v2073_v13 = vpop.f32.mrf.mxu0  ;;  %5870 = vmatmul.mubr.msk.bf16.gmra.mxu0 %vm627_vm1, %v6320_v34  ;;  %v6324_v1 = vld [vmem:[%s9373_s0 + $0x5c0] ss:$12 sps:$4 sm:$0xff]  }
 0x22a   :  { %v7978_v40 = vpop.f32.mrf.mxu1  ;;  %v7981_v53 = vadd.f32 %v2073_v13, %v7796_v10  ;;  %2945 = vmatmul.mubr.bf16.gmra.mxu1 %v6317_v9  ;;  %5873 = vmatprep.mubr.msk.bf16.mxu0 %vm6472_vm0, %v9468_v7  ;;  %v6321_v13 = vld [vmem:[%s9373_s0 + $0x660] ss:$12 sps:$4 sm:$0xff]  }
 0x22b   :  { %v5771_v52 = vpop.f32.mrf.mxu0  ;;  %2952 = vmatprep.mubr.bf16.mxu1 %v6323_v29  ;;  %v6327_v29 = vld [vmem:[%s9373_s0 + $0x67c] ss:$12 sps:$4 sm:$0xff]  }
 0x22c   :  { %9496 = vst [vmem:[#allocation47_spill] sm:$0xff] %v7981_v53  ;;  %v1899_v2 = vpop.f32.mrf.mxu1 }
 0x22d   :  { %v2076_v14 = vpop.f32.mrf.mxu0 }
 0x22e   :  { %v7990_v34 = vpop.f32.mrf.mxu1  ;;  %v7993_v10 = vadd.f32 %v2076_v14, %v7808_v43 }
 0x22f   :  { %v5772_v9 = vpop.f32.mrf.mxu0 }
 0x230   :  { %9498 = vst [vmem:[#allocation48_spill] sm:$0xff] %v7993_v10  ;;  %v1902_v51 = vpop.f32.mrf.mxu1 }
 0x231   :  { %v2081_v53 = vpop.f32.mrf.mxu0  ;;  %5874 = vmatmul.mubr.msk.bf16.gmra.mxu0 %vm627_vm1, %v6324_v1  ;;  %v6328_v51 = vld [vmem:[%s9373_s0 + $0x5d8] ss:$12 sps:$4 sm:$0xff]  }
 0x232   :  { %v8004_v56 = vpop.f32.mrf.mxu1  ;;  %v8007_v43 = vadd.f32 %v2081_v53, %v7822_v61  ;;  %2953 = vmatmul.mubr.bf16.gmra.mxu1 %v6321_v13  ;;  %5877 = vmatprep.mubr.msk.bf16.mxu0 %vm6472_vm0, %v9468_v7  ;;  %v6325_v53 = vld [vmem:[%s9373_s0 + $0x678] ss:$12 sps:$4 sm:$0xff]  }
 0x233   :  { %v5775_v14 = vpop.f32.mrf.mxu0  ;;  %2960 = vmatprep.mubr.bf16.mxu1 %v6327_v29  ;;  %v6331_v29 = vld [vmem:[%s9373_s0 + $0x694] ss:$12 sps:$4 sm:$0xff]  }
 0x234   :  { %9500 = vst [vmem:[#allocation49_spill] sm:$0xff] %v8007_v43  ;;  %v1907_v50 = vpop.f32.mrf.mxu1 }
 0x235   :  { %v2084_v52 = vpop.f32.mrf.mxu0 }
 0x236   :  { %v8016_v1 = vpop.f32.mrf.mxu1  ;;  %v8019_v61 = vadd.f32 %v2084_v52, %v7834_v60 }
 0x237   :  { %v5776_v13 = vpop.f32.mrf.mxu0 }
 0x238   :  { %9502 = vst [vmem:[#allocation50_spill] sm:$0xff] %v8019_v61  ;;  %v1910_v31 = vpop.f32.mrf.mxu1 }
 0x239   :  { %v2089_v43 = vpop.f32.mrf.mxu0  ;;  %5878 = vmatmul.mubr.msk.bf16.gmra.mxu0 %vm627_vm1, %v6328_v51  ;;  %v6332_v31 = vld [vmem:[%s9373_s0 + $0x5f0] ss:$12 sps:$4 sm:$0xff]  }
 0x23a   :  { %v8030_v9 = vpop.f32.mrf.mxu1  ;;  %v8033_v60 = vadd.f32 %v2089_v43, %v7848_v18  ;;  %2961 = vmatmul.mubr.bf16.gmra.mxu1 %v6325_v53  ;;  %5881 = vmatprep.mubr.msk.bf16.mxu0 %vm6472_vm0, %v9468_v7  ;;  %v6329_v43 = vld [vmem:[%s9373_s0 + $0x690] ss:$12 sps:$4 sm:$0xff]  }
 0x23b   :  { %v5779_v52 = vpop.f32.mrf.mxu0  ;;  %2968 = vmatprep.mubr.bf16.mxu1 %v6331_v29  ;;  %v6335_v29 = vld [vmem:[%s9373_s0 + $0x6ac] ss:$12 sps:$4 sm:$0xff]  }
 0x23c   :  { %9504 = vst [vmem:[#allocation51_spill] sm:$0xff] %v8033_v60  ;;  %v1915_v2 = vpop.f32.mrf.mxu1 }
 0x23d   :  { %v2092_v14 = vpop.f32.mrf.mxu0 }
 0x23e   :  { %v8042_v51 = vpop.f32.mrf.mxu1  ;;  %v8045_v18 = vadd.f32 %v2092_v14, %v7860_v45 }
 0x23f   :  { %v5780_v53 = vpop.f32.mrf.mxu0 }
 0x240   :  { %9506 = vst [vmem:[#allocation52_spill] sm:$0xff] %v8045_v18  ;;  %v1918_v10 = vpop.f32.mrf.mxu1  ;;  %v9515_v18 = vld [vmem:[#allocation25_spill] sm:$0xff] }
 0x241   :  { %v2097_v60 = vpop.f32.mrf.mxu0  ;;  %5882 = vmatmul.mubr.msk.bf16.gmra.mxu0 %vm627_vm1, %v6332_v31  ;;  %v6336_v10 = vld [vmem:[%s9373_s0 + $0x608] ss:$12 sps:$4 sm:$0xff]  }
 0x242   :  { %v8056_v13 = vpop.f32.mrf.mxu1  ;;  %v8059_v45 = vadd.f32 %v2097_v60, %v7874_v63  ;;  %2969 = vmatmul.mubr.bf16.gmra.mxu1 %v6329_v43  ;;  %5885 = vmatprep.mubr.msk.bf16.mxu0 %vm6472_vm0, %v9468_v7  ;;  %v6333_v60 = vld [vmem:[%s9373_s0 + $0x6a8] ss:$12 sps:$4 sm:$0xff]  }
 0x243   :  { %v5783_v14 = vpop.f32.mrf.mxu0  ;;  %2976 = vmatprep.mubr.bf16.mxu1 %v6335_v29  ;;  %v6339_v29 = vld [vmem:[%s9373_s0 + $0x6c4] ss:$12 sps:$4 sm:$0xff]  }
 0x244   :  { %9508 = vst [vmem:[#allocation53_spill] sm:$0xff] %v8059_v45  ;;  %v1923_v50 = vpop.f32.mrf.mxu1 }
 0x245   :  { %v2100_v52 = vpop.f32.mrf.mxu0 }
 0x246   :  { %v8068_v31 = vpop.f32.mrf.mxu1  ;;  %v8071_v63 = vadd.f32 %v2100_v52, %v7886_v11 }
 0x247   :  { %v5784_v43 = vpop.f32.mrf.mxu0 }
 0x248   :  { %9510 = vst [vmem:[#allocation54_spill] sm:$0xff] %v8071_v63  ;;  %v1926_v61 = vpop.f32.mrf.mxu1 }
 0x249   :  { %v2105_v45 = vpop.f32.mrf.mxu0  ;;  %5886 = vmatmul.mubr.msk.bf16.gmra.mxu0 %vm627_vm1, %v6336_v10  ;;  %v5106_v61 = vld [vmem:[%s9373_s0 + $0x6d8] sm:$0xff] }
 0x24a   :  { %v8082_v53 = vpop.f32.mrf.mxu1  ;;  %v8085_v11 = vadd.f32 %v2105_v45, %v7900_v19  ;;  %2977 = vmatmul.mubr.bf16.gmra.mxu1 %v6333_v60  ;;  %5889 = vmatprep.mubr.msk.bf16.mxu0 %vm6472_vm0, %v9468_v7  ;;  %v6340_v19 = vld [vmem:[%s9373_s0 + $0x620] ss:$12 sps:$4 sm:$0xff]  }
 0x24b   :  { %v5787_v52 = vpop.f32.mrf.mxu0  ;;  %2984 = vmatprep.mubr.bf16.mxu1 %v6339_v29  ;;  %v6337_v29 = vld [vmem:[%s9373_s0 + $0x6c0] ss:$12 sps:$4 sm:$0xff]  }
 0x24c   :  { %9512 = vst [vmem:[#allocation55_spill] sm:$0xff] %v8085_v11  ;;  %v1931_v2 = vpop.f32.mrf.mxu1 }
 0x24d   :  { %v2108_v10 = vpop.f32.mrf.mxu0  ;;  %v5181_v2 = vcombine.high %v5106_v61, %v5106_v61 }
 0x24e   :  { %v8097_v45 = vpop.f32.mrf.mxu1  ;;  %v8100_v60 = vadd.f32 %v2108_v10, %v7912_v41  ;;  %v9516_v10 = vld [vmem:[#allocation26_spill] sm:$0xff] }
 0x24f   :  { %v5788_v52 = vpop.f32.mrf.mxu0 }
 0x250   :  { %9514 = vst [vmem:[#allocation56_spill] sm:$0xff] %v8100_v60  ;;  %v1934_v11 = vpop.f32.mrf.mxu1 }
 0x251   :  { %v2113_v43 = vpop.f32.mrf.mxu0  ;;  %5890 = vmatmul.mubr.msk.bf16.gmra.mxu0 %vm627_vm1, %v6340_v19  ;;  %v6343_v11 = vld [vmem:[%s9373_s0 + $0x638] ss:$12 sps:$4 sm:$0xff]  }
 0x252   :  { %v8108_v63 = vpop.f32.mrf.mxu1  ;;  %v8111_v50 = vadd.f32 %v2113_v43, %v7926_v30  ;;  %2985 = vmatmul.mubr.bf16.gmra.mxu1 %v6337_v29  ;;  %5893 = vmatprep.mubr.msk.bf16.mxu0 %vm6472_vm0, %v9468_v7  ;;  %v5180_v30 = vcombine.low %v5106_v61, %v5106_v61  ;;  %v6346_v29 = vld [vmem:[%s9373_s0 + $0x6e8] ss:$12 sps:$4 sm:$0xff]  }
 0x253   :  { %v5791_v41 = vpop.f32.mrf.mxu0  ;;  %2992 = vmatprep.mubr.bf16.mxu1 %v5181_v2  ;;  %v6468_v2 = vld [vmem:[%s9372_s1 + $0x88] sm:$0xff]  }
 0x254   :  { %v1939_v33 = vpop.f32.mrf.mxu1 }
 0x255   :  { %v2116_v14 = vpop.f32.mrf.mxu0 }
 0x256   :  { %v1940_v19 = vpop.f32.mrf.mxu1  ;;  %v8121_v60 = vadd.f32 %v2116_v14, %v7938_v22 }
 0x257   :  { %v5792_v43 = vpop.f32.mrf.mxu0 }
 0x258   :  { %v1941_v41 = vpop.f32.mrf.mxu1 }
 0x259   :  { %v2121_v33 = vpop.f32.mrf.mxu0  ;;  %5894 = vmatmul.mubr.msk.bf16.gmra.mxu0 %vm627_vm1, %v6343_v11  ;;  %v6347_v11 = vld [vmem:[%s9373_s0 + $0x650] ss:$12 sps:$4 sm:$0xff]  }
 0x25a   :  { %v8130_v52 = vadd.f32 %v2121_v33, %v7952_v36  ;;  %v8132_v19 = vpop.f32.mrf.mxu1  ;;  %2993 = vmatmul.mubr.bf16.gmra.mxu1 %v5180_v30  ;;  %5897 = vmatprep.mubr.msk.bf16.mxu0 %vm6472_vm0, %v9468_v7  ;;  %v6344_v30 = vld [vmem:[%s9373_s0 + $0x6e4] ss:$12 sps:$4 sm:$0xff]  }
 0x25b   :  { %v5795_v22 = vpop.f32.mrf.mxu0  ;;  %3857 = vmatprep.mubr.bf16.mxu1 %v6346_v29  ;;  %v6350_v29 = vld [vmem:[%s9373_s0 + $0x700] ss:$12 sps:$4 sm:$0xff]  }
 0x25c   :  { %v2804_v61 = vpop.f32.mrf.mxu1 }
 0x25d   :  { %v2124_v43 = vpop.f32.mrf.mxu0 }
 0x25e   :  { %v8142_v36 = vadd.f32 %v2124_v43, %v7964_v21  ;;  %v8144_v41 = vpop.f32.mrf.mxu1 }
 0x25f   :  { %v5796_v33 = vpop.f32.mrf.mxu0 }
 0x260   :  { %9517 = vst [vmem:[#allocation25_spill] sm:$0xff] %v8142_v36  ;;  %v2807_v61 = vpop.f32.mrf.mxu1 }
 0x261   :  { %v2129_v14 = vpop.f32.mrf.mxu0  ;;  %5898 = vmatmul.mubr.msk.bf16.gmra.mxu0 %vm627_vm1, %v6347_v11  ;;  %v6469_v61 = vld [vmem:[%s9372_s1 + $0x80] sm:$0xff]  }
 0x262   :  { %v8156_v21 = vadd.f32 %v2129_v14, %v7978_v40  ;;  %v8158_v43 = vpop.f32.mrf.mxu1  ;;  %3858 = vmatmul.mubr.bf16.vlgmr.msra.gmra.mxu1 %v6344_v30  ;;  %5901 = vmatprep.mubr.msk.bf16.mxu0 %vm6472_vm0, %v9468_v7  ;;  %v6351_v14 = vld [vmem:[%s9373_s0 + $0x668] ss:$12 sps:$4 sm:$0xff]  }
 0x263   :  { %v5799_v33 = vpop.f32.mrf.mxu0  ;;  %3865 = vmatprep.mubr.bf16.mxu1 %v6350_v29  ;;  %6031 = vmatpush3.bf16.msra.mxu1 %v6468_v2  ;;  %v6348_v2 = vld [vmem:[%s9373_s0 + $0x6fc] ss:$12 sps:$4 sm:$0xff]  }
 0x264   :  { %9518 = vst [vmem:[#allocation26_spill] sm:$0xff] %v8156_v21  ;;  %v2812_v11 = vpop.f32.mrf.mxu1  ;;  %6030 = vmatprep.subr.bf16.mxu1 %v9468_v7 }
 0x265   :  { %v2132_v40 = vpop.f32.mrf.mxu0  ;;  %v6354_v11 = vld [vmem:[%s9373_s0 + $0x718] ss:$12 sps:$4 sm:$0xff]  }
 0x266   :  { %v8172_v30 = vadd.f32 %v2132_v40, %v7990_v34  ;;  %v8174_v29 = vpop.f32.mrf.mxu1 }
 0x267   :  { %v5800_v33 = vpop.f32.mrf.mxu0  ;;  %6032 = vmatpush3.bf16.msra.mxu1 %v6469_v61 }
 0x268   :  { %v2815_v40 = vpop.f32.mrf.mxu1 }
 0x269   :  { %v2137_v22 = vpop.f32.mrf.mxu0  ;;  %5902 = vmatmul.mubr.msk.bf16.gmra.mxu0 %vm627_vm1, %v6351_v14  ;;  %v6355_v14 = vld [vmem:[%s9373_s0 + $0x680] ss:$12 sps:$4 sm:$0xff]  }
 0x26a   :  { %v8189_v21 = vadd.f32 %v2137_v22, %v8004_v56  ;;  %v8191_v33 = vpop.f32.mrf.mxu1  ;;  %3866 = vmatmul.mubr.bf16.gmra.mxu1 %v6348_v2  ;;  %5905 = vmatprep.mubr.msk.bf16.mxu0 %vm6472_vm0, %v9468_v7  ;;  %v6352_v2 = vld [vmem:[%s9373_s0 + $0x714] ss:$12 sps:$4 sm:$0xff]  }
 0x26b   :  { %v5803_v44 = vpop.f32.mrf.mxu0  ;;  %3873 = vmatprep.mubr.bf16.mxu1 %v6354_v11  ;;  %v6358_v11 = vld [vmem:[%s9373_s0 + $0x730] ss:$12 sps:$4 sm:$0xff]  }
 0x26c   :  { %9519 = vst [vmem:[#allocation57_spill] sm:$0xff] %v8189_v21  ;;  %v2820_v36 = vpop.f32.mrf.mxu1 }
 0x26d   :  { %v2140_v34 = vpop.f32.mrf.mxu0 }
 0x26e   :  { %v8201_v56 = vadd.f32 %v2140_v34, %v8016_v1  ;;  %v8203_v22 = vpop.f32.mrf.mxu1 }
 0x26f   :  { %v5804_v44 = vpop.f32.mrf.mxu0 }
 0x270   :  { %v2823_v40 = vpop.f32.mrf.mxu1 }
 0x271   :  { %v2145_v61 = vpop.f32.mrf.mxu0  ;;  %5906 = vmatmul.mubr.msk.bf16.gmra.mxu0 %vm627_vm1, %v6355_v14  ;;  %v6359_v14 = vld [vmem:[%s9373_s0 + $0x698] ss:$12 sps:$4 sm:$0xff]  }
 0x272   :  { %v8215_v1 = vadd.f32 %v2145_v61, %v8030_v9  ;;  %v8217_v34 = vpop.f32.mrf.mxu1  ;;  %3874 = vmatmul.mubr.bf16.gmra.mxu1 %v6352_v2  ;;  %5909 = vmatprep.mubr.msk.bf16.mxu0 %vm6472_vm0, %v9468_v7  ;;  %v6356_v2 = vld [vmem:[%s9373_s0 + $0x72c] ss:$12 sps:$4 sm:$0xff]  }
 0x273   :  { %v5807_v44 = vpop.f32.mrf.mxu0  ;;  %3881 = vmatprep.mubr.bf16.mxu1 %v6358_v11  ;;  %v6362_v11 = vld [vmem:[%s9373_s0 + $0x748] ss:$12 sps:$4 sm:$0xff]  }
 0x274   :  { %9520 = vst [vmem:[#allocation58_spill] sm:$0xff] %v8215_v1  ;;  %v2828_v59 = vpop.f32.mrf.mxu1 }
 0x275   :  { %v2148_v36 = vpop.f32.mrf.mxu0 }
 0x276   :  { %v8227_v9 = vadd.f32 %v2148_v36, %v8042_v51  ;;  %v8229_v61 = vpop.f32.mrf.mxu1 }
 0x277   :  { %v5808_v40 = vpop.f32.mrf.mxu0 }
 0x278   :  { %v2831_v44 = vpop.f32.mrf.mxu1 }
 0x279   :  { %v2153_v21 = vpop.f32.mrf.mxu0  ;;  %5910 = vmatmul.mubr.msk.bf16.gmra.mxu0 %vm627_vm1, %v6359_v14  ;;  %v6363_v14 = vld [vmem:[%s9373_s0 + $0x6b0] ss:$12 sps:$4 sm:$0xff]  }
 0x27a   :  { %v8241_v51 = vadd.f32 %v2153_v21, %v8056_v13  ;;  %v8243_v36 = vpop.f32.mrf.mxu1  ;;  %3882 = vmatmul.mubr.bf16.gmra.mxu1 %v6356_v2  ;;  %5913 = vmatprep.mubr.msk.bf16.mxu0 %vm6472_vm0, %v9468_v7  ;;  %v6360_v2 = vld [vmem:[%s9373_s0 + $0x744] ss:$12 sps:$4 sm:$0xff]  }
 0x27b   :  { %v5811_v40 = vpop.f32.mrf.mxu0  ;;  %3889 = vmatprep.mubr.bf16.mxu1 %v6362_v11  ;;  %v6366_v11 = vld [vmem:[%s9373_s0 + $0x760] ss:$12 sps:$4 sm:$0xff]  }
 0x27c   :  { %9521 = vst [vmem:[#allocation59_spill] sm:$0xff] %v8241_v51  ;;  %v2836_v46 = vpop.f32.mrf.mxu1 }
 0x27d   :  { %v2156_v59 = vpop.f32.mrf.mxu0 }
 0x27e   :  { %v8253_v13 = vadd.f32 %v2156_v59, %v8068_v31  ;;  %v8255_v21 = vpop.f32.mrf.mxu1 }
 0x27f   :  { %v5812_v44 = vpop.f32.mrf.mxu0 }
 0x280   :  { %v2839_v40 = vpop.f32.mrf.mxu1 }
 0x281   :  { %v2161_v1 = vpop.f32.mrf.mxu0  ;;  %5914 = vmatmul.mubr.msk.bf16.gmra.mxu0 %vm627_vm1, %v6363_v14  ;;  %v6367_v14 = vld [vmem:[%s9373_s0 + $0x6c8] ss:$12 sps:$4 sm:$0xff]  }
 0x282   :  { %v8267_v31 = vadd.f32 %v2161_v1, %v8082_v53  ;;  %v8269_v59 = vpop.f32.mrf.mxu1  ;;  %3890 = vmatmul.mubr.bf16.gmra.mxu1 %v6360_v2  ;;  %5917 = vmatprep.mubr.msk.bf16.mxu0 %vm6472_vm0, %v9468_v7  ;;  %v6364_v2 = vld [vmem:[%s9373_s0 + $0x75c] ss:$12 sps:$4 sm:$0xff]  }
 0x283   :  { %v5815_v44 = vpop.f32.mrf.mxu0  ;;  %3897 = vmatprep.mubr.bf16.mxu1 %v6366_v11  ;;  %v6370_v11 = vld [vmem:[%s9373_s0 + $0x778] ss:$12 sps:$4 sm:$0xff]  }
 0x284   :  { %9522 = vst [vmem:[#allocation60_spill] sm:$0xff] %v8267_v31  ;;  %v2844_v55 = vpop.f32.mrf.mxu1 }
 0x285   :  { %v2164_v46 = vpop.f32.mrf.mxu0 }
 0x286   :  { %v8279_v53 = vadd.f32 %v2164_v46, %v8097_v45  ;;  %v8281_v1 = vpop.f32.mrf.mxu1 }
 0x287   :  { %v5816_v40 = vpop.f32.mrf.mxu0 }
 0x288   :  { %9523 = vst [vmem:[#allocation61_spill] sm:$0xff] %v8279_v53  ;;  %v2847_v44 = vpop.f32.mrf.mxu1 }
 0x289   :  { %v2169_v51 = vpop.f32.mrf.mxu0  ;;  %5918 = vmatmul.mubr.msk.bf16.gmra.mxu0 %vm627_vm1, %v6367_v14  ;;  %v6371_v14 = vld [vmem:[%s9373_s0 + $0x6e0] ss:$0 sps:$4 sm:$0xff]  }
 0x28a   :  { %v8293_v45 = vadd.f32 %v2169_v51, %v8108_v63  ;;  %v8295_v46 = vpop.f32.mrf.mxu1  ;;  %3898 = vmatmul.mubr.bf16.gmra.mxu1 %v6364_v2  ;;  %5921 = vmatprep.mubr.msk.bf16.mxu0 %vm6472_vm0, %v9468_v7  ;;  %v6368_v63 = vld [vmem:[%s9373_s0 + $0x774] ss:$12 sps:$4 sm:$0xff]   ;;  %v6374_v2 = vld [vmem:[%s9373_s0 + $0x790] ss:$12 sps:$4 sm:$0xff]  }
 0x28b   :  { %v5819_v40 = vpop.f32.mrf.mxu0  ;;  %3905 = vmatprep.mubr.bf16.mxu1 %v6370_v11 }
 0x28c   :  { %9524 = vst [vmem:[#allocation62_spill] sm:$0xff] %v8293_v45  ;;  %v2852_v26 = vpop.f32.mrf.mxu1 }
 0x28d   :  { %v2172_v55 = vpop.f32.mrf.mxu0 }
 0x28e   :  { %v8304_v44 = vpop.f32.mrf.mxu1 }
 0x28f   :  { %v5820_v51 = vpop.f32.mrf.mxu0 }
 0x290   :  { %v2855_v11 = vpop.f32.mrf.mxu1  ;;  %v9525_v51 = vmax.f32 %v7048_v32, %v7658_v16  ;;  %v6378_v32 = vld [vmem:[%s9373_s0 + $0x7a8] ss:$12 sps:$4 sm:$0xff]  }
 0x291   :  { %v3034_v40 = vpop.f32.mrf.mxu0  ;;  %5922 = vmatmul.mubr.msk.bf16.gmra.mxu0 %vm627_vm1, %v6371_v14  ;;  %v6375_v14 = vld [vmem:[%s9373_s0 + $0x6ec] ss:$12 sps:$4 sm:$0xff]  }
 0x292   :  { %v8313_v26 = vpop.f32.mrf.mxu1  ;;  %v3035_v55 = vadd.f32 %v3034_v40, %v8132_v19  ;;  %3906 = vmatmul.mubr.bf16.gmra.mxu1 %v6368_v63  ;;  %5929 = vmatprep.mubr.msk.bf16.mxu0 %vm6472_vm0, %v9468_v7 }
 0x293   :  { %v5827_v31 = vpop.f32.mrf.mxu0  ;;  %3913 = vmatprep.mubr.bf16.mxu1 %v6374_v2 }
 0x294   :  { %v8321_v45 = vmax.f32 %v9525_v51, %v3035_v55  ;;  %v2860_v17 = vpop.f32.mrf.mxu1  ;;  %v6372_v31 = vld [vmem:[%s9373_s0 + $0x78c] ss:$12 sps:$4 sm:$0xff]  }
 0x295   :  { %v3037_v11 = vpop.f32.mrf.mxu0  ;;  %v9526_v17 = vmax.f32 %v7065_v42, %v7672_v39 }
 0x296   :  { %v8326_v53 = vpop.f32.mrf.mxu1  ;;  %v3038_v19 = vadd.f32 %v3037_v11, %v8144_v41  ;;  %v9527_v11 = vmax.f32 %v7084_v54, %v7688_v12  ;;  %v6382_v54 = vld [vmem:[%s9373_s0 + $0x7c0] ss:$12 sps:$4 sm:$0xff]   ;;  %v9528_v12 = vmax.f32 %v7108_v3, %v7704_v27 }
 0x297   :  { %v5828_v63 = vpop.f32.mrf.mxu0 }
 0x298   :  { %v8338_v16 = vmax.f32 %v9526_v17, %v3038_v19  ;;  %v2863_v2 = vpop.f32.mrf.mxu1 }
 0x299   :  { %v3042_v40 = vpop.f32.mrf.mxu0  ;;  %5930 = vmatmul.mubr.msk.bf16.vlgmr.msra.gmra.mxu0 %vm627_vm1, %v6375_v14  ;;  %v6379_v14 = vld [vmem:[%s9373_s0 + $0x704] ss:$12 sps:$4 sm:$0xff]  }
 0x29a   :  { %v8341_v55 = vpop.f32.mrf.mxu1  ;;  %v3043_v41 = vadd.f32 %v3042_v40, %v8158_v43  ;;  %3914 = vmatmul.mubr.bf16.gmra.mxu1 %v6372_v31  ;;  %5933 = vmatprep.mubr.msk.bf16.mxu0 %vm6472_vm0, %v9468_v7  ;;  %v6376_v31 = vld [vmem:[%s9373_s0 + $0x7a4] ss:$12 sps:$4 sm:$0xff]  }
 0x29b   :  { %v5831_v51 = vpop.f32.mrf.mxu0  ;;  %3921 = vmatprep.mubr.bf16.mxu1 %v6378_v32 }
 0x29c   :  { %v8349_v42 = vmax.f32 %v9527_v11, %v3043_v41  ;;  %v2868_v39 = vpop.f32.mrf.mxu1  ;;  %v9529_v11 = vmax.f32 %v7134_v15, %v7721_v8  ;;  %v6386_v15 = vld [vmem:[%s9373_s0 + $0x7d8] ss:$12 sps:$4 sm:$0xff]   ;;  %v9530_v8 = vmax.f32 %v7144_v28, %v7733_v24 }
 0x29d   :  { %v3045_v19 = vpop.f32.mrf.mxu0 }
 0x29e   :  { %v8354_v63 = vpop.f32.mrf.mxu1  ;;  %v3046_v43 = vadd.f32 %v3045_v19, %v8174_v29  ;;  %v6383_v19 = vld [vmem:[%s9373_s0 + $0x71c] ss:$12 sps:$4 sm:$0xff]  }
 0x29f   :  { %v5832_v32 = vpop.f32.mrf.mxu0 }
 0x2a0   :  { %v8366_v17 = vmax.f32 %v9528_v12, %v3046_v43  ;;  %v2871_v2 = vpop.f32.mrf.mxu1  ;;  %v6380_v43 = vld [vmem:[%s9373_s0 + $0x7bc] ss:$12 sps:$4 sm:$0xff]  }
 0x2a1   :  { %v3050_v40 = vpop.f32.mrf.mxu0  ;;  %5934 = vmatmul.mubr.msk.bf16.gmra.mxu0 %vm627_vm1, %v6379_v14 }
 0x2a2   :  { %v8369_v41 = vpop.f32.mrf.mxu1  ;;  %v3051_v29 = vadd.f32 %v3050_v40, %v8191_v33  ;;  %3922 = vmatmul.mubr.bf16.gmra.mxu1 %v6376_v31  ;;  %5937 = vmatprep.mubr.msk.bf16.mxu0 %vm6472_vm0, %v9468_v7 }
 0x2a3   :  { %v5835_v51 = vpop.f32.mrf.mxu0  ;;  %3929 = vmatprep.mubr.bf16.mxu1 %v6382_v54 }
 0x2a4   :  { %v8377_v3 = vmax.f32 %v9529_v11, %v3051_v29  ;;  %v2876_v27 = vpop.f32.mrf.mxu1  ;;  %v9531_v29 = vld [vmem:[#allocation2_spill] sm:$0xff]  ;;  %v9532_v51 = vld [vmem:[#allocation33_spill] sm:$0xff] }
 0x2a5   :  { %v3053_v39 = vpop.f32.mrf.mxu0  ;;  %v9533_v11 = vmax.f32 %v9531_v29, %v9532_v51  ;;  %v9535_v29 = vld [vmem:[#allocation3_spill] sm:$0xff]  ;;  %v9536_v51 = vld [vmem:[#allocation34_spill] sm:$0xff] }
 0x2a6   :  { %v8382_v14 = vpop.f32.mrf.mxu1  ;;  %v3054_v33 = vadd.f32 %v3053_v39, %v8203_v22  ;;  %v6387_v39 = vld [vmem:[%s9373_s0 + $0x734] ss:$12 sps:$4 sm:$0xff]  }
 0x2a7   :  { %v5836_v31 = vpop.f32.mrf.mxu0 }
 0x2a8   :  { %v8394_v32 = vmax.f32 %v9530_v8, %v3054_v33  ;;  %v2879_v54 = vpop.f32.mrf.mxu1  ;;  %v6384_v33 = vld [vmem:[%s9373_s0 + $0x7d4] ss:$12 sps:$4 sm:$0xff]   ;;  %v6390_v31 = vld [vmem:[%s9373_s0 + $0x7f0] ss:$12 sps:$4 sm:$0xff]  }
 0x2a9   :  { %v3058_v12 = vpop.f32.mrf.mxu0  ;;  %5938 = vmatmul.mubr.msk.bf16.gmra.mxu0 %vm627_vm1, %v6383_v19 }
 0x2aa   :  { %v8397_v2 = vpop.f32.mrf.mxu1  ;;  %v3059_v22 = vadd.f32 %v3058_v12, %v8217_v34  ;;  %3930 = vmatmul.mubr.bf16.gmra.mxu1 %v6380_v43  ;;  %5941 = vmatprep.mubr.msk.bf16.mxu0 %vm6472_vm0, %v9468_v7 }
 0x2ab   :  { %v5839_v40 = vpop.f32.mrf.mxu0  ;;  %3937 = vmatprep.mubr.bf16.mxu1 %v6386_v15  ;;  %v9534_v15 = vmax.f32 %v7166_v58, %v7759_v37 }
 0x2ac   :  { %v8405_v28 = vmax.f32 %v9533_v11, %v3059_v22  ;;  %v2884_v24 = vpop.f32.mrf.mxu1  ;;  %v9537_v11 = vmax.f32 %v9535_v29, %v9536_v51  ;;  %v9539_v29 = vld [vmem:[#allocation4_spill] sm:$0xff]  ;;  %v9540_v51 = vld [vmem:[#allocation35_spill] sm:$0xff] }
 0x2ad   :  { %v3061_v27 = vpop.f32.mrf.mxu0 }
 0x2ae   :  { %v8410_v19 = vpop.f32.mrf.mxu1  ;;  %v3062_v34 = vadd.f32 %v3061_v27, %v8229_v61  ;;  %v6391_v27 = vld [vmem:[%s9373_s0 + $0x74c] ss:$12 sps:$4 sm:$0xff]  }
 0x2af   :  { %v5840_v43 = vpop.f32.mrf.mxu0 }
 0x2b0   :  { %v8422_v8 = vmax.f32 %v9534_v15, %v3062_v34  ;;  %v2887_v54 = vpop.f32.mrf.mxu1  ;;  %v6388_v34 = vld [vmem:[%s9373_s0 + $0x7ec] ss:$12 sps:$4 sm:$0xff]   ;;  %v6394_v43 = vld [vmem:[%s9373_s0 + $0x808] ss:$12 sps:$4 sm:$0xff]  }
 0x2b1   :  { %v3066_v12 = vpop.f32.mrf.mxu0  ;;  %5942 = vmatmul.mubr.msk.bf16.gmra.mxu0 %vm627_vm1, %v6387_v39 }
 0x2b2   :  { %v8425_v22 = vpop.f32.mrf.mxu1  ;;  %v3067_v61 = vadd.f32 %v3066_v12, %v8243_v36  ;;  %3938 = vmatmul.mubr.bf16.gmra.mxu1 %v6384_v33  ;;  %5945 = vmatprep.mubr.msk.bf16.mxu0 %vm6472_vm0, %v9468_v7 }
 0x2b3   :  { %v5843_v40 = vpop.f32.mrf.mxu0  ;;  %3945 = vmatprep.mubr.bf16.mxu1 %v6390_v31  ;;  %v9538_v31 = vmax.f32 %v7188_v25, %v7785_v47 }
 0x2b4   :  { %v8433_v58 = vmax.f32 %v9537_v11, %v3067_v61  ;;  %v2892_v37 = vpop.f32.mrf.mxu1  ;;  %v9541_v11 = vmax.f32 %v9539_v29, %v9540_v51  ;;  %v9543_v29 = vld [vmem:[#allocation5_spill] sm:$0xff]  ;;  %v9544_v51 = vld [vmem:[#allocation36_spill] sm:$0xff] }
 0x2b5   :  { %v3069_v24 = vpop.f32.mrf.mxu0 }
 0x2b6   :  { %v8438_v39 = vpop.f32.mrf.mxu1  ;;  %v3070_v36 = vadd.f32 %v3069_v24, %v8255_v21  ;;  %v6395_v24 = vld [vmem:[%s9373_s0 + $0x764] ss:$12 sps:$4 sm:$0xff]  }
 0x2b7   :  { %v5844_v33 = vpop.f32.mrf.mxu0 }
 0x2b8   :  { %v8450_v15 = vmax.f32 %v9538_v31, %v3070_v36  ;;  %v2895_v54 = vpop.f32.mrf.mxu1  ;;  %v6392_v36 = vld [vmem:[%s9373_s0 + $0x804] ss:$12 sps:$4 sm:$0xff]   ;;  %v6398_v33 = vld [vmem:[%s9373_s0 + $0x820] ss:$12 sps:$4 sm:$0xff]  }
 0x2b9   :  { %v3074_v12 = vpop.f32.mrf.mxu0  ;;  %5946 = vmatmul.mubr.msk.bf16.gmra.mxu0 %vm627_vm1, %v6391_v27 }
 0x2ba   :  { %v8453_v61 = vpop.f32.mrf.mxu1  ;;  %v3075_v21 = vadd.f32 %v3074_v12, %v8269_v59  ;;  %3946 = vmatmul.mubr.bf16.gmra.mxu1 %v6388_v34  ;;  %5949 = vmatprep.mubr.msk.bf16.mxu0 %vm6472_vm0, %v9468_v7 }
 0x2bb   :  { %v5847_v40 = vpop.f32.mrf.mxu0  ;;  %3953 = vmatprep.mubr.bf16.mxu1 %v6394_v43  ;;  %v9542_v43 = vmax.f32 %v7210_v49, %v7811_v57 }
 0x2bc   :  { %v8461_v25 = vmax.f32 %v9541_v11, %v3075_v21  ;;  %v2900_v47 = vpop.f32.mrf.mxu1  ;;  %v9545_v11 = vmax.f32 %v9543_v29, %v9544_v51  ;;  %v9547_v29 = vld [vmem:[#allocation6_spill] sm:$0xff]  ;;  %v9548_v51 = vld [vmem:[#allocation37_spill] sm:$0xff] }
 0x2bd   :  { %v3077_v37 = vpop.f32.mrf.mxu0 }
 0x2be   :  { %v8466_v27 = vpop.f32.mrf.mxu1  ;;  %v3078_v59 = vadd.f32 %v3077_v37, %v8281_v1  ;;  %v6399_v37 = vld [vmem:[%s9373_s0 + $0x77c] ss:$12 sps:$4 sm:$0xff]  }
 0x2bf   :  { %v5848_v34 = vpop.f32.mrf.mxu0 }
 0x2c0   :  { %v8478_v31 = vmax.f32 %v9542_v43, %v3078_v59  ;;  %v2903_v54 = vpop.f32.mrf.mxu1  ;;  %v6396_v59 = vld [vmem:[%s9373_s0 + $0x81c] ss:$12 sps:$4 sm:$0xff]   ;;  %v6402_v34 = vld [vmem:[%s9373_s0 + $0x838] ss:$12 sps:$4 sm:$0xff]  }
 0x2c1   :  { %v3082_v12 = vpop.f32.mrf.mxu0  ;;  %5950 = vmatmul.mubr.msk.bf16.gmra.mxu0 %vm627_vm1, %v6395_v24 }
 0x2c2   :  { %v8481_v21 = vpop.f32.mrf.mxu1  ;;  %v3083_v1 = vadd.f32 %v3082_v12, %v8295_v46  ;;  %3954 = vmatmul.mubr.bf16.gmra.mxu1 %v6392_v36  ;;  %5953 = vmatprep.mubr.msk.bf16.mxu0 %vm6472_vm0, %v9468_v7 }
 0x2c3   :  { %v5851_v40 = vpop.f32.mrf.mxu0  ;;  %3961 = vmatprep.mubr.bf16.mxu1 %v6398_v33  ;;  %v9546_v33 = vmax.f32 %v7232_v35, %v7837_v5 }
 0x2c4   :  { %v8489_v49 = vmax.f32 %v9545_v11, %v3083_v1  ;;  %v2908_v57 = vpop.f32.mrf.mxu1  ;;  %v9549_v11 = vmax.f32 %v9547_v29, %v9548_v51 }
 0x2c5   :  { %v3085_v47 = vpop.f32.mrf.mxu0 }
 0x2c6   :  { %v8494_v24 = vpop.f32.mrf.mxu1  ;;  %v3086_v46 = vadd.f32 %v3085_v47, %v8304_v44  ;;  %v6403_v47 = vld [vmem:[%s9373_s0 + $0x794] ss:$12 sps:$4 sm:$0xff]  }
 0x2c7   :  { %v5852_v36 = vpop.f32.mrf.mxu0 }
 0x2c8   :  { %v8506_v43 = vmax.f32 %v9546_v33, %v3086_v46  ;;  %v2911_v54 = vpop.f32.mrf.mxu1  ;;  %v6400_v46 = vld [vmem:[%s9373_s0 + $0x834] ss:$12 sps:$4 sm:$0xff]   ;;  %v6406_v36 = vld [vmem:[%s9373_s0 + $0x850] ss:$12 sps:$4 sm:$0xff]  }
 0x2c9   :  { %v3090_v12 = vpop.f32.mrf.mxu0  ;;  %5954 = vmatmul.mubr.msk.bf16.gmra.mxu0 %vm627_vm1, %v6399_v37  ;;  %v9551_v33 = vld [vmem:[#allocation38_spill] sm:$0xff] }
 0x2ca   :  { %v8509_v1 = vpop.f32.mrf.mxu1  ;;  %v3091_v44 = vadd.f32 %v3090_v12, %v8313_v26  ;;  %3962 = vmatmul.mubr.bf16.gmra.mxu1 %v6396_v59  ;;  %5957 = vmatprep.mubr.msk.bf16.mxu0 %vm6472_vm0, %v9468_v7 }
 0x2cb   :  { %v5855_v40 = vpop.f32.mrf.mxu0  ;;  %3969 = vmatprep.mubr.bf16.mxu1 %v6402_v34  ;;  %v9550_v34 = vld [vmem:[#allocation7_spill] sm:$0xff] }
 0x2cc   :  { %v8517_v35 = vmax.f32 %v9549_v11, %v3091_v44  ;;  %v2916_v5 = vpop.f32.mrf.mxu1  ;;  %v9552_v54 = vmax.f32 %v9550_v34, %v9551_v33  ;;  %v9553_v11 = vld [vmem:[#allocation8_spill] sm:$0xff] }
 0x2cd   :  { %v3093_v57 = vpop.f32.mrf.mxu0  ;;  %v9554_v5 = vld [vmem:[#allocation39_spill] sm:$0xff] }
 0x2ce   :  { %v8522_v37 = vpop.f32.mrf.mxu1  ;;  %v3094_v26 = vadd.f32 %v3093_v57, %v8326_v53  ;;  %v9555_v57 = vmax.f32 %v9553_v11, %v9554_v5 }
 0x2cf   :  { %v5856_v59 = vpop.f32.mrf.mxu0 }
 0x2d0   :  { %v8534_v12 = vmax.f32 %v9552_v54, %v3094_v26  ;;  %v2919_v44 = vpop.f32.mrf.mxu1  ;;  %v6410_v54 = vld [vmem:[%s9373_s0 + $0x868] ss:$12 sps:$4 sm:$0xff]  }
 0x2d1   :  { %v3098_v40 = vpop.f32.mrf.mxu0  ;;  %5958 = vmatmul.mubr.msk.bf16.gmra.mxu0 %vm627_vm1, %v6403_v47  ;;  %v6407_v47 = vld [vmem:[%s9373_s0 + $0x7ac] ss:$12 sps:$4 sm:$0xff]  }
 0x2d2   :  { %v8537_v29 = vpop.f32.mrf.mxu1  ;;  %v3099_v53 = vadd.f32 %v3098_v40, %v8341_v55  ;;  %3970 = vmatmul.mubr.bf16.gmra.mxu1 %v6400_v46  ;;  %5961 = vmatprep.mubr.msk.bf16.mxu0 %vm6472_vm0, %v9468_v7  ;;  %v6404_v46 = vld [vmem:[%s9373_s0 + $0x84c] ss:$12 sps:$4 sm:$0xff]   ;;  %v9558_v40 = vld [vmem:[#allocation40_spill] sm:$0xff] }
 0x2d3   :  { %v5859_v51 = vpop.f32.mrf.mxu0  ;;  %3977 = vmatprep.mubr.bf16.mxu1 %v6406_v36  ;;  %v9557_v44 = vld [vmem:[#allocation9_spill] sm:$0xff] }
 0x2d4   :  { %v8545_v59 = vmax.f32 %v9555_v57, %v3099_v53  ;;  %v2924_v26 = vpop.f32.mrf.mxu1  ;;  %v9559_v53 = vmax.f32 %v9557_v44, %v9558_v40 }
 0x2d5   :  { %v3101_v34 = vpop.f32.mrf.mxu0 }
 0x2d6   :  { %9556 = vst [vmem:[#allocation2_spill] sm:$0xff] %v8545_v59  ;;  %v8550_v33 = vpop.f32.mrf.mxu1  ;;  %v3102_v55 = vadd.f32 %v3101_v34, %v8354_v63  ;;  %v9561_v34 = vld [vmem:[#allocation10_spill] sm:$0xff] }
 0x2d7   :  { %v5860_v36 = vpop.f32.mrf.mxu0 }
 0x2d8   :  { %v8562_v51 = vmax.f32 %v9559_v53, %v3102_v55  ;;  %v2927_v11 = vpop.f32.mrf.mxu1  ;;  %v9562_v36 = vld [vmem:[#allocation41_spill] sm:$0xff] }
 0x2d9   :  { %v3106_v5 = vpop.f32.mrf.mxu0  ;;  %5962 = vmatmul.mubr.msk.bf16.gmra.mxu0 %vm627_vm1, %v6407_v47  ;;  %v9563_v59 = vmax.f32 %v9561_v34, %v9562_v36  ;;  %v6411_v47 = vld [vmem:[%s9373_s0 + $0x7c4] ss:$12 sps:$4 sm:$0xff]   ;;  %v9565_v11 = vld [vmem:[#allocation11_spill] sm:$0xff] }
 0x2da   :  { %9560 = vst [vmem:[#allocation33_spill] sm:$0xff] %v8562_v51  ;;  %v8565_v57 = vpop.f32.mrf.mxu1  ;;  %v3107_v63 = vadd.f32 %v3106_v5, %v8369_v41  ;;  %3978 = vmatmul.mubr.bf16.gmra.mxu1 %v6404_v46  ;;  %5965 = vmatprep.mubr.msk.bf16.mxu0 %vm6472_vm0, %v9468_v7  ;;  %v6408_v46 = vld [vmem:[%s9373_s0 + $0x864] ss:$12 sps:$4 sm:$0xff]  }
 0x2db   :  { %v5863_v26 = vpop.f32.mrf.mxu0  ;;  %3985 = vmatprep.mubr.bf16.mxu1 %v6410_v54  ;;  %v9566_v5 = vld [vmem:[#allocation42_spill] sm:$0xff] }
 0x2dc   :  { %v8573_v44 = vmax.f32 %v9563_v59, %v3107_v63  ;;  %v2932_v55 = vpop.f32.mrf.mxu1  ;;  %v6414_v59 = vld [vmem:[%s9373_s0 + $0x880] ss:$12 sps:$4 sm:$0xff]   ;;  %v9567_v63 = vmax.f32 %v9565_v11, %v9566_v5 }
 0x2dd   :  { %v3109_v40 = vpop.f32.mrf.mxu0 }
 0x2de   :  { %9564 = vst [vmem:[#allocation3_spill] sm:$0xff] %v8573_v44  ;;  %v8578_v53 = vpop.f32.mrf.mxu1  ;;  %v3110_v41 = vadd.f32 %v3109_v40, %v8382_v14  ;;  %v9570_v44 = vld [vmem:[#allocation43_spill] sm:$0xff] }
 0x2df   :  { %v5864_v54 = vpop.f32.mrf.mxu0 }
 0x2e0   :  { %v8590_v26 = vmax.f32 %v9567_v63, %v3110_v41  ;;  %v2935_v34 = vpop.f32.mrf.mxu1  ;;  %v9569_v54 = vld [vmem:[#allocation12_spill] sm:$0xff] }
 0x2e1   :  { %v3114_v36 = vpop.f32.mrf.mxu0  ;;  %5966 = vmatmul.mubr.msk.bf16.gmra.mxu0 %vm627_vm1, %v6411_v47  ;;  %v9571_v51 = vmax.f32 %v9569_v54, %v9570_v44  ;;  %v6415_v47 = vld [vmem:[%s9373_s0 + $0x7dc] ss:$12 sps:$4 sm:$0xff]   ;;  %v9574_v34 = vld [vmem:[#allocation44_spill] sm:$0xff] }
 0x2e2   :  { %9568 = vst [vmem:[#allocation34_spill] sm:$0xff] %v8590_v26  ;;  %v8593_v55 = vpop.f32.mrf.mxu1  ;;  %v3115_v14 = vadd.f32 %v3114_v36, %v8397_v2  ;;  %3986 = vmatmul.mubr.bf16.gmra.mxu1 %v6408_v46  ;;  %5969 = vmatprep.mubr.msk.bf16.mxu0 %vm6472_vm0, %v9468_v7  ;;  %v6412_v46 = vld [vmem:[%s9373_s0 + $0x87c] ss:$12 sps:$4 sm:$0xff]  }
 0x2e3   :  { %v5867_v40 = vpop.f32.mrf.mxu0  ;;  %3993 = vmatprep.mubr.bf16.mxu1 %v6414_v59  ;;  %v9573_v44 = vld [vmem:[#allocation13_spill] sm:$0xff] }
 0x2e4   :  { %v8601_v11 = vmax.f32 %v9571_v51, %v3115_v14  ;;  %v2940_v41 = vpop.f32.mrf.mxu1  ;;  %v6418_v51 = vld [vmem:[%s9373_s0 + $0x898] ss:$12 sps:$4 sm:$0xff]   ;;  %v9575_v36 = vmax.f32 %v9573_v44, %v9574_v34 }
 0x2e5   :  { %v3117_v5 = vpop.f32.mrf.mxu0 }
 0x2e6   :  { %9572 = vst [vmem:[#allocation4_spill] sm:$0xff] %v8601_v11  ;;  %v8606_v63 = vpop.f32.mrf.mxu1  ;;  %v3118_v2 = vadd.f32 %v3117_v5, %v8410_v19  ;;  %v9578_v11 = vld [vmem:[#allocation45_spill] sm:$0xff] }
 0x2e7   :  { %v5868_v59 = vpop.f32.mrf.mxu0 }
 0x2e8   :  { %v8618_v14 = vmax.f32 %v9575_v36, %v3118_v2  ;;  %v2943_v40 = vpop.f32.mrf.mxu1  ;;  %v9577_v59 = vld [vmem:[#allocation14_spill] sm:$0xff] }
 0x2e9   :  { %v3122_v54 = vpop.f32.mrf.mxu0  ;;  %5970 = vmatmul.mubr.msk.bf16.gmra.mxu0 %vm627_vm1, %v6415_v47  ;;  %v9579_v26 = vmax.f32 %v9577_v59, %v9578_v11  ;;  %v6419_v47 = vld [vmem:[%s9373_s0 + $0x7f4] ss:$12 sps:$4 sm:$0xff]   ;;  %v9581_v11 = vld [vmem:[#allocation15_spill] sm:$0xff] }
 0x2ea   :  { %9576 = vst [vmem:[#allocation35_spill] sm:$0xff] %v8618_v14  ;;  %v8621_v41 = vpop.f32.mrf.mxu1  ;;  %v3123_v19 = vadd.f32 %v3122_v54, %v8425_v22  ;;  %3994 = vmatmul.mubr.bf16.gmra.mxu1 %v6412_v46  ;;  %5973 = vmatprep.mubr.msk.bf16.mxu0 %vm6472_vm0, %v9468_v7  ;;  %v6416_v46 = vld [vmem:[%s9373_s0 + $0x894] ss:$12 sps:$4 sm:$0xff]  }
 0x2eb   :  { %v5871_v5 = vpop.f32.mrf.mxu0  ;;  %4001 = vmatprep.mubr.bf16.mxu1 %v6418_v51  ;;  %v9582_v40 = vld [vmem:[#allocation46_spill] sm:$0xff] }
 0x2ec   :  { %v8629_v44 = vmax.f32 %v9579_v26, %v3123_v19  ;;  %v2948_v2 = vpop.f32.mrf.mxu1  ;;  %v6422_v26 = vld [vmem:[%s9373_s0 + $0x8b0] ss:$12 sps:$4 sm:$0xff]   ;;  %v9583_v54 = vmax.f32 %v9581_v11, %v9582_v40 }
 0x2ed   :  { %v3125_v34 = vpop.f32.mrf.mxu0 }
 0x2ee   :  { %9580 = vst [vmem:[#allocation5_spill] sm:$0xff] %v8629_v44  ;;  %v8634_v36 = vpop.f32.mrf.mxu1  ;;  %v3126_v22 = vadd.f32 %v3125_v34, %v8438_v39  ;;  %v9586_v44 = vld [vmem:[#allocation47_spill] sm:$0xff] }
 0x2ef   :  { %v5872_v51 = vpop.f32.mrf.mxu0 }
 0x2f0   :  { %v8646_v19 = vmax.f32 %v9583_v54, %v3126_v22  ;;  %v2951_v5 = vpop.f32.mrf.mxu1  ;;  %v9585_v51 = vld [vmem:[#allocation16_spill] sm:$0xff] }
 0x2f1   :  { %v3130_v59 = vpop.f32.mrf.mxu0  ;;  %5974 = vmatmul.mubr.msk.bf16.gmra.mxu0 %vm627_vm1, %v6419_v47  ;;  %v9587_v14 = vmax.f32 %v9585_v51, %v9586_v44  ;;  %v6423_v47 = vld [vmem:[%s9373_s0 + $0x80c] ss:$12 sps:$4 sm:$0xff]   ;;  %v9590_v5 = vld [vmem:[#allocation48_spill] sm:$0xff] }
 0x2f2   :  { %9584 = vst [vmem:[#allocation36_spill] sm:$0xff] %v8646_v19  ;;  %v8649_v2 = vpop.f32.mrf.mxu1  ;;  %v3131_v39 = vadd.f32 %v3130_v59, %v8453_v61  ;;  %4002 = vmatmul.mubr.bf16.gmra.mxu1 %v6416_v46  ;;  %5977 = vmatprep.mubr.msk.bf16.mxu0 %vm6472_vm0, %v9468_v7  ;;  %v6420_v46 = vld [vmem:[%s9373_s0 + $0x8ac] ss:$12 sps:$4 sm:$0xff]  }
 0x2f3   :  { %v5875_v34 = vpop.f32.mrf.mxu0  ;;  %4009 = vmatprep.mubr.bf16.mxu1 %v6422_v26  ;;  %v9589_v44 = vld [vmem:[#allocation17_spill] sm:$0xff] }
 0x2f4   :  { %v8657_v11 = vmax.f32 %v9587_v14, %v3131_v39  ;;  %v2956_v22 = vpop.f32.mrf.mxu1  ;;  %v6426_v14 = vld [vmem:[%s9373_s0 + $0x8c8] ss:$12 sps:$4 sm:$0xff]   ;;  %v9591_v59 = vmax.f32 %v9589_v44, %v9590_v5 }
 0x2f5   :  { %v3133_v40 = vpop.f32.mrf.mxu0 }
 0x2f6   :  { %9588 = vst [vmem:[#allocation6_spill] sm:$0xff] %v8657_v11  ;;  %v8662_v54 = vpop.f32.mrf.mxu1  ;;  %v3134_v61 = vadd.f32 %v3133_v40, %v8466_v27  ;;  %v9594_v11 = vld [vmem:[#allocation49_spill] sm:$0xff] }
 0x2f7   :  { %v5876_v26 = vpop.f32.mrf.mxu0 }
 0x2f8   :  { %v8674_v39 = vmax.f32 %v9591_v59, %v3134_v61  ;;  %v2959_v34 = vpop.f32.mrf.mxu1  ;;  %v9593_v26 = vld [vmem:[#allocation18_spill] sm:$0xff] }
 0x2f9   :  { %v3138_v51 = vpop.f32.mrf.mxu0  ;;  %5978 = vmatmul.mubr.msk.bf16.gmra.mxu0 %vm627_vm1, %v6423_v47  ;;  %v9595_v19 = vmax.f32 %v9593_v26, %v9594_v11  ;;  %v6427_v47 = vld [vmem:[%s9373_s0 + $0x824] ss:$12 sps:$4 sm:$0xff]   ;;  %v9597_v11 = vld [vmem:[#allocation19_spill] sm:$0xff] }
 0x2fa   :  { %9592 = vst [vmem:[#allocation37_spill] sm:$0xff] %v8674_v39  ;;  %v8677_v22 = vpop.f32.mrf.mxu1  ;;  %v3139_v27 = vadd.f32 %v3138_v51, %v8481_v21  ;;  %4010 = vmatmul.mubr.bf16.gmra.mxu1 %v6420_v46  ;;  %5981 = vmatprep.mubr.msk.bf16.mxu0 %vm6472_vm0, %v9468_v7  ;;  %v6424_v46 = vld [vmem:[%s9373_s0 + $0x8c4] ss:$12 sps:$4 sm:$0xff]  }
 0x2fb   :  { %v5879_v40 = vpop.f32.mrf.mxu0  ;;  %4017 = vmatprep.mubr.bf16.mxu1 %v6426_v14  ;;  %v9598_v34 = vld [vmem:[#allocation50_spill] sm:$0xff] }
 0x2fc   :  { %v8685_v44 = vmax.f32 %v9595_v19, %v3139_v27  ;;  %v2964_v61 = vpop.f32.mrf.mxu1  ;;  %v6430_v19 = vld [vmem:[%s9373_s0 + $0x8e0] ss:$12 sps:$4 sm:$0xff]   ;;  %v9599_v51 = vmax.f32 %v9597_v11, %v9598_v34 }
 0x2fd   :  { %v3141_v5 = vpop.f32.mrf.mxu0 }
 0x2fe   :  { %9596 = vst [vmem:[#allocation7_spill] sm:$0xff] %v8685_v44  ;;  %v8690_v59 = vpop.f32.mrf.mxu1  ;;  %v3142_v21 = vadd.f32 %v3141_v5, %v8494_v24  ;;  %v9602_v44 = vld [vmem:[#allocation51_spill] sm:$0xff] }
 0x2ff   :  { %v5880_v14 = vpop.f32.mrf.mxu0 }
 0x300   :  { %v8702_v27 = vmax.f32 %v9599_v51, %v3142_v21  ;;  %v2967_v40 = vpop.f32.mrf.mxu1  ;;  %v9601_v14 = vld [vmem:[#allocation20_spill] sm:$0xff] }
 0x301   :  { %v3146_v26 = vpop.f32.mrf.mxu0  ;;  %5982 = vmatmul.mubr.msk.bf16.gmra.mxu0 %vm627_vm1, %v6427_v47  ;;  %v9603_v39 = vmax.f32 %v9601_v14, %v9602_v44  ;;  %v6431_v47 = vld [vmem:[%s9373_s0 + $0x83c] ss:$12 sps:$4 sm:$0xff]   ;;  %v9606_v40 = vld [vmem:[#allocation52_spill] sm:$0xff] }
 0x302   :  { %9600 = vst [vmem:[#allocation38_spill] sm:$0xff] %v8702_v27  ;;  %v8705_v61 = vpop.f32.mrf.mxu1  ;;  %v3147_v24 = vadd.f32 %v3146_v26, %v8509_v1  ;;  %4018 = vmatmul.mubr.bf16.gmra.mxu1 %v6424_v46  ;;  %5985 = vmatprep.mubr.msk.bf16.mxu0 %vm6472_vm0, %v9468_v7  ;;  %v6428_v46 = vld [vmem:[%s9373_s0 + $0x8dc] ss:$12 sps:$4 sm:$0xff]  }
 0x303   :  { %v5883_v5 = vpop.f32.mrf.mxu0  ;;  %4025 = vmatprep.mubr.bf16.mxu1 %v6430_v19  ;;  %v9605_v44 = vld [vmem:[#allocation21_spill] sm:$0xff] }
 0x304   :  { %v8713_v11 = vmax.f32 %v9603_v39, %v3147_v24  ;;  %v2972_v21 = vpop.f32.mrf.mxu1  ;;  %v6434_v39 = vld [vmem:[%s9373_s0 + $0x8f8] ss:$12 sps:$4 sm:$0xff]   ;;  %v9607_v26 = vmax.f32 %v9605_v44, %v9606_v40 }
 0x305   :  { %v3149_v34 = vpop.f32.mrf.mxu0 }
 0x306   :  { %9604 = vst [vmem:[#allocation8_spill] sm:$0xff] %v8713_v11  ;;  %v8718_v51 = vpop.f32.mrf.mxu1  ;;  %v3150_v1 = vadd.f32 %v3149_v34, %v8522_v37  ;;  %v9610_v11 = vld [vmem:[#allocation53_spill] sm:$0xff] }
 0x307   :  { %v5884_v19 = vpop.f32.mrf.mxu0 }
 0x308   :  { %v8730_v24 = vmax.f32 %v9607_v26, %v3150_v1  ;;  %v2975_v5 = vpop.f32.mrf.mxu1  ;;  %v9609_v19 = vld [vmem:[#allocation22_spill] sm:$0xff] }
 0x309   :  { %v3154_v14 = vpop.f32.mrf.mxu0  ;;  %5986 = vmatmul.mubr.msk.bf16.gmra.mxu0 %vm627_vm1, %v6431_v47  ;;  %v9611_v27 = vmax.f32 %v9609_v19, %v9610_v11  ;;  %v6435_v47 = vld [vmem:[%s9373_s0 + $0x854] ss:$12 sps:$4 sm:$0xff]   ;;  %v9613_v11 = vld [vmem:[#allocation23_spill] sm:$0xff] }
 0x30a   :  { %9608 = vst [vmem:[#allocation39_spill] sm:$0xff] %v8730_v24  ;;  %v8733_v21 = vpop.f32.mrf.mxu1  ;;  %v3155_v37 = vadd.f32 %v3154_v14, %v8537_v29  ;;  %4026 = vmatmul.mubr.bf16.gmra.mxu1 %v6428_v46  ;;  %5989 = vmatprep.mubr.msk.bf16.mxu0 %vm6472_vm0, %v9468_v7  ;;  %v6432_v46 = vld [vmem:[%s9373_s0 + $0x8f4] ss:$12 sps:$4 sm:$0xff]  }
 0x30b   :  { %v5887_v34 = vpop.f32.mrf.mxu0  ;;  %4033 = vmatprep.mubr.bf16.mxu1 %v6434_v39  ;;  %v9614_v5 = vld [vmem:[#allocation54_spill] sm:$0xff] }
 0x30c   :  { %v8741_v44 = vmax.f32 %v9611_v27, %v3155_v37  ;;  %v2980_v1 = vpop.f32.mrf.mxu1  ;;  %v6438_v27 = vld [vmem:[%s9373_s0 + $0x910] ss:$12 sps:$4 sm:$0xff]   ;;  %v9615_v14 = vmax.f32 %v9613_v11, %v9614_v5 }
 0x30d   :  { %v3157_v40 = vpop.f32.mrf.mxu0 }
 0x30e   :  { %9612 = vst [vmem:[#allocation9_spill] sm:$0xff] %v8741_v44  ;;  %v8746_v26 = vpop.f32.mrf.mxu1  ;;  %v3158_v29 = vadd.f32 %v3157_v40, %v8550_v33  ;;  %v9617_v44 = vld [vmem:[#allocation55_spill] sm:$0xff] }
 0x30f   :  { %v5888_v39 = vpop.f32.mrf.mxu0 }
 0x310   :  { %v8758_v37 = vmax.f32 %v9615_v14, %v3158_v29  ;;  %v2983_v34 = vpop.f32.mrf.mxu1  ;;  %v9616_v39 = vld [vmem:[#allocation24_spill] sm:$0xff] }
 0x311   :  { %v3162_v19 = vpop.f32.mrf.mxu0  ;;  %5990 = vmatmul.mubr.msk.bf16.gmra.mxu0 %vm627_vm1, %v6435_v47  ;;  %v9618_v24 = vmax.f32 %v9616_v39, %v9617_v44  ;;  %v5304_v47 = vld [vmem:[%s9373_s0 + $0x924] sm:$0xff]  ;;  %v6436_v44 = vld [vmem:[%s9373_s0 + $0x90c] ss:$12 sps:$4 sm:$0xff]   ;;  %v9620_v34 = vld [vmem:[#allocation56_spill] sm:$0xff] }
 0x312   :  { %v8761_v1 = vpop.f32.mrf.mxu1  ;;  %v3163_v33 = vadd.f32 %v3162_v19, %v8565_v57  ;;  %4034 = vmatmul.mubr.bf16.gmra.mxu1 %v6432_v46  ;;  %5993 = vmatprep.mubr.msk.bf16.mxu0 %vm6472_vm0, %v9468_v7  ;;  %v6439_v57 = vld [vmem:[%s9373_s0 + $0x86c] ss:$12 sps:$4 sm:$0xff]   ;;  %v9621_v19 = vmax.f32 %v9515_v18, %v9620_v34 }
 0x313   :  { %v5891_v40 = vpop.f32.mrf.mxu0  ;;  %4041 = vmatprep.mubr.bf16.mxu1 %v6438_v27  ;;  %v5379_v27 = vcombine.high %v5304_v47, %v5304_v47 }
 0x314   :  { %v8769_v11 = vmax.f32 %v9618_v24, %v3163_v33  ;;  %v2988_v29 = vpop.f32.mrf.mxu1 }
 0x315   :  { %v3165_v5 = vpop.f32.mrf.mxu0 }
 0x316   :  { %9619 = vst [vmem:[#allocation40_spill] sm:$0xff] %v8769_v11  ;;  %v8777_v46 = vpop.f32.mrf.mxu1  ;;  %v3166_v14 = vadd.f32 %v3165_v5, %v8578_v53  ;;  %v9622_v5 = vmax.f32 %v9516_v10, %v8111_v50 }
 0x317   :  { %v5892_v24 = vpop.f32.mrf.mxu0 }
 0x318   :  { %v8786_v33 = vmax.f32 %v9621_v19, %v3166_v14  ;;  %v2991_v40 = vpop.f32.mrf.mxu1 }
 0x319   :  { %v3170_v39 = vpop.f32.mrf.mxu0  ;;  %5994 = vmatmul.mubr.msk.bf16.gmra.mxu0 %vm627_vm1, %v6439_v57  ;;  %v6442_v57 = vld [vmem:[%s9373_s0 + $0x884] ss:$12 sps:$4 sm:$0xff]   ;;  %v9623_v40 = vmax.f32 %v7474_v23, %v8121_v60  ;;  %v9624_v23 = vmax.f32 %v7481_v4, %v8130_v52 }
 0x31a   :  { %v8789_v29 = vpop.f32.mrf.mxu1  ;;  %v3171_v11 = vadd.f32 %v3170_v39, %v8593_v55  ;;  %4042 = vmatmul.mubr.bf16.gmra.mxu1 %v6436_v44  ;;  %5997 = vmatprep.mubr.msk.bf16.mxu0 %vm6472_vm0, %v9468_v7  ;;  %v5378_v44 = vcombine.low %v5304_v47, %v5304_v47 }
 0x31b   :  { %v5895_v53 = vpop.f32.mrf.mxu0  ;;  %4049 = vmatprep.mubr.bf16.mxu1 %v5379_v27 }
 0x31c   :  { %v8797_v18 = vmax.f32 %v9622_v5, %v3171_v11  ;;  %v2996_v14 = vpop.f32.mrf.mxu1 }
 0x31d   :  { %v3173_v24 = vpop.f32.mrf.mxu0 }
 0x31e   :  { %v2997_v34 = vpop.f32.mrf.mxu1  ;;  %v3174_v55 = vadd.f32 %v3173_v24, %v8606_v63  ;;  %v6444_v24 = vld [vmem:[%s9373_s0 + $0x8fc] ss:$12 sps:$4 sm:$0xff]  }
 0x31f   :  { %v5896_v19 = vpop.f32.mrf.mxu0  ;;  %v9625_v34 = vld [vmem:[#allocation25_spill] sm:$0xff] }
 0x320   :  { %v8806_v27 = vmax.f32 %v9623_v40, %v3174_v55  ;;  %v2998_v39 = vpop.f32.mrf.mxu1  ;;  %v9626_v4 = vmax.f32 %v7491_v48, %v9625_v34  ;;  %v9627_v48 = vld [vmem:[#allocation27_spill] sm:$0xff] }
 0x321   :  { %v3178_v50 = vpop.f32.mrf.mxu0  ;;  %5998 = vmatmul.mubr.msk.bf16.gmra.mxu0 %vm627_vm1, %v6442_v57  ;;  %v9628_v39 = vld [vmem:[#allocation26_spill] sm:$0xff] }
 0x322   :  { %v3179_v10 = vadd.f32 %v3178_v50, %v8621_v41  ;;  %v8810_v11 = vpop.f32.mrf.mxu1  ;;  %4050 = vmatmul.mubr.bf16.gmra.mxu1 %v5378_v44  ;;  %6001 = vmatprep.mubr.msk.bf16.mxu0 %vm6472_vm0, %v9468_v7  ;;  %v6443_v41 = vld [vmem:[%s9373_s0 + $0x89c] ss:$12 sps:$4 sm:$0xff]   ;;  %v9629_v50 = vmax.f32 %v9627_v48, %v9628_v39 }
 0x323   :  { %v5899_v63 = vpop.f32.mrf.mxu0  ;;  %6017 = vmatprep.mubr.msk.bf16.mxu1 %vm6472_vm0, %v9468_v7 }
 0x324   :  { %v8819_v60 = vmax.f32 %v9624_v23, %v3179_v10  ;;  %v3861_v47 = vpop.f32.mrf.mxu1 }
 0x325   :  { %v3181_v53 = vpop.f32.mrf.mxu0 }
 0x326   :  { %v3182_v5 = vadd.f32 %v3181_v53, %v8634_v36  ;;  %v8825_v14 = vpop.f32.mrf.mxu1 }
 0x327   :  { %v5900_v57 = vpop.f32.mrf.mxu0 }
 0x328   :  { %v8833_v52 = vmax.f32 %v9626_v4, %v3182_v5  ;;  %v3864_v55 = vpop.f32.mrf.mxu1 }
 0x329   :  { %v3186_v44 = vpop.f32.mrf.mxu0  ;;  %6002 = vmatmul.mubr.msk.bf16.gmra.mxu0 %vm627_vm1, %v6443_v41  ;;  %v6446_v41 = vld [vmem:[%s9373_s0 + $0x914] ss:$12 sps:$4 sm:$0xff]  }
 0x32a   :  { %v3187_v19 = vadd.f32 %v3186_v44, %v8649_v2  ;;  %v8837_v40 = vpop.f32.mrf.mxu1  ;;  %6018 = vmatmul.mubr.msk.bf16.vlgmr.msra.gmra.mxu1 %vm627_vm1, %v6444_v24  ;;  %6005 = vmatprep.mubr.msk.bf16.mxu0 %vm6472_vm0, %v9468_v7  ;;  %v6445_v2 = vld [vmem:[%s9373_s0 + $0x8b4] ss:$12 sps:$4 sm:$0xff]   ;;  %v9630_v24 = vmax.f32 %v7515_v0, %v8172_v30  ;;  %v9632_v30 = vld [vmem:[#allocation57_spill] sm:$0xff] }
 0x32b   :  { %v5903_v36 = vpop.f32.mrf.mxu0  ;;  %6021 = vmatprep.mubr.msk.bf16.mxu1 %vm6472_vm0, %v9468_v7  ;;  %v9631_v0 = vld [vmem:[#allocation28_spill] sm:$0xff] }
 0x32c   :  { %v8847_v10 = vmax.f32 %v9629_v50, %v3187_v19  ;;  %v3869_v63 = vpop.f32.mrf.mxu1  ;;  %v9633_v19 = vmax.f32 %v9631_v0, %v9632_v30 }
 0x32d   :  { %v3189_v23 = vpop.f32.mrf.mxu0 }
 0x32e   :  { %v3190_v47 = vadd.f32 %v3189_v23, %v8662_v54  ;;  %v8853_v53 = vpop.f32.mrf.mxu1  ;;  %v6448_v23 = vld [vmem:[%s9373_s0 + $0x92c] ss:$0 sps:$4 sm:$0xff]  }
 0x32f   :  { %v5904_v5 = vpop.f32.mrf.mxu0 }
 0x330   :  { %v8861_v57 = vmax.f32 %v9630_v24, %v3190_v47  ;;  %v3872_v34 = vpop.f32.mrf.mxu1  ;;  %v9634_v47 = vmax.f32 %v7541_v62, %v8201_v56 }
 0x331   :  { %v3194_v4 = vpop.f32.mrf.mxu0  ;;  %6006 = vmatmul.mubr.msk.bf16.gmra.mxu0 %vm627_vm1, %v6445_v2 }
 0x332   :  { %v3195_v55 = vadd.f32 %v3194_v4, %v8677_v22  ;;  %v8865_v44 = vpop.f32.mrf.mxu1  ;;  %6022 = vmatmul.mubr.msk.bf16.gmra.mxu1 %vm627_vm1, %v6446_v41  ;;  %6009 = vmatprep.mubr.msk.bf16.mxu0 %vm6472_vm0, %v9468_v7  ;;  %v6447_v22 = vld [vmem:[%s9373_s0 + $0x8cc] ss:$12 sps:$4 sm:$0xff]  }
 0x333   :  { %v5907_v54 = vpop.f32.mrf.mxu0  ;;  %6025 = vmatprep.mubr.msk.bf16.mxu1 %vm6472_vm0, %v9468_v7 }
 0x334   :  { %v8875_v36 = vmax.f32 %v9633_v19, %v3195_v55  ;;  %v3877_v48 = vpop.f32.mrf.mxu1  ;;  %v9635_v55 = vld [vmem:[#allocation29_spill] sm:$0xff]  ;;  %v9636_v54 = vld [vmem:[#allocation58_spill] sm:$0xff] }
 0x335   :  { %v3197_v39 = vpop.f32.mrf.mxu0  ;;  %v9637_v0 = vmax.f32 %v9635_v55, %v9636_v54  ;;  %v6449_v19 = vld [vmem:[%s9373_s0 + $0x8e4] ss:$12 sps:$4 sm:$0xff]  }
 0x336   :  { %v3198_v50 = vadd.f32 %v3197_v39, %v8690_v59  ;;  %v8881_v63 = vpop.f32.mrf.mxu1 }
 0x337   :  { %v5908_v2 = vpop.f32.mrf.mxu0 }
 0x338   :  { %v8889_v41 = vmax.f32 %v9634_v47, %v3198_v50  ;;  %v3880_v5 = vpop.f32.mrf.mxu1 }
 0x339   :  { %v3202_v24 = vpop.f32.mrf.mxu0  ;;  %6010 = vmatmul.mubr.msk.bf16.gmra.mxu0 %vm627_vm1, %v6447_v22 }
 0x33a   :  { %v3203_v34 = vadd.f32 %v3202_v24, %v8705_v61  ;;  %v8893_v4 = vpop.f32.mrf.mxu1  ;;  %6026 = vmatmul.mubr.msk.bf16.gmra.mxu1 %vm627_vm1, %v6448_v23  ;;  %6013 = vmatprep.mubr.msk.bf16.mxu0 %vm6472_vm0, %v9468_v7  ;;  %v9638_v7 = vmax.f32 %v7567_v38, %v8227_v9  ;;  %v9639_v24 = vld [vmem:[#allocation30_spill] sm:$0xff] }
 0x33b   :  { %v5911_v59 = vpop.f32.mrf.mxu0 }
 0x33c   :  { %v8901_v62 = vmax.f32 %v9637_v0, %v3203_v34  ;;  %v3885_v56 = vpop.f32.mrf.mxu1  ;;  %v9640_v34 = vld [vmem:[#allocation59_spill] sm:$0xff] }
 0x33d   :  { %v3205_v30 = vpop.f32.mrf.mxu0  ;;  %v9642_v56 = vmax.f32 %v7593_v20, %v8253_v13  ;;  %v9646_v13 = vld [vmem:[#allocation61_spill] sm:$0xff] }
 0x33e   :  { %v3206_v61 = vadd.f32 %v3205_v30, %v8718_v51  ;;  %v8907_v48 = vpop.f32.mrf.mxu1  ;;  %v9641_v51 = vmax.f32 %v9639_v24, %v9640_v34 }
 0x33f   :  { %v5912_v39 = vpop.f32.mrf.mxu0 }
 0x340   :  { %v8912_v22 = vmax.f32 %v9638_v7, %v3206_v61  ;;  %v3888_v50 = vpop.f32.mrf.mxu1 }
 0x341   :  { %v3210_v23 = vpop.f32.mrf.mxu0  ;;  %6014 = vmatmul.mubr.msk.bf16.gmra.mxu0 %vm627_vm1, %v6449_v19  ;;  %v9643_v50 = vld [vmem:[#allocation31_spill] sm:$0xff] }
 0x342   :  { %v3211_v2 = vadd.f32 %v3210_v23, %v8733_v21  ;;  %v8916_v47 = vpop.f32.mrf.mxu1  ;;  %v9644_v23 = vld [vmem:[#allocation60_spill] sm:$0xff] }
 0x343   :  { %v5915_v5 = vpop.f32.mrf.mxu0 }
 0x344   :  { %v8921_v59 = vmax.f32 %v9641_v51, %v3211_v2  ;;  %v3893_v55 = vpop.f32.mrf.mxu1  ;;  %v9645_v2 = vmax.f32 %v9643_v50, %v9644_v23 }
 0x345   :  { %v3213_v54 = vpop.f32.mrf.mxu0  ;;  %v9647_v55 = vmax.f32 %v7619_v6, %v9646_v13 }
 0x346   :  { %v3214_v38 = vadd.f32 %v3213_v54, %v8746_v26  ;;  %v8924_v9 = vpop.f32.mrf.mxu1 }
 0x347   :  { %v5916_v0 = vpop.f32.mrf.mxu0 }
 0x348   :  { %v8929_v30 = vmax.f32 %v9642_v56, %v3214_v38  ;;  %v3896_v21 = vpop.f32.mrf.mxu1 }
 0x349   :  { %v3218_v19 = vpop.f32.mrf.mxu0 }
 0x34a   :  { %v3219_v61 = vadd.f32 %v3218_v19, %v8761_v1  ;;  %v8932_v39 = vpop.f32.mrf.mxu1  ;;  %v9648_v19 = vld [vmem:[#allocation32_spill] sm:$0xff] }
 0x34b   :  { %v5919_v7 = vpop.f32.mrf.mxu0 }
 0x34c   :  { %v8937_v5 = vmax.f32 %v9645_v2, %v3219_v61  ;;  %v3901_v26 = vpop.f32.mrf.mxu1  ;;  %v9649_v61 = vld [vmem:[#allocation62_spill] sm:$0xff] }
 0x34d   :  { %v3221_v24 = vpop.f32.mrf.mxu0  ;;  %v9650_v7 = vmax.f32 %v9648_v19, %v9649_v61 }
 0x34e   :  { %v3222_v34 = vadd.f32 %v3221_v24, %v8777_v46  ;;  %v8940_v51 = vpop.f32.mrf.mxu1 }
 0x34f   :  { %v5920_v20 = vpop.f32.mrf.mxu0 }
 0x350   :  { %v8945_v54 = vmax.f32 %v9647_v55, %v3222_v34  ;;  %v3904_v1 = vpop.f32.mrf.mxu1 }
 0x351   :  { %v3226_v38 = vpop.f32.mrf.mxu0 }
 0x352   :  { %v3227_v0 = vadd.f32 %v3226_v38, %v8789_v29  ;;  %v8948_v56 = vpop.f32.mrf.mxu1  ;;  %v8963_v29 = vld [vmem:[%s9374_s2] ss:$0 sm:$0xff] }
 0x353   :  { %v5923_v21 = vpop.f32.mrf.mxu0 }
 0x354   :  { %v8953_v50 = vmax.f32 %v9650_v7, %v3227_v0  ;;  %v3909_v46 = vpop.f32.mrf.mxu1 }
 0x355   :  { %v3229_v23 = vpop.f32.mrf.mxu0 }
 0x356   :  { %v8955_v2 = vpop.f32.mrf.mxu1 }
 0x357   :  { %v5924_v26 = vpop.f32.mrf.mxu0 }
 0x358   :  { %v3912_v6 = vpop.f32.mrf.mxu1 }
 0x359   :  { %v4091_v24 = vpop.f32.mrf.mxu0 }
 0x35a   :  { %v8957_v34 = vpop.f32.mrf.mxu1  ;;  %v4092_v20 = vadd.f32 %v4091_v24, %v8810_v11 }
 0x35b   :  { %v5931_v13 = vpop.f32.mrf.mxu0 }
 0x35c   :  { %v4289_v55 = vmax.f32 %v8321_v45, %v4092_v20  ;;  %v3917_v1 = vpop.f32.mrf.mxu1 }
 0x35d   :  { %v4094_v38 = vpop.f32.mrf.mxu0 }
 0x35e   :  { %v4345_v0 = vadd.f32 %v8963_v29, %v4289_v55  ;;  %v8967_v21 = vpop.f32.mrf.mxu1  ;;  %v4095_v19 = vadd.f32 %v4094_v38, %v8825_v14 }
 0x35f   :  { %v5932_v61 = vpop.f32.mrf.mxu0 }
 0x360   :  { %v4394_v7 = vmax.f32 %v4345_v0, 0.0  ;;  %v4290_v11 = vmax.f32 %v8338_v16, %v4095_v19  ;;  %v3920_v46 = vpop.f32.mrf.mxu1 }
 0x361   :  { %v4099_v23 = vpop.f32.mrf.mxu0 }
 0x362   :  { %v5456_v26 = vpack.c.bf16 %v4394_v7, %v4394_v7  ;;  %v4346_v6 = vadd.f32 %v8963_v29, %v4290_v11  ;;  %v8972_v24 = vpop.f32.mrf.mxu1  ;;  %v4100_v45 = vadd.f32 %v4099_v23, %v8837_v40 }
 0x363   :  { %v5935_v20 = vpop.f32.mrf.mxu0 }
 0x364   :  { %4641 = vst.msk [vmem:[%s9375_s3] sm:$0xf] %vm4640_vm2, %v5456_v26  ;;  %v4395_v14 = vmax.f32 %v4346_v6, 0.0  ;;  %v4291_v13 = vmax.f32 %v8349_v42, %v4100_v45  ;;  %v3925_v16 = vpop.f32.mrf.mxu1 }
 0x365   :  { %v4102_v55 = vpop.f32.mrf.mxu0 }
 0x366   :  { %v5457_v1 = vpack.c.bf16 %v4395_v14, %v4395_v14  ;;  %v4347_v38 = vadd.f32 %v8963_v29, %v4291_v13  ;;  %v8981_v0 = vpop.f32.mrf.mxu1  ;;  %v4103_v19 = vadd.f32 %v4102_v55, %v8853_v53 }
 0x367   :  { %v5936_v61 = vpop.f32.mrf.mxu0 }
 0x368   :  { %4642 = vst.msk [vmem:[%s9375_s3 + $0x4] sm:$0xf] %vm4640_vm2, %v5457_v1  ;;  %v4396_v40 = vmax.f32 %v4347_v38, 0.0  ;;  %v4292_v7 = vmax.f32 %v8366_v17, %v4103_v19  ;;  %v3928_v11 = vpop.f32.mrf.mxu1 }
 0x369   :  { %v4107_v42 = vpop.f32.mrf.mxu0 }
 0x36a   :  { %v5458_v46 = vpack.c.bf16 %v4396_v40, %v4396_v40  ;;  %v4348_v23 = vadd.f32 %v8963_v29, %v4292_v7  ;;  %v8990_v26 = vpop.f32.mrf.mxu1  ;;  %v4108_v6 = vadd.f32 %v4107_v42, %v8865_v44 }
 0x36b   :  { %v5939_v45 = vpop.f32.mrf.mxu0 }
 0x36c   :  { %4643 = vst.msk [vmem:[%s9375_s3 + $0x8] sm:$0xf] %vm4640_vm2, %v5458_v46  ;;  %v4397_v53 = vmax.f32 %v4348_v23, 0.0  ;;  %v4293_v20 = vmax.f32 %v8377_v3, %v4108_v6  ;;  %v3933_v14 = vpop.f32.mrf.mxu1 }
 0x36d   :  { %v4110_v17 = vpop.f32.mrf.mxu0 }
 0x36e   :  { %v5459_v13 = vpack.c.bf16 %v4397_v53, %v4397_v53  ;;  %v4349_v16 = vadd.f32 %v8963_v29, %v4293_v20  ;;  %v8999_v55 = vpop.f32.mrf.mxu1  ;;  %v4111_v1 = vadd.f32 %v4110_v17, %v8881_v63 }
 0x36f   :  { %v5940_v38 = vpop.f32.mrf.mxu0 }
 0x370   :  { %4644 = vst.msk [vmem:[%s9375_s3 + $0xc] sm:$0xf] %vm4640_vm2, %v5459_v13  ;;  %v4398_v44 = vmax.f32 %v4349_v16, 0.0  ;;  %v4294_v19 = vmax.f32 %v8394_v32, %v4111_v1  ;;  %v3936_v61 = vpop.f32.mrf.mxu1 }
 0x371   :  { %v4115_v3 = vpop.f32.mrf.mxu0 }
 0x372   :  { %v5460_v40 = vpack.c.bf16 %v4398_v44, %v4398_v44  ;;  %v4350_v7 = vadd.f32 %v8963_v29, %v4294_v19  ;;  %v9008_v11 = vpop.f32.mrf.mxu1  ;;  %v4116_v42 = vadd.f32 %v4115_v3, %v8893_v4 }
 0x373   :  { %v5943_v46 = vpop.f32.mrf.mxu0 }
 0x374   :  { %4645 = vst.msk [vmem:[%s9375_s3 + $0x10] sm:$0xf] %vm4640_vm2, %v5460_v40  ;;  %v4399_v63 = vmax.f32 %v4350_v7, 0.0  ;;  %v4295_v23 = vmax.f32 %v8405_v28, %v4116_v42  ;;  %v3941_v6 = vpop.f32.mrf.mxu1 }
 0x375   :  { %v4118_v32 = vpop.f32.mrf.mxu0 }
 0x376   :  { %v5461_v45 = vpack.c.bf16 %v4399_v63, %v4399_v63  ;;  %v4351_v53 = vadd.f32 %v8963_v29, %v4295_v23  ;;  %v9017_v20 = vpop.f32.mrf.mxu1  ;;  %v4119_v14 = vadd.f32 %v4118_v32, %v8907_v48 }
 0x377   :  { %v5944_v17 = vpop.f32.mrf.mxu0 }
 0x378   :  { %4646 = vst.msk [vmem:[%s9375_s3 + $0x14] sm:$0xf] %vm4640_vm2, %v5461_v45  ;;  %v4400_v4 = vmax.f32 %v4351_v53, 0.0  ;;  %v4296_v13 = vmax.f32 %v8422_v8, %v4119_v14  ;;  %v3944_v16 = vpop.f32.mrf.mxu1 }
 0x379   :  { %v4123_v28 = vpop.f32.mrf.mxu0 }
 0x37a   :  { %v5462_v1 = vpack.c.bf16 %v4400_v4, %v4400_v4  ;;  %v4352_v38 = vadd.f32 %v8963_v29, %v4296_v13  ;;  %v9026_v44 = vpop.f32.mrf.mxu1  ;;  %v4124_v19 = vadd.f32 %v4123_v28, %v8916_v47 }
 0x37b   :  { %v5947_v61 = vpop.f32.mrf.mxu0 }
 0x37c   :  { %4647 = vst.msk [vmem:[%s9375_s3 + $0x18] sm:$0xf] %vm4640_vm2, %v5462_v1  ;;  %v4401_v48 = vmax.f32 %v4352_v38, 0.0  ;;  %v4297_v3 = vmax.f32 %v8433_v58, %v4124_v19  ;;  %v3949_v40 = vpop.f32.mrf.mxu1 }
 0x37d   :  { %v4126_v8 = vpop.f32.mrf.mxu0 }
 0x37e   :  { %v5463_v7 = vpack.c.bf16 %v4401_v48, %v4401_v48  ;;  %v4353_v42 = vadd.f32 %v8963_v29, %v4297_v3  ;;  %v9035_v46 = vpop.f32.mrf.mxu1  ;;  %v4127_v63 = vadd.f32 %v4126_v8, %v8924_v9 }
 0x37f   :  { %v5948_v23 = vpop.f32.mrf.mxu0 }
 0x380   :  { %4648 = vst.msk [vmem:[%s9375_s3 + $0x1c] sm:$0xf] %vm4640_vm2, %v5463_v7  ;;  %v4402_v47 = vmax.f32 %v4353_v42, 0.0  ;;  %v4298_v6 = vmax.f32 %v8450_v15, %v4127_v63  ;;  %v3952_v32 = vpop.f32.mrf.mxu1 }
 0x381   :  { %v4131_v58 = vpop.f32.mrf.mxu0 }
 0x382   :  { %v5464_v45 = vpack.c.bf16 %v4402_v47, %v4402_v47  ;;  %v4354_v53 = vadd.f32 %v8963_v29, %v4298_v6  ;;  %v9044_v14 = vpop.f32.mrf.mxu1  ;;  %v4132_v17 = vadd.f32 %v4131_v58, %v8932_v39 }
 0x383   :  { %v5951_v4 = vpop.f32.mrf.mxu0 }
 0x384   :  { %4649 = vst.msk [vmem:[%s9375_s3 + $0x20] sm:$0xf] %vm4640_vm2, %v5464_v45  ;;  %v4403_v9 = vmax.f32 %v4354_v53, 0.0  ;;  %v4299_v13 = vmax.f32 %v8461_v25, %v4132_v17  ;;  %v3957_v16 = vpop.f32.mrf.mxu1 }
 0x385   :  { %v4134_v15 = vpop.f32.mrf.mxu0 }
 0x386   :  { %v5465_v28 = vpack.c.bf16 %v4403_v9, %v4403_v9  ;;  %v4355_v1 = vadd.f32 %v8963_v29, %v4299_v13  ;;  %v9053_v38 = vpop.f32.mrf.mxu1  ;;  %v4135_v19 = vadd.f32 %v4134_v15, %v8940_v51 }
 0x387   :  { %v5952_v61 = vpop.f32.mrf.mxu0 }
 0x388   :  { %4650 = vst.msk [vmem:[%s9375_s3 + $0x24] sm:$0xf] %vm4640_vm2, %v5465_v28  ;;  %v4404_v39 = vmax.f32 %v4355_v1, 0.0  ;;  %v4300_v48 = vmax.f32 %v8478_v31, %v4135_v19  ;;  %v3960_v3 = vpop.f32.mrf.mxu1 }
 0x389   :  { %v4139_v25 = vpop.f32.mrf.mxu0 }
 0x38a   :  { %v5466_v40 = vpack.c.bf16 %v4404_v39, %v4404_v39  ;;  %v4356_v8 = vadd.f32 %v8963_v29, %v4300_v48  ;;  %v9062_v7 = vpop.f32.mrf.mxu1  ;;  %v4140_v42 = vadd.f32 %v4139_v25, %v8948_v56 }
 0x38b   :  { %v5955_v63 = vpop.f32.mrf.mxu0 }
 0x38c   :  { %4651 = vst.msk [vmem:[%s9375_s3 + $0x28] sm:$0xf] %vm4640_vm2, %v5466_v40  ;;  %v4405_v51 = vmax.f32 %v4356_v8, 0.0  ;;  %v4301_v23 = vmax.f32 %v8489_v49, %v4140_v42  ;;  %v3965_v47 = vpop.f32.mrf.mxu1 }
 0x38d   :  { %v4142_v31 = vpop.f32.mrf.mxu0 }
 0x38e   :  { %v5467_v6 = vpack.c.bf16 %v4405_v51, %v4405_v51  ;;  %v4357_v32 = vadd.f32 %v8963_v29, %v4301_v23  ;;  %v9071_v58 = vpop.f32.mrf.mxu1  ;;  %v4143_v45 = vadd.f32 %v4142_v31, %v8955_v2  ;;  %v9651_v31 = vld [vmem:[#allocation2_spill] sm:$0xff] }
 0x38f   :  { %v5956_v53 = vpop.f32.mrf.mxu0 }
 0x390   :  { %4652 = vst.msk [vmem:[%s9375_s3 + $0x2c] sm:$0xf] %vm4640_vm2, %v5467_v6  ;;  %v4406_v56 = vmax.f32 %v4357_v32, 0.0  ;;  %v4302_v17 = vmax.f32 %v8506_v43, %v4143_v45  ;;  %v3968_v4 = vpop.f32.mrf.mxu1 }
 0x391   :  { %v4147_v49 = vpop.f32.mrf.mxu0 }
 0x392   :  { %v5468_v9 = vpack.c.bf16 %v4406_v56, %v4406_v56  ;;  %v4358_v13 = vadd.f32 %v8963_v29, %v4302_v17  ;;  %v9080_v16 = vpop.f32.mrf.mxu1  ;;  %v4148_v15 = vadd.f32 %v4147_v49, %v8957_v34  ;;  %v9652_v49 = vld [vmem:[#allocation33_spill] sm:$0xff] }
 0x393   :  { %v5959_v28 = vpop.f32.mrf.mxu0 }
 0x394   :  { %4653 = vst.msk [vmem:[%s9375_s3 + $0x30] sm:$0xf] %vm4640_vm2, %v5468_v9  ;;  %v4407_v2 = vmax.f32 %v4358_v13, 0.0  ;;  %v4303_v1 = vmax.f32 %v8517_v35, %v4148_v15  ;;  %v3973_v19 = vpop.f32.mrf.mxu1 }
 0x395   :  { %v4150_v43 = vpop.f32.mrf.mxu0 }
 0x396   :  { %v5469_v61 = vpack.c.bf16 %v4407_v2, %v4407_v2  ;;  %v4359_v39 = vadd.f32 %v8963_v29, %v4303_v1  ;;  %v9089_v48 = vpop.f32.mrf.mxu1  ;;  %v4151_v3 = vadd.f32 %v4150_v43, %v8967_v21 }
 0x397   :  { %v5960_v25 = vpop.f32.mrf.mxu0 }
 0x398   :  { %4654 = vst.msk [vmem:[%s9375_s3 + $0x34] sm:$0xf] %vm4640_vm2, %v5469_v61  ;;  %v4408_v34 = vmax.f32 %v4359_v39, 0.0  ;;  %v4304_v40 = vmax.f32 %v8534_v12, %v4151_v3  ;;  %v3976_v8 = vpop.f32.mrf.mxu1  ;;  %v9653_v61 = vld [vmem:[#allocation3_spill] sm:$0xff] }
 0x399   :  { %v4155_v35 = vpop.f32.mrf.mxu0 }
 0x39a   :  { %v5470_v42 = vpack.c.bf16 %v4408_v34, %v4408_v34  ;;  %v4360_v63 = vadd.f32 %v8963_v29, %v4304_v40  ;;  %v9098_v51 = vpop.f32.mrf.mxu1  ;;  %v4156_v23 = vadd.f32 %v4155_v35, %v8972_v24 }
 0x39b   :  { %v5963_v47 = vpop.f32.mrf.mxu0 }
 0x39c   :  { %4655 = vst.msk [vmem:[%s9375_s3 + $0x38] sm:$0xf] %vm4640_vm2, %v5470_v42  ;;  %v4409_v21 = vmax.f32 %v4360_v63, 0.0  ;;  %v4305_v6 = vmax.f32 %v9651_v31, %v4156_v23  ;;  %v3981_v32 = vpop.f32.mrf.mxu1  ;;  %v9654_v63 = vld [vmem:[#allocation34_spill] sm:$0xff] }
 0x39d   :  { %v4158_v12 = vpop.f32.mrf.mxu0 }
 0x39e   :  { %v5471_v45 = vpack.c.bf16 %v4409_v21, %v4409_v21  ;;  %v4361_v53 = vadd.f32 %v8963_v29, %v4305_v6  ;;  %v9107_v56 = vpop.f32.mrf.mxu1  ;;  %v4159_v17 = vadd.f32 %v4158_v12, %v8981_v0 }
 0x39f   :  { %v5964_v4 = vpop.f32.mrf.mxu0 }
 0x3a0   :  { %4656 = vst.msk [vmem:[%s9375_s3 + $0x3c] sm:$0xf] %vm4640_vm2, %v5471_v45  ;;  %v4410_v24 = vmax.f32 %v4361_v53, 0.0  ;;  %v4306_v9 = vmax.f32 %v9652_v49, %v4159_v17  ;;  %v3984_v13 = vpop.f32.mrf.mxu1  ;;  %v9655_v53 = vld [vmem:[#allocation4_spill] sm:$0xff] }
 0x3a1   :  { %v4163_v15 = vpop.f32.mrf.mxu0 }
 0x3a2   :  { %v5472_v28 = vpack.c.bf16 %v4410_v24, %v4410_v24  ;;  %v4362_v2 = vadd.f32 %v8963_v29, %v4306_v9  ;;  %v9116_v1 = vpop.f32.mrf.mxu1  ;;  %v4164_v19 = vadd.f32 %v4163_v15, %v8990_v26 }
 0x3a3   :  { %v5967_v43 = vpop.f32.mrf.mxu0 }
 0x3a4   :  { %4657 = vst.msk [vmem:[%s9375_s3 + $0x40] sm:$0xf] %vm4640_vm2, %v5472_v28  ;;  %v4411_v0 = vmax.f32 %v4362_v2, 0.0  ;;  %v4307_v39 = vmax.f32 %v9653_v61, %v4164_v19  ;;  %v3989_v3 = vpop.f32.mrf.mxu1  ;;  %v9656_v2 = vld [vmem:[#allocation35_spill] sm:$0xff] }
 0x3a5   :  { %v4166_v25 = vpop.f32.mrf.mxu0 }
 0x3a6   :  { %v5473_v34 = vpack.c.bf16 %v4411_v0, %v4411_v0  ;;  %v4363_v40 = vadd.f32 %v8963_v29, %v4307_v39  ;;  %v9125_v8 = vpop.f32.mrf.mxu1  ;;  %v4167_v35 = vadd.f32 %v4166_v25, %v8999_v55 }
 0x3a7   :  { %v5968_v42 = vpop.f32.mrf.mxu0 }
 0x3a8   :  { %4658 = vst.msk [vmem:[%s9375_s3 + $0x44] sm:$0xf] %vm4640_vm2, %v5473_v34  ;;  %v4412_v26 = vmax.f32 %v4363_v40, 0.0  ;;  %v4308_v23 = vmax.f32 %v9654_v63, %v4167_v35  ;;  %v3992_v47 = vpop.f32.mrf.mxu1  ;;  %v9657_v40 = vld [vmem:[#allocation5_spill] sm:$0xff] }
 0x3a9   :  { %v4171_v21 = vpop.f32.mrf.mxu0 }
 0x3aa   :  { %v5474_v31 = vpack.c.bf16 %v4412_v26, %v4412_v26  ;;  %v4364_v6 = vadd.f32 %v8963_v29, %v4308_v23  ;;  %v9134_v32 = vpop.f32.mrf.mxu1  ;;  %v4172_v12 = vadd.f32 %v4171_v21, %v9008_v11 }
 0x3ab   :  { %v5971_v45 = vpop.f32.mrf.mxu0 }
 0x3ac   :  { %4659 = vst.msk [vmem:[%s9375_s3 + $0x48] sm:$0xf] %vm4640_vm2, %v5474_v31  ;;  %v4413_v55 = vmax.f32 %v4364_v6, 0.0  ;;  %v4309_v17 = vmax.f32 %v9655_v53, %v4172_v12  ;;  %v3997_v4 = vpop.f32.mrf.mxu1  ;;  %v9658_v6 = vld [vmem:[#allocation36_spill] sm:$0xff] }
 0x3ad   :  { %v4174_v24 = vpop.f32.mrf.mxu0 }
 0x3ae   :  { %v5475_v49 = vpack.c.bf16 %v4413_v55, %v4413_v55  ;;  %v4365_v9 = vadd.f32 %v8963_v29, %v4309_v17  ;;  %v9143_v13 = vpop.f32.mrf.mxu1  ;;  %v4175_v15 = vadd.f32 %v4174_v24, %v9017_v20 }
 0x3af   :  { %v5972_v28 = vpop.f32.mrf.mxu0 }
 0x3b0   :  { %4660 = vst.msk [vmem:[%s9375_s3 + $0x4c] sm:$0xf] %vm4640_vm2, %v5475_v49  ;;  %v4414_v11 = vmax.f32 %v4365_v9, 0.0  ;;  %v4310_v19 = vmax.f32 %v9656_v2, %v4175_v15  ;;  %v4000_v43 = vpop.f32.mrf.mxu1  ;;  %v9659_v9 = vld [vmem:[#allocation6_spill] sm:$0xff] }
 0x3b1   :  { %v4179_v0 = vpop.f32.mrf.mxu0 }
 0x3b2   :  { %v5476_v61 = vpack.c.bf16 %v4414_v11, %v4414_v11  ;;  %v4366_v39 = vadd.f32 %v8963_v29, %v4310_v19  ;;  %v9152_v3 = vpop.f32.mrf.mxu1  ;;  %v4180_v25 = vadd.f32 %v4179_v0, %v9026_v44 }
 0x3b3   :  { %v5975_v34 = vpop.f32.mrf.mxu0 }
 0x3b4   :  { %4661 = vst.msk [vmem:[%s9375_s3 + $0x50] sm:$0xf] %vm4640_vm2, %v5476_v61  ;;  %v4415_v20 = vmax.f32 %v4366_v39, 0.0  ;;  %v4311_v35 = vmax.f32 %v9657_v40, %v4180_v25  ;;  %v4005_v42 = vpop.f32.mrf.mxu1  ;;  %v9660_v39 = vld [vmem:[#allocation37_spill] sm:$0xff] }
 0x3b5   :  { %v4182_v26 = vpop.f32.mrf.mxu0 }
 0x3b6   :  { %v5477_v63 = vpack.c.bf16 %v4415_v20, %v4415_v20  ;;  %v4367_v23 = vadd.f32 %v8963_v29, %v4311_v35  ;;  %v9161_v47 = vpop.f32.mrf.mxu1  ;;  %v4183_v21 = vadd.f32 %v4182_v26, %v9035_v46 }
 0x3b7   :  { %v5976_v31 = vpop.f32.mrf.mxu0 }
 0x3b8   :  { %4662 = vst.msk [vmem:[%s9375_s3 + $0x54] sm:$0xf] %vm4640_vm2, %v5477_v63  ;;  %v4416_v44 = vmax.f32 %v4367_v23, 0.0  ;;  %v4312_v12 = vmax.f32 %v9658_v6, %v4183_v21  ;;  %v4008_v45 = vpop.f32.mrf.mxu1  ;;  %v9661_v23 = vld [vmem:[#allocation7_spill] sm:$0xff] }
 0x3b9   :  { %v4187_v55 = vpop.f32.mrf.mxu0 }
 0x3ba   :  { %v5478_v53 = vpack.c.bf16 %v4416_v44, %v4416_v44  ;;  %v4368_v17 = vadd.f32 %v8963_v29, %v4312_v12  ;;  %v9170_v4 = vpop.f32.mrf.mxu1  ;;  %v4188_v24 = vadd.f32 %v4187_v55, %v9044_v14 }
 0x3bb   :  { %v5979_v49 = vpop.f32.mrf.mxu0 }
 0x3bc   :  { %4663 = vst.msk [vmem:[%s9375_s3 + $0x58] sm:$0xf] %vm4640_vm2, %v5478_v53  ;;  %v4417_v46 = vmax.f32 %v4368_v17, 0.0  ;;  %v4313_v15 = vmax.f32 %v9659_v9, %v4188_v24  ;;  %v4013_v28 = vpop.f32.mrf.mxu1  ;;  %v9662_v17 = vld [vmem:[#allocation38_spill] sm:$0xff] }
 0x3bd   :  { %v4190_v11 = vpop.f32.mrf.mxu0 }
 0x3be   :  { %v5479_v2 = vpack.c.bf16 %v4417_v46, %v4417_v46  ;;  %v4369_v19 = vadd.f32 %v8963_v29, %v4313_v15  ;;  %v9179_v43 = vpop.f32.mrf.mxu1  ;;  %v4191_v0 = vadd.f32 %v4190_v11, %v9053_v38 }
 0x3bf   :  { %v5980_v61 = vpop.f32.mrf.mxu0 }
 0x3c0   :  { %4664 = vst.msk [vmem:[%s9375_s3 + $0x5c] sm:$0xf] %vm4640_vm2, %v5479_v2  ;;  %v4418_v14 = vmax.f32 %v4369_v19, 0.0  ;;  %v4314_v25 = vmax.f32 %v9660_v39, %v4191_v0  ;;  %v4016_v34 = vpop.f32.mrf.mxu1  ;;  %v9663_v19 = vld [vmem:[#allocation8_spill] sm:$0xff] }
 0x3c1   :  { %v4195_v20 = vpop.f32.mrf.mxu0 }
 0x3c2   :  { %v5480_v40 = vpack.c.bf16 %v4418_v14, %v4418_v14  ;;  %v4370_v35 = vadd.f32 %v8963_v29, %v4314_v25  ;;  %v9188_v42 = vpop.f32.mrf.mxu1  ;;  %v4196_v26 = vadd.f32 %v4195_v20, %v9062_v7 }
 0x3c3   :  { %v5983_v63 = vpop.f32.mrf.mxu0 }
 0x3c4   :  { %4665 = vst.msk [vmem:[%s9375_s3 + $0x60] sm:$0xf] %vm4640_vm2, %v5480_v40  ;;  %v4419_v38 = vmax.f32 %v4370_v35, 0.0  ;;  %v4315_v21 = vmax.f32 %v9661_v23, %v4196_v26  ;;  %v4021_v31 = vpop.f32.mrf.mxu1  ;;  %v9664_v35 = vld [vmem:[#allocation39_spill] sm:$0xff] }
 0x3c5   :  { %v4198_v44 = vpop.f32.mrf.mxu0 }
 0x3c6   :  { %v5481_v6 = vpack.c.bf16 %v4419_v38, %v4419_v38  ;;  %v4371_v12 = vadd.f32 %v8963_v29, %v4315_v21  ;;  %v9197_v45 = vpop.f32.mrf.mxu1  ;;  %v4199_v55 = vadd.f32 %v4198_v44, %v9071_v58 }
 0x3c7   :  { %v5984_v53 = vpop.f32.mrf.mxu0 }
 0x3c8   :  { %4666 = vst.msk [vmem:[%s9375_s3 + $0x64] sm:$0xf] %vm4640_vm2, %v5481_v6  ;;  %v4420_v7 = vmax.f32 %v4371_v12, 0.0  ;;  %v4316_v24 = vmax.f32 %v9662_v17, %v4199_v55  ;;  %v4024_v49 = vpop.f32.mrf.mxu1  ;;  %v9665_v12 = vld [vmem:[#allocation9_spill] sm:$0xff] }
 0x3c9   :  { %v4203_v46 = vpop.f32.mrf.mxu0 }
 0x3ca   :  { %v5482_v9 = vpack.c.bf16 %v4420_v7, %v4420_v7  ;;  %v4372_v15 = vadd.f32 %v8963_v29, %v4316_v24  ;;  %v9206_v28 = vpop.f32.mrf.mxu1  ;;  %v4204_v11 = vadd.f32 %v4203_v46, %v9080_v16 }
 0x3cb   :  { %v5987_v2 = vpop.f32.mrf.mxu0 }
 0x3cc   :  { %4667 = vst.msk [vmem:[%s9375_s3 + $0x68] sm:$0xf] %vm4640_vm2, %v5482_v9  ;;  %v4421_v58 = vmax.f32 %v4372_v15, 0.0  ;;  %v4317_v0 = vmax.f32 %v9663_v19, %v4204_v11  ;;  %v4029_v61 = vpop.f32.mrf.mxu1 }
 0x3cd   :  { %v4206_v14 = vpop.f32.mrf.mxu0 }
 0x3ce   :  { %v5483_v39 = vpack.c.bf16 %v4421_v58, %v4421_v58  ;;  %v4373_v25 = vadd.f32 %v8963_v29, %v4317_v0  ;;  %v9215_v34 = vpop.f32.mrf.mxu1  ;;  %v4207_v20 = vadd.f32 %v4206_v14, %v9089_v48 }
 0x3cf   :  { %v5988_v40 = vpop.f32.mrf.mxu0 }
 0x3d0   :  { %4668 = vst.msk [vmem:[%s9375_s3 + $0x6c] sm:$0xf] %vm4640_vm2, %v5483_v39  ;;  %v4422_v16 = vmax.f32 %v4373_v25, 0.0  ;;  %v4318_v26 = vmax.f32 %v9664_v35, %v4207_v20  ;;  %v4032_v63 = vpop.f32.mrf.mxu1  ;;  %v9666_v39 = vld [vmem:[#allocation40_spill] sm:$0xff] }
 0x3d1   :  { %v4211_v38 = vpop.f32.mrf.mxu0 }
 0x3d2   :  { %v5484_v23 = vpack.c.bf16 %v4422_v16, %v4422_v16  ;;  %v4374_v21 = vadd.f32 %v8963_v29, %v4318_v26  ;;  %v4035_v31 = vpop.f32.mrf.mxu1  ;;  %v4212_v44 = vadd.f32 %v4211_v38, %v9098_v51 }
 0x3d3   :  { %v5991_v6 = vpop.f32.mrf.mxu0 }
 0x3d4   :  { %4669 = vst.msk [vmem:[%s9375_s3 + $0x70] sm:$0xf] %vm4640_vm2, %v5484_v23  ;;  %v4423_v48 = vmax.f32 %v4374_v21, 0.0  ;;  %v4319_v55 = vmax.f32 %v9665_v12, %v4212_v44  ;;  %v4037_v53 = vpop.f32.mrf.mxu1 }
 0x3d5   :  { %v4214_v7 = vpop.f32.mrf.mxu0 }
 0x3d6   :  { %v5485_v17 = vpack.c.bf16 %v4423_v48, %v4423_v48  ;;  %v4375_v24 = vadd.f32 %v8963_v29, %v4319_v55  ;;  %v9231_v49 = vpop.f32.mrf.mxu1  ;;  %v4215_v46 = vadd.f32 %v4214_v7, %v9107_v56 }
 0x3d7   :  { %v5992_v9 = vpop.f32.mrf.mxu0 }
 0x3d8   :  { %4670 = vst.msk [vmem:[%s9375_s3 + $0x74] sm:$0xf] %vm4640_vm2, %v5485_v17  ;;  %v4424_v51 = vmax.f32 %v4375_v24, 0.0  ;;  %v4320_v15 = vmax.f32 %v8758_v37, %v4215_v46  ;;  %v4040_v11 = vpop.f32.mrf.mxu1 }
 0x3d9   :  { %v4219_v2 = vpop.f32.mrf.mxu0 }
 0x3da   :  { %v5486_v58 = vpack.c.bf16 %v4424_v51, %v4424_v51  ;;  %v4376_v19 = vadd.f32 %v8963_v29, %v4320_v15  ;;  %v9240_v0 = vpop.f32.mrf.mxu1  ;;  %v4220_v61 = vadd.f32 %v4219_v2, %v9116_v1 }
 0x3db   :  { %v5995_v14 = vpop.f32.mrf.mxu0 }
 0x3dc   :  { %4671 = vst.msk [vmem:[%s9375_s3 + $0x78] sm:$0xf] %vm4640_vm2, %v5486_v58  ;;  %v4425_v56 = vmax.f32 %v4376_v19, 0.0  ;;  %v4321_v25 = vmax.f32 %v9666_v39, %v4220_v61  ;;  %v4045_v20 = vpop.f32.mrf.mxu1 }
 0x3dd   :  { %v4222_v37 = vpop.f32.mrf.mxu0 }
 0x3de   :  { %v5487_v40 = vpack.c.bf16 %v4425_v56, %v4425_v56  ;;  %v4377_v16 = vadd.f32 %v8963_v29, %v4321_v25  ;;  %v9249_v35 = vpop.f32.mrf.mxu1  ;;  %v4223_v26 = vadd.f32 %v4222_v37, %v9125_v8 }
 0x3df   :  { %v5996_v63 = vpop.f32.mrf.mxu0 }
 0x3e0   :  { %4672 = vst.msk [vmem:[%s9375_s3 + $0x7c] sm:$0xf] %vm4640_vm2, %v5487_v40  ;;  %v4426_v1 = vmax.f32 %v4377_v16, 0.0  ;;  %v4322_v38 = vmax.f32 %v8786_v33, %v4223_v26  ;;  %v4048_v23 = vpop.f32.mrf.mxu1 }
 0x3e1   :  { %v4227_v21 = vpop.f32.mrf.mxu0 }
 0x3e2   :  { %v5488_v44 = vpack.c.bf16 %v4426_v1, %v4426_v1  ;;  %v4378_v6 = vadd.f32 %v8963_v29, %v4322_v38  ;;  %v9258_v48 = vpop.f32.mrf.mxu1  ;;  %v4228_v12 = vadd.f32 %v4227_v21, %v9134_v32 }
 0x3e3   :  { %v5999_v55 = vpop.f32.mrf.mxu0 }
 0x3e4   :  { %4673 = vst.msk [vmem:[%s9375_s3 + $0x80] sm:$0xf] %vm4640_vm2, %v5488_v44  ;;  %v4427_v8 = vmax.f32 %v4378_v6, 0.0  ;;  %v4323_v53 = vmax.f32 %v8797_v18, %v4228_v12  ;;  %v4053_v7 = vpop.f32.mrf.mxu1 }
 0x3e5   :  { %v4230_v33 = vpop.f32.mrf.mxu0 }
 0x3e6   :  { %v5489_v17 = vpack.c.bf16 %v4427_v8, %v4427_v8  ;;  %v4379_v24 = vadd.f32 %v8963_v29, %v4323_v53  ;;  %v4054_v46 = vpop.f32.mrf.mxu1  ;;  %v4231_v9 = vadd.f32 %v4230_v33, %v9143_v13 }
 0x3e7   :  { %v6000_v51 = vpop.f32.mrf.mxu0 }
 0x3e8   :  { %4674 = vst.msk [vmem:[%s9375_s3 + $0x84] sm:$0xf] %vm4640_vm2, %v5489_v17  ;;  %v4428_v32 = vmax.f32 %v4379_v24, 0.0  ;;  %v4324_v15 = vmax.f32 %v8806_v27, %v4231_v9  ;;  %v4055_v11 = vpop.f32.mrf.mxu1 }
 0x3e9   :  { %v4235_v2 = vpop.f32.mrf.mxu0 }
 0x3ea   :  { %v5490_v18 = vpack.c.bf16 %v4428_v32, %v4428_v32  ;;  %v4380_v58 = vadd.f32 %v8963_v29, %v4324_v15  ;;  %v4236_v19 = vadd.f32 %v4235_v2, %v9152_v3  ;;  %v4267_v61 = vpop.f32.mrf.mxu1 }
 0x3eb   :  { %v4268_v14 = vadd.f32 %v4267_v61, %v4035_v31  ;;  %v6003_v56 = vpop.f32.mrf.mxu0 }
 0x3ec   :  { %4675 = vst.msk [vmem:[%s9375_s3 + $0x88] sm:$0xf] %vm4640_vm2, %v5490_v18  ;;  %v4429_v13 = vmax.f32 %v4380_v58, 0.0  ;;  %v4325_v39 = vmax.f32 %v8819_v60, %v4236_v19  ;;  %v6019_v25 = vpop.f32.mrf.mxu1 }
 0x3ed   :  { %v4333_v27 = vmax.f32 %v8921_v59, %v4268_v14  ;;  %v4238_v20 = vpop.f32.mrf.mxu0 }
 0x3ee   :  { %v5491_v37 = vpack.c.bf16 %v4429_v13, %v4429_v13  ;;  %v4381_v40 = vadd.f32 %v8963_v29, %v4325_v39  ;;  %v4239_v3 = vadd.f32 %v4238_v20, %v9161_v47  ;;  %v4270_v16 = vpop.f32.mrf.mxu1 }
 0x3ef   :  { %v4389_v31 = vadd.f32 %v8963_v29, %v4333_v27  ;;  %v4271_v26 = vadd.f32 %v4270_v16, %v9231_v49  ;;  %v6004_v63 = vpop.f32.mrf.mxu0 }
 0x3f0   :  { %4676 = vst.msk [vmem:[%s9375_s3 + $0x8c] sm:$0xf] %vm4640_vm2, %v5491_v37  ;;  %v4430_v60 = vmax.f32 %v4381_v40, 0.0  ;;  %v4326_v59 = vmax.f32 %v8833_v52, %v4239_v3  ;;  %v6020_v1 = vpop.f32.mrf.mxu1 }
 0x3f1   :  { %v4438_v38 = vmax.f32 %v4389_v31, 0.0  ;;  %v4334_v23 = vmax.f32 %v8929_v30, %v4271_v26  ;;  %v4243_v21 = vpop.f32.mrf.mxu0 }
 0x3f2   :  { %v5492_v47 = vpack.c.bf16 %v4430_v60, %v4430_v60  ;;  %v4382_v44 = vadd.f32 %v8963_v29, %v4326_v59  ;;  %v4244_v6 = vadd.f32 %v4243_v21, %v9170_v4  ;;  %v4275_v49 = vpop.f32.mrf.mxu1 }
 0x3f3   :  { %v5500_v12 = vpack.c.bf16 %v4438_v38, %v4438_v38  ;;  %v4390_v55 = vadd.f32 %v8963_v29, %v4334_v23  ;;  %v4276_v8 = vadd.f32 %v4275_v49, %v9240_v0  ;;  %v6007_v53 = vpop.f32.mrf.mxu0 }
 0x3f4   :  { %4677 = vst.msk [vmem:[%s9375_s3 + $0x90] sm:$0xf] %vm4640_vm2, %v5492_v47  ;;  %v4431_v52 = vmax.f32 %v4382_v44, 0.0  ;;  %v4327_v30 = vmax.f32 %v8847_v10, %v4244_v6  ;;  %v6023_v7 = vpop.f32.mrf.mxu1 }
 0x3f5   :  { %4685 = vst.msk [vmem:[%s9375_s3 + $0xb0] sm:$0xf] %vm4640_vm2, %v5500_v12  ;;  %v4439_v4 = vmax.f32 %v4390_v55, 0.0  ;;  %v4335_v33 = vmax.f32 %v8937_v5, %v4276_v8  ;;  %v4246_v17 = vpop.f32.mrf.mxu0 }
 0x3f6   :  { %v5493_v0 = vpack.c.bf16 %v4431_v52, %v4431_v52  ;;  %v4383_v24 = vadd.f32 %v8963_v29, %v4327_v30  ;;  %v4247_v46 = vadd.f32 %v4246_v17, %v9179_v43  ;;  %v4278_v9 = vpop.f32.mrf.mxu1 }
 0x3f7   :  { %v5501_v51 = vpack.c.bf16 %v4439_v4, %v4439_v4  ;;  %v4391_v32 = vadd.f32 %v8963_v29, %v4335_v33  ;;  %v4279_v10 = vadd.f32 %v4278_v9, %v9249_v35  ;;  %v6008_v15 = vpop.f32.mrf.mxu0 }
 0x3f8   :  { %4678 = vst.msk [vmem:[%s9375_s3 + $0x94] sm:$0xf] %vm4640_vm2, %v5493_v0  ;;  %v4432_v11 = vmax.f32 %v4383_v24, 0.0  ;;  %v4328_v5 = vmax.f32 %v8861_v57, %v4247_v46  ;;  %v6024_v2 = vpop.f32.mrf.mxu1 }
 0x3f9   :  { %4686 = vst.msk [vmem:[%s9375_s3 + $0xb4] sm:$0xf] %vm4640_vm2, %v5501_v51  ;;  %v4440_v43 = vmax.f32 %v4391_v32, 0.0  ;;  %v4336_v18 = vmax.f32 %v8945_v54, %v4279_v10  ;;  %v4251_v58 = vpop.f32.mrf.mxu0 }
 0x3fa   :  { %v5494_v35 = vpack.c.bf16 %v4432_v11, %v4432_v11  ;;  %v4384_v19 = vadd.f32 %v8963_v29, %v4328_v5  ;;  %v4252_v61 = vadd.f32 %v4251_v58, %v9188_v42  ;;  %v4283_v14 = vpop.f32.mrf.mxu1 }
 0x3fb   :  { %v5502_v56 = vpack.c.bf16 %v4440_v43, %v4440_v43  ;;  %v4392_v13 = vadd.f32 %v8963_v29, %v4336_v18  ;;  %v4284_v57 = vadd.f32 %v4283_v14, %v9258_v48  ;;  %v6011_v39 = vpop.f32.mrf.mxu0 }
 0x3fc   :  { %4679 = vst.msk [vmem:[%s9375_s3 + $0x98] sm:$0xf] %vm4640_vm2, %v5494_v35  ;;  %v4433_v25 = vmax.f32 %v4384_v19, 0.0  ;;  %v4329_v54 = vmax.f32 %v8875_v36, %v4252_v61  ;;  %v6027_v27 = vpop.f32.mrf.mxu1 }
 0x3fd   :  { %4687 = vst.msk [vmem:[%s9375_s3 + $0xb8] sm:$0xf] %vm4640_vm2, %v5502_v56  ;;  %v4441_v42 = vmax.f32 %v4392_v13, 0.0  ;;  %v4337_v20 = vmax.f32 %v8953_v50, %v4284_v57  ;;  %v4254_v37 = vpop.f32.mrf.mxu0 }
 0x3fe   :  { %v5495_v48 = vpack.c.bf16 %v4433_v25, %v4433_v25  ;;  %v4385_v40 = vadd.f32 %v8963_v29, %v4329_v54  ;;  %v4255_v3 = vadd.f32 %v4254_v37, %v9197_v45  ;;  %v4286_v16 = vpop.f32.mrf.mxu1 }
 0x3ff   :  { %v5503_v31 = vpack.c.bf16 %v4441_v42, %v4441_v42  ;;  %v4393_v26 = vadd.f32 %v8963_v29, %v4337_v20  ;;  %v6012_v36 = vpop.f32.mrf.mxu0 }
 0x400   :  { %4680 = vst.msk [vmem:[%s9375_s3 + $0x9c] sm:$0xf] %vm4640_vm2, %v5495_v48  ;;  %v4434_v63 = vmax.f32 %v4385_v40, 0.0  ;;  %v4330_v60 = vmax.f32 %v8889_v41, %v4255_v3  ;;  %v6028_v50 = vpop.f32.mrf.mxu1 }
 0x401   :  { %4688 = vst.msk [vmem:[%s9375_s3 + $0xbc] sm:$0xf] %vm4640_vm2, %v5503_v31  ;;  %v4442_v45 = vmax.f32 %v4393_v26, 0.0  ;;  %v4259_v59 = vpop.f32.mrf.mxu0 }
 0x402   :  { %v5496_v1 = vpack.c.bf16 %v4434_v63, %v4434_v63  ;;  %v4386_v38 = vadd.f32 %v8963_v29, %v4330_v60  ;;  %v4260_v23 = vadd.f32 %v4259_v59, %v9206_v28 }
 0x403   :  { %v5504_v21 = vpack.c.bf16 %v4442_v45, %v4442_v45  ;;  %v6015_v47 = vpop.f32.mrf.mxu0 }
 0x404   :  { %4681 = vst.msk [vmem:[%s9375_s3 + $0xa0] sm:$0xf] %vm4640_vm2, %v5496_v1  ;;  %v4435_v41 = vmax.f32 %v4386_v38, 0.0  ;;  %v4331_v44 = vmax.f32 %v8901_v62, %v4260_v23 }
 0x405   :  { %4689 = vst.msk [vmem:[%s9375_s3 + $0xc0] sm:$0xf] %vm4640_vm2, %v5504_v21  ;;  %v4262_v6 = vpop.f32.mrf.mxu0 }
 0x406   :  { %v5497_v49 = vpack.c.bf16 %v4435_v41, %v4435_v41  ;;  %v4387_v12 = vadd.f32 %v8963_v29, %v4331_v44  ;;  %v4263_v28 = vadd.f32 %v4262_v6, %v9215_v34 }
 0x407   :  { %v6016_v55 = vpop.f32.mrf.mxu0 }
 0x408   :  { %4682 = vst.msk [vmem:[%s9375_s3 + $0xa4] sm:$0xf] %vm4640_vm2, %v5497_v49  ;;  %v4436_v8 = vmax.f32 %v4387_v12, 0.0  ;;  %v4332_v62 = vmax.f32 %v8912_v22, %v4263_v28 }
 0x40a   :  { %v5498_v53 = vpack.c.bf16 %v4436_v8, %v4436_v8  ;;  %v4388_v52 = vadd.f32 %v8963_v29, %v4332_v62 }
 0x40c   :  { %4683 = vst.msk [vmem:[%s9375_s3 + $0xa8] sm:$0xf] %vm4640_vm2, %v5498_v53  ;;  %v4437_v30 = vmax.f32 %v4388_v52, 0.0 }
 0x40e   :  { %v5499_v7 = vpack.c.bf16 %v4437_v30, %v4437_v30 }
 0x410   :  { %4684 = vst.msk [vmem:[%s9375_s3 + $0xac] sm:$0xf] %vm4640_vm2, %v5499_v7 }

// kernel: cnn_forward.7
= control target key start
LH: loop header
LB: loop body
LE: loop exit
PB: predicated region body
PF: predicated region fallthrough
CT: control target
= control target key end

     0   :  { %vm1289_vm0 = vmmov 0   ;;  %vm954_vm1 = vcmask 80896   ;;  %s1584_s1 = inlined_call_operand.vmem [shape: bf16[1152,128], index: 1, kind: input, shape index: {}]   ;;  %s1585_s0 = inlined_call_operand.vmem [shape: bf16[8,1152], index: 0, kind: input, shape index: {}]   ;;  %s1586_s3 = inlined_call_operand.vmem [shape: bf16[128,10], index: 3, kind: input, shape index: {}]   ;;  %s1587_s2 = inlined_call_operand.vmem [shape: f32[1,128], index: 2, kind: input, shape index: {}]   ;;  %s1588_s4 = inlined_call_operand.vmem [shape: f32[1,10], index: 4, kind: input, shape index: {}]   ;;  %s1589_s5 = inlined_call_operand.vmem [shape: f32[8,10], index: 5, kind: output, shape index: {}]  }
   0x1   :  { %v1199_v0 = vld [vmem:[%s1584_s1 + $0x78] sm:$0xff]   ;;  %v1203_v4 = vld [vmem:[%s1584_s1 + $0x70] sm:$0xff]   ;;  %v1207_v8 = vld [vmem:[%s1584_s1 + $0x68] sm:$0xff]  }
   0x2   :  { %v1200_v1 = vld [vmem:[%s1584_s1 + $0x38] sm:$0xff]   ;;  %1051 = vmatprep.subr.bf16.mxu0 %v1199_v0  ;;  %v1204_v5 = vld [vmem:[%s1584_s1 + $0x30] sm:$0xff]   ;;  %v1208_v9 = vld [vmem:[%s1584_s1 + $0x28] sm:$0xff]  }
   0x3   :  { %v1201_v2 = vld [vmem:[%s1584_s1 + $0xf8] sm:$0xff]   ;;  %1052 = vmatpush3.bf16.msra.mxu0 %v1200_v1  ;;  %v1205_v6 = vld [vmem:[%s1584_s1 + $0xf0] sm:$0xff]   ;;  %v1209_v10 = vld [vmem:[%s1584_s1 + $0xe8] sm:$0xff]  }
   0x4   :  { %v1202_v3 = vld [vmem:[%s1584_s1 + $0xb8] sm:$0xff]   ;;  %1073 = vmatprep.subr.bf16.mxu1 %v1201_v2  ;;  %1053 = vmatprep.subr.bf16.mxu0 %v1203_v4  ;;  %v1206_v7 = vld [vmem:[%s1584_s1 + $0xb0] sm:$0xff]   ;;  %v1210_v11 = vld [vmem:[%s1584_s1 + $0xa8] sm:$0xff]  }
   0x5   :  { %1074 = vmatpush3.bf16.msra.mxu1 %v1202_v3  ;;  %v1211_v12 = vld [vmem:[%s1584_s1 + $0x60] sm:$0xff]   ;;  %v1215_v16 = vld [vmem:[%s1584_s1 + $0x58] sm:$0xff]   ;;  %v1219_v20 = vld [vmem:[%s1584_s1 + $0x50] sm:$0xff]  }
   0x6   :  { %1075 = vmatprep.subr.bf16.mxu1 %v1205_v6  ;;  %v1212_v13 = vld [vmem:[%s1584_s1 + $0x20] sm:$0xff]   ;;  %v1216_v17 = vld [vmem:[%s1584_s1 + $0x18] sm:$0xff]   ;;  %v1220_v21 = vld [vmem:[%s1584_s1 + $0x10] sm:$0xff]  }
   0x7   :  { %1054 = vmatpush3.bf16.msra.mxu0 %v1204_v5  ;;  %v1213_v14 = vld [vmem:[%s1584_s1 + $0xe0] sm:$0xff]   ;;  %v1217_v18 = vld [vmem:[%s1584_s1 + $0xd8] sm:$0xff]   ;;  %v1221_v22 = vld [vmem:[%s1584_s1 + $0xd0] sm:$0xff]  }
   0x8   :  { %1055 = vmatprep.subr.bf16.mxu0 %v1207_v8  ;;  %v1214_v15 = vld [vmem:[%s1584_s1 + $0xa0] sm:$0xff]   ;;  %v1218_v19 = vld [vmem:[%s1584_s1 + $0x98] sm:$0xff]   ;;  %v1222_v23 = vld [vmem:[%s1584_s1 + $0x90] sm:$0xff]  }
   0x9   :  { %1076 = vmatpush3.bf16.msra.mxu1 %v1206_v7  ;;  %v1223_v24 = vld [vmem:[%s1584_s1 + $0x48] sm:$0xff]   ;;  %v1227_v28 = vld [vmem:[%s1584_s1 + $0x40] sm:$0xff]   ;;  %v1233_v35 = vld [vmem:[%s1584_s1 + $0x178] sm:$0xff]  }
   0xa   :  { %1077 = vmatprep.subr.bf16.mxu1 %v1209_v10  ;;  %v1224_v25 = vld [vmem:[%s1584_s1 + $0x8] sm:$0xff]   ;;  %v1228_v29 = vld [vmem:[%s1584_s1] sm:$0xff]   ;;  %v1236_v39 = vld [vmem:[%s1584_s1 + $0x138] sm:$0xff]  }
   0xb   :  { %1056 = vmatpush3.bf16.msra.mxu0 %v1208_v9  ;;  %v1225_v26 = vld [vmem:[%s1584_s1 + $0xc8] sm:$0xff]   ;;  %v1229_v30 = vld [vmem:[%s1584_s1 + $0xc0] sm:$0xff]   ;;  %v1237_v40 = vld [vmem:[%s1584_s1 + $0x1f8] sm:$0xff]   ;;  %v1288_v9 = vmov 0.0  }
   0xc   :  { %1057 = vmatprep.subr.bf16.mxu0 %v1211_v12  ;;  %v1226_v27 = vld [vmem:[%s1584_s1 + $0x88] sm:$0xff]   ;;  %v21_v31 = vld [vmem:[%s1585_s0] sm:$0xff]  ;;  %v1238_v41 = vld [vmem:[%s1584_s1 + $0x1b8] sm:$0xff]  }
   0xd   :  { %1078 = vmatpush3.bf16.msra.mxu1 %v1210_v11  ;;  %v961_v32 = vcombine.low %v21_v31, %v21_v31  ;;  %v962_v33 = vcombine.high %v21_v31, %v21_v31  ;;  %v1232_v34 = vld [vmem:[%s1584_s1 + $0x80] sm:$0xff]   ;;  %v22_v36 = vld [vmem:[%s1585_s0 + $0x8] sm:$0xff]  ;;  %v1239_v42 = vld [vmem:[%s1584_s1 + $0x170] sm:$0xff]  }
   0xe   :  { %1079 = vmatprep.subr.bf16.mxu1 %v1213_v14  ;;  %v963_v37 = vcombine.low %v22_v36, %v22_v36  ;;  %v964_v38 = vcombine.high %v22_v36, %v22_v36  ;;  %v1240_v43 = vld [vmem:[%s1584_s1 + $0x130] sm:$0xff]   ;;  %v1243_v46 = vld [vmem:[%s1584_s1 + $0x168] sm:$0xff]   ;;  %v1247_v50 = vld [vmem:[%s1584_s1 + $0x160] sm:$0xff]  }
   0xf   :  { %1058 = vmatpush3.bf16.msra.mxu0 %v1212_v13  ;;  %673 = vmatprep.mubr.bf16.mxu0 %v962_v33  ;;  %v1241_v44 = vld [vmem:[%s1584_s1 + $0x1f0] sm:$0xff]   ;;  %v1244_v47 = vld [vmem:[%s1584_s1 + $0x128] sm:$0xff]   ;;  %v1248_v51 = vld [vmem:[%s1584_s1 + $0x120] sm:$0xff]  }
  0x10   :  { %1059 = vmatprep.subr.bf16.mxu0 %v1215_v16  ;;  %713 = vmatprep.mubr.bf16.mxu1 %v964_v38  ;;  %v1242_v45 = vld [vmem:[%s1584_s1 + $0x1b0] sm:$0xff]   ;;  %v1245_v48 = vld [vmem:[%s1584_s1 + $0x1e8] sm:$0xff]   ;;  %v1249_v52 = vld [vmem:[%s1584_s1 + $0x1e0] sm:$0xff]  }
  0x11   :  { %1080 = vmatpush3.bf16.msra.mxu1 %v1214_v15  ;;  %v1246_v49 = vld [vmem:[%s1584_s1 + $0x1a8] sm:$0xff]   ;;  %v1250_v53 = vld [vmem:[%s1584_s1 + $0x1a0] sm:$0xff]   ;;  %v1251_v54 = vld [vmem:[%s1584_s1 + $0x158] sm:$0xff]  }
  0x12   :  { %1081 = vmatprep.subr.bf16.mxu1 %v1217_v18  ;;  %v1252_v55 = vld [vmem:[%s1584_s1 + $0x118] sm:$0xff]   ;;  %v1255_v58 = vld [vmem:[%s1584_s1 + $0x150] sm:$0xff]   ;;  %v1259_v62 = vld [vmem:[%s1584_s1 + $0x148] sm:$0xff]  }
  0x13   :  { %1060 = vmatpush3.bf16.msra.mxu0 %v1216_v17  ;;  %v1253_v56 = vld [vmem:[%s1584_s1 + $0x1d8] sm:$0xff]   ;;  %v1256_v59 = vld [vmem:[%s1584_s1 + $0x110] sm:$0xff]   ;;  %v1260_v63 = vld [vmem:[%s1584_s1 + $0x108] sm:$0xff]  }
  0x14   :  { %1061 = vmatprep.subr.bf16.mxu0 %v1219_v20  ;;  %v1254_v57 = vld [vmem:[%s1584_s1 + $0x198] sm:$0xff]   ;;  %v1257_v60 = vld [vmem:[%s1584_s1 + $0x1d0] sm:$0xff]   ;;  %v1261_v0 = vld [vmem:[%s1584_s1 + $0x1c8] sm:$0xff]  }
  0x15   :  { %1082 = vmatpush3.bf16.msra.mxu1 %v1218_v19  ;;  %v1258_v61 = vld [vmem:[%s1584_s1 + $0x190] sm:$0xff]   ;;  %v1262_v1 = vld [vmem:[%s1584_s1 + $0x188] sm:$0xff]   ;;  %v1263_v2 = vld [vmem:[%s1584_s1 + $0x140] sm:$0xff]  }
  0x16   :  { %1083 = vmatprep.subr.bf16.mxu1 %v1221_v22  ;;  %v1264_v3 = vld [vmem:[%s1584_s1 + $0x100] sm:$0xff]   ;;  %v23_v5 = vld [vmem:[%s1585_s0 + $0x10] sm:$0xff]  ;;  %v24_v10 = vld [vmem:[%s1585_s0 + $0x18] sm:$0xff] }
  0x17   :  { %1062 = vmatpush3.bf16.msra.mxu0 %v1220_v21  ;;  %v1265_v4 = vld [vmem:[%s1584_s1 + $0x1c0] sm:$0xff]   ;;  %v965_v6 = vcombine.low %v23_v5, %v23_v5  ;;  %v966_v7 = vcombine.high %v23_v5, %v23_v5  ;;  %v967_v11 = vcombine.low %v24_v10, %v24_v10  ;;  %v968_v12 = vcombine.high %v24_v10, %v24_v10  ;;  %v1271_v13 = vld [vmem:[%s1584_s1 + $0x238] sm:$0xff]   ;;  %v1272_v14 = vld [vmem:[%s1584_s1 + $0x230] sm:$0xff]  }
  0x18   :  { %1063 = vmatprep.subr.bf16.mxu0 %v1223_v24  ;;  %v1268_v8 = vld [vmem:[%s1584_s1 + $0x180] sm:$0xff]   ;;  %v1273_v15 = vld [vmem:[%s1584_s1 + $0x228] sm:$0xff]   ;;  %v1275_v17 = vld [vmem:[%s1584_s1 + $0x218] sm:$0xff]  }
  0x19   :  { %1084 = vmatpush3.bf16.msra.mxu1 %v1222_v23  ;;  %v1274_v16 = vld [vmem:[%s1584_s1 + $0x220] sm:$0xff]   ;;  %v1276_v18 = vld [vmem:[%s1584_s1 + $0x210] sm:$0xff]   ;;  %v1277_v19 = vld [vmem:[%s1584_s1 + $0x208] sm:$0xff]  }
  0x1a   :  { %1085 = vmatprep.subr.bf16.mxu1 %v1225_v26  ;;  %v1278_v20 = vld [vmem:[%s1584_s1 + $0x200] sm:$0xff]   ;;  %v1280_v22 = vld [vmem:[%s1586_s3 + $0x38] sm:$0xff]   ;;  %v1281_v23 = vld [vmem:[%s1586_s3 + $0x30] sm:$0xff]  }
  0x1b   :  { %1064 = vmatpush3.bf16.msra.mxu0 %v1224_v25  ;;  %v1279_v21 = vld [vmem:[%s1585_s0 + $0x20] ss:$0 sps:$4 sm:$0xff]   ;;  %v1282_v24 = vld [vmem:[%s1586_s3 + $0x28] sm:$0xff]   ;;  %v1284_v26 = vld [vmem:[%s1586_s3 + $0x18] sm:$0xff]  }
  0x1c   :  { %1065 = vmatprep.subr.bf16.mxu0 %v1227_v28  ;;  %v1283_v25 = vld [vmem:[%s1586_s3 + $0x20] sm:$0xff]   ;;  %v1286_v28 = vld [vmem:[%s1586_s3 + $0x8] sm:$0xff]  }
  0x1d   :  { %1086 = vmatpush3.bf16.msra.mxu1 %v1226_v27  ;;  %v1285_v27 = vld [vmem:[%s1586_s3 + $0x10] sm:$0xff]  }
  0x1e   :  { %1087 = vmatprep.subr.bf16.mxu1 %v1229_v30 }
  0x1f   :  { %1066 = vmatpush3.bf16.msra.mxu0 %v1228_v29  ;;  %v1287_v29 = vld [vmem:[%s1586_s3] sm:$0xff]  }
  0x20   :  { %1095 = vmatprep.subr.bf16.mxu0 %v1233_v35 }
  0x21   :  { %1088 = vmatpush3.bf16.msra.mxu1 %v1232_v34 }
  0x22   :  { %674 = vmatmul.mubr.bf16.vlgmr.msra.gmra.mxu0 %v961_v32  ;;  %1117 = vmatprep.subr.bf16.mxu1 %v1237_v40 }
  0x23   :  { %1096 = vmatpush3.bf16.msra.mxu0 %v1236_v39  ;;  %753 = vmatprep.mubr.bf16.mxu0 %v966_v7 }
  0x24   :  { %714 = vmatmul.mubr.bf16.vlgmr.msra.gmra.mxu1 %v963_v37  ;;  %1097 = vmatprep.subr.bf16.mxu0 %v1239_v42 }
  0x25   :  { %1118 = vmatpush3.bf16.msra.mxu1 %v1238_v41  ;;  %793 = vmatprep.mubr.bf16.mxu1 %v968_v12 }
  0x26   :  { %1119 = vmatprep.subr.bf16.mxu1 %v1241_v44 }
  0x27   :  { %1098 = vmatpush3.bf16.msra.mxu0 %v1240_v43 }
  0x28   :  { %1099 = vmatprep.subr.bf16.mxu0 %v1243_v46 }
  0x29   :  { %1120 = vmatpush3.bf16.msra.mxu1 %v1242_v45 }
  0x2a   :  { %1121 = vmatprep.subr.bf16.mxu1 %v1245_v48 }
  0x2b   :  { %1100 = vmatpush3.bf16.msra.mxu0 %v1244_v47  ;;  %v960_v47 = vld [vmem:[%s1587_s2] ss:$0 sm:$0xff] }
  0x2c   :  { %1101 = vmatprep.subr.bf16.mxu0 %v1247_v50 }
  0x2d   :  { %1122 = vmatpush3.bf16.msra.mxu1 %v1246_v49 }
  0x2e   :  { %1123 = vmatprep.subr.bf16.mxu1 %v1249_v52 }
  0x2f   :  { %1102 = vmatpush3.bf16.msra.mxu0 %v1248_v51 }
  0x30   :  { %1103 = vmatprep.subr.bf16.mxu0 %v1251_v54 }
  0x31   :  { %1124 = vmatpush3.bf16.msra.mxu1 %v1250_v53 }
  0x32   :  { %1125 = vmatprep.subr.bf16.mxu1 %v1253_v56 }
  0x33   :  { %1104 = vmatpush3.bf16.msra.mxu0 %v1252_v55 }
  0x34   :  { %1105 = vmatprep.subr.bf16.mxu0 %v1255_v58 }
  0x35   :  { %1126 = vmatpush3.bf16.msra.mxu1 %v1254_v57 }
  0x36   :  { %1127 = vmatprep.subr.bf16.mxu1 %v1257_v60 }
  0x37   :  { %1106 = vmatpush3.bf16.msra.mxu0 %v1256_v59 }
  0x38   :  { %1107 = vmatprep.subr.bf16.mxu0 %v1259_v62  ;;  %v1042_v62 = vld [vmem:[%s1588_s4] ss:$0 sm:$0xff] }
  0x39   :  { %1128 = vmatpush3.bf16.msra.mxu1 %v1258_v61 }
  0x3a   :  { %1129 = vmatprep.subr.bf16.mxu1 %v1261_v0 }
  0x3b   :  { %1108 = vmatpush3.bf16.msra.mxu0 %v1260_v63 }
  0x3c   :  { %1109 = vmatprep.subr.bf16.mxu0 %v1263_v2 }
  0x3d   :  { %1130 = vmatpush3.bf16.msra.mxu1 %v1262_v1 }
  0x3e   :  { %1131 = vmatprep.subr.bf16.mxu1 %v1265_v4 }
  0x3f   :  { %1110 = vmatpush3.bf16.msra.mxu0 %v1264_v3 }
  0x40   :  { %1157 = vmatprep.subr.bf16.mxu0 %v1288_v9 }
  0x41   :  { %1132 = vmatpush3.bf16.msra.mxu1 %v1268_v8 }
  0x42   :  { %754 = vmatmul.mubr.bf16.vlgmr.msra.gmra.mxu0 %v965_v6  ;;  %1177 = vmatprep.subr.bf16.mxu1 %v1288_v9 }
  0x43   :  { %1158 = vmatpush3.bf16.msra.mxu0 %v1271_v13  ;;  %1173 = vmatprep.mubr.msk.bf16.mxu0 %vm1289_vm0, %v1288_v9 }
  0x44   :  { %794 = vmatmul.mubr.bf16.vlgmr.msra.gmra.mxu1 %v967_v11  ;;  %1159 = vmatprep.subr.bf16.mxu0 %v1288_v9 }
  0x45   :  { %1193 = vmatprep.mubr.msk.bf16.mxu1 %vm1289_vm0, %v1288_v9  ;;  %1178 = vmatpush3.bf16.msra.mxu1 %v1280_v22 }
  0x46   :  { %1179 = vmatprep.subr.bf16.mxu1 %v1288_v9 }
  0x47   :  { %1160 = vmatpush3.bf16.msra.mxu0 %v1272_v14 }
  0x48   :  { %1161 = vmatprep.subr.bf16.mxu0 %v1288_v9 }
  0x49   :  { %1180 = vmatpush3.bf16.msra.mxu1 %v1281_v23 }
  0x4a   :  { %1181 = vmatprep.subr.bf16.mxu1 %v1288_v9 }
  0x4b   :  { %1162 = vmatpush3.bf16.msra.mxu0 %v1273_v15 }
  0x4c   :  { %1163 = vmatprep.subr.bf16.mxu0 %v1288_v9 }
  0x4d   :  { %1182 = vmatpush3.bf16.msra.mxu1 %v1282_v24 }
  0x4e   :  { %1183 = vmatprep.subr.bf16.mxu1 %v1288_v9 }
  0x4f   :  { %1164 = vmatpush3.bf16.msra.mxu0 %v1274_v16 }
  0x50   :  { %1165 = vmatprep.subr.bf16.mxu0 %v1288_v9 }
  0x51   :  { %1184 = vmatpush3.bf16.msra.mxu1 %v1283_v25 }
  0x52   :  { %1185 = vmatprep.subr.bf16.mxu1 %v1288_v9 }
  0x53   :  { %1166 = vmatpush3.bf16.msra.mxu0 %v1275_v17 }
  0x54   :  { %1167 = vmatprep.subr.bf16.mxu0 %v1288_v9 }
  0x55   :  { %1186 = vmatpush3.bf16.msra.mxu1 %v1284_v26 }
  0x56   :  { %1187 = vmatprep.subr.bf16.mxu1 %v1288_v9 }
  0x57   :  { %1168 = vmatpush3.bf16.msra.mxu0 %v1276_v18 }
  0x58   :  { %1169 = vmatprep.subr.bf16.mxu0 %v1288_v9 }
  0x59   :  { %1188 = vmatpush3.bf16.msra.mxu1 %v1285_v27 }
  0x5a   :  { %1189 = vmatprep.subr.bf16.mxu1 %v1288_v9 }
  0x5b   :  { %1170 = vmatpush3.bf16.msra.mxu0 %v1277_v19 }
  0x5c   :  { %1171 = vmatprep.subr.bf16.mxu0 %v1288_v9 }
  0x5d   :  { %1190 = vmatpush3.bf16.msra.mxu1 %v1286_v28 }
  0x5e   :  { %1191 = vmatprep.subr.bf16.mxu1 %v1288_v9 }
  0x5f   :  { %1172 = vmatpush3.bf16.msra.mxu0 %v1278_v20 }
  0x61   :  { %1192 = vmatpush3.bf16.msra.mxu1 %v1287_v29 }
  0x62   :  { %1174 = vmatmul.mubr.bf16.vlgmr.msra.gmra.mxu0 %v1279_v21 }
  0xe2   :  { %v1067_v30 = vpop.f32.mrf.mxu0 }
  0xe4   :  { %v1068_v31 = vpop.f32.mrf.mxu0  ;;  %v1089_v32 = vpop.f32.mrf.mxu1 }
  0xe5   :  { %v1069_v46 = vadd.f32 %v1068_v31, %v1067_v30 }
  0xe6   :  { %v1070_v33 = vpop.f32.mrf.mxu0  ;;  %v1090_v34 = vpop.f32.mrf.mxu1 }
  0xe7   :  { %v676_v48 = vadd.f32 %v1069_v46, %v960_v47  ;;  %v1091_v49 = vadd.f32 %v1090_v34, %v1089_v32 }
  0xe8   :  { %v1071_v35 = vpop.f32.mrf.mxu0  ;;  %v1092_v36 = vpop.f32.mrf.mxu1 }
  0xe9   :  { %v716_v51 = vadd.f32 %v1091_v49, %v676_v48 }
  0xea   :  { %v1093_v37 = vpop.f32.mrf.mxu1 }
 0x102   :  { %v1111_v38 = vpop.f32.mrf.mxu0 }
 0x104   :  { %v1112_v39 = vpop.f32.mrf.mxu0  ;;  %v1133_v40 = vpop.f32.mrf.mxu1 }
 0x105   :  { %v1113_v50 = vadd.f32 %v1112_v39, %v1111_v38 }
 0x106   :  { %v1114_v41 = vpop.f32.mrf.mxu0  ;;  %v1134_v42 = vpop.f32.mrf.mxu1 }
 0x107   :  { %v756_v52 = vadd.f32 %v1113_v50, %v716_v51  ;;  %v1135_v53 = vadd.f32 %v1134_v42, %v1133_v40 }
 0x108   :  { %v1115_v43 = vpop.f32.mrf.mxu0  ;;  %v1136_v44 = vpop.f32.mrf.mxu1 }
 0x109   :  { %v796_v54 = vadd.f32 %v1135_v53, %v756_v52 }
 0x10a   :  { %v1137_v45 = vpop.f32.mrf.mxu1 }
 0x122   :  { %v835_v55 = vpop.f32.mrf.mxu0 }
 0x123   :  { %v836_v56 = vadd.f32 %v835_v55, %v796_v54 }
 0x124   :  { %v1175_v57 = vpop.f32.mrf.mxu0 }
 0x125   :  { %v841_v58 = vmax.f32 %v836_v56, 0.0 }
 0x126   :  { %v838_v59 = vpop.f32.mrf.mxu0 }
 0x127   :  { %v842_v60 = vpack.c.bf16 %v841_v58, %v841_v58 }
 0x128   :  { %v1176_v61 = vpop.f32.mrf.mxu0 }
 0x129   :  { %1194 = vmatmul.mubr.bf16.vlgmr.msra.gmra.mxu1 %v842_v60 }
 0x1e9   :  { %v948_v63 = vpop.f32.mrf.mxu1 }
 0x1ea   :  { %v949_v0 = vadd.f32 %v1042_v62, %v948_v63 }
 0x1eb   :  { %v1195_v1 = vpop.f32.mrf.mxu1 }
 0x1ec   :  { %955 = vst.msk [vmem:[%s1589_s5] sm:$0xff] %vm954_vm1, %v949_v0 }
 0x1ed   :  { %v951_v2 = vpop.f32.mrf.mxu1 }
 0x1ef   :  { %v1196_v3 = vpop.f32.mrf.mxu1 }

// kernel: cnn_forward.6
= control target key start
LH: loop header
LB: loop body
LE: loop exit
PB: predicated region body
PF: predicated region fallthrough
CT: control target
= control target key end

     0   :  { %v2874_v34 = vmov 0.0   ;;  %vm2875_vm0 = vmmov 0   ;;  %vm447_vm1 = vcmask 523264   ;;  %s3784_s1 = inlined_call_operand.vmem [shape: bf16[576,128], index: 1, kind: input, shape index: {}]   ;;  %s3785_s0 = inlined_call_operand.vmem [shape: bf16[4,72,576], index: 0, kind: input, shape index: {}]   ;;  %s3786_s2 = inlined_call_operand.vmem [shape: f32[1,128], index: 2, kind: input, shape index: {}]   ;;  %s3787_s3 = inlined_call_operand.vmem [shape: bf16[72,128], index: 3, kind: output, shape index: {}]  }
   0x1   :  { %v2899_v0 = vld [vmem:[%s3784_s1 + $0x78] sm:$0xff]   ;;  %v2922_v4 = vld [vmem:[%s3784_s1 + $0x70] sm:$0xff]   ;;  %v2946_v8 = vld [vmem:[%s3784_s1 + $0x68] sm:$0xff]  }
   0x2   :  { %v2904_v1 = vld [vmem:[%s3784_s1 + $0xf8] sm:$0xff]   ;;  %2188 = vmatprep.subr.bf16.mxu0 %v2899_v0  ;;  %v2928_v5 = vld [vmem:[%s3784_s1 + $0xf0] sm:$0xff]   ;;  %v2952_v9 = vld [vmem:[%s3784_s1 + $0xe8] sm:$0xff]  }
   0x3   :  { %v2910_v2 = vld [vmem:[%s3784_s1 + $0x38] sm:$0xff]   ;;  %2234 = vmatprep.subr.bf16.mxu1 %v2904_v1  ;;  %v2934_v6 = vld [vmem:[%s3784_s1 + $0x30] sm:$0xff]   ;;  %v2958_v10 = vld [vmem:[%s3784_s1 + $0x28] sm:$0xff]  }
   0x4   :  { %v2916_v3 = vld [vmem:[%s3784_s1 + $0xb8] sm:$0xff]   ;;  %2189 = vmatpush3.bf16.msra.mxu0 %v2910_v2  ;;  %v2940_v7 = vld [vmem:[%s3784_s1 + $0xb0] sm:$0xff]   ;;  %v2964_v11 = vld [vmem:[%s3784_s1 + $0xa8] sm:$0xff]  }
   0x5   :  { %2235 = vmatpush3.bf16.msra.mxu1 %v2916_v3  ;;  %2190 = vmatprep.subr.bf16.mxu0 %v2922_v4  ;;  %v2970_v12 = vld [vmem:[%s3784_s1 + $0x60] sm:$0xff]   ;;  %v2994_v16 = vld [vmem:[%s3784_s1 + $0x58] sm:$0xff]   ;;  %v3018_v20 = vld [vmem:[%s3784_s1 + $0x50] sm:$0xff]  }
   0x6   :  { %2236 = vmatprep.subr.bf16.mxu1 %v2928_v5  ;;  %v2976_v13 = vld [vmem:[%s3784_s1 + $0xe0] sm:$0xff]   ;;  %v3000_v17 = vld [vmem:[%s3784_s1 + $0xd8] sm:$0xff]   ;;  %v3024_v21 = vld [vmem:[%s3784_s1 + $0xd0] sm:$0xff]  }
   0x7   :  { %v2982_v14 = vld [vmem:[%s3784_s1 + $0x20] sm:$0xff]   ;;  %v3006_v18 = vld [vmem:[%s3784_s1 + $0x18] sm:$0xff]   ;;  %v3030_v22 = vld [vmem:[%s3784_s1 + $0x10] sm:$0xff]  }
   0x8   :  { %2191 = vmatpush3.bf16.msra.mxu0 %v2934_v6  ;;  %v2988_v15 = vld [vmem:[%s3784_s1 + $0xa0] sm:$0xff]   ;;  %v3012_v19 = vld [vmem:[%s3784_s1 + $0x98] sm:$0xff]   ;;  %v3036_v23 = vld [vmem:[%s3784_s1 + $0x90] sm:$0xff]  }
   0x9   :  { %2237 = vmatpush3.bf16.msra.mxu1 %v2940_v7  ;;  %2192 = vmatprep.subr.bf16.mxu0 %v2946_v8  ;;  %v3042_v24 = vld [vmem:[%s3784_s1 + $0x48] sm:$0xff]   ;;  %v3066_v28 = vld [vmem:[%s3784_s1 + $0x40] sm:$0xff]   ;;  %v3105_v37 = vld [vmem:[%s3784_s1 + $0x118] sm:$0xff]  }
   0xa   :  { %2238 = vmatprep.subr.bf16.mxu1 %v2952_v9  ;;  %v3048_v25 = vld [vmem:[%s3784_s1 + $0xc8] sm:$0xff]   ;;  %v3072_v29 = vld [vmem:[%s3784_s1 + $0xc0] sm:$0xff]   ;;  %v3119_v40 = vld [vmem:[%s3784_s1 + $0x110] sm:$0xff]  }
   0xb   :  { %v3054_v26 = vld [vmem:[%s3784_s1 + $0x8] sm:$0xff]   ;;  %v3078_v30 = vld [vmem:[%s3784_s1] sm:$0xff]   ;;  %v2754_v44 = vld [vmem:[%s3785_s0 + $0x5c] ss:$20 sps:$4 sm:$0xff]  }
   0xc   :  { %2193 = vmatpush3.bf16.msra.mxu0 %v2958_v10  ;;  %v3060_v27 = vld [vmem:[%s3784_s1 + $0x88] sm:$0xff]   ;;  %v3084_v31 = vld [vmem:[%s3784_s1 + $0x80] sm:$0xff]   ;;  %v2759_v49 = vld [vmem:[%s3785_s0 + $0x7c] ss:$20 sps:$4 sm:$0xff]  }
   0xd   :  { %2239 = vmatpush3.bf16.msra.mxu1 %v2964_v11  ;;  %2194 = vmatprep.subr.bf16.mxu0 %v2970_v12  ;;  %v2738_v32 = vld [vmem:[%s3785_s0] ss:$20 sps:$4 sm:$0xff]   ;;  %v2740_v33 = vld [vmem:[%s3785_s0 + $0x4] ss:$20 sps:$4 sm:$0xff]   ;;  %v2741_v35 = vld [vmem:[%s3785_s0 + $0x8] ss:$20 sps:$4 sm:$0xff]  }
   0xe   :  { %2240 = vmatprep.subr.bf16.mxu1 %v2976_v13  ;;  %v2743_v36 = vld [vmem:[%s3785_s0 + $0xc] ss:$20 sps:$4 sm:$0xff]   ;;  %495 = vmatprep.mubr.bf16.mxu0 %v2740_v33  ;;  %v2747_v39 = vld [vmem:[%s3785_s0 + $0x34] ss:$20 sps:$4 sm:$0xff]   ;;  %v2750_v42 = vld [vmem:[%s3785_s0 + $0x30] ss:$20 sps:$4 sm:$0xff]  }
   0xf   :  { %567 = vmatprep.mubr.bf16.mxu1 %v2743_v36  ;;  %v2745_v38 = vld [vmem:[%s3785_s0 + $0x2c] ss:$20 sps:$4 sm:$0xff]   ;;  %v2749_v41 = vld [vmem:[%s3785_s0 + $0x28] ss:$20 sps:$4 sm:$0xff]   ;;  %v2756_v47 = vld [vmem:[%s3785_s0 + $0x50] ss:$20 sps:$4 sm:$0xff]  }
  0x10   :  { %2195 = vmatpush3.bf16.msra.mxu0 %v2982_v14  ;;  %v2752_v43 = vld [vmem:[%s3785_s0 + $0x54] ss:$20 sps:$4 sm:$0xff]   ;;  %v3149_v46 = vld [vmem:[%s3784_s1 + $0x100] sm:$0xff]   ;;  %v2757_v48 = vld [vmem:[%s3785_s0 + $0x58] ss:$20 sps:$4 sm:$0xff]  }
  0x11   :  { %2241 = vmatpush3.bf16.msra.mxu1 %v2988_v15  ;;  %2196 = vmatprep.subr.bf16.mxu0 %v2994_v16  ;;  %v3141_v45 = vld [vmem:[%s3784_s1 + $0x108] sm:$0xff]   ;;  %v2761_v50 = vld [vmem:[%s3785_s0 + $0x84] ss:$20 sps:$4 sm:$0xff]   ;;  %v2764_v54 = vld [vmem:[%s3785_s0 + $0x80] ss:$20 sps:$4 sm:$0xff]  }
  0x12   :  { %2242 = vmatprep.subr.bf16.mxu1 %v3000_v17  ;;  %v111_v51 = vld [vmem:[%s3785_s0 + $0xa0] sm:$0xff]  ;;  %v112_v52 = vld [vmem:[%s3785_s0 + $0xa8] sm:$0xff] }
  0x13   :  { %v2763_v53 = vld [vmem:[%s3785_s0 + $0x78] ss:$20 sps:$4 sm:$0xff]   ;;  %v1930_v55 = vcombine.high %v111_v51, %v111_v51  ;;  %v1932_v56 = vcombine.high %v112_v52, %v112_v52  ;;  %v1929_v57 = vcombine.low %v111_v51, %v111_v51  ;;  %v1931_v58 = vcombine.low %v112_v52, %v112_v52  ;;  %v2773_v60 = vld [vmem:[%s3785_s0 + $0x10] ss:$20 sps:$4 sm:$0xff]   ;;  %v2770_v61 = vld [vmem:[%s3785_s0 + $0xb4] ss:$20 sps:$4 sm:$0xff]  }
  0x14   :  { %2197 = vmatpush3.bf16.msra.mxu0 %v3006_v18  ;;  %v2772_v59 = vld [vmem:[%s3785_s0 + $0xb8] ss:$20 sps:$4 sm:$0xff]   ;;  %v2774_v62 = vld [vmem:[%s3785_s0 + $0xe0] ss:$20 sps:$4 sm:$0xff]   ;;  %v2778_v33 = vld [vmem:[%s3785_s0 + $0x108] ss:$20 sps:$4 sm:$0xff]  }
  0x15   :  { %2243 = vmatpush3.bf16.msra.mxu1 %v3012_v19  ;;  %2198 = vmatprep.subr.bf16.mxu0 %v3018_v20  ;;  %v2776_v63 = vld [vmem:[%s3785_s0 + $0x38] ss:$20 sps:$4 sm:$0xff]   ;;  %v2793_v51 = vld [vmem:[%s3785_s0 + $0xe8] ss:$20 sps:$4 sm:$0xff]  }
  0x16   :  { %2244 = vmatprep.subr.bf16.mxu1 %v3024_v21  ;;  %v2781_v36 = vld [vmem:[%s3785_s0 + $0x104] ss:$20 sps:$4 sm:$0xff]  }
  0x17   :  { %v2795_v52 = vld [vmem:[%s3785_s0 + $0xe4] ss:$20 sps:$4 sm:$0xff]  }
  0x18   :  { %2199 = vmatpush3.bf16.msra.mxu0 %v3030_v22 }
  0x19   :  { %2245 = vmatpush3.bf16.msra.mxu1 %v3036_v23  ;;  %2200 = vmatprep.subr.bf16.mxu0 %v3042_v24 }
  0x1a   :  { %2246 = vmatprep.subr.bf16.mxu1 %v3048_v25 }
  0x1c   :  { %2201 = vmatpush3.bf16.msra.mxu0 %v3054_v26 }
  0x1d   :  { %2247 = vmatpush3.bf16.msra.mxu1 %v3060_v27  ;;  %2202 = vmatprep.subr.bf16.mxu0 %v3066_v28 }
  0x1e   :  { %2248 = vmatprep.subr.bf16.mxu1 %v3072_v29 }
  0x20   :  { %2203 = vmatpush3.bf16.msra.mxu0 %v3078_v30 }
  0x21   :  { %2249 = vmatpush3.bf16.msra.mxu1 %v3084_v31  ;;  %2592 = vmatprep.subr.bf16.mxu0 %v2874_v34 }
  0x22   :  { %2289 = vmatprep.subr.bf16.mxu1 %v2899_v0 }
  0x23   :  { %496 = vmatmul.mubr.bf16.vlgmr.msra.gmra.mxu0 %v2738_v32  ;;  %v2777_v32 = vld [vmem:[%s3785_s0 + $0xdc] ss:$20 sps:$4 sm:$0xff]  }
  0x24   :  { %568 = vmatmul.mubr.bf16.vlgmr.msra.gmra.mxu1 %v2741_v35  ;;  %2593 = vmatpush3.bf16.msra.mxu0 %v3105_v37  ;;  %v2780_v35 = vld [vmem:[%s3785_s0 + $0x60] ss:$20 sps:$4 sm:$0xff]  }
  0x25   :  { %503 = vmatprep.mubr.bf16.mxu0 %v2745_v38  ;;  %2290 = vmatpush3.bf16.msra.mxu1 %v2910_v2  ;;  %v2782_v38 = vld [vmem:[%s3785_s0 + $0x130] ss:$20 sps:$4 sm:$0xff]  }
  0x26   :  { %575 = vmatprep.mubr.bf16.mxu1 %v2747_v39  ;;  %2594 = vmatprep.subr.bf16.mxu0 %v2874_v34  ;;  %v1999_v39 = vld [vmem:[%s3785_s0 + $0x154] sm:$0xff] }
  0x27   :  { %2291 = vmatprep.subr.bf16.mxu1 %v2922_v4 }
  0x28   :  { %2595 = vmatpush3.bf16.msra.mxu0 %v3119_v40 }
  0x29   :  { %2292 = vmatpush3.bf16.msra.mxu1 %v2934_v6  ;;  %2596 = vmatprep.subr.bf16.mxu0 %v2874_v34 }
  0x2a   :  { %2293 = vmatprep.subr.bf16.mxu1 %v2946_v8 }
  0x2b   :  { %504 = vmatmul.mubr.bf16.gmra.mxu0 %v2749_v41  ;;  %v2784_v41 = vld [vmem:[%s3785_s0 + $0x88] ss:$20 sps:$4 sm:$0xff]  }
  0x2c   :  { %576 = vmatmul.mubr.bf16.gmra.mxu1 %v2750_v42  ;;  %511 = vmatprep.mubr.bf16.mxu0 %v2752_v43  ;;  %v2785_v42 = vld [vmem:[%s3785_s0 + $0x12c] ss:$20 sps:$4 sm:$0xff]   ;;  %v2023_v43 = vcombine.high %v1999_v39, %v1999_v39 }
  0x2d   :  { %583 = vmatprep.mubr.bf16.mxu1 %v2754_v44  ;;  %2294 = vmatpush3.bf16.msra.mxu1 %v2958_v10  ;;  %v2787_v44 = vld [vmem:[%s3785_s0 + $0xb0] ss:$0 sps:$4 sm:$0xff]  }
  0x2e   :  { %2295 = vmatprep.subr.bf16.mxu1 %v2970_v12  ;;  %2597 = vmatpush3.bf16.msra.mxu0 %v3141_v45 }
  0x2f   :  { %2598 = vmatprep.subr.bf16.mxu0 %v2874_v34 }
  0x31   :  { %2296 = vmatpush3.bf16.msra.mxu1 %v2982_v14 }
  0x32   :  { %2297 = vmatprep.subr.bf16.mxu1 %v2994_v16  ;;  %2599 = vmatpush3.bf16.msra.mxu0 %v3149_v46 }
  0x33   :  { %512 = vmatmul.mubr.bf16.gmra.mxu0 %v2756_v47  ;;  %2335 = vmatprep.subr.bf16.mxu0 %v2904_v1  ;;  %v2022_v47 = vcombine.low %v1999_v39, %v1999_v39  ;;  %v2818_v39 = vld [vmem:[%s3785_s0 + $0x190] ss:$20 sps:$4 sm:$0xff]  }
  0x34   :  { %584 = vmatmul.mubr.bf16.gmra.mxu1 %v2757_v48  ;;  %519 = vmatprep.mubr.bf16.mxu0 %v2759_v49  ;;  %v2791_v48 = vld [vmem:[%s3785_s0 + $0xc0] ss:$20 sps:$4 sm:$0xff]   ;;  %v2789_v49 = vld [vmem:[%s3785_s0 + $0xbc] ss:$20 sps:$4 sm:$0xff]  }
  0x35   :  { %591 = vmatprep.mubr.bf16.mxu1 %v2761_v50  ;;  %2298 = vmatpush3.bf16.msra.mxu1 %v3006_v18  ;;  %v2792_v50 = vld [vmem:[%s3785_s0 + $0xc4] ss:$20 sps:$4 sm:$0xff]  }
  0x36   :  { %2299 = vmatprep.subr.bf16.mxu1 %v3018_v20 }
  0x39   :  { %2300 = vmatpush3.bf16.msra.mxu1 %v3030_v22 }
  0x3a   :  { %2301 = vmatprep.subr.bf16.mxu1 %v3042_v24 }
  0x3b   :  { %520 = vmatmul.mubr.bf16.gmra.mxu0 %v2763_v53  ;;  %v2796_v53 = vld [vmem:[%s3785_s0 + $0xec] ss:$20 sps:$4 sm:$0xff]  }
  0x3c   :  { %592 = vmatmul.mubr.bf16.gmra.mxu1 %v2764_v54  ;;  %527 = vmatprep.mubr.bf16.mxu0 %v1930_v55  ;;  %v2797_v54 = vld [vmem:[%s3785_s0 + $0x110] ss:$20 sps:$4 sm:$0xff]   ;;  %v2799_v55 = vld [vmem:[%s3785_s0 + $0x10c] ss:$20 sps:$4 sm:$0xff]  }
  0x3d   :  { %599 = vmatprep.mubr.bf16.mxu1 %v1932_v56  ;;  %2302 = vmatpush3.bf16.msra.mxu1 %v3054_v26  ;;  %v2800_v56 = vld [vmem:[%s3785_s0 + $0x114] ss:$20 sps:$4 sm:$0xff]  }
  0x3e   :  { %2303 = vmatprep.subr.bf16.mxu1 %v3066_v28 }
  0x41   :  { %2304 = vmatpush3.bf16.msra.mxu1 %v3078_v30 }
  0x42   :  { %2620 = vmatprep.subr.bf16.mxu1 %v2874_v34 }
  0x43   :  { %528 = vmatmul.mubr.bf16.gmra.mxu0 %v1929_v57  ;;  %v2801_v57 = vld [vmem:[%s3785_s0 + $0x138] ss:$20 sps:$4 sm:$0xff]  }
  0x44   :  { %600 = vmatmul.mubr.bf16.gmra.mxu1 %v1931_v58  ;;  %2600 = vmatprep.mubr.msk.bf16.mxu0 %vm2875_vm0, %v2874_v34  ;;  %v2000_v58 = vld [vmem:[%s3785_s0 + $0x15c] sm:$0xff] }
  0x45   :  { %871 = vmatprep.mubr.bf16.mxu1 %v2772_v59  ;;  %v2803_v59 = vld [vmem:[%s3785_s0 + $0x134] ss:$20 sps:$4 sm:$0xff]  }
  0x4b   :  { %2601 = vmatmul.mubr.msk.bf16.vlgmr.msra.gmra.mxu0 %vm447_vm1, %v2773_v60  ;;  %v2804_v60 = vld [vmem:[%s3785_s0 + $0x13c] ss:$20 sps:$4 sm:$0xff]  }
  0x4c   :  { %872 = vmatmul.mubr.bf16.vlgmr.msra.gmra.mxu1 %v2770_v61  ;;  %2336 = vmatpush3.bf16.msra.mxu0 %v2916_v3  ;;  %v2025_v61 = vcombine.high %v2000_v58, %v2000_v58 }
  0x4d   :  { %2337 = vmatprep.subr.bf16.mxu0 %v2928_v5  ;;  %2604 = vmatprep.mubr.msk.bf16.mxu0 %vm2875_vm0, %v2874_v34 }
  0x4e   :  { %879 = vmatprep.mubr.bf16.mxu1 %v2774_v62  ;;  %2621 = vmatpush3.bf16.msra.mxu1 %v3105_v37  ;;  %v2024_v62 = vcombine.low %v2000_v58, %v2000_v58 }
  0x4f   :  { %2622 = vmatprep.subr.bf16.mxu1 %v2874_v34 }
  0x50   :  { %2338 = vmatpush3.bf16.msra.mxu0 %v2940_v7 }
  0x51   :  { %2339 = vmatprep.subr.bf16.mxu0 %v2952_v9 }
  0x52   :  { %2623 = vmatpush3.bf16.msra.mxu1 %v3119_v40 }
  0x53   :  { %2605 = vmatmul.mubr.msk.bf16.gmra.mxu0 %vm447_vm1, %v2776_v63  ;;  %2624 = vmatprep.subr.bf16.mxu1 %v2874_v34  ;;  %v2807_v63 = vld [vmem:[%s3785_s0 + $0x164] ss:$0 sps:$4 sm:$0xff]  }
  0x54   :  { %880 = vmatmul.mubr.bf16.gmra.mxu1 %v2777_v32  ;;  %2340 = vmatpush3.bf16.msra.mxu0 %v2964_v11  ;;  %v2810_v32 = vld [vmem:[%s3785_s0 + $0x16c] ss:$20 sps:$4 sm:$0xff]  }
  0x55   :  { %2608 = vmatprep.mubr.msk.bf16.mxu0 %vm2875_vm0, %v2874_v34  ;;  %887 = vmatprep.mubr.bf16.mxu1 %v2778_v33  ;;  %v2813_v33 = vld [vmem:[%s3785_s0 + $0x174] ss:$20 sps:$4 sm:$0xff]  }
  0x56   :  { %2341 = vmatprep.subr.bf16.mxu0 %v2976_v13  ;;  %2625 = vmatpush3.bf16.msra.mxu1 %v3141_v45 }
  0x57   :  { %2626 = vmatprep.subr.bf16.mxu1 %v2874_v34 }
  0x58   :  { %2342 = vmatpush3.bf16.msra.mxu0 %v2988_v15 }
  0x59   :  { %2343 = vmatprep.subr.bf16.mxu0 %v3000_v17 }
  0x5a   :  { %2627 = vmatpush3.bf16.msra.mxu1 %v3149_v46 }
  0x5b   :  { %2609 = vmatmul.mubr.msk.bf16.gmra.mxu0 %vm447_vm1, %v2780_v35  ;;  %2436 = vmatprep.subr.bf16.mxu1 %v2904_v1  ;;  %v2808_v35 = vld [vmem:[%s3785_s0 + $0x168] ss:$20 sps:$4 sm:$0xff]  }
  0x5c   :  { %888 = vmatmul.mubr.bf16.gmra.mxu1 %v2781_v36  ;;  %2344 = vmatpush3.bf16.msra.mxu0 %v3012_v19  ;;  %v2811_v36 = vld [vmem:[%s3785_s0 + $0x170] ss:$20 sps:$4 sm:$0xff]  }
  0x5d   :  { %2612 = vmatprep.mubr.msk.bf16.mxu0 %vm2875_vm0, %v2874_v34  ;;  %895 = vmatprep.mubr.bf16.mxu1 %v2782_v38  ;;  %v2814_v38 = vld [vmem:[%s3785_s0 + $0x194] ss:$20 sps:$4 sm:$0xff]  }
  0x5e   :  { %2345 = vmatprep.subr.bf16.mxu0 %v3024_v21 }
  0x60   :  { %2346 = vmatpush3.bf16.msra.mxu0 %v3036_v23 }
  0x61   :  { %2347 = vmatprep.subr.bf16.mxu0 %v3048_v25 }
  0x63   :  { %2613 = vmatmul.mubr.msk.bf16.gmra.mxu0 %vm447_vm1, %v2784_v41  ;;  %v2819_v41 = vld [vmem:[%s3785_s0 + $0x198] ss:$20 sps:$4 sm:$0xff]  }
  0x64   :  { %896 = vmatmul.mubr.bf16.gmra.mxu1 %v2785_v42  ;;  %2616 = vmatprep.mubr.msk.bf16.mxu0 %vm2875_vm0, %v2874_v34  ;;  %v2820_v42 = vld [vmem:[%s3785_s0 + $0x1bc] ss:$20 sps:$4 sm:$0xff]  }
  0x65   :  { %903 = vmatprep.mubr.bf16.mxu1 %v2023_v43  ;;  %2348 = vmatpush3.bf16.msra.mxu0 %v3060_v27  ;;  %v2057_v43 = vld [vmem:[%s3785_s0 + $0x210] sm:$0xff] }
  0x66   :  { %2349 = vmatprep.subr.bf16.mxu0 %v3072_v29 }
  0x69   :  { %2350 = vmatpush3.bf16.msra.mxu0 %v3084_v31 }
  0x6a   :  { %2390 = vmatprep.subr.bf16.mxu0 %v2899_v0 }
  0x6b   :  { %2617 = vmatmul.mubr.msk.bf16.gmra.mxu0 %vm447_vm1, %v2787_v44  ;;  %v2082_v44 = vcombine.high %v2057_v43, %v2057_v43 }
  0x6c   :  { %904 = vmatmul.mubr.bf16.gmra.mxu1 %v2022_v47  ;;  %943 = vmatprep.mubr.bf16.mxu0 %v2791_v48  ;;  %v2839_v47 = vld [vmem:[%s3785_s0 + $0x220] ss:$20 sps:$4 sm:$0xff]   ;;  %v2855_v48 = vld [vmem:[%s3785_s0 + $0x224] ss:$20 sps:$4 sm:$0xff]  }
  0x6d   :  { %2628 = vmatprep.mubr.msk.bf16.mxu1 %vm2875_vm0, %v2874_v34 }
  0x73   :  { %944 = vmatmul.mubr.bf16.vlgmr.msra.gmra.mxu0 %v2789_v49 }
  0x74   :  { %2629 = vmatmul.mubr.msk.bf16.vlgmr.msra.gmra.mxu1 %vm447_vm1, %v2792_v50  ;;  %2391 = vmatpush3.bf16.msra.mxu0 %v2910_v2  ;;  %v2859_v50 = vld [vmem:[%s3785_s0 + $0x250] ss:$20 sps:$4 sm:$0xff]  }
  0x75   :  { %2392 = vmatprep.subr.bf16.mxu0 %v2922_v4  ;;  %951 = vmatprep.mubr.bf16.mxu0 %v2793_v51 }
  0x76   :  { %2632 = vmatprep.mubr.msk.bf16.mxu1 %vm2875_vm0, %v2874_v34  ;;  %2437 = vmatpush3.bf16.msra.mxu1 %v2916_v3 }
  0x77   :  { %2438 = vmatprep.subr.bf16.mxu1 %v2928_v5 }
  0x78   :  { %2393 = vmatpush3.bf16.msra.mxu0 %v2934_v6 }
  0x79   :  { %2394 = vmatprep.subr.bf16.mxu0 %v2946_v8 }
  0x7a   :  { %2439 = vmatpush3.bf16.msra.mxu1 %v2940_v7 }
  0x7b   :  { %952 = vmatmul.mubr.bf16.gmra.mxu0 %v2795_v52  ;;  %2440 = vmatprep.subr.bf16.mxu1 %v2952_v9 }
  0x7c   :  { %2633 = vmatmul.mubr.msk.bf16.gmra.mxu1 %vm447_vm1, %v2796_v53  ;;  %2395 = vmatpush3.bf16.msra.mxu0 %v2958_v10 }
  0x7d   :  { %959 = vmatprep.mubr.bf16.mxu0 %v2797_v54  ;;  %2636 = vmatprep.mubr.msk.bf16.mxu1 %vm2875_vm0, %v2874_v34 }
  0x7e   :  { %2396 = vmatprep.subr.bf16.mxu0 %v2970_v12  ;;  %2441 = vmatpush3.bf16.msra.mxu1 %v2964_v11 }
  0x7f   :  { %2442 = vmatprep.subr.bf16.mxu1 %v2976_v13 }
  0x80   :  { %2397 = vmatpush3.bf16.msra.mxu0 %v2982_v14 }
  0x81   :  { %2398 = vmatprep.subr.bf16.mxu0 %v2994_v16 }
  0x82   :  { %2443 = vmatpush3.bf16.msra.mxu1 %v2988_v15 }
  0x83   :  { %960 = vmatmul.mubr.bf16.gmra.mxu0 %v2799_v55  ;;  %2444 = vmatprep.subr.bf16.mxu1 %v3000_v17 }
  0x84   :  { %2637 = vmatmul.mubr.msk.bf16.gmra.mxu1 %vm447_vm1, %v2800_v56  ;;  %2399 = vmatpush3.bf16.msra.mxu0 %v3006_v18 }
  0x85   :  { %967 = vmatprep.mubr.bf16.mxu0 %v2801_v57  ;;  %2640 = vmatprep.mubr.msk.bf16.mxu1 %vm2875_vm0, %v2874_v34 }
  0x86   :  { %2400 = vmatprep.subr.bf16.mxu0 %v3018_v20  ;;  %2445 = vmatpush3.bf16.msra.mxu1 %v3012_v19 }
  0x87   :  { %2446 = vmatprep.subr.bf16.mxu1 %v3024_v21 }
  0x88   :  { %2401 = vmatpush3.bf16.msra.mxu0 %v3030_v22 }
  0x89   :  { %2402 = vmatprep.subr.bf16.mxu0 %v3042_v24 }
  0x8a   :  { %2447 = vmatpush3.bf16.msra.mxu1 %v3036_v23 }
  0x8b   :  { %968 = vmatmul.mubr.bf16.gmra.mxu0 %v2803_v59  ;;  %2448 = vmatprep.subr.bf16.mxu1 %v3048_v25 }
  0x8c   :  { %2641 = vmatmul.mubr.msk.bf16.gmra.mxu1 %vm447_vm1, %v2804_v60  ;;  %975 = vmatprep.mubr.bf16.mxu0 %v2025_v61 }
  0x8d   :  { %2644 = vmatprep.mubr.msk.bf16.mxu1 %vm2875_vm0, %v2874_v34  ;;  %2403 = vmatpush3.bf16.msra.mxu0 %v3054_v26 }
  0x8e   :  { %2449 = vmatpush3.bf16.msra.mxu1 %v3060_v27  ;;  %2404 = vmatprep.subr.bf16.mxu0 %v3066_v28 }
  0x8f   :  { %2450 = vmatprep.subr.bf16.mxu1 %v3072_v29 }
  0x91   :  { %2405 = vmatpush3.bf16.msra.mxu0 %v3078_v30 }
  0x92   :  { %2451 = vmatpush3.bf16.msra.mxu1 %v3084_v31  ;;  %2648 = vmatprep.subr.bf16.mxu0 %v2874_v34 }
  0x93   :  { %976 = vmatmul.mubr.bf16.gmra.mxu0 %v2024_v62  ;;  %2491 = vmatprep.subr.bf16.mxu1 %v2899_v0  ;;  %v2816_v0 = vld [vmem:[%s3785_s0 + $0x19c] ss:$20 sps:$4 sm:$0xff]  }
  0x94   :  { %2645 = vmatmul.mubr.msk.bf16.gmra.mxu1 %vm447_vm1, %v2807_v63  ;;  %1256 = vmatprep.mubr.bf16.mxu0 %v2810_v32  ;;  %v2861_v32 = vld [vmem:[%s3785_s0 + $0x24c] ss:$20 sps:$4 sm:$0xff]  }
  0x95   :  { %1328 = vmatprep.mubr.bf16.mxu1 %v2813_v33 }
  0x9b   :  { %1257 = vmatmul.mubr.bf16.vlgmr.msra.gmra.mxu0 %v2808_v35  ;;  %v2862_v35 = vld [vmem:[%s3785_s0 + $0x254] ss:$20 sps:$4 sm:$0xff]  }
  0x9c   :  { %1329 = vmatmul.mubr.bf16.vlgmr.msra.gmra.mxu1 %v2811_v36  ;;  %2649 = vmatpush3.bf16.msra.mxu0 %v3105_v37  ;;  %v2863_v36 = vld [vmem:[%s3785_s0 + $0x278] ss:$20 sps:$4 sm:$0xff]  }
  0x9d   :  { %1264 = vmatprep.mubr.bf16.mxu0 %v2814_v38  ;;  %1336 = vmatprep.mubr.bf16.mxu1 %v2816_v0 }
  0x9e   :  { %2492 = vmatpush3.bf16.msra.mxu1 %v2910_v2  ;;  %2650 = vmatprep.subr.bf16.mxu0 %v2874_v34  ;;  %v2822_v2 = vld [vmem:[%s3785_s0 + $0x1c4] ss:$20 sps:$4 sm:$0xff]  }
  0x9f   :  { %2493 = vmatprep.subr.bf16.mxu1 %v2922_v4  ;;  %v2824_v4 = vld [vmem:[%s3785_s0 + $0x1b8] ss:$20 sps:$4 sm:$0xff]  }
  0xa0   :  { %2651 = vmatpush3.bf16.msra.mxu0 %v3119_v40 }
  0xa1   :  { %2652 = vmatprep.subr.bf16.mxu0 %v2874_v34 }
  0xa2   :  { %2494 = vmatpush3.bf16.msra.mxu1 %v2934_v6  ;;  %v2825_v6 = vld [vmem:[%s3785_s0 + $0x1c0] ss:$20 sps:$4 sm:$0xff]  }
  0xa3   :  { %1265 = vmatmul.mubr.bf16.gmra.mxu0 %v2818_v39  ;;  %2495 = vmatprep.subr.bf16.mxu1 %v2946_v8  ;;  %v2826_v8 = vld [vmem:[%s3785_s0 + $0x1e4] ss:$20 sps:$4 sm:$0xff]  }
  0xa4   :  { %1337 = vmatmul.mubr.bf16.gmra.mxu1 %v2819_v41  ;;  %1272 = vmatprep.mubr.bf16.mxu0 %v2820_v42 }
  0xa5   :  { %1344 = vmatprep.mubr.bf16.mxu1 %v2822_v2  ;;  %2653 = vmatpush3.bf16.msra.mxu0 %v3141_v45 }
  0xa6   :  { %2496 = vmatpush3.bf16.msra.mxu1 %v2958_v10  ;;  %2654 = vmatprep.subr.bf16.mxu0 %v2874_v34  ;;  %v2828_v10 = vld [vmem:[%s3785_s0 + $0x1ec] ss:$20 sps:$4 sm:$0xff]  }
  0xa7   :  { %2497 = vmatprep.subr.bf16.mxu1 %v2970_v12  ;;  %v2056_v12 = vld [vmem:[%s3785_s0 + $0x208] sm:$0xff] }
  0xa9   :  { %2655 = vmatpush3.bf16.msra.mxu0 %v3149_v46 }
  0xaa   :  { %2498 = vmatpush3.bf16.msra.mxu1 %v2982_v14  ;;  %2537 = vmatprep.subr.bf16.mxu0 %v2904_v1  ;;  %v2830_v1 = vld [vmem:[%s3785_s0 + $0x1e0] ss:$20 sps:$4 sm:$0xff]   ;;  %v2831_v14 = vld [vmem:[%s3785_s0 + $0x1e8] ss:$20 sps:$4 sm:$0xff]  }
  0xab   :  { %1273 = vmatmul.mubr.bf16.gmra.mxu0 %v2824_v4  ;;  %2499 = vmatprep.subr.bf16.mxu1 %v2994_v16  ;;  %v2080_v16 = vcombine.high %v2056_v12, %v2056_v12 }
  0xac   :  { %1345 = vmatmul.mubr.bf16.gmra.mxu1 %v2825_v6  ;;  %1280 = vmatprep.mubr.bf16.mxu0 %v2826_v8 }
  0xad   :  { %1352 = vmatprep.mubr.bf16.mxu1 %v2828_v10 }
  0xae   :  { %2500 = vmatpush3.bf16.msra.mxu1 %v3006_v18  ;;  %v2079_v18 = vcombine.low %v2056_v12, %v2056_v12 }
  0xaf   :  { %2501 = vmatprep.subr.bf16.mxu1 %v3018_v20  ;;  %v2081_v20 = vcombine.low %v2057_v43, %v2057_v43 }
  0xb2   :  { %2502 = vmatpush3.bf16.msra.mxu1 %v3030_v22  ;;  %v2836_v22 = vld [vmem:[%s3785_s0 + $0x178] ss:$20 sps:$4 sm:$0xff]  }
  0xb3   :  { %1281 = vmatmul.mubr.bf16.gmra.mxu0 %v2830_v1  ;;  %2503 = vmatprep.subr.bf16.mxu1 %v3042_v24  ;;  %v2837_v24 = vld [vmem:[%s3785_s0 + $0x21c] ss:$20 sps:$4 sm:$0xff]  }
  0xb4   :  { %1353 = vmatmul.mubr.bf16.gmra.mxu1 %v2831_v14  ;;  %1288 = vmatprep.mubr.bf16.mxu0 %v2080_v16  ;;  %v2865_v14 = vld [vmem:[%s3785_s0 + $0x274] ss:$20 sps:$4 sm:$0xff]  }
  0xb5   :  { %1360 = vmatprep.mubr.bf16.mxu1 %v2082_v44  ;;  %v2866_v44 = vld [vmem:[%s3785_s0 + $0x27c] ss:$20 sps:$4 sm:$0xff]  }
  0xb6   :  { %2504 = vmatpush3.bf16.msra.mxu1 %v3054_v26  ;;  %v2841_v26 = vld [vmem:[%s3785_s0 + $0x248] ss:$20 sps:$4 sm:$0xff]  }
  0xb7   :  { %2505 = vmatprep.subr.bf16.mxu1 %v3066_v28  ;;  %v2840_v28 = vld [vmem:[%s3785_s0 + $0x1a0] ss:$20 sps:$4 sm:$0xff]  }
  0xba   :  { %2506 = vmatpush3.bf16.msra.mxu1 %v3078_v30 }
  0xbb   :  { %1289 = vmatmul.mubr.bf16.gmra.mxu0 %v2079_v18  ;;  %2676 = vmatprep.subr.bf16.mxu1 %v2874_v34  ;;  %v2869_v18 = vld [vmem:[%s3785_s0 + $0x2a0] ss:$20 sps:$4 sm:$0xff]  }
  0xbc   :  { %1361 = vmatmul.mubr.bf16.gmra.mxu1 %v2081_v20  ;;  %2656 = vmatprep.mubr.msk.bf16.mxu0 %vm2875_vm0, %v2874_v34 }
  0xbd   :  { %1641 = vmatprep.mubr.bf16.mxu1 %v2839_v47 }
  0xc3   :  { %2657 = vmatmul.mubr.msk.bf16.vlgmr.msra.gmra.mxu0 %vm447_vm1, %v2836_v22 }
  0xc4   :  { %1642 = vmatmul.mubr.bf16.vlgmr.msra.gmra.mxu1 %v2837_v24  ;;  %2538 = vmatpush3.bf16.msra.mxu0 %v2916_v3  ;;  %v2843_v3 = vld [vmem:[%s3785_s0 + $0x244] ss:$20 sps:$4 sm:$0xff]  }
  0xc5   :  { %2539 = vmatprep.subr.bf16.mxu0 %v2928_v5  ;;  %2660 = vmatprep.mubr.msk.bf16.mxu0 %vm2875_vm0, %v2874_v34  ;;  %v2845_v5 = vld [vmem:[%s3785_s0 + $0x270] ss:$20 sps:$4 sm:$0xff]  }
  0xc6   :  { %2677 = vmatpush3.bf16.msra.mxu1 %v3105_v37  ;;  %1649 = vmatprep.mubr.bf16.mxu1 %v2841_v26 }
  0xc7   :  { %2678 = vmatprep.subr.bf16.mxu1 %v2874_v34 }
  0xc8   :  { %2540 = vmatpush3.bf16.msra.mxu0 %v2940_v7  ;;  %v2844_v7 = vld [vmem:[%s3785_s0 + $0x1c8] ss:$20 sps:$4 sm:$0xff]  }
  0xc9   :  { %2541 = vmatprep.subr.bf16.mxu0 %v2952_v9  ;;  %v2847_v9 = vld [vmem:[%s3785_s0 + $0x26c] ss:$20 sps:$4 sm:$0xff]  }
  0xca   :  { %2679 = vmatpush3.bf16.msra.mxu1 %v3119_v40 }
  0xcb   :  { %2661 = vmatmul.mubr.msk.bf16.gmra.mxu0 %vm447_vm1, %v2840_v28  ;;  %2680 = vmatprep.subr.bf16.mxu1 %v2874_v34 }
  0xcc   :  { %1650 = vmatmul.mubr.bf16.gmra.mxu1 %v2843_v3  ;;  %2542 = vmatpush3.bf16.msra.mxu0 %v2964_v11  ;;  %v2849_v11 = vld [vmem:[%s3785_s0 + $0x298] ss:$20 sps:$4 sm:$0xff]  }
  0xcd   :  { %2664 = vmatprep.mubr.msk.bf16.mxu0 %vm2875_vm0, %v2874_v34  ;;  %2543 = vmatprep.subr.bf16.mxu0 %v2976_v13  ;;  %v2113_v13 = vld [vmem:[%s3785_s0 + $0x2bc] sm:$0xff] }
  0xce   :  { %1657 = vmatprep.mubr.bf16.mxu1 %v2845_v5  ;;  %2681 = vmatpush3.bf16.msra.mxu1 %v3141_v45  ;;  %v2136_v30 = vcombine.low %v2113_v13, %v2113_v13 }
  0xcf   :  { %2682 = vmatprep.subr.bf16.mxu1 %v2874_v34 }
  0xd0   :  { %2544 = vmatpush3.bf16.msra.mxu0 %v2988_v15  ;;  %v2848_v15 = vld [vmem:[%s3785_s0 + $0x1f0] ss:$20 sps:$4 sm:$0xff]  }
  0xd1   :  { %2545 = vmatprep.subr.bf16.mxu0 %v3000_v17  ;;  %v2851_v17 = vld [vmem:[%s3785_s0 + $0x294] ss:$20 sps:$4 sm:$0xff]  }
  0xd2   :  { %2683 = vmatpush3.bf16.msra.mxu1 %v3149_v46 }
  0xd3   :  { %2665 = vmatmul.mubr.msk.bf16.gmra.mxu0 %vm447_vm1, %v2844_v7  ;;  %v2114_v7 = vld [vmem:[%s3785_s0 + $0x2c4] sm:$0xff] }
  0xd4   :  { %1658 = vmatmul.mubr.bf16.gmra.mxu1 %v2847_v9  ;;  %2546 = vmatpush3.bf16.msra.mxu0 %v3012_v19  ;;  %v2137_v19 = vcombine.high %v2113_v13, %v2113_v13 }
  0xd5   :  { %2668 = vmatprep.mubr.msk.bf16.mxu0 %vm2875_vm0, %v2874_v34  ;;  %1665 = vmatprep.mubr.bf16.mxu1 %v2849_v11 }
  0xd6   :  { %2547 = vmatprep.subr.bf16.mxu0 %v3024_v21  ;;  %v2852_v21 = vld [vmem:[%s3785_s0 + $0x218] ss:$0 sps:$4 sm:$0xff]  }
  0xd8   :  { %2548 = vmatpush3.bf16.msra.mxu0 %v3036_v23  ;;  %v2857_v23 = vld [vmem:[%s3785_s0 + $0x228] ss:$20 sps:$4 sm:$0xff]  }
  0xd9   :  { %2549 = vmatprep.subr.bf16.mxu0 %v3048_v25 }
  0xdb   :  { %2669 = vmatmul.mubr.msk.bf16.gmra.mxu0 %vm447_vm1, %v2848_v15 }
  0xdc   :  { %1666 = vmatmul.mubr.bf16.gmra.mxu1 %v2851_v17  ;;  %2672 = vmatprep.mubr.msk.bf16.mxu0 %vm2875_vm0, %v2874_v34 }
  0xdd   :  { %2550 = vmatpush3.bf16.msra.mxu0 %v3060_v27  ;;  %1673 = vmatprep.mubr.bf16.mxu1 %v2137_v19  ;;  %v2867_v19 = vld [vmem:[%s3785_s0 + $0x29c] ss:$20 sps:$4 sm:$0xff]  }
  0xde   :  { %2551 = vmatprep.subr.bf16.mxu0 %v3072_v29 }
  0xe1   :  { %2552 = vmatpush3.bf16.msra.mxu0 %v3084_v31  ;;  %v2858_v31 = vld [vmem:[%s3785_s0 + $0x22c] ss:$20 sps:$4 sm:$0xff]  }
  0xe3   :  { %v2204_v25 = vpop.f32.mrf.mxu0  ;;  %2673 = vmatmul.mubr.msk.bf16.gmra.mxu0 %vm447_vm1, %v2852_v21 }
  0xe4   :  { %v2250_v37 = vpop.f32.mrf.mxu1  ;;  %1674 = vmatmul.mubr.bf16.gmra.mxu1 %v2136_v30  ;;  %1713 = vmatprep.mubr.bf16.mxu0 %v2857_v23  ;;  %v2870_v30 = vld [vmem:[%s3785_s0 + $0x2a4] ss:$20 sps:$4 sm:$0xff]   ;;  %v2139_v23 = vcombine.high %v2114_v7, %v2114_v7 }
  0xe5   :  { %v2205_v27 = vpop.f32.mrf.mxu0  ;;  %2684 = vmatprep.mubr.msk.bf16.mxu1 %vm2875_vm0, %v2874_v34 }
  0xe6   :  { %v2206_v29 = vadd.f32 %v2205_v27, %v2204_v25  ;;  %v2251_v40 = vpop.f32.mrf.mxu1 }
  0xe7   :  { %v2252_v45 = vadd.f32 %v2251_v40, %v2250_v37  ;;  %v2207_v46 = vpop.f32.mrf.mxu0 }
  0xe8   :  { %v2253_v49 = vpop.f32.mrf.mxu1 }
  0xe9   :  { %v2208_v51 = vpop.f32.mrf.mxu0  ;;  %v3529_v52 = vadd.f32 %v2252_v45, %v2206_v29 }
  0xea   :  { %v2209_v53 = vadd.f32 %v2208_v51, %v2207_v46  ;;  %v2254_v54 = vpop.f32.mrf.mxu1 }
  0xeb   :  { %v2255_v55 = vadd.f32 %v2254_v54, %v2253_v49  ;;  %v2210_v56 = vpop.f32.mrf.mxu0  ;;  %1714 = vmatmul.mubr.bf16.vlgmr.msra.gmra.mxu0 %v2855_v48  ;;  %v2138_v54 = vcombine.low %v2114_v7, %v2114_v7 }
  0xec   :  { %v2256_v57 = vpop.f32.mrf.mxu1  ;;  %2685 = vmatmul.mubr.msk.bf16.vlgmr.msra.gmra.mxu1 %vm447_vm1, %v2858_v31  ;;  %1721 = vmatprep.mubr.bf16.mxu0 %v2859_v50 }
  0xed   :  { %v2211_v58 = vpop.f32.mrf.mxu0  ;;  %2688 = vmatprep.mubr.msk.bf16.mxu1 %vm2875_vm0, %v2874_v34  ;;  %v3534_v59 = vadd.f32 %v2255_v55, %v2209_v53 }
  0xee   :  { %v2212_v60 = vadd.f32 %v2211_v58, %v2210_v56  ;;  %v2257_v61 = vpop.f32.mrf.mxu1  ;;  %v2873_v56 = vld [vmem:[%s3785_s0 + $0x2cc] ss:$0 sps:$4 sm:$0xff]  }
  0xef   :  { %v2258_v62 = vadd.f32 %v2257_v61, %v2256_v57  ;;  %v2213_v63 = vpop.f32.mrf.mxu0 }
  0xf0   :  { %v2259_v33 = vpop.f32.mrf.mxu1 }
  0xf1   :  { %v2214_v38 = vpop.f32.mrf.mxu0  ;;  %v3545_v0 = vadd.f32 %v2258_v62, %v2212_v60 }
  0xf2   :  { %v2215_v39 = vadd.f32 %v2214_v38, %v2213_v63  ;;  %v2260_v41 = vpop.f32.mrf.mxu1 }
  0xf3   :  { %v2261_v42 = vadd.f32 %v2260_v41, %v2259_v33  ;;  %v2216_v2 = vpop.f32.mrf.mxu0  ;;  %1722 = vmatmul.mubr.bf16.gmra.mxu0 %v2861_v32 }
  0xf4   :  { %v2262_v4 = vpop.f32.mrf.mxu1  ;;  %2689 = vmatmul.mubr.msk.bf16.gmra.mxu1 %vm447_vm1, %v2862_v35  ;;  %1729 = vmatprep.mubr.bf16.mxu0 %v2863_v36 }
  0xf5   :  { %v2217_v6 = vpop.f32.mrf.mxu0  ;;  %2692 = vmatprep.mubr.msk.bf16.mxu1 %vm2875_vm0, %v2874_v34  ;;  %v3550_v8 = vadd.f32 %v2261_v42, %v2215_v39 }
  0xf6   :  { %v2218_v10 = vadd.f32 %v2217_v6, %v2216_v2  ;;  %v2263_v12 = vpop.f32.mrf.mxu1 }
  0xf7   :  { %v2264_v43 = vadd.f32 %v2263_v12, %v2262_v4  ;;  %v2219_v1 = vpop.f32.mrf.mxu0 }
  0xf8   :  { %v2265_v16 = vpop.f32.mrf.mxu1 }
  0xf9   :  { %v2220_v20 = vpop.f32.mrf.mxu0  ;;  %v3561_v47 = vadd.f32 %v2264_v43, %v2218_v10 }
  0xfa   :  { %v2221_v22 = vadd.f32 %v2220_v20, %v2219_v1  ;;  %v2266_v24 = vpop.f32.mrf.mxu1 }
  0xfb   :  { %v2267_v26 = vadd.f32 %v2266_v24, %v2265_v16  ;;  %v2222_v28 = vpop.f32.mrf.mxu0  ;;  %1730 = vmatmul.mubr.bf16.gmra.mxu0 %v2865_v14 }
  0xfc   :  { %v2268_v3 = vpop.f32.mrf.mxu1  ;;  %2693 = vmatmul.mubr.msk.bf16.gmra.mxu1 %vm447_vm1, %v2866_v44  ;;  %1737 = vmatprep.mubr.bf16.mxu0 %v2869_v18 }
  0xfd   :  { %v2223_v5 = vpop.f32.mrf.mxu0  ;;  %2696 = vmatprep.mubr.msk.bf16.mxu1 %vm2875_vm0, %v2874_v34  ;;  %v3569_v9 = vadd.f32 %v2267_v26, %v2221_v22 }
  0xfe   :  { %v2224_v11 = vadd.f32 %v2223_v5, %v2222_v28  ;;  %v2269_v13 = vpop.f32.mrf.mxu1 }
  0xff   :  { %v2270_v15 = vadd.f32 %v2269_v13, %v2268_v3  ;;  %v2225_v17 = vpop.f32.mrf.mxu0 }
 0x100   :  { %v2271_v21 = vpop.f32.mrf.mxu1 }
 0x101   :  { %v2226_v25 = vpop.f32.mrf.mxu0  ;;  %v594_v37 = vadd.f32 %v2270_v15, %v2224_v11 }
 0x102   :  { %v2227_v27 = vadd.f32 %v2226_v25, %v2225_v17  ;;  %v2272_v29 = vpop.f32.mrf.mxu1 }
 0x103   :  { %v2273_v40 = vadd.f32 %v2272_v29, %v2271_v21  ;;  %v2228_v45 = vpop.f32.mrf.mxu0  ;;  %1738 = vmatmul.mubr.bf16.gmra.mxu0 %v2867_v19 }
 0x104   :  { %v2274_v46 = vpop.f32.mrf.mxu1  ;;  %2697 = vmatmul.mubr.msk.bf16.gmra.mxu1 %vm447_vm1, %v2870_v30  ;;  %1745 = vmatprep.mubr.bf16.mxu0 %v2139_v23 }
 0x105   :  { %v2229_v48 = vpop.f32.mrf.mxu0  ;;  %2700 = vmatprep.mubr.msk.bf16.mxu1 %vm2875_vm0, %v2874_v34  ;;  %v597_v49 = vadd.f32 %v2273_v40, %v2227_v27 }
 0x106   :  { %v2230_v31 = vadd.f32 %v2229_v48, %v2228_v45  ;;  %v2275_v50 = vpop.f32.mrf.mxu1 }
 0x107   :  { %v2276_v51 = vadd.f32 %v2275_v50, %v2274_v46  ;;  %v2231_v53 = vpop.f32.mrf.mxu0 }
 0x108   :  { %v2277_v55 = vpop.f32.mrf.mxu1 }
 0x109   :  { %v2232_v57 = vpop.f32.mrf.mxu0  ;;  %v602_v58 = vadd.f32 %v2276_v51, %v2230_v31 }
 0x10a   :  { %v2278_v60 = vpop.f32.mrf.mxu1 }
 0x10b   :  { %v641_v61 = vpop.f32.mrf.mxu0  ;;  %1746 = vmatmul.mubr.bf16.gmra.mxu0 %v2138_v54 }
 0x10c   :  { %v3584_v62 = vadd.f32 %v641_v61, %v3529_v52  ;;  %v2305_v34 = vpop.f32.mrf.mxu1  ;;  %2701 = vmatmul.mubr.msk.bf16.gmra.mxu1 %vm447_vm1, %v2873_v56 }
 0x10d   :  { %v2602_v63 = vpop.f32.mrf.mxu0 }
 0x10e   :  { %v2306_v32 = vpop.f32.mrf.mxu1 }
 0x10f   :  { %v2307_v33 = vadd.f32 %v2306_v32, %v2305_v34  ;;  %v644_v35 = vpop.f32.mrf.mxu0 }
 0x110   :  { %v3588_v36 = vadd.f32 %v644_v35, %v3534_v59  ;;  %v2308_v38 = vpop.f32.mrf.mxu1 }
 0x111   :  { %v2603_v39 = vpop.f32.mrf.mxu0 }
 0x112   :  { %v2309_v41 = vpop.f32.mrf.mxu1 }
 0x113   :  { %v2310_v42 = vadd.f32 %v2309_v41, %v2308_v38  ;;  %v649_v2 = vpop.f32.mrf.mxu0 }
 0x114   :  { %v3591_v4 = vadd.f32 %v649_v2, %v3545_v0  ;;  %v2311_v52 = vpop.f32.mrf.mxu1 }
 0x115   :  { %v2606_v6 = vpop.f32.mrf.mxu0 }
 0x116   :  { %v2312_v10 = vpop.f32.mrf.mxu1 }
 0x117   :  { %v2313_v12 = vadd.f32 %v2312_v10, %v2311_v52  ;;  %v652_v43 = vpop.f32.mrf.mxu0 }
 0x118   :  { %v3594_v1 = vadd.f32 %v652_v43, %v3550_v8  ;;  %v2314_v14 = vpop.f32.mrf.mxu1 }
 0x119   :  { %v2607_v16 = vpop.f32.mrf.mxu0 }
 0x11a   :  { %v2315_v59 = vpop.f32.mrf.mxu1 }
 0x11b   :  { %v3596_v44 = vadd.f32 %v2315_v59, %v2314_v14  ;;  %v657_v18 = vpop.f32.mrf.mxu0 }
 0x11c   :  { %v3599_v20 = vadd.f32 %v657_v18, %v3561_v47  ;;  %v2317_v22 = vpop.f32.mrf.mxu1 }
 0x11d   :  { %v2610_v0 = vpop.f32.mrf.mxu0 }
 0x11e   :  { %v2318_v24 = vpop.f32.mrf.mxu1 }
 0x11f   :  { %v3601_v26 = vadd.f32 %v2318_v24, %v2317_v22  ;;  %v660_v28 = vpop.f32.mrf.mxu0 }
 0x120   :  { %v3604_v3 = vadd.f32 %v660_v28, %v3569_v9  ;;  %v2320_v8 = vpop.f32.mrf.mxu1 }
 0x121   :  { %v2611_v5 = vpop.f32.mrf.mxu0 }
 0x122   :  { %v2321_v7 = vpop.f32.mrf.mxu1 }
 0x123   :  { %v3606_v11 = vadd.f32 %v2321_v7, %v2320_v8  ;;  %v665_v13 = vpop.f32.mrf.mxu0 }
 0x124   :  { %v3608_v15 = vadd.f32 %v665_v13, %v594_v37  ;;  %v2323_v17 = vpop.f32.mrf.mxu1 }
 0x125   :  { %v2614_v47 = vpop.f32.mrf.mxu0 }
 0x126   :  { %v2324_v19 = vpop.f32.mrf.mxu1 }
 0x127   :  { %v3610_v21 = vadd.f32 %v2324_v19, %v2323_v17  ;;  %v668_v30 = vpop.f32.mrf.mxu0 }
 0x128   :  { %v3612_v23 = vadd.f32 %v668_v30, %v597_v49  ;;  %v2326_v25 = vpop.f32.mrf.mxu1 }
 0x129   :  { %v2615_v27 = vpop.f32.mrf.mxu0 }
 0x12a   :  { %v2327_v9 = vpop.f32.mrf.mxu1 }
 0x12b   :  { %v3614_v29 = vadd.f32 %v2327_v9, %v2326_v25  ;;  %v673_v40 = vpop.f32.mrf.mxu0 }
 0x12c   :  { %v3616_v45 = vadd.f32 %v673_v40, %v602_v58  ;;  %v2329_v46 = vpop.f32.mrf.mxu1 }
 0x12d   :  { %v2618_v48 = vpop.f32.mrf.mxu0 }
 0x12e   :  { %v2330_v37 = vpop.f32.mrf.mxu1 }
 0x12f   :  { %v3618_v31 = vadd.f32 %v2330_v37, %v2329_v46  ;;  %v676_v50 = vpop.f32.mrf.mxu0 }
 0x130   :  { %v2332_v51 = vpop.f32.mrf.mxu1 }
 0x131   :  { %v2619_v53 = vpop.f32.mrf.mxu0 }
 0x132   :  { %v2333_v54 = vpop.f32.mrf.mxu1 }
 0x133   :  { %v2351_v55 = vpop.f32.mrf.mxu0 }
 0x134   :  { %v1017_v49 = vpop.f32.mrf.mxu1 }
 0x135   :  { %v2352_v56 = vpop.f32.mrf.mxu0 }
 0x136   :  { %v2353_v57 = vadd.f32 %v2352_v56, %v2351_v55  ;;  %v2630_v60 = vpop.f32.mrf.mxu1 }
 0x137   :  { %v2354_v61 = vpop.f32.mrf.mxu0 }
 0x138   :  { %v946_v34 = vadd.f32 %v2353_v57, %v2307_v33  ;;  %v1020_v63 = vpop.f32.mrf.mxu1 }
 0x139   :  { %v2355_v32 = vpop.f32.mrf.mxu0 }
 0x13a   :  { %v3620_v58 = vadd.f32 %v1017_v49, %v946_v34  ;;  %v2356_v35 = vadd.f32 %v2355_v32, %v2354_v61  ;;  %v2631_v38 = vpop.f32.mrf.mxu1 }
 0x13b   :  { %v2357_v39 = vpop.f32.mrf.mxu0 }
 0x13c   :  { %v949_v41 = vadd.f32 %v2356_v35, %v2310_v42  ;;  %v1025_v2 = vpop.f32.mrf.mxu1  ;;  %v1055_v52 = vmax.f32 %v3584_v62, %v3620_v58 }
 0x13d   :  { %v2358_v6 = vpop.f32.mrf.mxu0 }
 0x13e   :  { %v3624_v10 = vadd.f32 %v1020_v63, %v949_v41  ;;  %v2359_v43 = vadd.f32 %v2358_v6, %v2357_v39  ;;  %v2634_v14 = vpop.f32.mrf.mxu1 }
 0x13f   :  { %v2360_v16 = vpop.f32.mrf.mxu0 }
 0x140   :  { %v954_v59 = vadd.f32 %v2359_v43, %v2313_v12  ;;  %v1028_v33 = vpop.f32.mrf.mxu1  ;;  %v1056_v18 = vmax.f32 %v3588_v36, %v3624_v10 }
 0x141   :  { %v2361_v22 = vpop.f32.mrf.mxu0 }
 0x142   :  { %v3628_v0 = vadd.f32 %v1025_v2, %v954_v59  ;;  %v2362_v24 = vadd.f32 %v2361_v22, %v2360_v16  ;;  %v2635_v42 = vpop.f32.mrf.mxu1 }
 0x143   :  { %v2363_v28 = vpop.f32.mrf.mxu0 }
 0x144   :  { %v957_v8 = vadd.f32 %v2362_v24, %v3596_v44  ;;  %v1033_v5 = vpop.f32.mrf.mxu1  ;;  %v1057_v7 = vmax.f32 %v3591_v4, %v3628_v0 }
 0x145   :  { %v2364_v13 = vpop.f32.mrf.mxu0 }
 0x146   :  { %v3633_v17 = vadd.f32 %v1028_v33, %v957_v8  ;;  %v2365_v12 = vadd.f32 %v2364_v13, %v2363_v28  ;;  %v2638_v47 = vpop.f32.mrf.mxu1 }
 0x147   :  { %v2366_v19 = vpop.f32.mrf.mxu0 }
 0x148   :  { %v962_v30 = vadd.f32 %v2365_v12, %v3601_v26  ;;  %v1036_v25 = vpop.f32.mrf.mxu1  ;;  %v1058_v27 = vmax.f32 %v3594_v1, %v3633_v17 }
 0x149   :  { %v2367_v9 = vpop.f32.mrf.mxu0 }
 0x14a   :  { %v3638_v40 = vadd.f32 %v1033_v5, %v962_v30  ;;  %v2368_v44 = vadd.f32 %v2367_v9, %v2366_v19  ;;  %v2639_v46 = vpop.f32.mrf.mxu1 }
 0x14b   :  { %v2369_v48 = vpop.f32.mrf.mxu0 }
 0x14c   :  { %v965_v37 = vadd.f32 %v2368_v44, %v3606_v11  ;;  %v1041_v50 = vpop.f32.mrf.mxu1  ;;  %v1059_v51 = vmax.f32 %v3599_v20, %v3638_v40 }
 0x14d   :  { %v2370_v53 = vpop.f32.mrf.mxu0 }
 0x14e   :  { %v3643_v54 = vadd.f32 %v1036_v25, %v965_v37  ;;  %v2371_v26 = vadd.f32 %v2370_v53, %v2369_v48  ;;  %v2642_v55 = vpop.f32.mrf.mxu1 }
 0x14f   :  { %v2372_v49 = vpop.f32.mrf.mxu0 }
 0x150   :  { %v970_v56 = vadd.f32 %v2371_v26, %v3610_v21  ;;  %v1044_v57 = vpop.f32.mrf.mxu1  ;;  %v1060_v60 = vmax.f32 %v3604_v3, %v3643_v54 }
 0x151   :  { %v2373_v61 = vpop.f32.mrf.mxu0 }
 0x152   :  { %v3648_v34 = vadd.f32 %v1041_v50, %v970_v56  ;;  %v2374_v11 = vadd.f32 %v2373_v61, %v2372_v49  ;;  %v2643_v63 = vpop.f32.mrf.mxu1 }
 0x153   :  { %v2375_v32 = vpop.f32.mrf.mxu0 }
 0x154   :  { %v973_v35 = vadd.f32 %v2374_v11, %v3614_v29  ;;  %v1049_v38 = vpop.f32.mrf.mxu1  ;;  %v1061_v39 = vmax.f32 %v3608_v15, %v3648_v34 }
 0x155   :  { %v2376_v41 = vpop.f32.mrf.mxu0 }
 0x156   :  { %v3653_v2 = vadd.f32 %v1044_v57, %v973_v35  ;;  %v2377_v21 = vadd.f32 %v2376_v41, %v2375_v32  ;;  %v2646_v6 = vpop.f32.mrf.mxu1 }
 0x157   :  { %v2378_v43 = vpop.f32.mrf.mxu0 }
 0x158   :  { %v978_v14 = vadd.f32 %v2377_v21, %v3618_v31  ;;  %v1052_v16 = vpop.f32.mrf.mxu1  ;;  %v1062_v59 = vmax.f32 %v3612_v23, %v3653_v2 }
 0x159   :  { %v2379_v33 = vpop.f32.mrf.mxu0 }
 0x15a   :  { %v3658_v22 = vadd.f32 %v1049_v38, %v978_v14  ;;  %v2647_v29 = vpop.f32.mrf.mxu1 }
 0x15b   :  { %v2406_v24 = vpop.f32.mrf.mxu0 }
 0x15c   :  { %v2452_v42 = vpop.f32.mrf.mxu1  ;;  %v1063_v28 = vmax.f32 %v3616_v45, %v3658_v22 }
 0x15d   :  { %v2407_v8 = vpop.f32.mrf.mxu0 }
 0x15e   :  { %v2408_v5 = vadd.f32 %v2407_v8, %v2406_v24  ;;  %v2453_v13 = vpop.f32.mrf.mxu1 }
 0x15f   :  { %v2454_v12 = vadd.f32 %v2453_v13, %v2452_v42  ;;  %v2409_v47 = vpop.f32.mrf.mxu0 }
 0x160   :  { %v2455_v19 = vpop.f32.mrf.mxu1 }
 0x161   :  { %v2410_v31 = vpop.f32.mrf.mxu0  ;;  %v1331_v30 = vadd.f32 %v2454_v12, %v2408_v5 }
 0x162   :  { %v2411_v25 = vadd.f32 %v2410_v31, %v2409_v47  ;;  %v2456_v9 = vpop.f32.mrf.mxu1 }
 0x163   :  { %v2457_v44 = vadd.f32 %v2456_v9, %v2455_v19  ;;  %v2412_v46 = vpop.f32.mrf.mxu0 }
 0x164   :  { %v2458_v48 = vpop.f32.mrf.mxu1 }
 0x165   :  { %v2413_v37 = vpop.f32.mrf.mxu0  ;;  %v1334_v50 = vadd.f32 %v2457_v44, %v2411_v25 }
 0x166   :  { %v2414_v53 = vadd.f32 %v2413_v37, %v2412_v46  ;;  %v2459_v26 = vpop.f32.mrf.mxu1 }
 0x167   :  { %v2460_v55 = vadd.f32 %v2459_v26, %v2458_v48  ;;  %v2415_v49 = vpop.f32.mrf.mxu0 }
 0x168   :  { %v2461_v56 = vpop.f32.mrf.mxu1 }
 0x169   :  { %v2416_v57 = vpop.f32.mrf.mxu0  ;;  %v1339_v61 = vadd.f32 %v2460_v55, %v2414_v53 }
 0x16a   :  { %v2417_v11 = vadd.f32 %v2416_v57, %v2415_v49  ;;  %v2462_v63 = vpop.f32.mrf.mxu1 }
 0x16b   :  { %v2463_v32 = vadd.f32 %v2462_v63, %v2461_v56  ;;  %v2418_v35 = vpop.f32.mrf.mxu0 }
 0x16c   :  { %v2464_v38 = vpop.f32.mrf.mxu1 }
 0x16d   :  { %v2419_v41 = vpop.f32.mrf.mxu0  ;;  %v1342_v21 = vadd.f32 %v2463_v32, %v2417_v11 }
 0x16e   :  { %v2420_v6 = vadd.f32 %v2419_v41, %v2418_v35  ;;  %v2465_v43 = vpop.f32.mrf.mxu1 }
 0x16f   :  { %v2466_v14 = vadd.f32 %v2465_v43, %v2464_v38  ;;  %v2421_v16 = vpop.f32.mrf.mxu0 }
 0x170   :  { %v2467_v33 = vpop.f32.mrf.mxu1 }
 0x171   :  { %v2422_v29 = vpop.f32.mrf.mxu0  ;;  %v1347_v24 = vadd.f32 %v2466_v14, %v2420_v6 }
 0x172   :  { %v2423_v42 = vadd.f32 %v2422_v29, %v2421_v16  ;;  %v2468_v8 = vpop.f32.mrf.mxu1 }
 0x173   :  { %v2469_v5 = vadd.f32 %v2468_v8, %v2467_v33  ;;  %v2424_v13 = vpop.f32.mrf.mxu0 }
 0x174   :  { %v2470_v12 = vpop.f32.mrf.mxu1 }
 0x175   :  { %v2425_v47 = vpop.f32.mrf.mxu0  ;;  %v1350_v19 = vadd.f32 %v2469_v5, %v2423_v42 }
 0x176   :  { %v2426_v31 = vadd.f32 %v2425_v47, %v2424_v13  ;;  %v2471_v25 = vpop.f32.mrf.mxu1 }
 0x177   :  { %v2472_v9 = vadd.f32 %v2471_v25, %v2470_v12  ;;  %v2427_v44 = vpop.f32.mrf.mxu0 }
 0x178   :  { %v2473_v46 = vpop.f32.mrf.mxu1 }
 0x179   :  { %v2428_v48 = vpop.f32.mrf.mxu0  ;;  %v1355_v37 = vadd.f32 %v2472_v9, %v2426_v31 }
 0x17a   :  { %v2429_v53 = vadd.f32 %v2428_v48, %v2427_v44  ;;  %v2474_v26 = vpop.f32.mrf.mxu1 }
 0x17b   :  { %v2475_v55 = vadd.f32 %v2474_v26, %v2473_v46  ;;  %v2430_v49 = vpop.f32.mrf.mxu0 }
 0x17c   :  { %v2476_v56 = vpop.f32.mrf.mxu1 }
 0x17d   :  { %v2431_v57 = vpop.f32.mrf.mxu0  ;;  %v1358_v11 = vadd.f32 %v2475_v55, %v2429_v53 }
 0x17e   :  { %v2432_v63 = vadd.f32 %v2431_v57, %v2430_v49  ;;  %v2477_v32 = vpop.f32.mrf.mxu1 }
 0x17f   :  { %v2478_v35 = vadd.f32 %v2477_v32, %v2476_v56  ;;  %v2433_v38 = vpop.f32.mrf.mxu0 }
 0x180   :  { %v2479_v41 = vpop.f32.mrf.mxu1 }
 0x181   :  { %v2434_v6 = vpop.f32.mrf.mxu0  ;;  %v1363_v43 = vadd.f32 %v2478_v35, %v2432_v63 }
 0x182   :  { %v2480_v14 = vpop.f32.mrf.mxu1 }
 0x183   :  { %v1402_v16 = vpop.f32.mrf.mxu0 }
 0x184   :  { %v1403_v33 = vadd.f32 %v1402_v16, %v1331_v30  ;;  %v2507_v29 = vpop.f32.mrf.mxu1 }
 0x185   :  { %v2658_v42 = vpop.f32.mrf.mxu0 }
 0x186   :  { %v3665_v8 = vmax.f32 %v1055_v52, %v1403_v33  ;;  %v2508_v5 = vpop.f32.mrf.mxu1 }
 0x187   :  { %v1405_v13 = vpop.f32.mrf.mxu0  ;;  %v2509_v33 = vadd.f32 %v2508_v5, %v2507_v29 }
 0x188   :  { %v1406_v12 = vadd.f32 %v1405_v13, %v1334_v50  ;;  %v2510_v47 = vpop.f32.mrf.mxu1 }
 0x189   :  { %v2659_v31 = vpop.f32.mrf.mxu0 }
 0x18a   :  { %v3670_v25 = vmax.f32 %v1056_v18, %v1406_v12  ;;  %v2511_v9 = vpop.f32.mrf.mxu1 }
 0x18b   :  { %v1410_v44 = vpop.f32.mrf.mxu0 }
 0x18c   :  { %v1411_v30 = vadd.f32 %v1410_v44, %v1339_v61  ;;  %v3672_v46 = vpop.f32.mrf.mxu1 }
 0x18d   :  { %v2662_v48 = vpop.f32.mrf.mxu0 }
 0x18e   :  { %v3677_v62 = vmax.f32 %v1057_v7, %v1411_v30  ;;  %v2514_v58 = vpop.f32.mrf.mxu1  ;;  %v2512_v30 = vadd.f32 %v2511_v9, %v2510_v47 }
 0x18f   :  { %v1413_v52 = vpop.f32.mrf.mxu0  ;;  %v2515_v5 = vadd.f32 %v2514_v58, %v3672_v46 }
 0x190   :  { %v1414_v50 = vadd.f32 %v1413_v52, %v1342_v21  ;;  %v3679_v53 = vpop.f32.mrf.mxu1 }
 0x191   :  { %v2663_v26 = vpop.f32.mrf.mxu0 }
 0x192   :  { %v3684_v36 = vmax.f32 %v1058_v27, %v1414_v50  ;;  %v3686_v10 = vpop.f32.mrf.mxu1 }
 0x193   :  { %v1418_v18 = vpop.f32.mrf.mxu0 }
 0x194   :  { %v1419_v61 = vadd.f32 %v1418_v18, %v1347_v24  ;;  %v3688_v55 = vpop.f32.mrf.mxu1  ;;  %v3737_v18 = vld [vmem:[%s3786_s2] ss:$0 sm:$0xff] }
 0x195   :  { %v2666_v4 = vpop.f32.mrf.mxu0 }
 0x196   :  { %v3693_v0 = vmax.f32 %v1059_v51, %v1419_v61  ;;  %v3695_v7 = vpop.f32.mrf.mxu1 }
 0x197   :  { %v1421_v21 = vpop.f32.mrf.mxu0 }
 0x198   :  { %v1422_v49 = vadd.f32 %v1421_v21, %v1350_v19  ;;  %v3697_v56 = vpop.f32.mrf.mxu1 }
 0x199   :  { %v2667_v1 = vpop.f32.mrf.mxu0 }
 0x19a   :  { %v3702_v17 = vmax.f32 %v1060_v60, %v1422_v49  ;;  %v3704_v27 = vpop.f32.mrf.mxu1 }
 0x19b   :  { %v1426_v24 = vpop.f32.mrf.mxu0 }
 0x19c   :  { %v1427_v57 = vadd.f32 %v1426_v24, %v1355_v37  ;;  %v3706_v63 = vpop.f32.mrf.mxu1 }
 0x19d   :  { %v2670_v20 = vpop.f32.mrf.mxu0 }
 0x19e   :  { %v3711_v40 = vmax.f32 %v1061_v39, %v1427_v57  ;;  %v3713_v51 = vpop.f32.mrf.mxu1  ;;  %v2518_v57 = vadd.f32 %v3686_v10, %v3679_v53 }
 0x19f   :  { %v1429_v19 = vpop.f32.mrf.mxu0 }
 0x1a0   :  { %v1430_v32 = vadd.f32 %v1429_v19, %v1358_v11  ;;  %v3715_v35 = vpop.f32.mrf.mxu1 }
 0x1a1   :  { %v2671_v3 = vpop.f32.mrf.mxu0 }
 0x1a2   :  { %v3720_v54 = vmax.f32 %v1062_v59, %v1430_v32  ;;  %v3722_v60 = vpop.f32.mrf.mxu1 }
 0x1a3   :  { %v1434_v37 = vpop.f32.mrf.mxu0 }
 0x1a4   :  { %v1435_v38 = vadd.f32 %v1434_v37, %v1363_v43  ;;  %v3724_v41 = vpop.f32.mrf.mxu1 }
 0x1a5   :  { %v2674_v15 = vpop.f32.mrf.mxu0 }
 0x1a6   :  { %v3729_v34 = vmax.f32 %v1063_v28, %v1435_v38  ;;  %v3731_v39 = vpop.f32.mrf.mxu1 }
 0x1a7   :  { %v1437_v11 = vpop.f32.mrf.mxu0 }
 0x1a8   :  { %v2534_v6 = vpop.f32.mrf.mxu1 }
 0x1a9   :  { %v2675_v14 = vpop.f32.mrf.mxu0 }
 0x1aa   :  { %v2535_v23 = vpop.f32.mrf.mxu1 }
 0x1ab   :  { %v2553_v2 = vpop.f32.mrf.mxu0 }
 0x1ac   :  { %v1787_v59 = vpop.f32.mrf.mxu1 }
 0x1ad   :  { %v2554_v16 = vpop.f32.mrf.mxu0 }
 0x1ae   :  { %v2555_v42 = vadd.f32 %v2554_v16, %v2553_v2  ;;  %v2686_v43 = vpop.f32.mrf.mxu1 }
 0x1af   :  { %v2556_v13 = vpop.f32.mrf.mxu0  ;;  %v2524_v43 = vadd.f32 %v3704_v27, %v3697_v56 }
 0x1b0   :  { %v1716_v12 = vadd.f32 %v2555_v42, %v2509_v33  ;;  %v1790_v31 = vpop.f32.mrf.mxu1 }
 0x1b1   :  { %v2557_v44 = vpop.f32.mrf.mxu0 }
 0x1b2   :  { %v1788_v45 = vadd.f32 %v1787_v59, %v1716_v12  ;;  %v2558_v22 = vadd.f32 %v2557_v44, %v2556_v13  ;;  %v2687_v28 = vpop.f32.mrf.mxu1 }
 0x1b3   :  { %v2559_v48 = vpop.f32.mrf.mxu0 }
 0x1b4   :  { %v1825_v52 = vmax.f32 %v3665_v8, %v1788_v45  ;;  %v1719_v50 = vadd.f32 %v2558_v22, %v2512_v30  ;;  %v1795_v26 = vpop.f32.mrf.mxu1 }
 0x1b5   :  { %v2560_v29 = vpop.f32.mrf.mxu0 }
 0x1b6   :  { %v1791_v61 = vadd.f32 %v1790_v31, %v1719_v50  ;;  %v2561_v4 = vadd.f32 %v2560_v29, %v2559_v48  ;;  %v2690_v21 = vpop.f32.mrf.mxu1  ;;  %v1841_v9 = vadd.f32 %v3737_v18, %v1825_v52 }
 0x1b7   :  { %v2562_v47 = vpop.f32.mrf.mxu0  ;;  %v2530_v21 = vadd.f32 %v3722_v60, %v3715_v35 }
 0x1b8   :  { %v1826_v49 = vmax.f32 %v3670_v25, %v1791_v61  ;;  %v1724_v1 = vadd.f32 %v2561_v4, %v2515_v5  ;;  %v1798_v8 = vpop.f32.mrf.mxu1  ;;  %v1850_v58 = vmax.f32 %v1841_v9, 0.0  ;;  %v2521_v25 = vadd.f32 %v3695_v7, %v3688_v55 }
 0x1b9   :  { %v2563_v24 = vpop.f32.mrf.mxu0 }
 0x1ba   :  { %v1842_v20 = vadd.f32 %v3737_v18, %v1826_v49  ;;  %v1796_v19 = vadd.f32 %v1795_v26, %v1724_v1  ;;  %v2564_v32 = vadd.f32 %v2563_v24, %v2562_v47  ;;  %v2691_v3 = vpop.f32.mrf.mxu1 }
 0x1bb   :  { %v2565_v46 = vpop.f32.mrf.mxu0 }
 0x1bc   :  { %v1851_v37 = vmax.f32 %v1842_v20, 0.0  ;;  %v1827_v38 = vmax.f32 %v3677_v62, %v1796_v19  ;;  %v1727_v15 = vadd.f32 %v2564_v32, %v2518_v57  ;;  %v1803_v11 = vpop.f32.mrf.mxu1 }
 0x1bd   :  { %v2566_v6 = vpop.f32.mrf.mxu0 }
 0x1be   :  { %v2168_v14 = vpack.c.bf16 %v1851_v37, %v1850_v58  ;;  %v1799_v23 = vadd.f32 %v1798_v8, %v1727_v15  ;;  %v2567_v2 = vadd.f32 %v2566_v6, %v2565_v46  ;;  %v2694_v53 = vpop.f32.mrf.mxu1  ;;  %v1843_v59 = vadd.f32 %v3737_v18, %v1827_v38 }
 0x1bf   :  { %v2568_v10 = vpop.f32.mrf.mxu0 }
 0x1c0   :  { %2169 = vst [vmem:[%s3787_s3] sm:$0xff] %v2168_v14   ;;  %v1828_v16 = vmax.f32 %v3684_v36, %v1799_v23  ;;  %v1732_v62 = vadd.f32 %v2567_v2, %v2521_v25  ;;  %v1806_v33 = vpop.f32.mrf.mxu1  ;;  %v1852_v44 = vmax.f32 %v1843_v59, 0.0  ;;  %v2527_v36 = vadd.f32 %v3713_v51, %v3706_v63 }
 0x1c1   :  { %v2569_v42 = vpop.f32.mrf.mxu0 }
 0x1c2   :  { %v1844_v55 = vadd.f32 %v3737_v18, %v1828_v16  ;;  %v1804_v7 = vadd.f32 %v1803_v11, %v1732_v62  ;;  %v2570_v13 = vadd.f32 %v2569_v42, %v2568_v10  ;;  %v2695_v12 = vpop.f32.mrf.mxu1 }
 0x1c3   :  { %v2571_v31 = vpop.f32.mrf.mxu0 }
 0x1c4   :  { %v1853_v30 = vmax.f32 %v1844_v55, 0.0  ;;  %v1829_v45 = vmax.f32 %v3693_v0, %v1804_v7  ;;  %v1735_v22 = vadd.f32 %v2570_v13, %v2524_v43  ;;  %v1811_v28 = vpop.f32.mrf.mxu1 }
 0x1c5   :  { %v2572_v48 = vpop.f32.mrf.mxu0 }
 0x1c6   :  { %v2173_v52 = vpack.c.bf16 %v1853_v30, %v1852_v44  ;;  %v1807_v50 = vadd.f32 %v1806_v33, %v1735_v22  ;;  %v2573_v26 = vadd.f32 %v2572_v48, %v2571_v31  ;;  %v2698_v56 = vpop.f32.mrf.mxu1  ;;  %v1845_v29 = vadd.f32 %v3737_v18, %v1829_v45 }
 0x1c7   :  { %v2574_v27 = vpop.f32.mrf.mxu0 }
 0x1c8   :  { %2185 = vst [vmem:[%s3787_s3 + $0x8] sm:$0xff] %v2173_v52   ;;  %v1830_v5 = vmax.f32 %v3702_v17, %v1807_v50  ;;  %v1740_v0 = vadd.f32 %v2573_v26, %v2527_v36  ;;  %v1814_v61 = vpop.f32.mrf.mxu1  ;;  %v1854_v1 = vmax.f32 %v1845_v29, 0.0  ;;  %v2533_v17 = vadd.f32 %v3731_v39, %v3724_v41 }
 0x1c9   :  { %v2575_v4 = vpop.f32.mrf.mxu0 }
 0x1ca   :  { %v1846_v63 = vadd.f32 %v3737_v18, %v1830_v5  ;;  %v1812_v51 = vadd.f32 %v1811_v28, %v1740_v0  ;;  %v2576_v47 = vadd.f32 %v2575_v4, %v2574_v27  ;;  %v2699_v9 = vpop.f32.mrf.mxu1 }
 0x1cb   :  { %v2577_v49 = vpop.f32.mrf.mxu0 }
 0x1cc   :  { %v1855_v8 = vmax.f32 %v1846_v63, 0.0  ;;  %v1831_v24 = vmax.f32 %v3711_v40, %v1812_v51  ;;  %v1743_v57 = vadd.f32 %v2576_v47, %v2530_v21  ;;  %v1819_v20 = vpop.f32.mrf.mxu1 }
 0x1cd   :  { %v2578_v19 = vpop.f32.mrf.mxu0 }
 0x1ce   :  { %v2178_v32 = vpack.c.bf16 %v1855_v8, %v1854_v1  ;;  %v1815_v3 = vadd.f32 %v1814_v61, %v1743_v57  ;;  %v2579_v46 = vadd.f32 %v2578_v19, %v2577_v49  ;;  %v2702_v35 = vpop.f32.mrf.mxu1  ;;  %v1847_v58 = vadd.f32 %v3737_v18, %v1831_v24 }
 0x1cf   :  { %v2580_v60 = vpop.f32.mrf.mxu0 }
 0x1d0   :  { %2186 = vst [vmem:[%s3787_s3 + $0x10] sm:$0xff] %v2178_v32   ;;  %v1832_v37 = vmax.f32 %v3720_v54, %v1815_v3  ;;  %v1748_v40 = vadd.f32 %v2579_v46, %v2533_v17  ;;  %v1822_v38 = vpop.f32.mrf.mxu1  ;;  %v1856_v39 = vmax.f32 %v1847_v58, 0.0 }
 0x1d1   :  { %v2581_v15 = vpop.f32.mrf.mxu0 }
 0x1d2   :  { %v1848_v11 = vadd.f32 %v3737_v18, %v1832_v37  ;;  %v1820_v6 = vadd.f32 %v1819_v20, %v1748_v40  ;;  %v2703_v41 = vpop.f32.mrf.mxu1 }
 0x1d4   :  { %v1857_v25 = vmax.f32 %v1848_v11, 0.0  ;;  %v1833_v14 = vmax.f32 %v3729_v34, %v1820_v6 }
 0x1d6   :  { %v2183_v23 = vpack.c.bf16 %v1857_v25, %v1856_v39  ;;  %v1849_v2 = vadd.f32 %v3737_v18, %v1833_v14 }
 0x1d8   :  { %2187 = vst [vmem:[%s3787_s3 + $0x18] sm:$0xff] %v2183_v23   ;;  %v1858_v53 = vmax.f32 %v1849_v2, 0.0 }
 0x1da   :  { %v2164_v54 = vpack.c.bf16 %v1858_v53, %v1858_v53 }
 0x1dc   :  { %1904 = vst [vmem:[%s3787_s3 + $0x20] sm:$0xf] %v2164_v54 }

</bundles_post_ra>
